<compile_context>
chip_gen: v7x
topology: tpu7x:2x2x1
jax: 0.10.0
libtpu: 0.0.40
codegen_flags: <defaults>
</compile_context>

<pallas_src>
import jax
import jax.numpy as jnp
from jax.experimental import pallas as pl
from jax.experimental.pallas import tpu as pltpu


def _dm_kernel(doc_ids_ref, ctx_ids_ref, tgt_ids_ref,     # SMEM (scalar prefetch)
               d_hbm, w_hbm, ot_hbm,                      # HBM  (pl.ANY)
               out_ref,                                   # VMEM (TB, N)
               d_buf, w_buf, ot_buf, sem):                # scratch
    t = pl.program_id(0)
    tb, cw, v = w_buf.shape
    nn = ot_buf.shape[1]

    # ---- issue all row-gather DMAs for this batch tile (HBM -> VMEM) ----
    # Each copy moves one (1, V) f32 row; all copies share a single DMA
    # semaphore (identical byte counts), so starts and waits can be decoupled
    # and the row fetches overlap each other.
    for i in range(tb):
        b = t * tb + i
        pltpu.make_async_copy(
            d_hbm.at[pl.ds(doc_ids_ref[b], 1), :],
            d_buf.at[pl.ds(i, 1), :], sem).start()
        for c in range(cw):
            pltpu.make_async_copy(
                w_hbm.at[pl.ds(ctx_ids_ref[b, c], 1), :],
                w_buf.at[i, pl.ds(c, 1), :], sem).start()
        for n in range(nn):
            pltpu.make_async_copy(
                ot_hbm.at[pl.ds(tgt_ids_ref[b, n], 1), :],
                ot_buf.at[i, pl.ds(n, 1), :], sem).start()

    # ---- wait for every row copy (same (1, V) byte count per copy) ----
    for i in range(tb):
        pltpu.make_async_copy(
            d_hbm.at[pl.ds(0, 1), :], d_buf.at[pl.ds(i, 1), :], sem).wait()
        for c in range(cw):
            pltpu.make_async_copy(
                w_hbm.at[pl.ds(0, 1), :], w_buf.at[i, pl.ds(c, 1), :], sem).wait()
        for n in range(nn):
            pltpu.make_async_copy(
                ot_hbm.at[pl.ds(0, 1), :], ot_buf.at[i, pl.ds(n, 1), :], sem).wait()

    # ---- compute ----
    # x[i, :] = D[doc_ids[b]] + sum_c W[context_ids[b, c]]   (VPU adds, V on lanes)
    x = d_buf[...] + jnp.sum(w_buf[...], axis=1)                       # (TB, V)

    # scores[i, n] = <x[i, :], O^T[target_noise_ids[b, n], :]>
    # Batched (1,V) x (N,V)^T contraction over the lane axis (dot_general /
    # MXU-routable).  TODO(synk): at production sizes cast x / ot_buf to bf16
    # here (keep preferred_element_type=f32) to use the bf16 MXU on v6e/v7x.
    scores = jnp.einsum("bqv,bnv->bqn", x[:, None, :], ot_buf[...],
                        preferred_element_type=jnp.float32)            # (TB,1,N)
    # Output is tiny (TB*N*4 bytes per step); the masked narrow-lane store is
    # negligible relative to the gather traffic.  At larger N, pad N to 128.
    out_ref[...] = scores[:, 0, :]


def dm_forward(D, W, O, context_ids, doc_ids, target_noise_ids, *, batch_tile=8):
    """Pallas implementation of DM.forward with in-kernel embedding gathers."""
    B, C = context_ids.shape
    N = target_noise_ids.shape[1]
    V = D.shape[1]
    if B % batch_tile != 0:
        # TODO(synk): pad / mask a ragged final batch tile instead of erroring.
        raise ValueError(f"batch {B} must be a multiple of batch_tile {batch_tile}")

    # One-time, batch-independent parameter prep: O^T (num_words, V) so that
    # gathered output rows are lane-dense.  (In training you would keep O^T
    # resident instead of transposing per call.)
    OT = jnp.transpose(O)

    grid_spec = pltpu.PrefetchScalarGridSpec(
        num_scalar_prefetch=3,                              # doc / ctx / target ids -> SMEM
        grid=(B // batch_tile,),
        in_specs=[pl.BlockSpec(memory_space=pl.ANY)] * 3,   # D, W, O^T stay in HBM
        out_specs=pl.BlockSpec((batch_tile, N), lambda t, *_: (t, 0)),
        scratch_shapes=[
            pltpu.VMEM((batch_tile, V), jnp.float32),        # gathered D rows
            pltpu.VMEM((batch_tile, C, V), jnp.float32),     # gathered W rows
            pltpu.VMEM((batch_tile, N, V), jnp.float32),     # gathered O^T rows
            pltpu.SemaphoreType.DMA,
        ],
    )

    return pl.pallas_call(
        _dm_kernel,
        out_shape=jax.ShapeDtypeStruct((B, N), jnp.float32),
        grid_spec=grid_spec,
        compiler_params=pltpu.CompilerParams(
            dimension_semantics=("parallel",),               # batch tiles are independent
            # Tiny footprint here (<1 MiB of scratch); 16 MiB fits the scoped
            # VMEM budget on v5e and leaves headroom on v6e / v7x.
            vmem_limit_bytes=16 * 1024 * 1024,
        ),
    )(doc_ids.astype(jnp.int32),
      context_ids.astype(jnp.int32),
      target_noise_ids.astype(jnp.int32),
      D.astype(jnp.float32), W.astype(jnp.float32), OT.astype(jnp.float32))


def dm_reference(D, W, O, context_ids, doc_ids, target_noise_ids):
    """Pure-JAX reference mirroring the PyTorch forward."""
    x = D[doc_ids, :] + jnp.sum(W[context_ids, :], axis=1)            # (B, V)
    return jnp.einsum("bv,vbn->bn", x, O[:, target_noise_ids])        # (B, N)


if __name__ == "__main__":
    # Small but TPU-friendly shapes implied by the forward:
    vec_dim = 128            # V (lane-dense)
    num_docs = 64
    num_words = 256
    batch = 16               # B (two grid steps of 8)
    num_context_words = 4    # C
    num_noise_plus_1 = 8     # N

    key = jax.random.PRNGKey(0)
    kD, kW, kO, kc, kd, kt = jax.random.split(key, 6)

    # torch __init__ uses randn for D/W and zeros for O; O is randomized here
    # so the kernel result is non-trivially testable.
    D = jax.random.normal(kD, (num_docs, vec_dim), dtype=jnp.float32)
    W = jax.random.normal(kW, (num_words, vec_dim), dtype=jnp.float32)
    O = jax.random.normal(kO, (vec_dim, num_words), dtype=jnp.float32)

    context_ids = jax.random.randint(kc, (batch, num_context_words), 0, num_words)
    doc_ids = jax.random.randint(kd, (batch,), 0, num_docs)
    target_noise_ids = jax.random.randint(kt, (batch, num_noise_plus_1), 0, num_words)

    out = dm_forward(D, W, O, context_ids, doc_ids, target_noise_ids)
    out = jax.block_until_ready(out)

    ref = dm_reference(D, W, O, context_ids, doc_ids, target_noise_ids)
    assert out.shape == (batch, num_noise_plus_1)
    assert jnp.allclose(out, ref, atol=1e-3, rtol=1e-3), (out, ref)

    print("KERNEL_OK")
</pallas_src>

<mosaic_0001>
module attributes {stable_mosaic.version = 11 : i64} {
  func.func @_dm_kernel(%arg0: i32, %arg1: memref<16xi32, #tpu.memory_space<smem>>, %arg2: memref<16x4xi32, #tpu.memory_space<smem>>, %arg3: memref<16x8xi32, #tpu.memory_space<smem>>, %arg4: memref<64x128xf32, #tpu.memory_space<any>>, %arg5: memref<256x128xf32, #tpu.memory_space<any>>, %arg6: memref<256x128xf32, #tpu.memory_space<any>>, %arg7: memref<8x8xf32, #tpu.memory_space<vmem>>, %arg8: memref<8x128xf32, #tpu.memory_space<vmem>>, %arg9: memref<8x4x128xf32, #tpu.memory_space<vmem>>, %arg10: memref<8x8x128xf32, #tpu.memory_space<vmem>>, %arg11: memref<!tpu.dma_semaphore, #tpu.memory_space<semaphore_mem>>) attributes {dimension_semantics = [#tpu.dimension_semantics<parallel>], iteration_bounds = array<i64: 2>, scalar_prefetch = 3 : i64, scratch_operands = 4 : i64, tpu.core_type = #tpu.core_type<tc>, window_params = [{}, {}, {}, {transform_indices = @transform_3, window_bounds = array<i64: 8, 8>}]} {
    %c8_i32 = arith.constant 8 : i32
    %0 = arith.muli %arg0, %c8_i32 : i32
    %c0_i32 = arith.constant 0 : i32
    %1 = arith.addi %0, %c0_i32 : i32
    %2 = arith.index_cast %1 : i32 to index
    %3 = memref.load %arg1[%2] : memref<16xi32, #tpu.memory_space<smem>>
    %c0_i32_0 = arith.constant 0 : i32
    %4 = tpu.memref_slice %arg4[%3, %c0_i32_0] : memref<64x128xf32, #tpu.memory_space<any>> -> memref<1x128xf32, #tpu.memory_space<any>>
    %c0_i32_1 = arith.constant 0 : i32
    %c0_i32_2 = arith.constant 0 : i32
    %5 = tpu.memref_slice %arg8[%c0_i32_1, %c0_i32_2] : memref<8x128xf32, #tpu.memory_space<vmem>> -> memref<1x128xf32, #tpu.memory_space<vmem>>
    tpu.enqueue_dma source(%4 : memref<1x128xf32, #tpu.memory_space<any>>) target(%5 : memref<1x128xf32, #tpu.memory_space<vmem>>) target_semaphore(%arg11 : memref<!tpu.dma_semaphore, #tpu.memory_space<semaphore_mem>>)
    %6 = arith.index_cast %1 : i32 to index
    %c0 = arith.constant 0 : index
    %7 = memref.load %arg2[%6, %c0] : memref<16x4xi32, #tpu.memory_space<smem>>
    %c0_i32_3 = arith.constant 0 : i32
    %c0_i32_4 = arith.constant 0 : i32
    %8 = tpu.memref_slice %arg5[%7, %c0_i32_4] : memref<256x128xf32, #tpu.memory_space<any>> -> memref<1x128xf32, #tpu.memory_space<any>>
    %c0_i32_5 = arith.constant 0 : i32
    %c0_i32_6 = arith.constant 0 : i32
    %9 = tpu.memref_slice %arg9[%c0_i32_3, %c0_i32_5, %c0_i32_6] : memref<8x4x128xf32, #tpu.memory_space<vmem>> -> memref<1x1x128xf32, #tpu.memory_space<vmem>>
    %10 = tpu.memref_squeeze %9 : memref<1x1x128xf32, #tpu.memory_space<vmem>> -> memref<1x128xf32, #tpu.memory_space<vmem>>
    tpu.enqueue_dma source(%8 : memref<1x128xf32, #tpu.memory_space<any>>) target(%10 : memref<1x128xf32, #tpu.memory_space<vmem>>) target_semaphore(%arg11 : memref<!tpu.dma_semaphore, #tpu.memory_space<semaphore_mem>>)
    %11 = arith.index_cast %1 : i32 to index
    %c1 = arith.constant 1 : index
    %12 = memref.load %arg2[%11, %c1] : memref<16x4xi32, #tpu.memory_space<smem>>
    %c0_i32_7 = arith.constant 0 : i32
    %c0_i32_8 = arith.constant 0 : i32
    %13 = tpu.memref_slice %arg5[%12, %c0_i32_8] : memref<256x128xf32, #tpu.memory_space<any>> -> memref<1x128xf32, #tpu.memory_space<any>>
    %c1_i32 = arith.constant 1 : i32
    %c0_i32_9 = arith.constant 0 : i32
    %14 = tpu.memref_slice %arg9[%c0_i32_7, %c1_i32, %c0_i32_9] : memref<8x4x128xf32, #tpu.memory_space<vmem>> -> memref<1x1x128xf32, #tpu.memory_space<vmem>>
    %15 = tpu.memref_squeeze %14 : memref<1x1x128xf32, #tpu.memory_space<vmem>> -> memref<1x128xf32, #tpu.memory_space<vmem>>
    tpu.enqueue_dma source(%13 : memref<1x128xf32, #tpu.memory_space<any>>) target(%15 : memref<1x128xf32, #tpu.memory_space<vmem>>) target_semaphore(%arg11 : memref<!tpu.dma_semaphore, #tpu.memory_space<semaphore_mem>>)
    %16 = arith.index_cast %1 : i32 to index
    %c2 = arith.constant 2 : index
    %17 = memref.load %arg2[%16, %c2] : memref<16x4xi32, #tpu.memory_space<smem>>
    %c0_i32_10 = arith.constant 0 : i32
    %c0_i32_11 = arith.constant 0 : i32
    %18 = tpu.memref_slice %arg5[%17, %c0_i32_11] : memref<256x128xf32, #tpu.memory_space<any>> -> memref<1x128xf32, #tpu.memory_space<any>>
    %c2_i32 = arith.constant 2 : i32
    %c0_i32_12 = arith.constant 0 : i32
    %19 = tpu.memref_slice %arg9[%c0_i32_10, %c2_i32, %c0_i32_12] : memref<8x4x128xf32, #tpu.memory_space<vmem>> -> memref<1x1x128xf32, #tpu.memory_space<vmem>>
    %20 = tpu.memref_squeeze %19 : memref<1x1x128xf32, #tpu.memory_space<vmem>> -> memref<1x128xf32, #tpu.memory_space<vmem>>
    tpu.enqueue_dma source(%18 : memref<1x128xf32, #tpu.memory_space<any>>) target(%20 : memref<1x128xf32, #tpu.memory_space<vmem>>) target_semaphore(%arg11 : memref<!tpu.dma_semaphore, #tpu.memory_space<semaphore_mem>>)
    %21 = arith.index_cast %1 : i32 to index
    %c3 = arith.constant 3 : index
    %22 = memref.load %arg2[%21, %c3] : memref<16x4xi32, #tpu.memory_space<smem>>
    %c0_i32_13 = arith.constant 0 : i32
    %c0_i32_14 = arith.constant 0 : i32
    %23 = tpu.memref_slice %arg5[%22, %c0_i32_14] : memref<256x128xf32, #tpu.memory_space<any>> -> memref<1x128xf32, #tpu.memory_space<any>>
    %c3_i32 = arith.constant 3 : i32
    %c0_i32_15 = arith.constant 0 : i32
    %24 = tpu.memref_slice %arg9[%c0_i32_13, %c3_i32, %c0_i32_15] : memref<8x4x128xf32, #tpu.memory_space<vmem>> -> memref<1x1x128xf32, #tpu.memory_space<vmem>>
    %25 = tpu.memref_squeeze %24 : memref<1x1x128xf32, #tpu.memory_space<vmem>> -> memref<1x128xf32, #tpu.memory_space<vmem>>
    tpu.enqueue_dma source(%23 : memref<1x128xf32, #tpu.memory_space<any>>) target(%25 : memref<1x128xf32, #tpu.memory_space<vmem>>) target_semaphore(%arg11 : memref<!tpu.dma_semaphore, #tpu.memory_space<semaphore_mem>>)
    %26 = arith.index_cast %1 : i32 to index
    %c0_16 = arith.constant 0 : index
    %27 = memref.load %arg3[%26, %c0_16] : memref<16x8xi32, #tpu.memory_space<smem>>
    %c0_i32_17 = arith.constant 0 : i32
    %c0_i32_18 = arith.constant 0 : i32
    %28 = tpu.memref_slice %arg6[%27, %c0_i32_18] : memref<256x128xf32, #tpu.memory_space<any>> -> memref<1x128xf32, #tpu.memory_space<any>>
    %c0_i32_19 = arith.constant 0 : i32
    %c0_i32_20 = arith.constant 0 : i32
    %29 = tpu.memref_slice %arg10[%c0_i32_17, %c0_i32_19, %c0_i32_20] : memref<8x8x128xf32, #tpu.memory_space<vmem>> -> memref<1x1x128xf32, #tpu.memory_space<vmem>>
    %30 = tpu.memref_squeeze %29 : memref<1x1x128xf32, #tpu.memory_space<vmem>> -> memref<1x128xf32, #tpu.memory_space<vmem>>
    tpu.enqueue_dma source(%28 : memref<1x128xf32, #tpu.memory_space<any>>) target(%30 : memref<1x128xf32, #tpu.memory_space<vmem>>) target_semaphore(%arg11 : memref<!tpu.dma_semaphore, #tpu.memory_space<semaphore_mem>>)
    %31 = arith.index_cast %1 : i32 to index
    %c1_21 = arith.constant 1 : index
    %32 = memref.load %arg3[%31, %c1_21] : memref<16x8xi32, #tpu.memory_space<smem>>
    %c0_i32_22 = arith.constant 0 : i32
    %c0_i32_23 = arith.constant 0 : i32
    %33 = tpu.memref_slice %arg6[%32, %c0_i32_23] : memref<256x128xf32, #tpu.memory_space<any>> -> memref<1x128xf32, #tpu.memory_space<any>>
    %c1_i32_24 = arith.constant 1 : i32
    %c0_i32_25 = arith.constant 0 : i32
    %34 = tpu.memref_slice %arg10[%c0_i32_22, %c1_i32_24, %c0_i32_25] : memref<8x8x128xf32, #tpu.memory_space<vmem>> -> memref<1x1x128xf32, #tpu.memory_space<vmem>>
    %35 = tpu.memref_squeeze %34 : memref<1x1x128xf32, #tpu.memory_space<vmem>> -> memref<1x128xf32, #tpu.memory_space<vmem>>
    tpu.enqueue_dma source(%33 : memref<1x128xf32, #tpu.memory_space<any>>) target(%35 : memref<1x128xf32, #tpu.memory_space<vmem>>) target_semaphore(%arg11 : memref<!tpu.dma_semaphore, #tpu.memory_space<semaphore_mem>>)
    %36 = arith.index_cast %1 : i32 to index
    %c2_26 = arith.constant 2 : index
    %37 = memref.load %arg3[%36, %c2_26] : memref<16x8xi32, #tpu.memory_space<smem>>
    %c0_i32_27 = arith.constant 0 : i32
    %c0_i32_28 = arith.constant 0 : i32
    %38 = tpu.memref_slice %arg6[%37, %c0_i32_28] : memref<256x128xf32, #tpu.memory_space<any>> -> memref<1x128xf32, #tpu.memory_space<any>>
    %c2_i32_29 = arith.constant 2 : i32
    %c0_i32_30 = arith.constant 0 : i32
    %39 = tpu.memref_slice %arg10[%c0_i32_27, %c2_i32_29, %c0_i32_30] : memref<8x8x128xf32, #tpu.memory_space<vmem>> -> memref<1x1x128xf32, #tpu.memory_space<vmem>>
    %40 = tpu.memref_squeeze %39 : memref<1x1x128xf32, #tpu.memory_space<vmem>> -> memref<1x128xf32, #tpu.memory_space<vmem>>
    tpu.enqueue_dma source(%38 : memref<1x128xf32, #tpu.memory_space<any>>) target(%40 : memref<1x128xf32, #tpu.memory_space<vmem>>) target_semaphore(%arg11 : memref<!tpu.dma_semaphore, #tpu.memory_space<semaphore_mem>>)
    %41 = arith.index_cast %1 : i32 to index
    %c3_31 = arith.constant 3 : index
    %42 = memref.load %arg3[%41, %c3_31] : memref<16x8xi32, #tpu.memory_space<smem>>
    %c0_i32_32 = arith.constant 0 : i32
    %c0_i32_33 = arith.constant 0 : i32
    %43 = tpu.memref_slice %arg6[%42, %c0_i32_33] : memref<256x128xf32, #tpu.memory_space<any>> -> memref<1x128xf32, #tpu.memory_space<any>>
    %c3_i32_34 = arith.constant 3 : i32
    %c0_i32_35 = arith.constant 0 : i32
    %44 = tpu.memref_slice %arg10[%c0_i32_32, %c3_i32_34, %c0_i32_35] : memref<8x8x128xf32, #tpu.memory_space<vmem>> -> memref<1x1x128xf32, #tpu.memory_space<vmem>>
    %45 = tpu.memref_squeeze %44 : memref<1x1x128xf32, #tpu.memory_space<vmem>> -> memref<1x128xf32, #tpu.memory_space<vmem>>
    tpu.enqueue_dma source(%43 : memref<1x128xf32, #tpu.memory_space<any>>) target(%45 : memref<1x128xf32, #tpu.memory_space<vmem>>) target_semaphore(%arg11 : memref<!tpu.dma_semaphore, #tpu.memory_space<semaphore_mem>>)
    %46 = arith.index_cast %1 : i32 to index
    %c4 = arith.constant 4 : index
    %47 = memref.load %arg3[%46, %c4] : memref<16x8xi32, #tpu.memory_space<smem>>
    %c0_i32_36 = arith.constant 0 : i32
    %c0_i32_37 = arith.constant 0 : i32
    %48 = tpu.memref_slice %arg6[%47, %c0_i32_37] : memref<256x128xf32, #tpu.memory_space<any>> -> memref<1x128xf32, #tpu.memory_space<any>>
    %c4_i32 = arith.constant 4 : i32
    %c0_i32_38 = arith.constant 0 : i32
    %49 = tpu.memref_slice %arg10[%c0_i32_36, %c4_i32, %c0_i32_38] : memref<8x8x128xf32, #tpu.memory_space<vmem>> -> memref<1x1x128xf32, #tpu.memory_space<vmem>>
    %50 = tpu.memref_squeeze %49 : memref<1x1x128xf32, #tpu.memory_space<vmem>> -> memref<1x128xf32, #tpu.memory_space<vmem>>
    tpu.enqueue_dma source(%48 : memref<1x128xf32, #tpu.memory_space<any>>) target(%50 : memref<1x128xf32, #tpu.memory_space<vmem>>) target_semaphore(%arg11 : memref<!tpu.dma_semaphore, #tpu.memory_space<semaphore_mem>>)
    %51 = arith.index_cast %1 : i32 to index
    %c5 = arith.constant 5 : index
    %52 = memref.load %arg3[%51, %c5] : memref<16x8xi32, #tpu.memory_space<smem>>
    %c0_i32_39 = arith.constant 0 : i32
    %c0_i32_40 = arith.constant 0 : i32
    %53 = tpu.memref_slice %arg6[%52, %c0_i32_40] : memref<256x128xf32, #tpu.memory_space<any>> -> memref<1x128xf32, #tpu.memory_space<any>>
    %c5_i32 = arith.constant 5 : i32
    %c0_i32_41 = arith.constant 0 : i32
    %54 = tpu.memref_slice %arg10[%c0_i32_39, %c5_i32, %c0_i32_41] : memref<8x8x128xf32, #tpu.memory_space<vmem>> -> memref<1x1x128xf32, #tpu.memory_space<vmem>>
    %55 = tpu.memref_squeeze %54 : memref<1x1x128xf32, #tpu.memory_space<vmem>> -> memref<1x128xf32, #tpu.memory_space<vmem>>
    tpu.enqueue_dma source(%53 : memref<1x128xf32, #tpu.memory_space<any>>) target(%55 : memref<1x128xf32, #tpu.memory_space<vmem>>) target_semaphore(%arg11 : memref<!tpu.dma_semaphore, #tpu.memory_space<semaphore_mem>>)
    %56 = arith.index_cast %1 : i32 to index
    %c6 = arith.constant 6 : index
    %57 = memref.load %arg3[%56, %c6] : memref<16x8xi32, #tpu.memory_space<smem>>
    %c0_i32_42 = arith.constant 0 : i32
    %c0_i32_43 = arith.constant 0 : i32
    %58 = tpu.memref_slice %arg6[%57, %c0_i32_43] : memref<256x128xf32, #tpu.memory_space<any>> -> memref<1x128xf32, #tpu.memory_space<any>>
    %c6_i32 = arith.constant 6 : i32
    %c0_i32_44 = arith.constant 0 : i32
    %59 = tpu.memref_slice %arg10[%c0_i32_42, %c6_i32, %c0_i32_44] : memref<8x8x128xf32, #tpu.memory_space<vmem>> -> memref<1x1x128xf32, #tpu.memory_space<vmem>>
    %60 = tpu.memref_squeeze %59 : memref<1x1x128xf32, #tpu.memory_space<vmem>> -> memref<1x128xf32, #tpu.memory_space<vmem>>
    tpu.enqueue_dma source(%58 : memref<1x128xf32, #tpu.memory_space<any>>) target(%60 : memref<1x128xf32, #tpu.memory_space<vmem>>) target_semaphore(%arg11 : memref<!tpu.dma_semaphore, #tpu.memory_space<semaphore_mem>>)
    %61 = arith.index_cast %1 : i32 to index
    %c7 = arith.constant 7 : index
    %62 = memref.load %arg3[%61, %c7] : memref<16x8xi32, #tpu.memory_space<smem>>
    %c0_i32_45 = arith.constant 0 : i32
    %c0_i32_46 = arith.constant 0 : i32
    %63 = tpu.memref_slice %arg6[%62, %c0_i32_46] : memref<256x128xf32, #tpu.memory_space<any>> -> memref<1x128xf32, #tpu.memory_space<any>>
    %c7_i32 = arith.constant 7 : i32
    %c0_i32_47 = arith.constant 0 : i32
    %64 = tpu.memref_slice %arg10[%c0_i32_45, %c7_i32, %c0_i32_47] : memref<8x8x128xf32, #tpu.memory_space<vmem>> -> memref<1x1x128xf32, #tpu.memory_space<vmem>>
    %65 = tpu.memref_squeeze %64 : memref<1x1x128xf32, #tpu.memory_space<vmem>> -> memref<1x128xf32, #tpu.memory_space<vmem>>
    tpu.enqueue_dma source(%63 : memref<1x128xf32, #tpu.memory_space<any>>) target(%65 : memref<1x128xf32, #tpu.memory_space<vmem>>) target_semaphore(%arg11 : memref<!tpu.dma_semaphore, #tpu.memory_space<semaphore_mem>>)
    %c8_i32_48 = arith.constant 8 : i32
    %66 = arith.muli %arg0, %c8_i32_48 : i32
    %c1_i32_49 = arith.constant 1 : i32
    %67 = arith.addi %66, %c1_i32_49 : i32
    %68 = arith.index_cast %67 : i32 to index
    %69 = memref.load %arg1[%68] : memref<16xi32, #tpu.memory_space<smem>>
    %c0_i32_50 = arith.constant 0 : i32
    %70 = tpu.memref_slice %arg4[%69, %c0_i32_50] : memref<64x128xf32, #tpu.memory_space<any>> -> memref<1x128xf32, #tpu.memory_space<any>>
    %c1_i32_51 = arith.constant 1 : i32
    %c0_i32_52 = arith.constant 0 : i32
    %71 = tpu.memref_slice %arg8[%c1_i32_51, %c0_i32_52] : memref<8x128xf32, #tpu.memory_space<vmem>> -> memref<1x128xf32, #tpu.memory_space<vmem>>
    tpu.enqueue_dma source(%70 : memref<1x128xf32, #tpu.memory_space<any>>) target(%71 : memref<1x128xf32, #tpu.memory_space<vmem>>) target_semaphore(%arg11 : memref<!tpu.dma_semaphore, #tpu.memory_space<semaphore_mem>>)
    %72 = arith.index_cast %67 : i32 to index
    %c0_53 = arith.constant 0 : index
    %73 = memref.load %arg2[%72, %c0_53] : memref<16x4xi32, #tpu.memory_space<smem>>
    %c1_i32_54 = arith.constant 1 : i32
    %c0_i32_55 = arith.constant 0 : i32
    %74 = tpu.memref_slice %arg5[%73, %c0_i32_55] : memref<256x128xf32, #tpu.memory_space<any>> -> memref<1x128xf32, #tpu.memory_space<any>>
    %c0_i32_56 = arith.constant 0 : i32
    %c0_i32_57 = arith.constant 0 : i32
    %75 = tpu.memref_slice %arg9[%c1_i32_54, %c0_i32_56, %c0_i32_57] : memref<8x4x128xf32, #tpu.memory_space<vmem>> -> memref<1x1x128xf32, #tpu.memory_space<vmem>>
    %76 = tpu.memref_squeeze %75 : memref<1x1x128xf32, #tpu.memory_space<vmem>> -> memref<1x128xf32, #tpu.memory_space<vmem>>
    tpu.enqueue_dma source(%74 : memref<1x128xf32, #tpu.memory_space<any>>) target(%76 : memref<1x128xf32, #tpu.memory_space<vmem>>) target_semaphore(%arg11 : memref<!tpu.dma_semaphore, #tpu.memory_space<semaphore_mem>>)
    %77 = arith.index_cast %67 : i32 to index
    %c1_58 = arith.constant 1 : index
    %78 = memref.load %arg2[%77, %c1_58] : memref<16x4xi32, #tpu.memory_space<smem>>
    %c1_i32_59 = arith.constant 1 : i32
    %c0_i32_60 = arith.constant 0 : i32
    %79 = tpu.memref_slice %arg5[%78, %c0_i32_60] : memref<256x128xf32, #tpu.memory_space<any>> -> memref<1x128xf32, #tpu.memory_space<any>>
    %c1_i32_61 = arith.constant 1 : i32
    %c0_i32_62 = arith.constant 0 : i32
    %80 = tpu.memref_slice %arg9[%c1_i32_59, %c1_i32_61, %c0_i32_62] : memref<8x4x128xf32, #tpu.memory_space<vmem>> -> memref<1x1x128xf32, #tpu.memory_space<vmem>>
    %81 = tpu.memref_squeeze %80 : memref<1x1x128xf32, #tpu.memory_space<vmem>> -> memref<1x128xf32, #tpu.memory_space<vmem>>
    tpu.enqueue_dma source(%79 : memref<1x128xf32, #tpu.memory_space<any>>) target(%81 : memref<1x128xf32, #tpu.memory_space<vmem>>) target_semaphore(%arg11 : memref<!tpu.dma_semaphore, #tpu.memory_space<semaphore_mem>>)
    %82 = arith.index_cast %67 : i32 to index
    %c2_63 = arith.constant 2 : index
    %83 = memref.load %arg2[%82, %c2_63] : memref<16x4xi32, #tpu.memory_space<smem>>
    %c1_i32_64 = arith.constant 1 : i32
    %c0_i32_65 = arith.constant 0 : i32
    %84 = tpu.memref_slice %arg5[%83, %c0_i32_65] : memref<256x128xf32, #tpu.memory_space<any>> -> memref<1x128xf32, #tpu.memory_space<any>>
    %c2_i32_66 = arith.constant 2 : i32
    %c0_i32_67 = arith.constant 0 : i32
    %85 = tpu.memref_slice %arg9[%c1_i32_64, %c2_i32_66, %c0_i32_67] : memref<8x4x128xf32, #tpu.memory_space<vmem>> -> memref<1x1x128xf32, #tpu.memory_space<vmem>>
    %86 = tpu.memref_squeeze %85 : memref<1x1x128xf32, #tpu.memory_space<vmem>> -> memref<1x128xf32, #tpu.memory_space<vmem>>
    tpu.enqueue_dma source(%84 : memref<1x128xf32, #tpu.memory_space<any>>) target(%86 : memref<1x128xf32, #tpu.memory_space<vmem>>) target_semaphore(%arg11 : memref<!tpu.dma_semaphore, #tpu.memory_space<semaphore_mem>>)
    %87 = arith.index_cast %67 : i32 to index
    %c3_68 = arith.constant 3 : index
    %88 = memref.load %arg2[%87, %c3_68] : memref<16x4xi32, #tpu.memory_space<smem>>
    %c1_i32_69 = arith.constant 1 : i32
    %c0_i32_70 = arith.constant 0 : i32
    %89 = tpu.memref_slice %arg5[%88, %c0_i32_70] : memref<256x128xf32, #tpu.memory_space<any>> -> memref<1x128xf32, #tpu.memory_space<any>>
    %c3_i32_71 = arith.constant 3 : i32
    %c0_i32_72 = arith.constant 0 : i32
    %90 = tpu.memref_slice %arg9[%c1_i32_69, %c3_i32_71, %c0_i32_72] : memref<8x4x128xf32, #tpu.memory_space<vmem>> -> memref<1x1x128xf32, #tpu.memory_space<vmem>>
    %91 = tpu.memref_squeeze %90 : memref<1x1x128xf32, #tpu.memory_space<vmem>> -> memref<1x128xf32, #tpu.memory_space<vmem>>
    tpu.enqueue_dma source(%89 : memref<1x128xf32, #tpu.memory_space<any>>) target(%91 : memref<1x128xf32, #tpu.memory_space<vmem>>) target_semaphore(%arg11 : memref<!tpu.dma_semaphore, #tpu.memory_space<semaphore_mem>>)
    %92 = arith.index_cast %67 : i32 to index
    %c0_73 = arith.constant 0 : index
    %93 = memref.load %arg3[%92, %c0_73] : memref<16x8xi32, #tpu.memory_space<smem>>
    %c1_i32_74 = arith.constant 1 : i32
    %c0_i32_75 = arith.constant 0 : i32
    %94 = tpu.memref_slice %arg6[%93, %c0_i32_75] : memref<256x128xf32, #tpu.memory_space<any>> -> memref<1x128xf32, #tpu.memory_space<any>>
    %c0_i32_76 = arith.constant 0 : i32
    %c0_i32_77 = arith.constant 0 : i32
    %95 = tpu.memref_slice %arg10[%c1_i32_74, %c0_i32_76, %c0_i32_77] : memref<8x8x128xf32, #tpu.memory_space<vmem>> -> memref<1x1x128xf32, #tpu.memory_space<vmem>>
    %96 = tpu.memref_squeeze %95 : memref<1x1x128xf32, #tpu.memory_space<vmem>> -> memref<1x128xf32, #tpu.memory_space<vmem>>
    tpu.enqueue_dma source(%94 : memref<1x128xf32, #tpu.memory_space<any>>) target(%96 : memref<1x128xf32, #tpu.memory_space<vmem>>) target_semaphore(%arg11 : memref<!tpu.dma_semaphore, #tpu.memory_space<semaphore_mem>>)
    %97 = arith.index_cast %67 : i32 to index
    %c1_78 = arith.constant 1 : index
    %98 = memref.load %arg3[%97, %c1_78] : memref<16x8xi32, #tpu.memory_space<smem>>
    %c1_i32_79 = arith.constant 1 : i32
    %c0_i32_80 = arith.constant 0 : i32
    %99 = tpu.memref_slice %arg6[%98, %c0_i32_80] : memref<256x128xf32, #tpu.memory_space<any>> -> memref<1x128xf32, #tpu.memory_space<any>>
    %c1_i32_81 = arith.constant 1 : i32
    %c0_i32_82 = arith.constant 0 : i32
    %100 = tpu.memref_slice %arg10[%c1_i32_79, %c1_i32_81, %c0_i32_82] : memref<8x8x128xf32, #tpu.memory_space<vmem>> -> memref<1x1x128xf32, #tpu.memory_space<vmem>>
    %101 = tpu.memref_squeeze %100 : memref<1x1x128xf32, #tpu.memory_space<vmem>> -> memref<1x128xf32, #tpu.memory_space<vmem>>
    tpu.enqueue_dma source(%99 : memref<1x128xf32, #tpu.memory_space<any>>) target(%101 : memref<1x128xf32, #tpu.memory_space<vmem>>) target_semaphore(%arg11 : memref<!tpu.dma_semaphore, #tpu.memory_space<semaphore_mem>>)
    %102 = arith.index_cast %67 : i32 to index
    %c2_83 = arith.constant 2 : index
    %103 = memref.load %arg3[%102, %c2_83] : memref<16x8xi32, #tpu.memory_space<smem>>
    %c1_i32_84 = arith.constant 1 : i32
    %c0_i32_85 = arith.constant 0 : i32
    %104 = tpu.memref_slice %arg6[%103, %c0_i32_85] : memref<256x128xf32, #tpu.memory_space<any>> -> memref<1x128xf32, #tpu.memory_space<any>>
    %c2_i32_86 = arith.constant 2 : i32
    %c0_i32_87 = arith.constant 0 : i32
    %105 = tpu.memref_slice %arg10[%c1_i32_84, %c2_i32_86, %c0_i32_87] : memref<8x8x128xf32, #tpu.memory_space<vmem>> -> memref<1x1x128xf32, #tpu.memory_space<vmem>>
    %106 = tpu.memref_squeeze %105 : memref<1x1x128xf32, #tpu.memory_space<vmem>> -> memref<1x128xf32, #tpu.memory_space<vmem>>
    tpu.enqueue_dma source(%104 : memref<1x128xf32, #tpu.memory_space<any>>) target(%106 : memref<1x128xf32, #tpu.memory_space<vmem>>) target_semaphore(%arg11 : memref<!tpu.dma_semaphore, #tpu.memory_space<semaphore_mem>>)
    %107 = arith.index_cast %67 : i32 to index
    %c3_88 = arith.constant 3 : index
    %108 = memref.load %arg3[%107, %c3_88] : memref<16x8xi32, #tpu.memory_space<smem>>
    %c1_i32_89 = arith.constant 1 : i32
    %c0_i32_90 = arith.constant 0 : i32
    %109 = tpu.memref_slice %arg6[%108, %c0_i32_90] : memref<256x128xf32, #tpu.memory_space<any>> -> memref<1x128xf32, #tpu.memory_space<any>>
    %c3_i32_91 = arith.constant 3 : i32
    %c0_i32_92 = arith.constant 0 : i32
    %110 = tpu.memref_slice %arg10[%c1_i32_89, %c3_i32_91, %c0_i32_92] : memref<8x8x128xf32, #tpu.memory_space<vmem>> -> memref<1x1x128xf32, #tpu.memory_space<vmem>>
    %111 = tpu.memref_squeeze %110 : memref<1x1x128xf32, #tpu.memory_space<vmem>> -> memref<1x128xf32, #tpu.memory_space<vmem>>
    tpu.enqueue_dma source(%109 : memref<1x128xf32, #tpu.memory_space<any>>) target(%111 : memref<1x128xf32, #tpu.memory_space<vmem>>) target_semaphore(%arg11 : memref<!tpu.dma_semaphore, #tpu.memory_space<semaphore_mem>>)
    %112 = arith.index_cast %67 : i32 to index
    %c4_93 = arith.constant 4 : index
    %113 = memref.load %arg3[%112, %c4_93] : memref<16x8xi32, #tpu.memory_space<smem>>
    %c1_i32_94 = arith.constant 1 : i32
    %c0_i32_95 = arith.constant 0 : i32
    %114 = tpu.memref_slice %arg6[%113, %c0_i32_95] : memref<256x128xf32, #tpu.memory_space<any>> -> memref<1x128xf32, #tpu.memory_space<any>>
    %c4_i32_96 = arith.constant 4 : i32
    %c0_i32_97 = arith.constant 0 : i32
    %115 = tpu.memref_slice %arg10[%c1_i32_94, %c4_i32_96, %c0_i32_97] : memref<8x8x128xf32, #tpu.memory_space<vmem>> -> memref<1x1x128xf32, #tpu.memory_space<vmem>>
    %116 = tpu.memref_squeeze %115 : memref<1x1x128xf32, #tpu.memory_space<vmem>> -> memref<1x128xf32, #tpu.memory_space<vmem>>
    tpu.enqueue_dma source(%114 : memref<1x128xf32, #tpu.memory_space<any>>) target(%116 : memref<1x128xf32, #tpu.memory_space<vmem>>) target_semaphore(%arg11 : memref<!tpu.dma_semaphore, #tpu.memory_space<semaphore_mem>>)
    %117 = arith.index_cast %67 : i32 to index
    %c5_98 = arith.constant 5 : index
    %118 = memref.load %arg3[%117, %c5_98] : memref<16x8xi32, #tpu.memory_space<smem>>
    %c1_i32_99 = arith.constant 1 : i32
    %c0_i32_100 = arith.constant 0 : i32
    %119 = tpu.memref_slice %arg6[%118, %c0_i32_100] : memref<256x128xf32, #tpu.memory_space<any>> -> memref<1x128xf32, #tpu.memory_space<any>>
    %c5_i32_101 = arith.constant 5 : i32
    %c0_i32_102 = arith.constant 0 : i32
    %120 = tpu.memref_slice %arg10[%c1_i32_99, %c5_i32_101, %c0_i32_102] : memref<8x8x128xf32, #tpu.memory_space<vmem>> -> memref<1x1x128xf32, #tpu.memory_space<vmem>>
    %121 = tpu.memref_squeeze %120 : memref<1x1x128xf32, #tpu.memory_space<vmem>> -> memref<1x128xf32, #tpu.memory_space<vmem>>
    tpu.enqueue_dma source(%119 : memref<1x128xf32, #tpu.memory_space<any>>) target(%121 : memref<1x128xf32, #tpu.memory_space<vmem>>) target_semaphore(%arg11 : memref<!tpu.dma_semaphore, #tpu.memory_space<semaphore_mem>>)
    %122 = arith.index_cast %67 : i32 to index
    %c6_103 = arith.constant 6 : index
    %123 = memref.load %arg3[%122, %c6_103] : memref<16x8xi32, #tpu.memory_space<smem>>
    %c1_i32_104 = arith.constant 1 : i32
    %c0_i32_105 = arith.constant 0 : i32
    %124 = tpu.memref_slice %arg6[%123, %c0_i32_105] : memref<256x128xf32, #tpu.memory_space<any>> -> memref<1x128xf32, #tpu.memory_space<any>>
    %c6_i32_106 = arith.constant 6 : i32
    %c0_i32_107 = arith.constant 0 : i32
    %125 = tpu.memref_slice %arg10[%c1_i32_104, %c6_i32_106, %c0_i32_107] : memref<8x8x128xf32, #tpu.memory_space<vmem>> -> memref<1x1x128xf32, #tpu.memory_space<vmem>>
    %126 = tpu.memref_squeeze %125 : memref<1x1x128xf32, #tpu.memory_space<vmem>> -> memref<1x128xf32, #tpu.memory_space<vmem>>
    tpu.enqueue_dma source(%124 : memref<1x128xf32, #tpu.memory_space<any>>) target(%126 : memref<1x128xf32, #tpu.memory_space<vmem>>) target_semaphore(%arg11 : memref<!tpu.dma_semaphore, #tpu.memory_space<semaphore_mem>>)
    %127 = arith.index_cast %67 : i32 to index
    %c7_108 = arith.constant 7 : index
    %128 = memref.load %arg3[%127, %c7_108] : memref<16x8xi32, #tpu.memory_space<smem>>
    %c1_i32_109 = arith.constant 1 : i32
    %c0_i32_110 = arith.constant 0 : i32
    %129 = tpu.memref_slice %arg6[%128, %c0_i32_110] : memref<256x128xf32, #tpu.memory_space<any>> -> memref<1x128xf32, #tpu.memory_space<any>>
    %c7_i32_111 = arith.constant 7 : i32
    %c0_i32_112 = arith.constant 0 : i32
    %130 = tpu.memref_slice %arg10[%c1_i32_109, %c7_i32_111, %c0_i32_112] : memref<8x8x128xf32, #tpu.memory_space<vmem>> -> memref<1x1x128xf32, #tpu.memory_space<vmem>>
    %131 = tpu.memref_squeeze %130 : memref<1x1x128xf32, #tpu.memory_space<vmem>> -> memref<1x128xf32, #tpu.memory_space<vmem>>
    tpu.enqueue_dma source(%129 : memref<1x128xf32, #tpu.memory_space<any>>) target(%131 : memref<1x128xf32, #tpu.memory_space<vmem>>) target_semaphore(%arg11 : memref<!tpu.dma_semaphore, #tpu.memory_space<semaphore_mem>>)
    %c8_i32_113 = arith.constant 8 : i32
    %132 = arith.muli %arg0, %c8_i32_113 : i32
    %c2_i32_114 = arith.constant 2 : i32
    %133 = arith.addi %132, %c2_i32_114 : i32
    %134 = arith.index_cast %133 : i32 to index
    %135 = memref.load %arg1[%134] : memref<16xi32, #tpu.memory_space<smem>>
    %c0_i32_115 = arith.constant 0 : i32
    %136 = tpu.memref_slice %arg4[%135, %c0_i32_115] : memref<64x128xf32, #tpu.memory_space<any>> -> memref<1x128xf32, #tpu.memory_space<any>>
    %c2_i32_116 = arith.constant 2 : i32
    %c0_i32_117 = arith.constant 0 : i32
    %137 = tpu.memref_slice %arg8[%c2_i32_116, %c0_i32_117] : memref<8x128xf32, #tpu.memory_space<vmem>> -> memref<1x128xf32, #tpu.memory_space<vmem>>
    tpu.enqueue_dma source(%136 : memref<1x128xf32, #tpu.memory_space<any>>) target(%137 : memref<1x128xf32, #tpu.memory_space<vmem>>) target_semaphore(%arg11 : memref<!tpu.dma_semaphore, #tpu.memory_space<semaphore_mem>>)
    %138 = arith.index_cast %133 : i32 to index
    %c0_118 = arith.constant 0 : index
    %139 = memref.load %arg2[%138, %c0_118] : memref<16x4xi32, #tpu.memory_space<smem>>
    %c2_i32_119 = arith.constant 2 : i32
    %c0_i32_120 = arith.constant 0 : i32
    %140 = tpu.memref_slice %arg5[%139, %c0_i32_120] : memref<256x128xf32, #tpu.memory_space<any>> -> memref<1x128xf32, #tpu.memory_space<any>>
    %c0_i32_121 = arith.constant 0 : i32
    %c0_i32_122 = arith.constant 0 : i32
    %141 = tpu.memref_slice %arg9[%c2_i32_119, %c0_i32_121, %c0_i32_122] : memref<8x4x128xf32, #tpu.memory_space<vmem>> -> memref<1x1x128xf32, #tpu.memory_space<vmem>>
    %142 = tpu.memref_squeeze %141 : memref<1x1x128xf32, #tpu.memory_space<vmem>> -> memref<1x128xf32, #tpu.memory_space<vmem>>
    tpu.enqueue_dma source(%140 : memref<1x128xf32, #tpu.memory_space<any>>) target(%142 : memref<1x128xf32, #tpu.memory_space<vmem>>) target_semaphore(%arg11 : memref<!tpu.dma_semaphore, #tpu.memory_space<semaphore_mem>>)
    %143 = arith.index_cast %133 : i32 to index
    %c1_123 = arith.constant 1 : index
    %144 = memref.load %arg2[%143, %c1_123] : memref<16x4xi32, #tpu.memory_space<smem>>
    %c2_i32_124 = arith.constant 2 : i32
    %c0_i32_125 = arith.constant 0 : i32
    %145 = tpu.memref_slice %arg5[%144, %c0_i32_125] : memref<256x128xf32, #tpu.memory_space<any>> -> memref<1x128xf32, #tpu.memory_space<any>>
    %c1_i32_126 = arith.constant 1 : i32
    %c0_i32_127 = arith.constant 0 : i32
    %146 = tpu.memref_slice %arg9[%c2_i32_124, %c1_i32_126, %c0_i32_127] : memref<8x4x128xf32, #tpu.memory_space<vmem>> -> memref<1x1x128xf32, #tpu.memory_space<vmem>>
    %147 = tpu.memref_squeeze %146 : memref<1x1x128xf32, #tpu.memory_space<vmem>> -> memref<1x128xf32, #tpu.memory_space<vmem>>
    tpu.enqueue_dma source(%145 : memref<1x128xf32, #tpu.memory_space<any>>) target(%147 : memref<1x128xf32, #tpu.memory_space<vmem>>) target_semaphore(%arg11 : memref<!tpu.dma_semaphore, #tpu.memory_space<semaphore_mem>>)
    %148 = arith.index_cast %133 : i32 to index
    %c2_128 = arith.constant 2 : index
    %149 = memref.load %arg2[%148, %c2_128] : memref<16x4xi32, #tpu.memory_space<smem>>
    %c2_i32_129 = arith.constant 2 : i32
    %c0_i32_130 = arith.constant 0 : i32
    %150 = tpu.memref_slice %arg5[%149, %c0_i32_130] : memref<256x128xf32, #tpu.memory_space<any>> -> memref<1x128xf32, #tpu.memory_space<any>>
    %c2_i32_131 = arith.constant 2 : i32
    %c0_i32_132 = arith.constant 0 : i32
    %151 = tpu.memref_slice %arg9[%c2_i32_129, %c2_i32_131, %c0_i32_132] : memref<8x4x128xf32, #tpu.memory_space<vmem>> -> memref<1x1x128xf32, #tpu.memory_space<vmem>>
    %152 = tpu.memref_squeeze %151 : memref<1x1x128xf32, #tpu.memory_space<vmem>> -> memref<1x128xf32, #tpu.memory_space<vmem>>
    tpu.enqueue_dma source(%150 : memref<1x128xf32, #tpu.memory_space<any>>) target(%152 : memref<1x128xf32, #tpu.memory_space<vmem>>) target_semaphore(%arg11 : memref<!tpu.dma_semaphore, #tpu.memory_space<semaphore_mem>>)
    %153 = arith.index_cast %133 : i32 to index
    %c3_133 = arith.constant 3 : index
    %154 = memref.load %arg2[%153, %c3_133] : memref<16x4xi32, #tpu.memory_space<smem>>
    %c2_i32_134 = arith.constant 2 : i32
    %c0_i32_135 = arith.constant 0 : i32
    %155 = tpu.memref_slice %arg5[%154, %c0_i32_135] : memref<256x128xf32, #tpu.memory_space<any>> -> memref<1x128xf32, #tpu.memory_space<any>>
    %c3_i32_136 = arith.constant 3 : i32
    %c0_i32_137 = arith.constant 0 : i32
    %156 = tpu.memref_slice %arg9[%c2_i32_134, %c3_i32_136, %c0_i32_137] : memref<8x4x128xf32, #tpu.memory_space<vmem>> -> memref<1x1x128xf32, #tpu.memory_space<vmem>>
    %157 = tpu.memref_squeeze %156 : memref<1x1x128xf32, #tpu.memory_space<vmem>> -> memref<1x128xf32, #tpu.memory_space<vmem>>
    tpu.enqueue_dma source(%155 : memref<1x128xf32, #tpu.memory_space<any>>) target(%157 : memref<1x128xf32, #tpu.memory_space<vmem>>) target_semaphore(%arg11 : memref<!tpu.dma_semaphore, #tpu.memory_space<semaphore_mem>>)
    %158 = arith.index_cast %133 : i32 to index
    %c0_138 = arith.constant 0 : index
    %159 = memref.load %arg3[%158, %c0_138] : memref<16x8xi32, #tpu.memory_space<smem>>
    %c2_i32_139 = arith.constant 2 : i32
    %c0_i32_140 = arith.constant 0 : i32
    %160 = tpu.memref_slice %arg6[%159, %c0_i32_140] : memref<256x128xf32, #tpu.memory_space<any>> -> memref<1x128xf32, #tpu.memory_space<any>>
    %c0_i32_141 = arith.constant 0 : i32
    %c0_i32_142 = arith.constant 0 : i32
    %161 = tpu.memref_slice %arg10[%c2_i32_139, %c0_i32_141, %c0_i32_142] : memref<8x8x128xf32, #tpu.memory_space<vmem>> -> memref<1x1x128xf32, #tpu.memory_space<vmem>>
    %162 = tpu.memref_squeeze %161 : memref<1x1x128xf32, #tpu.memory_space<vmem>> -> memref<1x128xf32, #tpu.memory_space<vmem>>
    tpu.enqueue_dma source(%160 : memref<1x128xf32, #tpu.memory_space<any>>) target(%162 : memref<1x128xf32, #tpu.memory_space<vmem>>) target_semaphore(%arg11 : memref<!tpu.dma_semaphore, #tpu.memory_space<semaphore_mem>>)
    %163 = arith.index_cast %133 : i32 to index
    %c1_143 = arith.constant 1 : index
    %164 = memref.load %arg3[%163, %c1_143] : memref<16x8xi32, #tpu.memory_space<smem>>
    %c2_i32_144 = arith.constant 2 : i32
    %c0_i32_145 = arith.constant 0 : i32
    %165 = tpu.memref_slice %arg6[%164, %c0_i32_145] : memref<256x128xf32, #tpu.memory_space<any>> -> memref<1x128xf32, #tpu.memory_space<any>>
    %c1_i32_146 = arith.constant 1 : i32
    %c0_i32_147 = arith.constant 0 : i32
    %166 = tpu.memref_slice %arg10[%c2_i32_144, %c1_i32_146, %c0_i32_147] : memref<8x8x128xf32, #tpu.memory_space<vmem>> -> memref<1x1x128xf32, #tpu.memory_space<vmem>>
    %167 = tpu.memref_squeeze %166 : memref<1x1x128xf32, #tpu.memory_space<vmem>> -> memref<1x128xf32, #tpu.memory_space<vmem>>
    tpu.enqueue_dma source(%165 : memref<1x128xf32, #tpu.memory_space<any>>) target(%167 : memref<1x128xf32, #tpu.memory_space<vmem>>) target_semaphore(%arg11 : memref<!tpu.dma_semaphore, #tpu.memory_space<semaphore_mem>>)
    %168 = arith.index_cast %133 : i32 to index
    %c2_148 = arith.constant 2 : index
    %169 = memref.load %arg3[%168, %c2_148] : memref<16x8xi32, #tpu.memory_space<smem>>
    %c2_i32_149 = arith.constant 2 : i32
    %c0_i32_150 = arith.constant 0 : i32
    %170 = tpu.memref_slice %arg6[%169, %c0_i32_150] : memref<256x128xf32, #tpu.memory_space<any>> -> memref<1x128xf32, #tpu.memory_space<any>>
    %c2_i32_151 = arith.constant 2 : i32
    %c0_i32_152 = arith.constant 0 : i32
    %171 = tpu.memref_slice %arg10[%c2_i32_149, %c2_i32_151, %c0_i32_152] : memref<8x8x128xf32, #tpu.memory_space<vmem>> -> memref<1x1x128xf32, #tpu.memory_space<vmem>>
    %172 = tpu.memref_squeeze %171 : memref<1x1x128xf32, #tpu.memory_space<vmem>> -> memref<1x128xf32, #tpu.memory_space<vmem>>
    tpu.enqueue_dma source(%170 : memref<1x128xf32, #tpu.memory_space<any>>) target(%172 : memref<1x128xf32, #tpu.memory_space<vmem>>) target_semaphore(%arg11 : memref<!tpu.dma_semaphore, #tpu.memory_space<semaphore_mem>>)
    %173 = arith.index_cast %133 : i32 to index
    %c3_153 = arith.constant 3 : index
    %174 = memref.load %arg3[%173, %c3_153] : memref<16x8xi32, #tpu.memory_space<smem>>
    %c2_i32_154 = arith.constant 2 : i32
    %c0_i32_155 = arith.constant 0 : i32
    %175 = tpu.memref_slice %arg6[%174, %c0_i32_155] : memref<256x128xf32, #tpu.memory_space<any>> -> memref<1x128xf32, #tpu.memory_space<any>>
    %c3_i32_156 = arith.constant 3 : i32
    %c0_i32_157 = arith.constant 0 : i32
    %176 = tpu.memref_slice %arg10[%c2_i32_154, %c3_i32_156, %c0_i32_157] : memref<8x8x128xf32, #tpu.memory_space<vmem>> -> memref<1x1x128xf32, #tpu.memory_space<vmem>>
    %177 = tpu.memref_squeeze %176 : memref<1x1x128xf32, #tpu.memory_space<vmem>> -> memref<1x128xf32, #tpu.memory_space<vmem>>
    tpu.enqueue_dma source(%175 : memref<1x128xf32, #tpu.memory_space<any>>) target(%177 : memref<1x128xf32, #tpu.memory_space<vmem>>) target_semaphore(%arg11 : memref<!tpu.dma_semaphore, #tpu.memory_space<semaphore_mem>>)
    %178 = arith.index_cast %133 : i32 to index
    %c4_158 = arith.constant 4 : index
    %179 = memref.load %arg3[%178, %c4_158] : memref<16x8xi32, #tpu.memory_space<smem>>
    %c2_i32_159 = arith.constant 2 : i32
    %c0_i32_160 = arith.constant 0 : i32
    %180 = tpu.memref_slice %arg6[%179, %c0_i32_160] : memref<256x128xf32, #tpu.memory_space<any>> -> memref<1x128xf32, #tpu.memory_space<any>>
    %c4_i32_161 = arith.constant 4 : i32
    %c0_i32_162 = arith.constant 0 : i32
    %181 = tpu.memref_slice %arg10[%c2_i32_159, %c4_i32_161, %c0_i32_162] : memref<8x8x128xf32, #tpu.memory_space<vmem>> -> memref<1x1x128xf32, #tpu.memory_space<vmem>>
    %182 = tpu.memref_squeeze %181 : memref<1x1x128xf32, #tpu.memory_space<vmem>> -> memref<1x128xf32, #tpu.memory_space<vmem>>
    tpu.enqueue_dma source(%180 : memref<1x128xf32, #tpu.memory_space<any>>) target(%182 : memref<1x128xf32, #tpu.memory_space<vmem>>) target_semaphore(%arg11 : memref<!tpu.dma_semaphore, #tpu.memory_space<semaphore_mem>>)
    %183 = arith.index_cast %133 : i32 to index
    %c5_163 = arith.constant 5 : index
    %184 = memref.load %arg3[%183, %c5_163] : memref<16x8xi32, #tpu.memory_space<smem>>
    %c2_i32_164 = arith.constant 2 : i32
    %c0_i32_165 = arith.constant 0 : i32
    %185 = tpu.memref_slice %arg6[%184, %c0_i32_165] : memref<256x128xf32, #tpu.memory_space<any>> -> memref<1x128xf32, #tpu.memory_space<any>>
    %c5_i32_166 = arith.constant 5 : i32
    %c0_i32_167 = arith.constant 0 : i32
    %186 = tpu.memref_slice %arg10[%c2_i32_164, %c5_i32_166, %c0_i32_167] : memref<8x8x128xf32, #tpu.memory_space<vmem>> -> memref<1x1x128xf32, #tpu.memory_space<vmem>>
    %187 = tpu.memref_squeeze %186 : memref<1x1x128xf32, #tpu.memory_space<vmem>> -> memref<1x128xf32, #tpu.memory_space<vmem>>
    tpu.enqueue_dma source(%185 : memref<1x128xf32, #tpu.memory_space<any>>) target(%187 : memref<1x128xf32, #tpu.memory_space<vmem>>) target_semaphore(%arg11 : memref<!tpu.dma_semaphore, #tpu.memory_space<semaphore_mem>>)
    %188 = arith.index_cast %133 : i32 to index
    %c6_168 = arith.constant 6 : index
    %189 = memref.load %arg3[%188, %c6_168] : memref<16x8xi32, #tpu.memory_space<smem>>
    %c2_i32_169 = arith.constant 2 : i32
    %c0_i32_170 = arith.constant 0 : i32
    %190 = tpu.memref_slice %arg6[%189, %c0_i32_170] : memref<256x128xf32, #tpu.memory_space<any>> -> memref<1x128xf32, #tpu.memory_space<any>>
    %c6_i32_171 = arith.constant 6 : i32
    %c0_i32_172 = arith.constant 0 : i32
    %191 = tpu.memref_slice %arg10[%c2_i32_169, %c6_i32_171, %c0_i32_172] : memref<8x8x128xf32, #tpu.memory_space<vmem>> -> memref<1x1x128xf32, #tpu.memory_space<vmem>>
    %192 = tpu.memref_squeeze %191 : memref<1x1x128xf32, #tpu.memory_space<vmem>> -> memref<1x128xf32, #tpu.memory_space<vmem>>
    tpu.enqueue_dma source(%190 : memref<1x128xf32, #tpu.memory_space<any>>) target(%192 : memref<1x128xf32, #tpu.memory_space<vmem>>) target_semaphore(%arg11 : memref<!tpu.dma_semaphore, #tpu.memory_space<semaphore_mem>>)
    %193 = arith.index_cast %133 : i32 to index
    %c7_173 = arith.constant 7 : index
    %194 = memref.load %arg3[%193, %c7_173] : memref<16x8xi32, #tpu.memory_space<smem>>
    %c2_i32_174 = arith.constant 2 : i32
    %c0_i32_175 = arith.constant 0 : i32
    %195 = tpu.memref_slice %arg6[%194, %c0_i32_175] : memref<256x128xf32, #tpu.memory_space<any>> -> memref<1x128xf32, #tpu.memory_space<any>>
    %c7_i32_176 = arith.constant 7 : i32
    %c0_i32_177 = arith.constant 0 : i32
    %196 = tpu.memref_slice %arg10[%c2_i32_174, %c7_i32_176, %c0_i32_177] : memref<8x8x128xf32, #tpu.memory_space<vmem>> -> memref<1x1x128xf32, #tpu.memory_space<vmem>>
    %197 = tpu.memref_squeeze %196 : memref<1x1x128xf32, #tpu.memory_space<vmem>> -> memref<1x128xf32, #tpu.memory_space<vmem>>
    tpu.enqueue_dma source(%195 : memref<1x128xf32, #tpu.memory_space<any>>) target(%197 : memref<1x128xf32, #tpu.memory_space<vmem>>) target_semaphore(%arg11 : memref<!tpu.dma_semaphore, #tpu.memory_space<semaphore_mem>>)
    %c8_i32_178 = arith.constant 8 : i32
    %198 = arith.muli %arg0, %c8_i32_178 : i32
    %c3_i32_179 = arith.constant 3 : i32
    %199 = arith.addi %198, %c3_i32_179 : i32
    %200 = arith.index_cast %199 : i32 to index
    %201 = memref.load %arg1[%200] : memref<16xi32, #tpu.memory_space<smem>>
    %c0_i32_180 = arith.constant 0 : i32
    %202 = tpu.memref_slice %arg4[%201, %c0_i32_180] : memref<64x128xf32, #tpu.memory_space<any>> -> memref<1x128xf32, #tpu.memory_space<any>>
    %c3_i32_181 = arith.constant 3 : i32
    %c0_i32_182 = arith.constant 0 : i32
    %203 = tpu.memref_slice %arg8[%c3_i32_181, %c0_i32_182] : memref<8x128xf32, #tpu.memory_space<vmem>> -> memref<1x128xf32, #tpu.memory_space<vmem>>
    tpu.enqueue_dma source(%202 : memref<1x128xf32, #tpu.memory_space<any>>) target(%203 : memref<1x128xf32, #tpu.memory_space<vmem>>) target_semaphore(%arg11 : memref<!tpu.dma_semaphore, #tpu.memory_space<semaphore_mem>>)
    %204 = arith.index_cast %199 : i32 to index
    %c0_183 = arith.constant 0 : index
    %205 = memref.load %arg2[%204, %c0_183] : memref<16x4xi32, #tpu.memory_space<smem>>
    %c3_i32_184 = arith.constant 3 : i32
    %c0_i32_185 = arith.constant 0 : i32
    %206 = tpu.memref_slice %arg5[%205, %c0_i32_185] : memref<256x128xf32, #tpu.memory_space<any>> -> memref<1x128xf32, #tpu.memory_space<any>>
    %c0_i32_186 = arith.constant 0 : i32
    %c0_i32_187 = arith.constant 0 : i32
    %207 = tpu.memref_slice %arg9[%c3_i32_184, %c0_i32_186, %c0_i32_187] : memref<8x4x128xf32, #tpu.memory_space<vmem>> -> memref<1x1x128xf32, #tpu.memory_space<vmem>>
    %208 = tpu.memref_squeeze %207 : memref<1x1x128xf32, #tpu.memory_space<vmem>> -> memref<1x128xf32, #tpu.memory_space<vmem>>
    tpu.enqueue_dma source(%206 : memref<1x128xf32, #tpu.memory_space<any>>) target(%208 : memref<1x128xf32, #tpu.memory_space<vmem>>) target_semaphore(%arg11 : memref<!tpu.dma_semaphore, #tpu.memory_space<semaphore_mem>>)
    %209 = arith.index_cast %199 : i32 to index
    %c1_188 = arith.constant 1 : index
    %210 = memref.load %arg2[%209, %c1_188] : memref<16x4xi32, #tpu.memory_space<smem>>
    %c3_i32_189 = arith.constant 3 : i32
    %c0_i32_190 = arith.constant 0 : i32
    %211 = tpu.memref_slice %arg5[%210, %c0_i32_190] : memref<256x128xf32, #tpu.memory_space<any>> -> memref<1x128xf32, #tpu.memory_space<any>>
    %c1_i32_191 = arith.constant 1 : i32
    %c0_i32_192 = arith.constant 0 : i32
    %212 = tpu.memref_slice %arg9[%c3_i32_189, %c1_i32_191, %c0_i32_192] : memref<8x4x128xf32, #tpu.memory_space<vmem>> -> memref<1x1x128xf32, #tpu.memory_space<vmem>>
    %213 = tpu.memref_squeeze %212 : memref<1x1x128xf32, #tpu.memory_space<vmem>> -> memref<1x128xf32, #tpu.memory_space<vmem>>
    tpu.enqueue_dma source(%211 : memref<1x128xf32, #tpu.memory_space<any>>) target(%213 : memref<1x128xf32, #tpu.memory_space<vmem>>) target_semaphore(%arg11 : memref<!tpu.dma_semaphore, #tpu.memory_space<semaphore_mem>>)
    %214 = arith.index_cast %199 : i32 to index
    %c2_193 = arith.constant 2 : index
    %215 = memref.load %arg2[%214, %c2_193] : memref<16x4xi32, #tpu.memory_space<smem>>
    %c3_i32_194 = arith.constant 3 : i32
    %c0_i32_195 = arith.constant 0 : i32
    %216 = tpu.memref_slice %arg5[%215, %c0_i32_195] : memref<256x128xf32, #tpu.memory_space<any>> -> memref<1x128xf32, #tpu.memory_space<any>>
    %c2_i32_196 = arith.constant 2 : i32
    %c0_i32_197 = arith.constant 0 : i32
    %217 = tpu.memref_slice %arg9[%c3_i32_194, %c2_i32_196, %c0_i32_197] : memref<8x4x128xf32, #tpu.memory_space<vmem>> -> memref<1x1x128xf32, #tpu.memory_space<vmem>>
    %218 = tpu.memref_squeeze %217 : memref<1x1x128xf32, #tpu.memory_space<vmem>> -> memref<1x128xf32, #tpu.memory_space<vmem>>
    tpu.enqueue_dma source(%216 : memref<1x128xf32, #tpu.memory_space<any>>) target(%218 : memref<1x128xf32, #tpu.memory_space<vmem>>) target_semaphore(%arg11 : memref<!tpu.dma_semaphore, #tpu.memory_space<semaphore_mem>>)
    %219 = arith.index_cast %199 : i32 to index
    %c3_198 = arith.constant 3 : index
    %220 = memref.load %arg2[%219, %c3_198] : memref<16x4xi32, #tpu.memory_space<smem>>
    %c3_i32_199 = arith.constant 3 : i32
    %c0_i32_200 = arith.constant 0 : i32
    %221 = tpu.memref_slice %arg5[%220, %c0_i32_200] : memref<256x128xf32, #tpu.memory_space<any>> -> memref<1x128xf32, #tpu.memory_space<any>>
    %c3_i32_201 = arith.constant 3 : i32
    %c0_i32_202 = arith.constant 0 : i32
    %222 = tpu.memref_slice %arg9[%c3_i32_199, %c3_i32_201, %c0_i32_202] : memref<8x4x128xf32, #tpu.memory_space<vmem>> -> memref<1x1x128xf32, #tpu.memory_space<vmem>>
    %223 = tpu.memref_squeeze %222 : memref<1x1x128xf32, #tpu.memory_space<vmem>> -> memref<1x128xf32, #tpu.memory_space<vmem>>
    tpu.enqueue_dma source(%221 : memref<1x128xf32, #tpu.memory_space<any>>) target(%223 : memref<1x128xf32, #tpu.memory_space<vmem>>) target_semaphore(%arg11 : memref<!tpu.dma_semaphore, #tpu.memory_space<semaphore_mem>>)
    %224 = arith.index_cast %199 : i32 to index
    %c0_203 = arith.constant 0 : index
    %225 = memref.load %arg3[%224, %c0_203] : memref<16x8xi32, #tpu.memory_space<smem>>
    %c3_i32_204 = arith.constant 3 : i32
    %c0_i32_205 = arith.constant 0 : i32
    %226 = tpu.memref_slice %arg6[%225, %c0_i32_205] : memref<256x128xf32, #tpu.memory_space<any>> -> memref<1x128xf32, #tpu.memory_space<any>>
    %c0_i32_206 = arith.constant 0 : i32
    %c0_i32_207 = arith.constant 0 : i32
    %227 = tpu.memref_slice %arg10[%c3_i32_204, %c0_i32_206, %c0_i32_207] : memref<8x8x128xf32, #tpu.memory_space<vmem>> -> memref<1x1x128xf32, #tpu.memory_space<vmem>>
    %228 = tpu.memref_squeeze %227 : memref<1x1x128xf32, #tpu.memory_space<vmem>> -> memref<1x128xf32, #tpu.memory_space<vmem>>
    tpu.enqueue_dma source(%226 : memref<1x128xf32, #tpu.memory_space<any>>) target(%228 : memref<1x128xf32, #tpu.memory_space<vmem>>) target_semaphore(%arg11 : memref<!tpu.dma_semaphore, #tpu.memory_space<semaphore_mem>>)
    %229 = arith.index_cast %199 : i32 to index
    %c1_208 = arith.constant 1 : index
    %230 = memref.load %arg3[%229, %c1_208] : memref<16x8xi32, #tpu.memory_space<smem>>
    %c3_i32_209 = arith.constant 3 : i32
    %c0_i32_210 = arith.constant 0 : i32
    %231 = tpu.memref_slice %arg6[%230, %c0_i32_210] : memref<256x128xf32, #tpu.memory_space<any>> -> memref<1x128xf32, #tpu.memory_space<any>>
    %c1_i32_211 = arith.constant 1 : i32
    %c0_i32_212 = arith.constant 0 : i32
    %232 = tpu.memref_slice %arg10[%c3_i32_209, %c1_i32_211, %c0_i32_212] : memref<8x8x128xf32, #tpu.memory_space<vmem>> -> memref<1x1x128xf32, #tpu.memory_space<vmem>>
    %233 = tpu.memref_squeeze %232 : memref<1x1x128xf32, #tpu.memory_space<vmem>> -> memref<1x128xf32, #tpu.memory_space<vmem>>
    tpu.enqueue_dma source(%231 : memref<1x128xf32, #tpu.memory_space<any>>) target(%233 : memref<1x128xf32, #tpu.memory_space<vmem>>) target_semaphore(%arg11 : memref<!tpu.dma_semaphore, #tpu.memory_space<semaphore_mem>>)
    %234 = arith.index_cast %199 : i32 to index
    %c2_213 = arith.constant 2 : index
    %235 = memref.load %arg3[%234, %c2_213] : memref<16x8xi32, #tpu.memory_space<smem>>
    %c3_i32_214 = arith.constant 3 : i32
    %c0_i32_215 = arith.constant 0 : i32
    %236 = tpu.memref_slice %arg6[%235, %c0_i32_215] : memref<256x128xf32, #tpu.memory_space<any>> -> memref<1x128xf32, #tpu.memory_space<any>>
    %c2_i32_216 = arith.constant 2 : i32
    %c0_i32_217 = arith.constant 0 : i32
    %237 = tpu.memref_slice %arg10[%c3_i32_214, %c2_i32_216, %c0_i32_217] : memref<8x8x128xf32, #tpu.memory_space<vmem>> -> memref<1x1x128xf32, #tpu.memory_space<vmem>>
    %238 = tpu.memref_squeeze %237 : memref<1x1x128xf32, #tpu.memory_space<vmem>> -> memref<1x128xf32, #tpu.memory_space<vmem>>
    tpu.enqueue_dma source(%236 : memref<1x128xf32, #tpu.memory_space<any>>) target(%238 : memref<1x128xf32, #tpu.memory_space<vmem>>) target_semaphore(%arg11 : memref<!tpu.dma_semaphore, #tpu.memory_space<semaphore_mem>>)
    %239 = arith.index_cast %199 : i32 to index
    %c3_218 = arith.constant 3 : index
    %240 = memref.load %arg3[%239, %c3_218] : memref<16x8xi32, #tpu.memory_space<smem>>
    %c3_i32_219 = arith.constant 3 : i32
    %c0_i32_220 = arith.constant 0 : i32
    %241 = tpu.memref_slice %arg6[%240, %c0_i32_220] : memref<256x128xf32, #tpu.memory_space<any>> -> memref<1x128xf32, #tpu.memory_space<any>>
    %c3_i32_221 = arith.constant 3 : i32
    %c0_i32_222 = arith.constant 0 : i32
    %242 = tpu.memref_slice %arg10[%c3_i32_219, %c3_i32_221, %c0_i32_222] : memref<8x8x128xf32, #tpu.memory_space<vmem>> -> memref<1x1x128xf32, #tpu.memory_space<vmem>>
    %243 = tpu.memref_squeeze %242 : memref<1x1x128xf32, #tpu.memory_space<vmem>> -> memref<1x128xf32, #tpu.memory_space<vmem>>
    tpu.enqueue_dma source(%241 : memref<1x128xf32, #tpu.memory_space<any>>) target(%243 : memref<1x128xf32, #tpu.memory_space<vmem>>) target_semaphore(%arg11 : memref<!tpu.dma_semaphore, #tpu.memory_space<semaphore_mem>>)
    %244 = arith.index_cast %199 : i32 to index
    %c4_223 = arith.constant 4 : index
    %245 = memref.load %arg3[%244, %c4_223] : memref<16x8xi32, #tpu.memory_space<smem>>
    %c3_i32_224 = arith.constant 3 : i32
    %c0_i32_225 = arith.constant 0 : i32
    %246 = tpu.memref_slice %arg6[%245, %c0_i32_225] : memref<256x128xf32, #tpu.memory_space<any>> -> memref<1x128xf32, #tpu.memory_space<any>>
    %c4_i32_226 = arith.constant 4 : i32
    %c0_i32_227 = arith.constant 0 : i32
    %247 = tpu.memref_slice %arg10[%c3_i32_224, %c4_i32_226, %c0_i32_227] : memref<8x8x128xf32, #tpu.memory_space<vmem>> -> memref<1x1x128xf32, #tpu.memory_space<vmem>>
    %248 = tpu.memref_squeeze %247 : memref<1x1x128xf32, #tpu.memory_space<vmem>> -> memref<1x128xf32, #tpu.memory_space<vmem>>
    tpu.enqueue_dma source(%246 : memref<1x128xf32, #tpu.memory_space<any>>) target(%248 : memref<1x128xf32, #tpu.memory_space<vmem>>) target_semaphore(%arg11 : memref<!tpu.dma_semaphore, #tpu.memory_space<semaphore_mem>>)
    %249 = arith.index_cast %199 : i32 to index
    %c5_228 = arith.constant 5 : index
    %250 = memref.load %arg3[%249, %c5_228] : memref<16x8xi32, #tpu.memory_space<smem>>
    %c3_i32_229 = arith.constant 3 : i32
    %c0_i32_230 = arith.constant 0 : i32
    %251 = tpu.memref_slice %arg6[%250, %c0_i32_230] : memref<256x128xf32, #tpu.memory_space<any>> -> memref<1x128xf32, #tpu.memory_space<any>>
    %c5_i32_231 = arith.constant 5 : i32
    %c0_i32_232 = arith.constant 0 : i32
    %252 = tpu.memref_slice %arg10[%c3_i32_229, %c5_i32_231, %c0_i32_232] : memref<8x8x128xf32, #tpu.memory_space<vmem>> -> memref<1x1x128xf32, #tpu.memory_space<vmem>>
    %253 = tpu.memref_squeeze %252 : memref<1x1x128xf32, #tpu.memory_space<vmem>> -> memref<1x128xf32, #tpu.memory_space<vmem>>
    tpu.enqueue_dma source(%251 : memref<1x128xf32, #tpu.memory_space<any>>) target(%253 : memref<1x128xf32, #tpu.memory_space<vmem>>) target_semaphore(%arg11 : memref<!tpu.dma_semaphore, #tpu.memory_space<semaphore_mem>>)
    %254 = arith.index_cast %199 : i32 to index
    %c6_233 = arith.constant 6 : index
    %255 = memref.load %arg3[%254, %c6_233] : memref<16x8xi32, #tpu.memory_space<smem>>
    %c3_i32_234 = arith.constant 3 : i32
    %c0_i32_235 = arith.constant 0 : i32
    %256 = tpu.memref_slice %arg6[%255, %c0_i32_235] : memref<256x128xf32, #tpu.memory_space<any>> -> memref<1x128xf32, #tpu.memory_space<any>>
    %c6_i32_236 = arith.constant 6 : i32
    %c0_i32_237 = arith.constant 0 : i32
    %257 = tpu.memref_slice %arg10[%c3_i32_234, %c6_i32_236, %c0_i32_237] : memref<8x8x128xf32, #tpu.memory_space<vmem>> -> memref<1x1x128xf32, #tpu.memory_space<vmem>>
    %258 = tpu.memref_squeeze %257 : memref<1x1x128xf32, #tpu.memory_space<vmem>> -> memref<1x128xf32, #tpu.memory_space<vmem>>
    tpu.enqueue_dma source(%256 : memref<1x128xf32, #tpu.memory_space<any>>) target(%258 : memref<1x128xf32, #tpu.memory_space<vmem>>) target_semaphore(%arg11 : memref<!tpu.dma_semaphore, #tpu.memory_space<semaphore_mem>>)
    %259 = arith.index_cast %199 : i32 to index
    %c7_238 = arith.constant 7 : index
    %260 = memref.load %arg3[%259, %c7_238] : memref<16x8xi32, #tpu.memory_space<smem>>
    %c3_i32_239 = arith.constant 3 : i32
    %c0_i32_240 = arith.constant 0 : i32
    %261 = tpu.memref_slice %arg6[%260, %c0_i32_240] : memref<256x128xf32, #tpu.memory_space<any>> -> memref<1x128xf32, #tpu.memory_space<any>>
    %c7_i32_241 = arith.constant 7 : i32
    %c0_i32_242 = arith.constant 0 : i32
    %262 = tpu.memref_slice %arg10[%c3_i32_239, %c7_i32_241, %c0_i32_242] : memref<8x8x128xf32, #tpu.memory_space<vmem>> -> memref<1x1x128xf32, #tpu.memory_space<vmem>>
    %263 = tpu.memref_squeeze %262 : memref<1x1x128xf32, #tpu.memory_space<vmem>> -> memref<1x128xf32, #tpu.memory_space<vmem>>
    tpu.enqueue_dma source(%261 : memref<1x128xf32, #tpu.memory_space<any>>) target(%263 : memref<1x128xf32, #tpu.memory_space<vmem>>) target_semaphore(%arg11 : memref<!tpu.dma_semaphore, #tpu.memory_space<semaphore_mem>>)
    %c8_i32_243 = arith.constant 8 : i32
    %264 = arith.muli %arg0, %c8_i32_243 : i32
    %c4_i32_244 = arith.constant 4 : i32
    %265 = arith.addi %264, %c4_i32_244 : i32
    %266 = arith.index_cast %265 : i32 to index
    %267 = memref.load %arg1[%266] : memref<16xi32, #tpu.memory_space<smem>>
    %c0_i32_245 = arith.constant 0 : i32
    %268 = tpu.memref_slice %arg4[%267, %c0_i32_245] : memref<64x128xf32, #tpu.memory_space<any>> -> memref<1x128xf32, #tpu.memory_space<any>>
    %c4_i32_246 = arith.constant 4 : i32
    %c0_i32_247 = arith.constant 0 : i32
    %269 = tpu.memref_slice %arg8[%c4_i32_246, %c0_i32_247] : memref<8x128xf32, #tpu.memory_space<vmem>> -> memref<1x128xf32, #tpu.memory_space<vmem>>
    tpu.enqueue_dma source(%268 : memref<1x128xf32, #tpu.memory_space<any>>) target(%269 : memref<1x128xf32, #tpu.memory_space<vmem>>) target_semaphore(%arg11 : memref<!tpu.dma_semaphore, #tpu.memory_space<semaphore_mem>>)
    %270 = arith.index_cast %265 : i32 to index
    %c0_248 = arith.constant 0 : index
    %271 = memref.load %arg2[%270, %c0_248] : memref<16x4xi32, #tpu.memory_space<smem>>
    %c4_i32_249 = arith.constant 4 : i32
    %c0_i32_250 = arith.constant 0 : i32
    %272 = tpu.memref_slice %arg5[%271, %c0_i32_250] : memref<256x128xf32, #tpu.memory_space<any>> -> memref<1x128xf32, #tpu.memory_space<any>>
    %c0_i32_251 = arith.constant 0 : i32
    %c0_i32_252 = arith.constant 0 : i32
    %273 = tpu.memref_slice %arg9[%c4_i32_249, %c0_i32_251, %c0_i32_252] : memref<8x4x128xf32, #tpu.memory_space<vmem>> -> memref<1x1x128xf32, #tpu.memory_space<vmem>>
    %274 = tpu.memref_squeeze %273 : memref<1x1x128xf32, #tpu.memory_space<vmem>> -> memref<1x128xf32, #tpu.memory_space<vmem>>
    tpu.enqueue_dma source(%272 : memref<1x128xf32, #tpu.memory_space<any>>) target(%274 : memref<1x128xf32, #tpu.memory_space<vmem>>) target_semaphore(%arg11 : memref<!tpu.dma_semaphore, #tpu.memory_space<semaphore_mem>>)
    %275 = arith.index_cast %265 : i32 to index
    %c1_253 = arith.constant 1 : index
    %276 = memref.load %arg2[%275, %c1_253] : memref<16x4xi32, #tpu.memory_space<smem>>
    %c4_i32_254 = arith.constant 4 : i32
    %c0_i32_255 = arith.constant 0 : i32
    %277 = tpu.memref_slice %arg5[%276, %c0_i32_255] : memref<256x128xf32, #tpu.memory_space<any>> -> memref<1x128xf32, #tpu.memory_space<any>>
    %c1_i32_256 = arith.constant 1 : i32
    %c0_i32_257 = arith.constant 0 : i32
    %278 = tpu.memref_slice %arg9[%c4_i32_254, %c1_i32_256, %c0_i32_257] : memref<8x4x128xf32, #tpu.memory_space<vmem>> -> memref<1x1x128xf32, #tpu.memory_space<vmem>>
    %279 = tpu.memref_squeeze %278 : memref<1x1x128xf32, #tpu.memory_space<vmem>> -> memref<1x128xf32, #tpu.memory_space<vmem>>
    tpu.enqueue_dma source(%277 : memref<1x128xf32, #tpu.memory_space<any>>) target(%279 : memref<1x128xf32, #tpu.memory_space<vmem>>) target_semaphore(%arg11 : memref<!tpu.dma_semaphore, #tpu.memory_space<semaphore_mem>>)
    %280 = arith.index_cast %265 : i32 to index
    %c2_258 = arith.constant 2 : index
    %281 = memref.load %arg2[%280, %c2_258] : memref<16x4xi32, #tpu.memory_space<smem>>
    %c4_i32_259 = arith.constant 4 : i32
    %c0_i32_260 = arith.constant 0 : i32
    %282 = tpu.memref_slice %arg5[%281, %c0_i32_260] : memref<256x128xf32, #tpu.memory_space<any>> -> memref<1x128xf32, #tpu.memory_space<any>>
    %c2_i32_261 = arith.constant 2 : i32
    %c0_i32_262 = arith.constant 0 : i32
    %283 = tpu.memref_slice %arg9[%c4_i32_259, %c2_i32_261, %c0_i32_262] : memref<8x4x128xf32, #tpu.memory_space<vmem>> -> memref<1x1x128xf32, #tpu.memory_space<vmem>>
    %284 = tpu.memref_squeeze %283 : memref<1x1x128xf32, #tpu.memory_space<vmem>> -> memref<1x128xf32, #tpu.memory_space<vmem>>
    tpu.enqueue_dma source(%282 : memref<1x128xf32, #tpu.memory_space<any>>) target(%284 : memref<1x128xf32, #tpu.memory_space<vmem>>) target_semaphore(%arg11 : memref<!tpu.dma_semaphore, #tpu.memory_space<semaphore_mem>>)
    %285 = arith.index_cast %265 : i32 to index
    %c3_263 = arith.constant 3 : index
    %286 = memref.load %arg2[%285, %c3_263] : memref<16x4xi32, #tpu.memory_space<smem>>
    %c4_i32_264 = arith.constant 4 : i32
    %c0_i32_265 = arith.constant 0 : i32
    %287 = tpu.memref_slice %arg5[%286, %c0_i32_265] : memref<256x128xf32, #tpu.memory_space<any>> -> memref<1x128xf32, #tpu.memory_space<any>>
    %c3_i32_266 = arith.constant 3 : i32
    %c0_i32_267 = arith.constant 0 : i32
    %288 = tpu.memref_slice %arg9[%c4_i32_264, %c3_i32_266, %c0_i32_267] : memref<8x4x128xf32, #tpu.memory_space<vmem>> -> memref<1x1x128xf32, #tpu.memory_space<vmem>>
    %289 = tpu.memref_squeeze %288 : memref<1x1x128xf32, #tpu.memory_space<vmem>> -> memref<1x128xf32, #tpu.memory_space<vmem>>
    tpu.enqueue_dma source(%287 : memref<1x128xf32, #tpu.memory_space<any>>) target(%289 : memref<1x128xf32, #tpu.memory_space<vmem>>) target_semaphore(%arg11 : memref<!tpu.dma_semaphore, #tpu.memory_space<semaphore_mem>>)
    %290 = arith.index_cast %265 : i32 to index
    %c0_268 = arith.constant 0 : index
    %291 = memref.load %arg3[%290, %c0_268] : memref<16x8xi32, #tpu.memory_space<smem>>
    %c4_i32_269 = arith.constant 4 : i32
    %c0_i32_270 = arith.constant 0 : i32
    %292 = tpu.memref_slice %arg6[%291, %c0_i32_270] : memref<256x128xf32, #tpu.memory_space<any>> -> memref<1x128xf32, #tpu.memory_space<any>>
    %c0_i32_271 = arith.constant 0 : i32
    %c0_i32_272 = arith.constant 0 : i32
    %293 = tpu.memref_slice %arg10[%c4_i32_269, %c0_i32_271, %c0_i32_272] : memref<8x8x128xf32, #tpu.memory_space<vmem>> -> memref<1x1x128xf32, #tpu.memory_space<vmem>>
    %294 = tpu.memref_squeeze %293 : memref<1x1x128xf32, #tpu.memory_space<vmem>> -> memref<1x128xf32, #tpu.memory_space<vmem>>
    tpu.enqueue_dma source(%292 : memref<1x128xf32, #tpu.memory_space<any>>) target(%294 : memref<1x128xf32, #tpu.memory_space<vmem>>) target_semaphore(%arg11 : memref<!tpu.dma_semaphore, #tpu.memory_space<semaphore_mem>>)
    %295 = arith.index_cast %265 : i32 to index
    %c1_273 = arith.constant 1 : index
    %296 = memref.load %arg3[%295, %c1_273] : memref<16x8xi32, #tpu.memory_space<smem>>
    %c4_i32_274 = arith.constant 4 : i32
    %c0_i32_275 = arith.constant 0 : i32
    %297 = tpu.memref_slice %arg6[%296, %c0_i32_275] : memref<256x128xf32, #tpu.memory_space<any>> -> memref<1x128xf32, #tpu.memory_space<any>>
    %c1_i32_276 = arith.constant 1 : i32
    %c0_i32_277 = arith.constant 0 : i32
    %298 = tpu.memref_slice %arg10[%c4_i32_274, %c1_i32_276, %c0_i32_277] : memref<8x8x128xf32, #tpu.memory_space<vmem>> -> memref<1x1x128xf32, #tpu.memory_space<vmem>>
    %299 = tpu.memref_squeeze %298 : memref<1x1x128xf32, #tpu.memory_space<vmem>> -> memref<1x128xf32, #tpu.memory_space<vmem>>
    tpu.enqueue_dma source(%297 : memref<1x128xf32, #tpu.memory_space<any>>) target(%299 : memref<1x128xf32, #tpu.memory_space<vmem>>) target_semaphore(%arg11 : memref<!tpu.dma_semaphore, #tpu.memory_space<semaphore_mem>>)
    %300 = arith.index_cast %265 : i32 to index
    %c2_278 = arith.constant 2 : index
    %301 = memref.load %arg3[%300, %c2_278] : memref<16x8xi32, #tpu.memory_space<smem>>
    %c4_i32_279 = arith.constant 4 : i32
    %c0_i32_280 = arith.constant 0 : i32
    %302 = tpu.memref_slice %arg6[%301, %c0_i32_280] : memref<256x128xf32, #tpu.memory_space<any>> -> memref<1x128xf32, #tpu.memory_space<any>>
    %c2_i32_281 = arith.constant 2 : i32
    %c0_i32_282 = arith.constant 0 : i32
    %303 = tpu.memref_slice %arg10[%c4_i32_279, %c2_i32_281, %c0_i32_282] : memref<8x8x128xf32, #tpu.memory_space<vmem>> -> memref<1x1x128xf32, #tpu.memory_space<vmem>>
    %304 = tpu.memref_squeeze %303 : memref<1x1x128xf32, #tpu.memory_space<vmem>> -> memref<1x128xf32, #tpu.memory_space<vmem>>
    tpu.enqueue_dma source(%302 : memref<1x128xf32, #tpu.memory_space<any>>) target(%304 : memref<1x128xf32, #tpu.memory_space<vmem>>) target_semaphore(%arg11 : memref<!tpu.dma_semaphore, #tpu.memory_space<semaphore_mem>>)
    %305 = arith.index_cast %265 : i32 to index
    %c3_283 = arith.constant 3 : index
    %306 = memref.load %arg3[%305, %c3_283] : memref<16x8xi32, #tpu.memory_space<smem>>
    %c4_i32_284 = arith.constant 4 : i32
    %c0_i32_285 = arith.constant 0 : i32
    %307 = tpu.memref_slice %arg6[%306, %c0_i32_285] : memref<256x128xf32, #tpu.memory_space<any>> -> memref<1x128xf32, #tpu.memory_space<any>>
    %c3_i32_286 = arith.constant 3 : i32
    %c0_i32_287 = arith.constant 0 : i32
    %308 = tpu.memref_slice %arg10[%c4_i32_284, %c3_i32_286, %c0_i32_287] : memref<8x8x128xf32, #tpu.memory_space<vmem>> -> memref<1x1x128xf32, #tpu.memory_space<vmem>>
    %309 = tpu.memref_squeeze %308 : memref<1x1x128xf32, #tpu.memory_space<vmem>> -> memref<1x128xf32, #tpu.memory_space<vmem>>
    tpu.enqueue_dma source(%307 : memref<1x128xf32, #tpu.memory_space<any>>) target(%309 : memref<1x128xf32, #tpu.memory_space<vmem>>) target_semaphore(%arg11 : memref<!tpu.dma_semaphore, #tpu.memory_space<semaphore_mem>>)
    %310 = arith.index_cast %265 : i32 to index
    %c4_288 = arith.constant 4 : index
    %311 = memref.load %arg3[%310, %c4_288] : memref<16x8xi32, #tpu.memory_space<smem>>
    %c4_i32_289 = arith.constant 4 : i32
    %c0_i32_290 = arith.constant 0 : i32
    %312 = tpu.memref_slice %arg6[%311, %c0_i32_290] : memref<256x128xf32, #tpu.memory_space<any>> -> memref<1x128xf32, #tpu.memory_space<any>>
    %c4_i32_291 = arith.constant 4 : i32
    %c0_i32_292 = arith.constant 0 : i32
    %313 = tpu.memref_slice %arg10[%c4_i32_289, %c4_i32_291, %c0_i32_292] : memref<8x8x128xf32, #tpu.memory_space<vmem>> -> memref<1x1x128xf32, #tpu.memory_space<vmem>>
    %314 = tpu.memref_squeeze %313 : memref<1x1x128xf32, #tpu.memory_space<vmem>> -> memref<1x128xf32, #tpu.memory_space<vmem>>
    tpu.enqueue_dma source(%312 : memref<1x128xf32, #tpu.memory_space<any>>) target(%314 : memref<1x128xf32, #tpu.memory_space<vmem>>) target_semaphore(%arg11 : memref<!tpu.dma_semaphore, #tpu.memory_space<semaphore_mem>>)
    %315 = arith.index_cast %265 : i32 to index
    %c5_293 = arith.constant 5 : index
    %316 = memref.load %arg3[%315, %c5_293] : memref<16x8xi32, #tpu.memory_space<smem>>
    %c4_i32_294 = arith.constant 4 : i32
    %c0_i32_295 = arith.constant 0 : i32
    %317 = tpu.memref_slice %arg6[%316, %c0_i32_295] : memref<256x128xf32, #tpu.memory_space<any>> -> memref<1x128xf32, #tpu.memory_space<any>>
    %c5_i32_296 = arith.constant 5 : i32
    %c0_i32_297 = arith.constant 0 : i32
    %318 = tpu.memref_slice %arg10[%c4_i32_294, %c5_i32_296, %c0_i32_297] : memref<8x8x128xf32, #tpu.memory_space<vmem>> -> memref<1x1x128xf32, #tpu.memory_space<vmem>>
    %319 = tpu.memref_squeeze %318 : memref<1x1x128xf32, #tpu.memory_space<vmem>> -> memref<1x128xf32, #tpu.memory_space<vmem>>
    tpu.enqueue_dma source(%317 : memref<1x128xf32, #tpu.memory_space<any>>) target(%319 : memref<1x128xf32, #tpu.memory_space<vmem>>) target_semaphore(%arg11 : memref<!tpu.dma_semaphore, #tpu.memory_space<semaphore_mem>>)
    %320 = arith.index_cast %265 : i32 to index
    %c6_298 = arith.constant 6 : index
    %321 = memref.load %arg3[%320, %c6_298] : memref<16x8xi32, #tpu.memory_space<smem>>
    %c4_i32_299 = arith.constant 4 : i32
    %c0_i32_300 = arith.constant 0 : i32
    %322 = tpu.memref_slice %arg6[%321, %c0_i32_300] : memref<256x128xf32, #tpu.memory_space<any>> -> memref<1x128xf32, #tpu.memory_space<any>>
    %c6_i32_301 = arith.constant 6 : i32
    %c0_i32_302 = arith.constant 0 : i32
    %323 = tpu.memref_slice %arg10[%c4_i32_299, %c6_i32_301, %c0_i32_302] : memref<8x8x128xf32, #tpu.memory_space<vmem>> -> memref<1x1x128xf32, #tpu.memory_space<vmem>>
    %324 = tpu.memref_squeeze %323 : memref<1x1x128xf32, #tpu.memory_space<vmem>> -> memref<1x128xf32, #tpu.memory_space<vmem>>
    tpu.enqueue_dma source(%322 : memref<1x128xf32, #tpu.memory_space<any>>) target(%324 : memref<1x128xf32, #tpu.memory_space<vmem>>) target_semaphore(%arg11 : memref<!tpu.dma_semaphore, #tpu.memory_space<semaphore_mem>>)
    %325 = arith.index_cast %265 : i32 to index
    %c7_303 = arith.constant 7 : index
    %326 = memref.load %arg3[%325, %c7_303] : memref<16x8xi32, #tpu.memory_space<smem>>
    %c4_i32_304 = arith.constant 4 : i32
    %c0_i32_305 = arith.constant 0 : i32
    %327 = tpu.memref_slice %arg6[%326, %c0_i32_305] : memref<256x128xf32, #tpu.memory_space<any>> -> memref<1x128xf32, #tpu.memory_space<any>>
    %c7_i32_306 = arith.constant 7 : i32
    %c0_i32_307 = arith.constant 0 : i32
    %328 = tpu.memref_slice %arg10[%c4_i32_304, %c7_i32_306, %c0_i32_307] : memref<8x8x128xf32, #tpu.memory_space<vmem>> -> memref<1x1x128xf32, #tpu.memory_space<vmem>>
    %329 = tpu.memref_squeeze %328 : memref<1x1x128xf32, #tpu.memory_space<vmem>> -> memref<1x128xf32, #tpu.memory_space<vmem>>
    tpu.enqueue_dma source(%327 : memref<1x128xf32, #tpu.memory_space<any>>) target(%329 : memref<1x128xf32, #tpu.memory_space<vmem>>) target_semaphore(%arg11 : memref<!tpu.dma_semaphore, #tpu.memory_space<semaphore_mem>>)
    %c8_i32_308 = arith.constant 8 : i32
    %330 = arith.muli %arg0, %c8_i32_308 : i32
    %c5_i32_309 = arith.constant 5 : i32
    %331 = arith.addi %330, %c5_i32_309 : i32
    %332 = arith.index_cast %331 : i32 to index
    %333 = memref.load %arg1[%332] : memref<16xi32, #tpu.memory_space<smem>>
    %c0_i32_310 = arith.constant 0 : i32
    %334 = tpu.memref_slice %arg4[%333, %c0_i32_310] : memref<64x128xf32, #tpu.memory_space<any>> -> memref<1x128xf32, #tpu.memory_space<any>>
    %c5_i32_311 = arith.constant 5 : i32
    %c0_i32_312 = arith.constant 0 : i32
    %335 = tpu.memref_slice %arg8[%c5_i32_311, %c0_i32_312] : memref<8x128xf32, #tpu.memory_space<vmem>> -> memref<1x128xf32, #tpu.memory_space<vmem>>
    tpu.enqueue_dma source(%334 : memref<1x128xf32, #tpu.memory_space<any>>) target(%335 : memref<1x128xf32, #tpu.memory_space<vmem>>) target_semaphore(%arg11 : memref<!tpu.dma_semaphore, #tpu.memory_space<semaphore_mem>>)
    %336 = arith.index_cast %331 : i32 to index
    %c0_313 = arith.constant 0 : index
    %337 = memref.load %arg2[%336, %c0_313] : memref<16x4xi32, #tpu.memory_space<smem>>
    %c5_i32_314 = arith.constant 5 : i32
    %c0_i32_315 = arith.constant 0 : i32
    %338 = tpu.memref_slice %arg5[%337, %c0_i32_315] : memref<256x128xf32, #tpu.memory_space<any>> -> memref<1x128xf32, #tpu.memory_space<any>>
    %c0_i32_316 = arith.constant 0 : i32
    %c0_i32_317 = arith.constant 0 : i32
    %339 = tpu.memref_slice %arg9[%c5_i32_314, %c0_i32_316, %c0_i32_317] : memref<8x4x128xf32, #tpu.memory_space<vmem>> -> memref<1x1x128xf32, #tpu.memory_space<vmem>>
    %340 = tpu.memref_squeeze %339 : memref<1x1x128xf32, #tpu.memory_space<vmem>> -> memref<1x128xf32, #tpu.memory_space<vmem>>
    tpu.enqueue_dma source(%338 : memref<1x128xf32, #tpu.memory_space<any>>) target(%340 : memref<1x128xf32, #tpu.memory_space<vmem>>) target_semaphore(%arg11 : memref<!tpu.dma_semaphore, #tpu.memory_space<semaphore_mem>>)
    %341 = arith.index_cast %331 : i32 to index
    %c1_318 = arith.constant 1 : index
    %342 = memref.load %arg2[%341, %c1_318] : memref<16x4xi32, #tpu.memory_space<smem>>
    %c5_i32_319 = arith.constant 5 : i32
    %c0_i32_320 = arith.constant 0 : i32
    %343 = tpu.memref_slice %arg5[%342, %c0_i32_320] : memref<256x128xf32, #tpu.memory_space<any>> -> memref<1x128xf32, #tpu.memory_space<any>>
    %c1_i32_321 = arith.constant 1 : i32
    %c0_i32_322 = arith.constant 0 : i32
    %344 = tpu.memref_slice %arg9[%c5_i32_319, %c1_i32_321, %c0_i32_322] : memref<8x4x128xf32, #tpu.memory_space<vmem>> -> memref<1x1x128xf32, #tpu.memory_space<vmem>>
    %345 = tpu.memref_squeeze %344 : memref<1x1x128xf32, #tpu.memory_space<vmem>> -> memref<1x128xf32, #tpu.memory_space<vmem>>
    tpu.enqueue_dma source(%343 : memref<1x128xf32, #tpu.memory_space<any>>) target(%345 : memref<1x128xf32, #tpu.memory_space<vmem>>) target_semaphore(%arg11 : memref<!tpu.dma_semaphore, #tpu.memory_space<semaphore_mem>>)
    %346 = arith.index_cast %331 : i32 to index
    %c2_323 = arith.constant 2 : index
    %347 = memref.load %arg2[%346, %c2_323] : memref<16x4xi32, #tpu.memory_space<smem>>
    %c5_i32_324 = arith.constant 5 : i32
    %c0_i32_325 = arith.constant 0 : i32
    %348 = tpu.memref_slice %arg5[%347, %c0_i32_325] : memref<256x128xf32, #tpu.memory_space<any>> -> memref<1x128xf32, #tpu.memory_space<any>>
    %c2_i32_326 = arith.constant 2 : i32
    %c0_i32_327 = arith.constant 0 : i32
    %349 = tpu.memref_slice %arg9[%c5_i32_324, %c2_i32_326, %c0_i32_327] : memref<8x4x128xf32, #tpu.memory_space<vmem>> -> memref<1x1x128xf32, #tpu.memory_space<vmem>>
    %350 = tpu.memref_squeeze %349 : memref<1x1x128xf32, #tpu.memory_space<vmem>> -> memref<1x128xf32, #tpu.memory_space<vmem>>
    tpu.enqueue_dma source(%348 : memref<1x128xf32, #tpu.memory_space<any>>) target(%350 : memref<1x128xf32, #tpu.memory_space<vmem>>) target_semaphore(%arg11 : memref<!tpu.dma_semaphore, #tpu.memory_space<semaphore_mem>>)
    %351 = arith.index_cast %331 : i32 to index
    %c3_328 = arith.constant 3 : index
    %352 = memref.load %arg2[%351, %c3_328] : memref<16x4xi32, #tpu.memory_space<smem>>
    %c5_i32_329 = arith.constant 5 : i32
    %c0_i32_330 = arith.constant 0 : i32
    %353 = tpu.memref_slice %arg5[%352, %c0_i32_330] : memref<256x128xf32, #tpu.memory_space<any>> -> memref<1x128xf32, #tpu.memory_space<any>>
    %c3_i32_331 = arith.constant 3 : i32
    %c0_i32_332 = arith.constant 0 : i32
    %354 = tpu.memref_slice %arg9[%c5_i32_329, %c3_i32_331, %c0_i32_332] : memref<8x4x128xf32, #tpu.memory_space<vmem>> -> memref<1x1x128xf32, #tpu.memory_space<vmem>>
    %355 = tpu.memref_squeeze %354 : memref<1x1x128xf32, #tpu.memory_space<vmem>> -> memref<1x128xf32, #tpu.memory_space<vmem>>
    tpu.enqueue_dma source(%353 : memref<1x128xf32, #tpu.memory_space<any>>) target(%355 : memref<1x128xf32, #tpu.memory_space<vmem>>) target_semaphore(%arg11 : memref<!tpu.dma_semaphore, #tpu.memory_space<semaphore_mem>>)
    %356 = arith.index_cast %331 : i32 to index
    %c0_333 = arith.constant 0 : index
    %357 = memref.load %arg3[%356, %c0_333] : memref<16x8xi32, #tpu.memory_space<smem>>
    %c5_i32_334 = arith.constant 5 : i32
    %c0_i32_335 = arith.constant 0 : i32
    %358 = tpu.memref_slice %arg6[%357, %c0_i32_335] : memref<256x128xf32, #tpu.memory_space<any>> -> memref<1x128xf32, #tpu.memory_space<any>>
    %c0_i32_336 = arith.constant 0 : i32
    %c0_i32_337 = arith.constant 0 : i32
    %359 = tpu.memref_slice %arg10[%c5_i32_334, %c0_i32_336, %c0_i32_337] : memref<8x8x128xf32, #tpu.memory_space<vmem>> -> memref<1x1x128xf32, #tpu.memory_space<vmem>>
    %360 = tpu.memref_squeeze %359 : memref<1x1x128xf32, #tpu.memory_space<vmem>> -> memref<1x128xf32, #tpu.memory_space<vmem>>
    tpu.enqueue_dma source(%358 : memref<1x128xf32, #tpu.memory_space<any>>) target(%360 : memref<1x128xf32, #tpu.memory_space<vmem>>) target_semaphore(%arg11 : memref<!tpu.dma_semaphore, #tpu.memory_space<semaphore_mem>>)
    %361 = arith.index_cast %331 : i32 to index
    %c1_338 = arith.constant 1 : index
    %362 = memref.load %arg3[%361, %c1_338] : memref<16x8xi32, #tpu.memory_space<smem>>
    %c5_i32_339 = arith.constant 5 : i32
    %c0_i32_340 = arith.constant 0 : i32
    %363 = tpu.memref_slice %arg6[%362, %c0_i32_340] : memref<256x128xf32, #tpu.memory_space<any>> -> memref<1x128xf32, #tpu.memory_space<any>>
    %c1_i32_341 = arith.constant 1 : i32
    %c0_i32_342 = arith.constant 0 : i32
    %364 = tpu.memref_slice %arg10[%c5_i32_339, %c1_i32_341, %c0_i32_342] : memref<8x8x128xf32, #tpu.memory_space<vmem>> -> memref<1x1x128xf32, #tpu.memory_space<vmem>>
    %365 = tpu.memref_squeeze %364 : memref<1x1x128xf32, #tpu.memory_space<vmem>> -> memref<1x128xf32, #tpu.memory_space<vmem>>
    tpu.enqueue_dma source(%363 : memref<1x128xf32, #tpu.memory_space<any>>) target(%365 : memref<1x128xf32, #tpu.memory_space<vmem>>) target_semaphore(%arg11 : memref<!tpu.dma_semaphore, #tpu.memory_space<semaphore_mem>>)
    %366 = arith.index_cast %331 : i32 to index
    %c2_343 = arith.constant 2 : index
    %367 = memref.load %arg3[%366, %c2_343] : memref<16x8xi32, #tpu.memory_space<smem>>
    %c5_i32_344 = arith.constant 5 : i32
    %c0_i32_345 = arith.constant 0 : i32
    %368 = tpu.memref_slice %arg6[%367, %c0_i32_345] : memref<256x128xf32, #tpu.memory_space<any>> -> memref<1x128xf32, #tpu.memory_space<any>>
    %c2_i32_346 = arith.constant 2 : i32
    %c0_i32_347 = arith.constant 0 : i32
    %369 = tpu.memref_slice %arg10[%c5_i32_344, %c2_i32_346, %c0_i32_347] : memref<8x8x128xf32, #tpu.memory_space<vmem>> -> memref<1x1x128xf32, #tpu.memory_space<vmem>>
    %370 = tpu.memref_squeeze %369 : memref<1x1x128xf32, #tpu.memory_space<vmem>> -> memref<1x128xf32, #tpu.memory_space<vmem>>
    tpu.enqueue_dma source(%368 : memref<1x128xf32, #tpu.memory_space<any>>) target(%370 : memref<1x128xf32, #tpu.memory_space<vmem>>) target_semaphore(%arg11 : memref<!tpu.dma_semaphore, #tpu.memory_space<semaphore_mem>>)
    %371 = arith.index_cast %331 : i32 to index
    %c3_348 = arith.constant 3 : index
    %372 = memref.load %arg3[%371, %c3_348] : memref<16x8xi32, #tpu.memory_space<smem>>
    %c5_i32_349 = arith.constant 5 : i32
    %c0_i32_350 = arith.constant 0 : i32
    %373 = tpu.memref_slice %arg6[%372, %c0_i32_350] : memref<256x128xf32, #tpu.memory_space<any>> -> memref<1x128xf32, #tpu.memory_space<any>>
    %c3_i32_351 = arith.constant 3 : i32
    %c0_i32_352 = arith.constant 0 : i32
    %374 = tpu.memref_slice %arg10[%c5_i32_349, %c3_i32_351, %c0_i32_352] : memref<8x8x128xf32, #tpu.memory_space<vmem>> -> memref<1x1x128xf32, #tpu.memory_space<vmem>>
    %375 = tpu.memref_squeeze %374 : memref<1x1x128xf32, #tpu.memory_space<vmem>> -> memref<1x128xf32, #tpu.memory_space<vmem>>
    tpu.enqueue_dma source(%373 : memref<1x128xf32, #tpu.memory_space<any>>) target(%375 : memref<1x128xf32, #tpu.memory_space<vmem>>) target_semaphore(%arg11 : memref<!tpu.dma_semaphore, #tpu.memory_space<semaphore_mem>>)
    %376 = arith.index_cast %331 : i32 to index
    %c4_353 = arith.constant 4 : index
    %377 = memref.load %arg3[%376, %c4_353] : memref<16x8xi32, #tpu.memory_space<smem>>
    %c5_i32_354 = arith.constant 5 : i32
    %c0_i32_355 = arith.constant 0 : i32
    %378 = tpu.memref_slice %arg6[%377, %c0_i32_355] : memref<256x128xf32, #tpu.memory_space<any>> -> memref<1x128xf32, #tpu.memory_space<any>>
    %c4_i32_356 = arith.constant 4 : i32
    %c0_i32_357 = arith.constant 0 : i32
    %379 = tpu.memref_slice %arg10[%c5_i32_354, %c4_i32_356, %c0_i32_357] : memref<8x8x128xf32, #tpu.memory_space<vmem>> -> memref<1x1x128xf32, #tpu.memory_space<vmem>>
    %380 = tpu.memref_squeeze %379 : memref<1x1x128xf32, #tpu.memory_space<vmem>> -> memref<1x128xf32, #tpu.memory_space<vmem>>
    tpu.enqueue_dma source(%378 : memref<1x128xf32, #tpu.memory_space<any>>) target(%380 : memref<1x128xf32, #tpu.memory_space<vmem>>) target_semaphore(%arg11 : memref<!tpu.dma_semaphore, #tpu.memory_space<semaphore_mem>>)
    %381 = arith.index_cast %331 : i32 to index
    %c5_358 = arith.constant 5 : index
    %382 = memref.load %arg3[%381, %c5_358] : memref<16x8xi32, #tpu.memory_space<smem>>
    %c5_i32_359 = arith.constant 5 : i32
    %c0_i32_360 = arith.constant 0 : i32
    %383 = tpu.memref_slice %arg6[%382, %c0_i32_360] : memref<256x128xf32, #tpu.memory_space<any>> -> memref<1x128xf32, #tpu.memory_space<any>>
    %c5_i32_361 = arith.constant 5 : i32
    %c0_i32_362 = arith.constant 0 : i32
    %384 = tpu.memref_slice %arg10[%c5_i32_359, %c5_i32_361, %c0_i32_362] : memref<8x8x128xf32, #tpu.memory_space<vmem>> -> memref<1x1x128xf32, #tpu.memory_space<vmem>>
    %385 = tpu.memref_squeeze %384 : memref<1x1x128xf32, #tpu.memory_space<vmem>> -> memref<1x128xf32, #tpu.memory_space<vmem>>
    tpu.enqueue_dma source(%383 : memref<1x128xf32, #tpu.memory_space<any>>) target(%385 : memref<1x128xf32, #tpu.memory_space<vmem>>) target_semaphore(%arg11 : memref<!tpu.dma_semaphore, #tpu.memory_space<semaphore_mem>>)
    %386 = arith.index_cast %331 : i32 to index
    %c6_363 = arith.constant 6 : index
    %387 = memref.load %arg3[%386, %c6_363] : memref<16x8xi32, #tpu.memory_space<smem>>
    %c5_i32_364 = arith.constant 5 : i32
    %c0_i32_365 = arith.constant 0 : i32
    %388 = tpu.memref_slice %arg6[%387, %c0_i32_365] : memref<256x128xf32, #tpu.memory_space<any>> -> memref<1x128xf32, #tpu.memory_space<any>>
    %c6_i32_366 = arith.constant 6 : i32
    %c0_i32_367 = arith.constant 0 : i32
    %389 = tpu.memref_slice %arg10[%c5_i32_364, %c6_i32_366, %c0_i32_367] : memref<8x8x128xf32, #tpu.memory_space<vmem>> -> memref<1x1x128xf32, #tpu.memory_space<vmem>>
    %390 = tpu.memref_squeeze %389 : memref<1x1x128xf32, #tpu.memory_space<vmem>> -> memref<1x128xf32, #tpu.memory_space<vmem>>
    tpu.enqueue_dma source(%388 : memref<1x128xf32, #tpu.memory_space<any>>) target(%390 : memref<1x128xf32, #tpu.memory_space<vmem>>) target_semaphore(%arg11 : memref<!tpu.dma_semaphore, #tpu.memory_space<semaphore_mem>>)
    %391 = arith.index_cast %331 : i32 to index
    %c7_368 = arith.constant 7 : index
    %392 = memref.load %arg3[%391, %c7_368] : memref<16x8xi32, #tpu.memory_space<smem>>
    %c5_i32_369 = arith.constant 5 : i32
    %c0_i32_370 = arith.constant 0 : i32
    %393 = tpu.memref_slice %arg6[%392, %c0_i32_370] : memref<256x128xf32, #tpu.memory_space<any>> -> memref<1x128xf32, #tpu.memory_space<any>>
    %c7_i32_371 = arith.constant 7 : i32
    %c0_i32_372 = arith.constant 0 : i32
    %394 = tpu.memref_slice %arg10[%c5_i32_369, %c7_i32_371, %c0_i32_372] : memref<8x8x128xf32, #tpu.memory_space<vmem>> -> memref<1x1x128xf32, #tpu.memory_space<vmem>>
    %395 = tpu.memref_squeeze %394 : memref<1x1x128xf32, #tpu.memory_space<vmem>> -> memref<1x128xf32, #tpu.memory_space<vmem>>
    tpu.enqueue_dma source(%393 : memref<1x128xf32, #tpu.memory_space<any>>) target(%395 : memref<1x128xf32, #tpu.memory_space<vmem>>) target_semaphore(%arg11 : memref<!tpu.dma_semaphore, #tpu.memory_space<semaphore_mem>>)
    %c8_i32_373 = arith.constant 8 : i32
    %396 = arith.muli %arg0, %c8_i32_373 : i32
    %c6_i32_374 = arith.constant 6 : i32
    %397 = arith.addi %396, %c6_i32_374 : i32
    %398 = arith.index_cast %397 : i32 to index
    %399 = memref.load %arg1[%398] : memref<16xi32, #tpu.memory_space<smem>>
    %c0_i32_375 = arith.constant 0 : i32
    %400 = tpu.memref_slice %arg4[%399, %c0_i32_375] : memref<64x128xf32, #tpu.memory_space<any>> -> memref<1x128xf32, #tpu.memory_space<any>>
    %c6_i32_376 = arith.constant 6 : i32
    %c0_i32_377 = arith.constant 0 : i32
    %401 = tpu.memref_slice %arg8[%c6_i32_376, %c0_i32_377] : memref<8x128xf32, #tpu.memory_space<vmem>> -> memref<1x128xf32, #tpu.memory_space<vmem>>
    tpu.enqueue_dma source(%400 : memref<1x128xf32, #tpu.memory_space<any>>) target(%401 : memref<1x128xf32, #tpu.memory_space<vmem>>) target_semaphore(%arg11 : memref<!tpu.dma_semaphore, #tpu.memory_space<semaphore_mem>>)
    %402 = arith.index_cast %397 : i32 to index
    %c0_378 = arith.constant 0 : index
    %403 = memref.load %arg2[%402, %c0_378] : memref<16x4xi32, #tpu.memory_space<smem>>
    %c6_i32_379 = arith.constant 6 : i32
    %c0_i32_380 = arith.constant 0 : i32
    %404 = tpu.memref_slice %arg5[%403, %c0_i32_380] : memref<256x128xf32, #tpu.memory_space<any>> -> memref<1x128xf32, #tpu.memory_space<any>>
    %c0_i32_381 = arith.constant 0 : i32
    %c0_i32_382 = arith.constant 0 : i32
    %405 = tpu.memref_slice %arg9[%c6_i32_379, %c0_i32_381, %c0_i32_382] : memref<8x4x128xf32, #tpu.memory_space<vmem>> -> memref<1x1x128xf32, #tpu.memory_space<vmem>>
    %406 = tpu.memref_squeeze %405 : memref<1x1x128xf32, #tpu.memory_space<vmem>> -> memref<1x128xf32, #tpu.memory_space<vmem>>
    tpu.enqueue_dma source(%404 : memref<1x128xf32, #tpu.memory_space<any>>) target(%406 : memref<1x128xf32, #tpu.memory_space<vmem>>) target_semaphore(%arg11 : memref<!tpu.dma_semaphore, #tpu.memory_space<semaphore_mem>>)
    %407 = arith.index_cast %397 : i32 to index
    %c1_383 = arith.constant 1 : index
    %408 = memref.load %arg2[%407, %c1_383] : memref<16x4xi32, #tpu.memory_space<smem>>
    %c6_i32_384 = arith.constant 6 : i32
    %c0_i32_385 = arith.constant 0 : i32
    %409 = tpu.memref_slice %arg5[%408, %c0_i32_385] : memref<256x128xf32, #tpu.memory_space<any>> -> memref<1x128xf32, #tpu.memory_space<any>>
    %c1_i32_386 = arith.constant 1 : i32
    %c0_i32_387 = arith.constant 0 : i32
    %410 = tpu.memref_slice %arg9[%c6_i32_384, %c1_i32_386, %c0_i32_387] : memref<8x4x128xf32, #tpu.memory_space<vmem>> -> memref<1x1x128xf32, #tpu.memory_space<vmem>>
    %411 = tpu.memref_squeeze %410 : memref<1x1x128xf32, #tpu.memory_space<vmem>> -> memref<1x128xf32, #tpu.memory_space<vmem>>
    tpu.enqueue_dma source(%409 : memref<1x128xf32, #tpu.memory_space<any>>) target(%411 : memref<1x128xf32, #tpu.memory_space<vmem>>) target_semaphore(%arg11 : memref<!tpu.dma_semaphore, #tpu.memory_space<semaphore_mem>>)
    %412 = arith.index_cast %397 : i32 to index
    %c2_388 = arith.constant 2 : index
    %413 = memref.load %arg2[%412, %c2_388] : memref<16x4xi32, #tpu.memory_space<smem>>
    %c6_i32_389 = arith.constant 6 : i32
    %c0_i32_390 = arith.constant 0 : i32
    %414 = tpu.memref_slice %arg5[%413, %c0_i32_390] : memref<256x128xf32, #tpu.memory_space<any>> -> memref<1x128xf32, #tpu.memory_space<any>>
    %c2_i32_391 = arith.constant 2 : i32
    %c0_i32_392 = arith.constant 0 : i32
    %415 = tpu.memref_slice %arg9[%c6_i32_389, %c2_i32_391, %c0_i32_392] : memref<8x4x128xf32, #tpu.memory_space<vmem>> -> memref<1x1x128xf32, #tpu.memory_space<vmem>>
    %416 = tpu.memref_squeeze %415 : memref<1x1x128xf32, #tpu.memory_space<vmem>> -> memref<1x128xf32, #tpu.memory_space<vmem>>
    tpu.enqueue_dma source(%414 : memref<1x128xf32, #tpu.memory_space<any>>) target(%416 : memref<1x128xf32, #tpu.memory_space<vmem>>) target_semaphore(%arg11 : memref<!tpu.dma_semaphore, #tpu.memory_space<semaphore_mem>>)
    %417 = arith.index_cast %397 : i32 to index
    %c3_393 = arith.constant 3 : index
    %418 = memref.load %arg2[%417, %c3_393] : memref<16x4xi32, #tpu.memory_space<smem>>
    %c6_i32_394 = arith.constant 6 : i32
    %c0_i32_395 = arith.constant 0 : i32
    %419 = tpu.memref_slice %arg5[%418, %c0_i32_395] : memref<256x128xf32, #tpu.memory_space<any>> -> memref<1x128xf32, #tpu.memory_space<any>>
    %c3_i32_396 = arith.constant 3 : i32
    %c0_i32_397 = arith.constant 0 : i32
    %420 = tpu.memref_slice %arg9[%c6_i32_394, %c3_i32_396, %c0_i32_397] : memref<8x4x128xf32, #tpu.memory_space<vmem>> -> memref<1x1x128xf32, #tpu.memory_space<vmem>>
    %421 = tpu.memref_squeeze %420 : memref<1x1x128xf32, #tpu.memory_space<vmem>> -> memref<1x128xf32, #tpu.memory_space<vmem>>
    tpu.enqueue_dma source(%419 : memref<1x128xf32, #tpu.memory_space<any>>) target(%421 : memref<1x128xf32, #tpu.memory_space<vmem>>) target_semaphore(%arg11 : memref<!tpu.dma_semaphore, #tpu.memory_space<semaphore_mem>>)
    %422 = arith.index_cast %397 : i32 to index
    %c0_398 = arith.constant 0 : index
    %423 = memref.load %arg3[%422, %c0_398] : memref<16x8xi32, #tpu.memory_space<smem>>
    %c6_i32_399 = arith.constant 6 : i32
    %c0_i32_400 = arith.constant 0 : i32
    %424 = tpu.memref_slice %arg6[%423, %c0_i32_400] : memref<256x128xf32, #tpu.memory_space<any>> -> memref<1x128xf32, #tpu.memory_space<any>>
    %c0_i32_401 = arith.constant 0 : i32
    %c0_i32_402 = arith.constant 0 : i32
    %425 = tpu.memref_slice %arg10[%c6_i32_399, %c0_i32_401, %c0_i32_402] : memref<8x8x128xf32, #tpu.memory_space<vmem>> -> memref<1x1x128xf32, #tpu.memory_space<vmem>>
    %426 = tpu.memref_squeeze %425 : memref<1x1x128xf32, #tpu.memory_space<vmem>> -> memref<1x128xf32, #tpu.memory_space<vmem>>
    tpu.enqueue_dma source(%424 : memref<1x128xf32, #tpu.memory_space<any>>) target(%426 : memref<1x128xf32, #tpu.memory_space<vmem>>) target_semaphore(%arg11 : memref<!tpu.dma_semaphore, #tpu.memory_space<semaphore_mem>>)
    %427 = arith.index_cast %397 : i32 to index
    %c1_403 = arith.constant 1 : index
    %428 = memref.load %arg3[%427, %c1_403] : memref<16x8xi32, #tpu.memory_space<smem>>
    %c6_i32_404 = arith.constant 6 : i32
    %c0_i32_405 = arith.constant 0 : i32
    %429 = tpu.memref_slice %arg6[%428, %c0_i32_405] : memref<256x128xf32, #tpu.memory_space<any>> -> memref<1x128xf32, #tpu.memory_space<any>>
    %c1_i32_406 = arith.constant 1 : i32
    %c0_i32_407 = arith.constant 0 : i32
    %430 = tpu.memref_slice %arg10[%c6_i32_404, %c1_i32_406, %c0_i32_407] : memref<8x8x128xf32, #tpu.memory_space<vmem>> -> memref<1x1x128xf32, #tpu.memory_space<vmem>>
    %431 = tpu.memref_squeeze %430 : memref<1x1x128xf32, #tpu.memory_space<vmem>> -> memref<1x128xf32, #tpu.memory_space<vmem>>
    tpu.enqueue_dma source(%429 : memref<1x128xf32, #tpu.memory_space<any>>) target(%431 : memref<1x128xf32, #tpu.memory_space<vmem>>) target_semaphore(%arg11 : memref<!tpu.dma_semaphore, #tpu.memory_space<semaphore_mem>>)
    %432 = arith.index_cast %397 : i32 to index
    %c2_408 = arith.constant 2 : index
    %433 = memref.load %arg3[%432, %c2_408] : memref<16x8xi32, #tpu.memory_space<smem>>
    %c6_i32_409 = arith.constant 6 : i32
    %c0_i32_410 = arith.constant 0 : i32
    %434 = tpu.memref_slice %arg6[%433, %c0_i32_410] : memref<256x128xf32, #tpu.memory_space<any>> -> memref<1x128xf32, #tpu.memory_space<any>>
    %c2_i32_411 = arith.constant 2 : i32
    %c0_i32_412 = arith.constant 0 : i32
    %435 = tpu.memref_slice %arg10[%c6_i32_409, %c2_i32_411, %c0_i32_412] : memref<8x8x128xf32, #tpu.memory_space<vmem>> -> memref<1x1x128xf32, #tpu.memory_space<vmem>>
    %436 = tpu.memref_squeeze %435 : memref<1x1x128xf32, #tpu.memory_space<vmem>> -> memref<1x128xf32, #tpu.memory_space<vmem>>
    tpu.enqueue_dma source(%434 : memref<1x128xf32, #tpu.memory_space<any>>) target(%436 : memref<1x128xf32, #tpu.memory_space<vmem>>) target_semaphore(%arg11 : memref<!tpu.dma_semaphore, #tpu.memory_space<semaphore_mem>>)
    %437 = arith.index_cast %397 : i32 to index
    %c3_413 = arith.constant 3 : index
    %438 = memref.load %arg3[%437, %c3_413] : memref<16x8xi32, #tpu.memory_space<smem>>
    %c6_i32_414 = arith.constant 6 : i32
    %c0_i32_415 = arith.constant 0 : i32
    %439 = tpu.memref_slice %arg6[%438, %c0_i32_415] : memref<256x128xf32, #tpu.memory_space<any>> -> memref<1x128xf32, #tpu.memory_space<any>>
    %c3_i32_416 = arith.constant 3 : i32
    %c0_i32_417 = arith.constant 0 : i32
    %440 = tpu.memref_slice %arg10[%c6_i32_414, %c3_i32_416, %c0_i32_417] : memref<8x8x128xf32, #tpu.memory_space<vmem>> -> memref<1x1x128xf32, #tpu.memory_space<vmem>>
    %441 = tpu.memref_squeeze %440 : memref<1x1x128xf32, #tpu.memory_space<vmem>> -> memref<1x128xf32, #tpu.memory_space<vmem>>
    tpu.enqueue_dma source(%439 : memref<1x128xf32, #tpu.memory_space<any>>) target(%441 : memref<1x128xf32, #tpu.memory_space<vmem>>) target_semaphore(%arg11 : memref<!tpu.dma_semaphore, #tpu.memory_space<semaphore_mem>>)
    %442 = arith.index_cast %397 : i32 to index
    %c4_418 = arith.constant 4 : index
    %443 = memref.load %arg3[%442, %c4_418] : memref<16x8xi32, #tpu.memory_space<smem>>
    %c6_i32_419 = arith.constant 6 : i32
    %c0_i32_420 = arith.constant 0 : i32
    %444 = tpu.memref_slice %arg6[%443, %c0_i32_420] : memref<256x128xf32, #tpu.memory_space<any>> -> memref<1x128xf32, #tpu.memory_space<any>>
    %c4_i32_421 = arith.constant 4 : i32
    %c0_i32_422 = arith.constant 0 : i32
    %445 = tpu.memref_slice %arg10[%c6_i32_419, %c4_i32_421, %c0_i32_422] : memref<8x8x128xf32, #tpu.memory_space<vmem>> -> memref<1x1x128xf32, #tpu.memory_space<vmem>>
    %446 = tpu.memref_squeeze %445 : memref<1x1x128xf32, #tpu.memory_space<vmem>> -> memref<1x128xf32, #tpu.memory_space<vmem>>
    tpu.enqueue_dma source(%444 : memref<1x128xf32, #tpu.memory_space<any>>) target(%446 : memref<1x128xf32, #tpu.memory_space<vmem>>) target_semaphore(%arg11 : memref<!tpu.dma_semaphore, #tpu.memory_space<semaphore_mem>>)
    %447 = arith.index_cast %397 : i32 to index
    %c5_423 = arith.constant 5 : index
    %448 = memref.load %arg3[%447, %c5_423] : memref<16x8xi32, #tpu.memory_space<smem>>
    %c6_i32_424 = arith.constant 6 : i32
    %c0_i32_425 = arith.constant 0 : i32
    %449 = tpu.memref_slice %arg6[%448, %c0_i32_425] : memref<256x128xf32, #tpu.memory_space<any>> -> memref<1x128xf32, #tpu.memory_space<any>>
    %c5_i32_426 = arith.constant 5 : i32
    %c0_i32_427 = arith.constant 0 : i32
    %450 = tpu.memref_slice %arg10[%c6_i32_424, %c5_i32_426, %c0_i32_427] : memref<8x8x128xf32, #tpu.memory_space<vmem>> -> memref<1x1x128xf32, #tpu.memory_space<vmem>>
    %451 = tpu.memref_squeeze %450 : memref<1x1x128xf32, #tpu.memory_space<vmem>> -> memref<1x128xf32, #tpu.memory_space<vmem>>
    tpu.enqueue_dma source(%449 : memref<1x128xf32, #tpu.memory_space<any>>) target(%451 : memref<1x128xf32, #tpu.memory_space<vmem>>) target_semaphore(%arg11 : memref<!tpu.dma_semaphore, #tpu.memory_space<semaphore_mem>>)
    %452 = arith.index_cast %397 : i32 to index
    %c6_428 = arith.constant 6 : index
    %453 = memref.load %arg3[%452, %c6_428] : memref<16x8xi32, #tpu.memory_space<smem>>
    %c6_i32_429 = arith.constant 6 : i32
    %c0_i32_430 = arith.constant 0 : i32
    %454 = tpu.memref_slice %arg6[%453, %c0_i32_430] : memref<256x128xf32, #tpu.memory_space<any>> -> memref<1x128xf32, #tpu.memory_space<any>>
    %c6_i32_431 = arith.constant 6 : i32
    %c0_i32_432 = arith.constant 0 : i32
    %455 = tpu.memref_slice %arg10[%c6_i32_429, %c6_i32_431, %c0_i32_432] : memref<8x8x128xf32, #tpu.memory_space<vmem>> -> memref<1x1x128xf32, #tpu.memory_space<vmem>>
    %456 = tpu.memref_squeeze %455 : memref<1x1x128xf32, #tpu.memory_space<vmem>> -> memref<1x128xf32, #tpu.memory_space<vmem>>
    tpu.enqueue_dma source(%454 : memref<1x128xf32, #tpu.memory_space<any>>) target(%456 : memref<1x128xf32, #tpu.memory_space<vmem>>) target_semaphore(%arg11 : memref<!tpu.dma_semaphore, #tpu.memory_space<semaphore_mem>>)
    %457 = arith.index_cast %397 : i32 to index
    %c7_433 = arith.constant 7 : index
    %458 = memref.load %arg3[%457, %c7_433] : memref<16x8xi32, #tpu.memory_space<smem>>
    %c6_i32_434 = arith.constant 6 : i32
    %c0_i32_435 = arith.constant 0 : i32
    %459 = tpu.memref_slice %arg6[%458, %c0_i32_435] : memref<256x128xf32, #tpu.memory_space<any>> -> memref<1x128xf32, #tpu.memory_space<any>>
    %c7_i32_436 = arith.constant 7 : i32
    %c0_i32_437 = arith.constant 0 : i32
    %460 = tpu.memref_slice %arg10[%c6_i32_434, %c7_i32_436, %c0_i32_437] : memref<8x8x128xf32, #tpu.memory_space<vmem>> -> memref<1x1x128xf32, #tpu.memory_space<vmem>>
    %461 = tpu.memref_squeeze %460 : memref<1x1x128xf32, #tpu.memory_space<vmem>> -> memref<1x128xf32, #tpu.memory_space<vmem>>
    tpu.enqueue_dma source(%459 : memref<1x128xf32, #tpu.memory_space<any>>) target(%461 : memref<1x128xf32, #tpu.memory_space<vmem>>) target_semaphore(%arg11 : memref<!tpu.dma_semaphore, #tpu.memory_space<semaphore_mem>>)
    %c8_i32_438 = arith.constant 8 : i32
    %462 = arith.muli %arg0, %c8_i32_438 : i32
    %c7_i32_439 = arith.constant 7 : i32
    %463 = arith.addi %462, %c7_i32_439 : i32
    %464 = arith.index_cast %463 : i32 to index
    %465 = memref.load %arg1[%464] : memref<16xi32, #tpu.memory_space<smem>>
    %c0_i32_440 = arith.constant 0 : i32
    %466 = tpu.memref_slice %arg4[%465, %c0_i32_440] : memref<64x128xf32, #tpu.memory_space<any>> -> memref<1x128xf32, #tpu.memory_space<any>>
    %c7_i32_441 = arith.constant 7 : i32
    %c0_i32_442 = arith.constant 0 : i32
    %467 = tpu.memref_slice %arg8[%c7_i32_441, %c0_i32_442] : memref<8x128xf32, #tpu.memory_space<vmem>> -> memref<1x128xf32, #tpu.memory_space<vmem>>
    tpu.enqueue_dma source(%466 : memref<1x128xf32, #tpu.memory_space<any>>) target(%467 : memref<1x128xf32, #tpu.memory_space<vmem>>) target_semaphore(%arg11 : memref<!tpu.dma_semaphore, #tpu.memory_space<semaphore_mem>>)
    %468 = arith.index_cast %463 : i32 to index
    %c0_443 = arith.constant 0 : index
    %469 = memref.load %arg2[%468, %c0_443] : memref<16x4xi32, #tpu.memory_space<smem>>
    %c7_i32_444 = arith.constant 7 : i32
    %c0_i32_445 = arith.constant 0 : i32
    %470 = tpu.memref_slice %arg5[%469, %c0_i32_445] : memref<256x128xf32, #tpu.memory_space<any>> -> memref<1x128xf32, #tpu.memory_space<any>>
    %c0_i32_446 = arith.constant 0 : i32
    %c0_i32_447 = arith.constant 0 : i32
    %471 = tpu.memref_slice %arg9[%c7_i32_444, %c0_i32_446, %c0_i32_447] : memref<8x4x128xf32, #tpu.memory_space<vmem>> -> memref<1x1x128xf32, #tpu.memory_space<vmem>>
    %472 = tpu.memref_squeeze %471 : memref<1x1x128xf32, #tpu.memory_space<vmem>> -> memref<1x128xf32, #tpu.memory_space<vmem>>
    tpu.enqueue_dma source(%470 : memref<1x128xf32, #tpu.memory_space<any>>) target(%472 : memref<1x128xf32, #tpu.memory_space<vmem>>) target_semaphore(%arg11 : memref<!tpu.dma_semaphore, #tpu.memory_space<semaphore_mem>>)
    %473 = arith.index_cast %463 : i32 to index
    %c1_448 = arith.constant 1 : index
    %474 = memref.load %arg2[%473, %c1_448] : memref<16x4xi32, #tpu.memory_space<smem>>
    %c7_i32_449 = arith.constant 7 : i32
    %c0_i32_450 = arith.constant 0 : i32
    %475 = tpu.memref_slice %arg5[%474, %c0_i32_450] : memref<256x128xf32, #tpu.memory_space<any>> -> memref<1x128xf32, #tpu.memory_space<any>>
    %c1_i32_451 = arith.constant 1 : i32
    %c0_i32_452 = arith.constant 0 : i32
    %476 = tpu.memref_slice %arg9[%c7_i32_449, %c1_i32_451, %c0_i32_452] : memref<8x4x128xf32, #tpu.memory_space<vmem>> -> memref<1x1x128xf32, #tpu.memory_space<vmem>>
    %477 = tpu.memref_squeeze %476 : memref<1x1x128xf32, #tpu.memory_space<vmem>> -> memref<1x128xf32, #tpu.memory_space<vmem>>
    tpu.enqueue_dma source(%475 : memref<1x128xf32, #tpu.memory_space<any>>) target(%477 : memref<1x128xf32, #tpu.memory_space<vmem>>) target_semaphore(%arg11 : memref<!tpu.dma_semaphore, #tpu.memory_space<semaphore_mem>>)
    %478 = arith.index_cast %463 : i32 to index
    %c2_453 = arith.constant 2 : index
    %479 = memref.load %arg2[%478, %c2_453] : memref<16x4xi32, #tpu.memory_space<smem>>
    %c7_i32_454 = arith.constant 7 : i32
    %c0_i32_455 = arith.constant 0 : i32
    %480 = tpu.memref_slice %arg5[%479, %c0_i32_455] : memref<256x128xf32, #tpu.memory_space<any>> -> memref<1x128xf32, #tpu.memory_space<any>>
    %c2_i32_456 = arith.constant 2 : i32
    %c0_i32_457 = arith.constant 0 : i32
    %481 = tpu.memref_slice %arg9[%c7_i32_454, %c2_i32_456, %c0_i32_457] : memref<8x4x128xf32, #tpu.memory_space<vmem>> -> memref<1x1x128xf32, #tpu.memory_space<vmem>>
    %482 = tpu.memref_squeeze %481 : memref<1x1x128xf32, #tpu.memory_space<vmem>> -> memref<1x128xf32, #tpu.memory_space<vmem>>
    tpu.enqueue_dma source(%480 : memref<1x128xf32, #tpu.memory_space<any>>) target(%482 : memref<1x128xf32, #tpu.memory_space<vmem>>) target_semaphore(%arg11 : memref<!tpu.dma_semaphore, #tpu.memory_space<semaphore_mem>>)
    %483 = arith.index_cast %463 : i32 to index
    %c3_458 = arith.constant 3 : index
    %484 = memref.load %arg2[%483, %c3_458] : memref<16x4xi32, #tpu.memory_space<smem>>
    %c7_i32_459 = arith.constant 7 : i32
    %c0_i32_460 = arith.constant 0 : i32
    %485 = tpu.memref_slice %arg5[%484, %c0_i32_460] : memref<256x128xf32, #tpu.memory_space<any>> -> memref<1x128xf32, #tpu.memory_space<any>>
    %c3_i32_461 = arith.constant 3 : i32
    %c0_i32_462 = arith.constant 0 : i32
    %486 = tpu.memref_slice %arg9[%c7_i32_459, %c3_i32_461, %c0_i32_462] : memref<8x4x128xf32, #tpu.memory_space<vmem>> -> memref<1x1x128xf32, #tpu.memory_space<vmem>>
    %487 = tpu.memref_squeeze %486 : memref<1x1x128xf32, #tpu.memory_space<vmem>> -> memref<1x128xf32, #tpu.memory_space<vmem>>
    tpu.enqueue_dma source(%485 : memref<1x128xf32, #tpu.memory_space<any>>) target(%487 : memref<1x128xf32, #tpu.memory_space<vmem>>) target_semaphore(%arg11 : memref<!tpu.dma_semaphore, #tpu.memory_space<semaphore_mem>>)
    %488 = arith.index_cast %463 : i32 to index
    %c0_463 = arith.constant 0 : index
    %489 = memref.load %arg3[%488, %c0_463] : memref<16x8xi32, #tpu.memory_space<smem>>
    %c7_i32_464 = arith.constant 7 : i32
    %c0_i32_465 = arith.constant 0 : i32
    %490 = tpu.memref_slice %arg6[%489, %c0_i32_465] : memref<256x128xf32, #tpu.memory_space<any>> -> memref<1x128xf32, #tpu.memory_space<any>>
    %c0_i32_466 = arith.constant 0 : i32
    %c0_i32_467 = arith.constant 0 : i32
    %491 = tpu.memref_slice %arg10[%c7_i32_464, %c0_i32_466, %c0_i32_467] : memref<8x8x128xf32, #tpu.memory_space<vmem>> -> memref<1x1x128xf32, #tpu.memory_space<vmem>>
    %492 = tpu.memref_squeeze %491 : memref<1x1x128xf32, #tpu.memory_space<vmem>> -> memref<1x128xf32, #tpu.memory_space<vmem>>
    tpu.enqueue_dma source(%490 : memref<1x128xf32, #tpu.memory_space<any>>) target(%492 : memref<1x128xf32, #tpu.memory_space<vmem>>) target_semaphore(%arg11 : memref<!tpu.dma_semaphore, #tpu.memory_space<semaphore_mem>>)
    %493 = arith.index_cast %463 : i32 to index
    %c1_468 = arith.constant 1 : index
    %494 = memref.load %arg3[%493, %c1_468] : memref<16x8xi32, #tpu.memory_space<smem>>
    %c7_i32_469 = arith.constant 7 : i32
    %c0_i32_470 = arith.constant 0 : i32
    %495 = tpu.memref_slice %arg6[%494, %c0_i32_470] : memref<256x128xf32, #tpu.memory_space<any>> -> memref<1x128xf32, #tpu.memory_space<any>>
    %c1_i32_471 = arith.constant 1 : i32
    %c0_i32_472 = arith.constant 0 : i32
    %496 = tpu.memref_slice %arg10[%c7_i32_469, %c1_i32_471, %c0_i32_472] : memref<8x8x128xf32, #tpu.memory_space<vmem>> -> memref<1x1x128xf32, #tpu.memory_space<vmem>>
    %497 = tpu.memref_squeeze %496 : memref<1x1x128xf32, #tpu.memory_space<vmem>> -> memref<1x128xf32, #tpu.memory_space<vmem>>
    tpu.enqueue_dma source(%495 : memref<1x128xf32, #tpu.memory_space<any>>) target(%497 : memref<1x128xf32, #tpu.memory_space<vmem>>) target_semaphore(%arg11 : memref<!tpu.dma_semaphore, #tpu.memory_space<semaphore_mem>>)
    %498 = arith.index_cast %463 : i32 to index
    %c2_473 = arith.constant 2 : index
    %499 = memref.load %arg3[%498, %c2_473] : memref<16x8xi32, #tpu.memory_space<smem>>
    %c7_i32_474 = arith.constant 7 : i32
    %c0_i32_475 = arith.constant 0 : i32
    %500 = tpu.memref_slice %arg6[%499, %c0_i32_475] : memref<256x128xf32, #tpu.memory_space<any>> -> memref<1x128xf32, #tpu.memory_space<any>>
    %c2_i32_476 = arith.constant 2 : i32
    %c0_i32_477 = arith.constant 0 : i32
    %501 = tpu.memref_slice %arg10[%c7_i32_474, %c2_i32_476, %c0_i32_477] : memref<8x8x128xf32, #tpu.memory_space<vmem>> -> memref<1x1x128xf32, #tpu.memory_space<vmem>>
    %502 = tpu.memref_squeeze %501 : memref<1x1x128xf32, #tpu.memory_space<vmem>> -> memref<1x128xf32, #tpu.memory_space<vmem>>
    tpu.enqueue_dma source(%500 : memref<1x128xf32, #tpu.memory_space<any>>) target(%502 : memref<1x128xf32, #tpu.memory_space<vmem>>) target_semaphore(%arg11 : memref<!tpu.dma_semaphore, #tpu.memory_space<semaphore_mem>>)
    %503 = arith.index_cast %463 : i32 to index
    %c3_478 = arith.constant 3 : index
    %504 = memref.load %arg3[%503, %c3_478] : memref<16x8xi32, #tpu.memory_space<smem>>
    %c7_i32_479 = arith.constant 7 : i32
    %c0_i32_480 = arith.constant 0 : i32
    %505 = tpu.memref_slice %arg6[%504, %c0_i32_480] : memref<256x128xf32, #tpu.memory_space<any>> -> memref<1x128xf32, #tpu.memory_space<any>>
    %c3_i32_481 = arith.constant 3 : i32
    %c0_i32_482 = arith.constant 0 : i32
    %506 = tpu.memref_slice %arg10[%c7_i32_479, %c3_i32_481, %c0_i32_482] : memref<8x8x128xf32, #tpu.memory_space<vmem>> -> memref<1x1x128xf32, #tpu.memory_space<vmem>>
    %507 = tpu.memref_squeeze %506 : memref<1x1x128xf32, #tpu.memory_space<vmem>> -> memref<1x128xf32, #tpu.memory_space<vmem>>
    tpu.enqueue_dma source(%505 : memref<1x128xf32, #tpu.memory_space<any>>) target(%507 : memref<1x128xf32, #tpu.memory_space<vmem>>) target_semaphore(%arg11 : memref<!tpu.dma_semaphore, #tpu.memory_space<semaphore_mem>>)
    %508 = arith.index_cast %463 : i32 to index
    %c4_483 = arith.constant 4 : index
    %509 = memref.load %arg3[%508, %c4_483] : memref<16x8xi32, #tpu.memory_space<smem>>
    %c7_i32_484 = arith.constant 7 : i32
    %c0_i32_485 = arith.constant 0 : i32
    %510 = tpu.memref_slice %arg6[%509, %c0_i32_485] : memref<256x128xf32, #tpu.memory_space<any>> -> memref<1x128xf32, #tpu.memory_space<any>>
    %c4_i32_486 = arith.constant 4 : i32
    %c0_i32_487 = arith.constant 0 : i32
    %511 = tpu.memref_slice %arg10[%c7_i32_484, %c4_i32_486, %c0_i32_487] : memref<8x8x128xf32, #tpu.memory_space<vmem>> -> memref<1x1x128xf32, #tpu.memory_space<vmem>>
    %512 = tpu.memref_squeeze %511 : memref<1x1x128xf32, #tpu.memory_space<vmem>> -> memref<1x128xf32, #tpu.memory_space<vmem>>
    tpu.enqueue_dma source(%510 : memref<1x128xf32, #tpu.memory_space<any>>) target(%512 : memref<1x128xf32, #tpu.memory_space<vmem>>) target_semaphore(%arg11 : memref<!tpu.dma_semaphore, #tpu.memory_space<semaphore_mem>>)
    %513 = arith.index_cast %463 : i32 to index
    %c5_488 = arith.constant 5 : index
    %514 = memref.load %arg3[%513, %c5_488] : memref<16x8xi32, #tpu.memory_space<smem>>
    %c7_i32_489 = arith.constant 7 : i32
    %c0_i32_490 = arith.constant 0 : i32
    %515 = tpu.memref_slice %arg6[%514, %c0_i32_490] : memref<256x128xf32, #tpu.memory_space<any>> -> memref<1x128xf32, #tpu.memory_space<any>>
    %c5_i32_491 = arith.constant 5 : i32
    %c0_i32_492 = arith.constant 0 : i32
    %516 = tpu.memref_slice %arg10[%c7_i32_489, %c5_i32_491, %c0_i32_492] : memref<8x8x128xf32, #tpu.memory_space<vmem>> -> memref<1x1x128xf32, #tpu.memory_space<vmem>>
    %517 = tpu.memref_squeeze %516 : memref<1x1x128xf32, #tpu.memory_space<vmem>> -> memref<1x128xf32, #tpu.memory_space<vmem>>
    tpu.enqueue_dma source(%515 : memref<1x128xf32, #tpu.memory_space<any>>) target(%517 : memref<1x128xf32, #tpu.memory_space<vmem>>) target_semaphore(%arg11 : memref<!tpu.dma_semaphore, #tpu.memory_space<semaphore_mem>>)
    %518 = arith.index_cast %463 : i32 to index
    %c6_493 = arith.constant 6 : index
    %519 = memref.load %arg3[%518, %c6_493] : memref<16x8xi32, #tpu.memory_space<smem>>
    %c7_i32_494 = arith.constant 7 : i32
    %c0_i32_495 = arith.constant 0 : i32
    %520 = tpu.memref_slice %arg6[%519, %c0_i32_495] : memref<256x128xf32, #tpu.memory_space<any>> -> memref<1x128xf32, #tpu.memory_space<any>>
    %c6_i32_496 = arith.constant 6 : i32
    %c0_i32_497 = arith.constant 0 : i32
    %521 = tpu.memref_slice %arg10[%c7_i32_494, %c6_i32_496, %c0_i32_497] : memref<8x8x128xf32, #tpu.memory_space<vmem>> -> memref<1x1x128xf32, #tpu.memory_space<vmem>>
    %522 = tpu.memref_squeeze %521 : memref<1x1x128xf32, #tpu.memory_space<vmem>> -> memref<1x128xf32, #tpu.memory_space<vmem>>
    tpu.enqueue_dma source(%520 : memref<1x128xf32, #tpu.memory_space<any>>) target(%522 : memref<1x128xf32, #tpu.memory_space<vmem>>) target_semaphore(%arg11 : memref<!tpu.dma_semaphore, #tpu.memory_space<semaphore_mem>>)
    %523 = arith.index_cast %463 : i32 to index
    %c7_498 = arith.constant 7 : index
    %524 = memref.load %arg3[%523, %c7_498] : memref<16x8xi32, #tpu.memory_space<smem>>
    %c7_i32_499 = arith.constant 7 : i32
    %c0_i32_500 = arith.constant 0 : i32
    %525 = tpu.memref_slice %arg6[%524, %c0_i32_500] : memref<256x128xf32, #tpu.memory_space<any>> -> memref<1x128xf32, #tpu.memory_space<any>>
    %c7_i32_501 = arith.constant 7 : i32
    %c0_i32_502 = arith.constant 0 : i32
    %526 = tpu.memref_slice %arg10[%c7_i32_499, %c7_i32_501, %c0_i32_502] : memref<8x8x128xf32, #tpu.memory_space<vmem>> -> memref<1x1x128xf32, #tpu.memory_space<vmem>>
    %527 = tpu.memref_squeeze %526 : memref<1x1x128xf32, #tpu.memory_space<vmem>> -> memref<1x128xf32, #tpu.memory_space<vmem>>
    tpu.enqueue_dma source(%525 : memref<1x128xf32, #tpu.memory_space<any>>) target(%527 : memref<1x128xf32, #tpu.memory_space<vmem>>) target_semaphore(%arg11 : memref<!tpu.dma_semaphore, #tpu.memory_space<semaphore_mem>>)
    %c0_i32_503 = arith.constant 0 : i32
    %c0_i32_504 = arith.constant 0 : i32
    %528 = tpu.memref_slice %arg4[%c0_i32_503, %c0_i32_504] : memref<64x128xf32, #tpu.memory_space<any>> -> memref<1x128xf32, #tpu.memory_space<any>>
    %c0_i32_505 = arith.constant 0 : i32
    %c0_i32_506 = arith.constant 0 : i32
    %529 = tpu.memref_slice %arg8[%c0_i32_505, %c0_i32_506] : memref<8x128xf32, #tpu.memory_space<vmem>> -> memref<1x128xf32, #tpu.memory_space<vmem>>
    tpu.wait_dma2 semaphore(%arg11 : memref<!tpu.dma_semaphore, #tpu.memory_space<semaphore_mem>>) src(%528 : memref<1x128xf32, #tpu.memory_space<any>>) dst(%529 : memref<1x128xf32, #tpu.memory_space<vmem>>)
    %c0_i32_507 = arith.constant 0 : i32
    %c0_i32_508 = arith.constant 0 : i32
    %c0_i32_509 = arith.constant 0 : i32
    %530 = tpu.memref_slice %arg5[%c0_i32_508, %c0_i32_509] : memref<256x128xf32, #tpu.memory_space<any>> -> memref<1x128xf32, #tpu.memory_space<any>>
    %c0_i32_510 = arith.constant 0 : i32
    %c0_i32_511 = arith.constant 0 : i32
    %531 = tpu.memref_slice %arg9[%c0_i32_507, %c0_i32_510, %c0_i32_511] : memref<8x4x128xf32, #tpu.memory_space<vmem>> -> memref<1x1x128xf32, #tpu.memory_space<vmem>>
    %532 = tpu.memref_squeeze %531 : memref<1x1x128xf32, #tpu.memory_space<vmem>> -> memref<1x128xf32, #tpu.memory_space<vmem>>
    tpu.wait_dma2 semaphore(%arg11 : memref<!tpu.dma_semaphore, #tpu.memory_space<semaphore_mem>>) src(%530 : memref<1x128xf32, #tpu.memory_space<any>>) dst(%532 : memref<1x128xf32, #tpu.memory_space<vmem>>)
    %c0_i32_512 = arith.constant 0 : i32
    %c0_i32_513 = arith.constant 0 : i32
    %c0_i32_514 = arith.constant 0 : i32
    %533 = tpu.memref_slice %arg5[%c0_i32_513, %c0_i32_514] : memref<256x128xf32, #tpu.memory_space<any>> -> memref<1x128xf32, #tpu.memory_space<any>>
    %c1_i32_515 = arith.constant 1 : i32
    %c0_i32_516 = arith.constant 0 : i32
    %534 = tpu.memref_slice %arg9[%c0_i32_512, %c1_i32_515, %c0_i32_516] : memref<8x4x128xf32, #tpu.memory_space<vmem>> -> memref<1x1x128xf32, #tpu.memory_space<vmem>>
    %535 = tpu.memref_squeeze %534 : memref<1x1x128xf32, #tpu.memory_space<vmem>> -> memref<1x128xf32, #tpu.memory_space<vmem>>
    tpu.wait_dma2 semaphore(%arg11 : memref<!tpu.dma_semaphore, #tpu.memory_space<semaphore_mem>>) src(%533 : memref<1x128xf32, #tpu.memory_space<any>>) dst(%535 : memref<1x128xf32, #tpu.memory_space<vmem>>)
    %c0_i32_517 = arith.constant 0 : i32
    %c0_i32_518 = arith.constant 0 : i32
    %c0_i32_519 = arith.constant 0 : i32
    %536 = tpu.memref_slice %arg5[%c0_i32_518, %c0_i32_519] : memref<256x128xf32, #tpu.memory_space<any>> -> memref<1x128xf32, #tpu.memory_space<any>>
    %c2_i32_520 = arith.constant 2 : i32
    %c0_i32_521 = arith.constant 0 : i32
    %537 = tpu.memref_slice %arg9[%c0_i32_517, %c2_i32_520, %c0_i32_521] : memref<8x4x128xf32, #tpu.memory_space<vmem>> -> memref<1x1x128xf32, #tpu.memory_space<vmem>>
    %538 = tpu.memref_squeeze %537 : memref<1x1x128xf32, #tpu.memory_space<vmem>> -> memref<1x128xf32, #tpu.memory_space<vmem>>
    tpu.wait_dma2 semaphore(%arg11 : memref<!tpu.dma_semaphore, #tpu.memory_space<semaphore_mem>>) src(%536 : memref<1x128xf32, #tpu.memory_space<any>>) dst(%538 : memref<1x128xf32, #tpu.memory_space<vmem>>)
    %c0_i32_522 = arith.constant 0 : i32
    %c0_i32_523 = arith.constant 0 : i32
    %c0_i32_524 = arith.constant 0 : i32
    %539 = tpu.memref_slice %arg5[%c0_i32_523, %c0_i32_524] : memref<256x128xf32, #tpu.memory_space<any>> -> memref<1x128xf32, #tpu.memory_space<any>>
    %c3_i32_525 = arith.constant 3 : i32
    %c0_i32_526 = arith.constant 0 : i32
    %540 = tpu.memref_slice %arg9[%c0_i32_522, %c3_i32_525, %c0_i32_526] : memref<8x4x128xf32, #tpu.memory_space<vmem>> -> memref<1x1x128xf32, #tpu.memory_space<vmem>>
    %541 = tpu.memref_squeeze %540 : memref<1x1x128xf32, #tpu.memory_space<vmem>> -> memref<1x128xf32, #tpu.memory_space<vmem>>
    tpu.wait_dma2 semaphore(%arg11 : memref<!tpu.dma_semaphore, #tpu.memory_space<semaphore_mem>>) src(%539 : memref<1x128xf32, #tpu.memory_space<any>>) dst(%541 : memref<1x128xf32, #tpu.memory_space<vmem>>)
    %c0_i32_527 = arith.constant 0 : i32
    %c0_i32_528 = arith.constant 0 : i32
    %c0_i32_529 = arith.constant 0 : i32
    %542 = tpu.memref_slice %arg6[%c0_i32_528, %c0_i32_529] : memref<256x128xf32, #tpu.memory_space<any>> -> memref<1x128xf32, #tpu.memory_space<any>>
    %c0_i32_530 = arith.constant 0 : i32
    %c0_i32_531 = arith.constant 0 : i32
    %543 = tpu.memref_slice %arg10[%c0_i32_527, %c0_i32_530, %c0_i32_531] : memref<8x8x128xf32, #tpu.memory_space<vmem>> -> memref<1x1x128xf32, #tpu.memory_space<vmem>>
    %544 = tpu.memref_squeeze %543 : memref<1x1x128xf32, #tpu.memory_space<vmem>> -> memref<1x128xf32, #tpu.memory_space<vmem>>
    tpu.wait_dma2 semaphore(%arg11 : memref<!tpu.dma_semaphore, #tpu.memory_space<semaphore_mem>>) src(%542 : memref<1x128xf32, #tpu.memory_space<any>>) dst(%544 : memref<1x128xf32, #tpu.memory_space<vmem>>)
    %c0_i32_532 = arith.constant 0 : i32
    %c0_i32_533 = arith.constant 0 : i32
    %c0_i32_534 = arith.constant 0 : i32
    %545 = tpu.memref_slice %arg6[%c0_i32_533, %c0_i32_534] : memref<256x128xf32, #tpu.memory_space<any>> -> memref<1x128xf32, #tpu.memory_space<any>>
    %c1_i32_535 = arith.constant 1 : i32
    %c0_i32_536 = arith.constant 0 : i32
    %546 = tpu.memref_slice %arg10[%c0_i32_532, %c1_i32_535, %c0_i32_536] : memref<8x8x128xf32, #tpu.memory_space<vmem>> -> memref<1x1x128xf32, #tpu.memory_space<vmem>>
    %547 = tpu.memref_squeeze %546 : memref<1x1x128xf32, #tpu.memory_space<vmem>> -> memref<1x128xf32, #tpu.memory_space<vmem>>
    tpu.wait_dma2 semaphore(%arg11 : memref<!tpu.dma_semaphore, #tpu.memory_space<semaphore_mem>>) src(%545 : memref<1x128xf32, #tpu.memory_space<any>>) dst(%547 : memref<1x128xf32, #tpu.memory_space<vmem>>)
    %c0_i32_537 = arith.constant 0 : i32
    %c0_i32_538 = arith.constant 0 : i32
    %c0_i32_539 = arith.constant 0 : i32
    %548 = tpu.memref_slice %arg6[%c0_i32_538, %c0_i32_539] : memref<256x128xf32, #tpu.memory_space<any>> -> memref<1x128xf32, #tpu.memory_space<any>>
    %c2_i32_540 = arith.constant 2 : i32
    %c0_i32_541 = arith.constant 0 : i32
    %549 = tpu.memref_slice %arg10[%c0_i32_537, %c2_i32_540, %c0_i32_541] : memref<8x8x128xf32, #tpu.memory_space<vmem>> -> memref<1x1x128xf32, #tpu.memory_space<vmem>>
    %550 = tpu.memref_squeeze %549 : memref<1x1x128xf32, #tpu.memory_space<vmem>> -> memref<1x128xf32, #tpu.memory_space<vmem>>
    tpu.wait_dma2 semaphore(%arg11 : memref<!tpu.dma_semaphore, #tpu.memory_space<semaphore_mem>>) src(%548 : memref<1x128xf32, #tpu.memory_space<any>>) dst(%550 : memref<1x128xf32, #tpu.memory_space<vmem>>)
    %c0_i32_542 = arith.constant 0 : i32
    %c0_i32_543 = arith.constant 0 : i32
    %c0_i32_544 = arith.constant 0 : i32
    %551 = tpu.memref_slice %arg6[%c0_i32_543, %c0_i32_544] : memref<256x128xf32, #tpu.memory_space<any>> -> memref<1x128xf32, #tpu.memory_space<any>>
    %c3_i32_545 = arith.constant 3 : i32
    %c0_i32_546 = arith.constant 0 : i32
    %552 = tpu.memref_slice %arg10[%c0_i32_542, %c3_i32_545, %c0_i32_546] : memref<8x8x128xf32, #tpu.memory_space<vmem>> -> memref<1x1x128xf32, #tpu.memory_space<vmem>>
    %553 = tpu.memref_squeeze %552 : memref<1x1x128xf32, #tpu.memory_space<vmem>> -> memref<1x128xf32, #tpu.memory_space<vmem>>
    tpu.wait_dma2 semaphore(%arg11 : memref<!tpu.dma_semaphore, #tpu.memory_space<semaphore_mem>>) src(%551 : memref<1x128xf32, #tpu.memory_space<any>>) dst(%553 : memref<1x128xf32, #tpu.memory_space<vmem>>)
    %c0_i32_547 = arith.constant 0 : i32
    %c0_i32_548 = arith.constant 0 : i32
    %c0_i32_549 = arith.constant 0 : i32
    %554 = tpu.memref_slice %arg6[%c0_i32_548, %c0_i32_549] : memref<256x128xf32, #tpu.memory_space<any>> -> memref<1x128xf32, #tpu.memory_space<any>>
    %c4_i32_550 = arith.constant 4 : i32
    %c0_i32_551 = arith.constant 0 : i32
    %555 = tpu.memref_slice %arg10[%c0_i32_547, %c4_i32_550, %c0_i32_551] : memref<8x8x128xf32, #tpu.memory_space<vmem>> -> memref<1x1x128xf32, #tpu.memory_space<vmem>>
    %556 = tpu.memref_squeeze %555 : memref<1x1x128xf32, #tpu.memory_space<vmem>> -> memref<1x128xf32, #tpu.memory_space<vmem>>
    tpu.wait_dma2 semaphore(%arg11 : memref<!tpu.dma_semaphore, #tpu.memory_space<semaphore_mem>>) src(%554 : memref<1x128xf32, #tpu.memory_space<any>>) dst(%556 : memref<1x128xf32, #tpu.memory_space<vmem>>)
    %c0_i32_552 = arith.constant 0 : i32
    %c0_i32_553 = arith.constant 0 : i32
    %c0_i32_554 = arith.constant 0 : i32
    %557 = tpu.memref_slice %arg6[%c0_i32_553, %c0_i32_554] : memref<256x128xf32, #tpu.memory_space<any>> -> memref<1x128xf32, #tpu.memory_space<any>>
    %c5_i32_555 = arith.constant 5 : i32
    %c0_i32_556 = arith.constant 0 : i32
    %558 = tpu.memref_slice %arg10[%c0_i32_552, %c5_i32_555, %c0_i32_556] : memref<8x8x128xf32, #tpu.memory_space<vmem>> -> memref<1x1x128xf32, #tpu.memory_space<vmem>>
    %559 = tpu.memref_squeeze %558 : memref<1x1x128xf32, #tpu.memory_space<vmem>> -> memref<1x128xf32, #tpu.memory_space<vmem>>
    tpu.wait_dma2 semaphore(%arg11 : memref<!tpu.dma_semaphore, #tpu.memory_space<semaphore_mem>>) src(%557 : memref<1x128xf32, #tpu.memory_space<any>>) dst(%559 : memref<1x128xf32, #tpu.memory_space<vmem>>)
    %c0_i32_557 = arith.constant 0 : i32
    %c0_i32_558 = arith.constant 0 : i32
    %c0_i32_559 = arith.constant 0 : i32
    %560 = tpu.memref_slice %arg6[%c0_i32_558, %c0_i32_559] : memref<256x128xf32, #tpu.memory_space<any>> -> memref<1x128xf32, #tpu.memory_space<any>>
    %c6_i32_560 = arith.constant 6 : i32
    %c0_i32_561 = arith.constant 0 : i32
    %561 = tpu.memref_slice %arg10[%c0_i32_557, %c6_i32_560, %c0_i32_561] : memref<8x8x128xf32, #tpu.memory_space<vmem>> -> memref<1x1x128xf32, #tpu.memory_space<vmem>>
    %562 = tpu.memref_squeeze %561 : memref<1x1x128xf32, #tpu.memory_space<vmem>> -> memref<1x128xf32, #tpu.memory_space<vmem>>
    tpu.wait_dma2 semaphore(%arg11 : memref<!tpu.dma_semaphore, #tpu.memory_space<semaphore_mem>>) src(%560 : memref<1x128xf32, #tpu.memory_space<any>>) dst(%562 : memref<1x128xf32, #tpu.memory_space<vmem>>)
    %c0_i32_562 = arith.constant 0 : i32
    %c0_i32_563 = arith.constant 0 : i32
    %c0_i32_564 = arith.constant 0 : i32
    %563 = tpu.memref_slice %arg6[%c0_i32_563, %c0_i32_564] : memref<256x128xf32, #tpu.memory_space<any>> -> memref<1x128xf32, #tpu.memory_space<any>>
    %c7_i32_565 = arith.constant 7 : i32
    %c0_i32_566 = arith.constant 0 : i32
    %564 = tpu.memref_slice %arg10[%c0_i32_562, %c7_i32_565, %c0_i32_566] : memref<8x8x128xf32, #tpu.memory_space<vmem>> -> memref<1x1x128xf32, #tpu.memory_space<vmem>>
    %565 = tpu.memref_squeeze %564 : memref<1x1x128xf32, #tpu.memory_space<vmem>> -> memref<1x128xf32, #tpu.memory_space<vmem>>
    tpu.wait_dma2 semaphore(%arg11 : memref<!tpu.dma_semaphore, #tpu.memory_space<semaphore_mem>>) src(%563 : memref<1x128xf32, #tpu.memory_space<any>>) dst(%565 : memref<1x128xf32, #tpu.memory_space<vmem>>)
    %c0_i32_567 = arith.constant 0 : i32
    %c0_i32_568 = arith.constant 0 : i32
    %566 = tpu.memref_slice %arg4[%c0_i32_567, %c0_i32_568] : memref<64x128xf32, #tpu.memory_space<any>> -> memref<1x128xf32, #tpu.memory_space<any>>
    %c1_i32_569 = arith.constant 1 : i32
    %c0_i32_570 = arith.constant 0 : i32
    %567 = tpu.memref_slice %arg8[%c1_i32_569, %c0_i32_570] : memref<8x128xf32, #tpu.memory_space<vmem>> -> memref<1x128xf32, #tpu.memory_space<vmem>>
    tpu.wait_dma2 semaphore(%arg11 : memref<!tpu.dma_semaphore, #tpu.memory_space<semaphore_mem>>) src(%566 : memref<1x128xf32, #tpu.memory_space<any>>) dst(%567 : memref<1x128xf32, #tpu.memory_space<vmem>>)
    %c1_i32_571 = arith.constant 1 : i32
    %c0_i32_572 = arith.constant 0 : i32
    %c0_i32_573 = arith.constant 0 : i32
    %568 = tpu.memref_slice %arg5[%c0_i32_572, %c0_i32_573] : memref<256x128xf32, #tpu.memory_space<any>> -> memref<1x128xf32, #tpu.memory_space<any>>
    %c0_i32_574 = arith.constant 0 : i32
    %c0_i32_575 = arith.constant 0 : i32
    %569 = tpu.memref_slice %arg9[%c1_i32_571, %c0_i32_574, %c0_i32_575] : memref<8x4x128xf32, #tpu.memory_space<vmem>> -> memref<1x1x128xf32, #tpu.memory_space<vmem>>
    %570 = tpu.memref_squeeze %569 : memref<1x1x128xf32, #tpu.memory_space<vmem>> -> memref<1x128xf32, #tpu.memory_space<vmem>>
    tpu.wait_dma2 semaphore(%arg11 : memref<!tpu.dma_semaphore, #tpu.memory_space<semaphore_mem>>) src(%568 : memref<1x128xf32, #tpu.memory_space<any>>) dst(%570 : memref<1x128xf32, #tpu.memory_space<vmem>>)
    %c1_i32_576 = arith.constant 1 : i32
    %c0_i32_577 = arith.constant 0 : i32
    %c0_i32_578 = arith.constant 0 : i32
    %571 = tpu.memref_slice %arg5[%c0_i32_577, %c0_i32_578] : memref<256x128xf32, #tpu.memory_space<any>> -> memref<1x128xf32, #tpu.memory_space<any>>
    %c1_i32_579 = arith.constant 1 : i32
    %c0_i32_580 = arith.constant 0 : i32
    %572 = tpu.memref_slice %arg9[%c1_i32_576, %c1_i32_579, %c0_i32_580] : memref<8x4x128xf32, #tpu.memory_space<vmem>> -> memref<1x1x128xf32, #tpu.memory_space<vmem>>
    %573 = tpu.memref_squeeze %572 : memref<1x1x128xf32, #tpu.memory_space<vmem>> -> memref<1x128xf32, #tpu.memory_space<vmem>>
    tpu.wait_dma2 semaphore(%arg11 : memref<!tpu.dma_semaphore, #tpu.memory_space<semaphore_mem>>) src(%571 : memref<1x128xf32, #tpu.memory_space<any>>) dst(%573 : memref<1x128xf32, #tpu.memory_space<vmem>>)
    %c1_i32_581 = arith.constant 1 : i32
    %c0_i32_582 = arith.constant 0 : i32
    %c0_i32_583 = arith.constant 0 : i32
    %574 = tpu.memref_slice %arg5[%c0_i32_582, %c0_i32_583] : memref<256x128xf32, #tpu.memory_space<any>> -> memref<1x128xf32, #tpu.memory_space<any>>
    %c2_i32_584 = arith.constant 2 : i32
    %c0_i32_585 = arith.constant 0 : i32
    %575 = tpu.memref_slice %arg9[%c1_i32_581, %c2_i32_584, %c0_i32_585] : memref<8x4x128xf32, #tpu.memory_space<vmem>> -> memref<1x1x128xf32, #tpu.memory_space<vmem>>
    %576 = tpu.memref_squeeze %575 : memref<1x1x128xf32, #tpu.memory_space<vmem>> -> memref<1x128xf32, #tpu.memory_space<vmem>>
    tpu.wait_dma2 semaphore(%arg11 : memref<!tpu.dma_semaphore, #tpu.memory_space<semaphore_mem>>) src(%574 : memref<1x128xf32, #tpu.memory_space<any>>) dst(%576 : memref<1x128xf32, #tpu.memory_space<vmem>>)
    %c1_i32_586 = arith.constant 1 : i32
    %c0_i32_587 = arith.constant 0 : i32
    %c0_i32_588 = arith.constant 0 : i32
    %577 = tpu.memref_slice %arg5[%c0_i32_587, %c0_i32_588] : memref<256x128xf32, #tpu.memory_space<any>> -> memref<1x128xf32, #tpu.memory_space<any>>
    %c3_i32_589 = arith.constant 3 : i32
    %c0_i32_590 = arith.constant 0 : i32
    %578 = tpu.memref_slice %arg9[%c1_i32_586, %c3_i32_589, %c0_i32_590] : memref<8x4x128xf32, #tpu.memory_space<vmem>> -> memref<1x1x128xf32, #tpu.memory_space<vmem>>
    %579 = tpu.memref_squeeze %578 : memref<1x1x128xf32, #tpu.memory_space<vmem>> -> memref<1x128xf32, #tpu.memory_space<vmem>>
    tpu.wait_dma2 semaphore(%arg11 : memref<!tpu.dma_semaphore, #tpu.memory_space<semaphore_mem>>) src(%577 : memref<1x128xf32, #tpu.memory_space<any>>) dst(%579 : memref<1x128xf32, #tpu.memory_space<vmem>>)
    %c1_i32_591 = arith.constant 1 : i32
    %c0_i32_592 = arith.constant 0 : i32
    %c0_i32_593 = arith.constant 0 : i32
    %580 = tpu.memref_slice %arg6[%c0_i32_592, %c0_i32_593] : memref<256x128xf32, #tpu.memory_space<any>> -> memref<1x128xf32, #tpu.memory_space<any>>
    %c0_i32_594 = arith.constant 0 : i32
    %c0_i32_595 = arith.constant 0 : i32
    %581 = tpu.memref_slice %arg10[%c1_i32_591, %c0_i32_594, %c0_i32_595] : memref<8x8x128xf32, #tpu.memory_space<vmem>> -> memref<1x1x128xf32, #tpu.memory_space<vmem>>
    %582 = tpu.memref_squeeze %581 : memref<1x1x128xf32, #tpu.memory_space<vmem>> -> memref<1x128xf32, #tpu.memory_space<vmem>>
    tpu.wait_dma2 semaphore(%arg11 : memref<!tpu.dma_semaphore, #tpu.memory_space<semaphore_mem>>) src(%580 : memref<1x128xf32, #tpu.memory_space<any>>) dst(%582 : memref<1x128xf32, #tpu.memory_space<vmem>>)
    %c1_i32_596 = arith.constant 1 : i32
    %c0_i32_597 = arith.constant 0 : i32
    %c0_i32_598 = arith.constant 0 : i32
    %583 = tpu.memref_slice %arg6[%c0_i32_597, %c0_i32_598] : memref<256x128xf32, #tpu.memory_space<any>> -> memref<1x128xf32, #tpu.memory_space<any>>
    %c1_i32_599 = arith.constant 1 : i32
    %c0_i32_600 = arith.constant 0 : i32
    %584 = tpu.memref_slice %arg10[%c1_i32_596, %c1_i32_599, %c0_i32_600] : memref<8x8x128xf32, #tpu.memory_space<vmem>> -> memref<1x1x128xf32, #tpu.memory_space<vmem>>
    %585 = tpu.memref_squeeze %584 : memref<1x1x128xf32, #tpu.memory_space<vmem>> -> memref<1x128xf32, #tpu.memory_space<vmem>>
    tpu.wait_dma2 semaphore(%arg11 : memref<!tpu.dma_semaphore, #tpu.memory_space<semaphore_mem>>) src(%583 : memref<1x128xf32, #tpu.memory_space<any>>) dst(%585 : memref<1x128xf32, #tpu.memory_space<vmem>>)
    %c1_i32_601 = arith.constant 1 : i32
    %c0_i32_602 = arith.constant 0 : i32
    %c0_i32_603 = arith.constant 0 : i32
    %586 = tpu.memref_slice %arg6[%c0_i32_602, %c0_i32_603] : memref<256x128xf32, #tpu.memory_space<any>> -> memref<1x128xf32, #tpu.memory_space<any>>
    %c2_i32_604 = arith.constant 2 : i32
    %c0_i32_605 = arith.constant 0 : i32
    %587 = tpu.memref_slice %arg10[%c1_i32_601, %c2_i32_604, %c0_i32_605] : memref<8x8x128xf32, #tpu.memory_space<vmem>> -> memref<1x1x128xf32, #tpu.memory_space<vmem>>
    %588 = tpu.memref_squeeze %587 : memref<1x1x128xf32, #tpu.memory_space<vmem>> -> memref<1x128xf32, #tpu.memory_space<vmem>>
    tpu.wait_dma2 semaphore(%arg11 : memref<!tpu.dma_semaphore, #tpu.memory_space<semaphore_mem>>) src(%586 : memref<1x128xf32, #tpu.memory_space<any>>) dst(%588 : memref<1x128xf32, #tpu.memory_space<vmem>>)
    %c1_i32_606 = arith.constant 1 : i32
    %c0_i32_607 = arith.constant 0 : i32
    %c0_i32_608 = arith.constant 0 : i32
    %589 = tpu.memref_slice %arg6[%c0_i32_607, %c0_i32_608] : memref<256x128xf32, #tpu.memory_space<any>> -> memref<1x128xf32, #tpu.memory_space<any>>
    %c3_i32_609 = arith.constant 3 : i32
    %c0_i32_610 = arith.constant 0 : i32
    %590 = tpu.memref_slice %arg10[%c1_i32_606, %c3_i32_609, %c0_i32_610] : memref<8x8x128xf32, #tpu.memory_space<vmem>> -> memref<1x1x128xf32, #tpu.memory_space<vmem>>
    %591 = tpu.memref_squeeze %590 : memref<1x1x128xf32, #tpu.memory_space<vmem>> -> memref<1x128xf32, #tpu.memory_space<vmem>>
    tpu.wait_dma2 semaphore(%arg11 : memref<!tpu.dma_semaphore, #tpu.memory_space<semaphore_mem>>) src(%589 : memref<1x128xf32, #tpu.memory_space<any>>) dst(%591 : memref<1x128xf32, #tpu.memory_space<vmem>>)
    %c1_i32_611 = arith.constant 1 : i32
    %c0_i32_612 = arith.constant 0 : i32
    %c0_i32_613 = arith.constant 0 : i32
    %592 = tpu.memref_slice %arg6[%c0_i32_612, %c0_i32_613] : memref<256x128xf32, #tpu.memory_space<any>> -> memref<1x128xf32, #tpu.memory_space<any>>
    %c4_i32_614 = arith.constant 4 : i32
    %c0_i32_615 = arith.constant 0 : i32
    %593 = tpu.memref_slice %arg10[%c1_i32_611, %c4_i32_614, %c0_i32_615] : memref<8x8x128xf32, #tpu.memory_space<vmem>> -> memref<1x1x128xf32, #tpu.memory_space<vmem>>
    %594 = tpu.memref_squeeze %593 : memref<1x1x128xf32, #tpu.memory_space<vmem>> -> memref<1x128xf32, #tpu.memory_space<vmem>>
    tpu.wait_dma2 semaphore(%arg11 : memref<!tpu.dma_semaphore, #tpu.memory_space<semaphore_mem>>) src(%592 : memref<1x128xf32, #tpu.memory_space<any>>) dst(%594 : memref<1x128xf32, #tpu.memory_space<vmem>>)
    %c1_i32_616 = arith.constant 1 : i32
    %c0_i32_617 = arith.constant 0 : i32
    %c0_i32_618 = arith.constant 0 : i32
    %595 = tpu.memref_slice %arg6[%c0_i32_617, %c0_i32_618] : memref<256x128xf32, #tpu.memory_space<any>> -> memref<1x128xf32, #tpu.memory_space<any>>
    %c5_i32_619 = arith.constant 5 : i32
    %c0_i32_620 = arith.constant 0 : i32
    %596 = tpu.memref_slice %arg10[%c1_i32_616, %c5_i32_619, %c0_i32_620] : memref<8x8x128xf32, #tpu.memory_space<vmem>> -> memref<1x1x128xf32, #tpu.memory_space<vmem>>
    %597 = tpu.memref_squeeze %596 : memref<1x1x128xf32, #tpu.memory_space<vmem>> -> memref<1x128xf32, #tpu.memory_space<vmem>>
    tpu.wait_dma2 semaphore(%arg11 : memref<!tpu.dma_semaphore, #tpu.memory_space<semaphore_mem>>) src(%595 : memref<1x128xf32, #tpu.memory_space<any>>) dst(%597 : memref<1x128xf32, #tpu.memory_space<vmem>>)
    %c1_i32_621 = arith.constant 1 : i32
    %c0_i32_622 = arith.constant 0 : i32
    %c0_i32_623 = arith.constant 0 : i32
    %598 = tpu.memref_slice %arg6[%c0_i32_622, %c0_i32_623] : memref<256x128xf32, #tpu.memory_space<any>> -> memref<1x128xf32, #tpu.memory_space<any>>
    %c6_i32_624 = arith.constant 6 : i32
    %c0_i32_625 = arith.constant 0 : i32
    %599 = tpu.memref_slice %arg10[%c1_i32_621, %c6_i32_624, %c0_i32_625] : memref<8x8x128xf32, #tpu.memory_space<vmem>> -> memref<1x1x128xf32, #tpu.memory_space<vmem>>
    %600 = tpu.memref_squeeze %599 : memref<1x1x128xf32, #tpu.memory_space<vmem>> -> memref<1x128xf32, #tpu.memory_space<vmem>>
    tpu.wait_dma2 semaphore(%arg11 : memref<!tpu.dma_semaphore, #tpu.memory_space<semaphore_mem>>) src(%598 : memref<1x128xf32, #tpu.memory_space<any>>) dst(%600 : memref<1x128xf32, #tpu.memory_space<vmem>>)
    %c1_i32_626 = arith.constant 1 : i32
    %c0_i32_627 = arith.constant 0 : i32
    %c0_i32_628 = arith.constant 0 : i32
    %601 = tpu.memref_slice %arg6[%c0_i32_627, %c0_i32_628] : memref<256x128xf32, #tpu.memory_space<any>> -> memref<1x128xf32, #tpu.memory_space<any>>
    %c7_i32_629 = arith.constant 7 : i32
    %c0_i32_630 = arith.constant 0 : i32
    %602 = tpu.memref_slice %arg10[%c1_i32_626, %c7_i32_629, %c0_i32_630] : memref<8x8x128xf32, #tpu.memory_space<vmem>> -> memref<1x1x128xf32, #tpu.memory_space<vmem>>
    %603 = tpu.memref_squeeze %602 : memref<1x1x128xf32, #tpu.memory_space<vmem>> -> memref<1x128xf32, #tpu.memory_space<vmem>>
    tpu.wait_dma2 semaphore(%arg11 : memref<!tpu.dma_semaphore, #tpu.memory_space<semaphore_mem>>) src(%601 : memref<1x128xf32, #tpu.memory_space<any>>) dst(%603 : memref<1x128xf32, #tpu.memory_space<vmem>>)
    %c0_i32_631 = arith.constant 0 : i32
    %c0_i32_632 = arith.constant 0 : i32
    %604 = tpu.memref_slice %arg4[%c0_i32_631, %c0_i32_632] : memref<64x128xf32, #tpu.memory_space<any>> -> memref<1x128xf32, #tpu.memory_space<any>>
    %c2_i32_633 = arith.constant 2 : i32
    %c0_i32_634 = arith.constant 0 : i32
    %605 = tpu.memref_slice %arg8[%c2_i32_633, %c0_i32_634] : memref<8x128xf32, #tpu.memory_space<vmem>> -> memref<1x128xf32, #tpu.memory_space<vmem>>
    tpu.wait_dma2 semaphore(%arg11 : memref<!tpu.dma_semaphore, #tpu.memory_space<semaphore_mem>>) src(%604 : memref<1x128xf32, #tpu.memory_space<any>>) dst(%605 : memref<1x128xf32, #tpu.memory_space<vmem>>)
    %c2_i32_635 = arith.constant 2 : i32
    %c0_i32_636 = arith.constant 0 : i32
    %c0_i32_637 = arith.constant 0 : i32
    %606 = tpu.memref_slice %arg5[%c0_i32_636, %c0_i32_637] : memref<256x128xf32, #tpu.memory_space<any>> -> memref<1x128xf32, #tpu.memory_space<any>>
    %c0_i32_638 = arith.constant 0 : i32
    %c0_i32_639 = arith.constant 0 : i32
    %607 = tpu.memref_slice %arg9[%c2_i32_635, %c0_i32_638, %c0_i32_639] : memref<8x4x128xf32, #tpu.memory_space<vmem>> -> memref<1x1x128xf32, #tpu.memory_space<vmem>>
    %608 = tpu.memref_squeeze %607 : memref<1x1x128xf32, #tpu.memory_space<vmem>> -> memref<1x128xf32, #tpu.memory_space<vmem>>
    tpu.wait_dma2 semaphore(%arg11 : memref<!tpu.dma_semaphore, #tpu.memory_space<semaphore_mem>>) src(%606 : memref<1x128xf32, #tpu.memory_space<any>>) dst(%608 : memref<1x128xf32, #tpu.memory_space<vmem>>)
    %c2_i32_640 = arith.constant 2 : i32
    %c0_i32_641 = arith.constant 0 : i32
    %c0_i32_642 = arith.constant 0 : i32
    %609 = tpu.memref_slice %arg5[%c0_i32_641, %c0_i32_642] : memref<256x128xf32, #tpu.memory_space<any>> -> memref<1x128xf32, #tpu.memory_space<any>>
    %c1_i32_643 = arith.constant 1 : i32
    %c0_i32_644 = arith.constant 0 : i32
    %610 = tpu.memref_slice %arg9[%c2_i32_640, %c1_i32_643, %c0_i32_644] : memref<8x4x128xf32, #tpu.memory_space<vmem>> -> memref<1x1x128xf32, #tpu.memory_space<vmem>>
    %611 = tpu.memref_squeeze %610 : memref<1x1x128xf32, #tpu.memory_space<vmem>> -> memref<1x128xf32, #tpu.memory_space<vmem>>
    tpu.wait_dma2 semaphore(%arg11 : memref<!tpu.dma_semaphore, #tpu.memory_space<semaphore_mem>>) src(%609 : memref<1x128xf32, #tpu.memory_space<any>>) dst(%611 : memref<1x128xf32, #tpu.memory_space<vmem>>)
    %c2_i32_645 = arith.constant 2 : i32
    %c0_i32_646 = arith.constant 0 : i32
    %c0_i32_647 = arith.constant 0 : i32
    %612 = tpu.memref_slice %arg5[%c0_i32_646, %c0_i32_647] : memref<256x128xf32, #tpu.memory_space<any>> -> memref<1x128xf32, #tpu.memory_space<any>>
    %c2_i32_648 = arith.constant 2 : i32
    %c0_i32_649 = arith.constant 0 : i32
    %613 = tpu.memref_slice %arg9[%c2_i32_645, %c2_i32_648, %c0_i32_649] : memref<8x4x128xf32, #tpu.memory_space<vmem>> -> memref<1x1x128xf32, #tpu.memory_space<vmem>>
    %614 = tpu.memref_squeeze %613 : memref<1x1x128xf32, #tpu.memory_space<vmem>> -> memref<1x128xf32, #tpu.memory_space<vmem>>
    tpu.wait_dma2 semaphore(%arg11 : memref<!tpu.dma_semaphore, #tpu.memory_space<semaphore_mem>>) src(%612 : memref<1x128xf32, #tpu.memory_space<any>>) dst(%614 : memref<1x128xf32, #tpu.memory_space<vmem>>)
    %c2_i32_650 = arith.constant 2 : i32
    %c0_i32_651 = arith.constant 0 : i32
    %c0_i32_652 = arith.constant 0 : i32
    %615 = tpu.memref_slice %arg5[%c0_i32_651, %c0_i32_652] : memref<256x128xf32, #tpu.memory_space<any>> -> memref<1x128xf32, #tpu.memory_space<any>>
    %c3_i32_653 = arith.constant 3 : i32
    %c0_i32_654 = arith.constant 0 : i32
    %616 = tpu.memref_slice %arg9[%c2_i32_650, %c3_i32_653, %c0_i32_654] : memref<8x4x128xf32, #tpu.memory_space<vmem>> -> memref<1x1x128xf32, #tpu.memory_space<vmem>>
    %617 = tpu.memref_squeeze %616 : memref<1x1x128xf32, #tpu.memory_space<vmem>> -> memref<1x128xf32, #tpu.memory_space<vmem>>
    tpu.wait_dma2 semaphore(%arg11 : memref<!tpu.dma_semaphore, #tpu.memory_space<semaphore_mem>>) src(%615 : memref<1x128xf32, #tpu.memory_space<any>>) dst(%617 : memref<1x128xf32, #tpu.memory_space<vmem>>)
    %c2_i32_655 = arith.constant 2 : i32
    %c0_i32_656 = arith.constant 0 : i32
    %c0_i32_657 = arith.constant 0 : i32
    %618 = tpu.memref_slice %arg6[%c0_i32_656, %c0_i32_657] : memref<256x128xf32, #tpu.memory_space<any>> -> memref<1x128xf32, #tpu.memory_space<any>>
    %c0_i32_658 = arith.constant 0 : i32
    %c0_i32_659 = arith.constant 0 : i32
    %619 = tpu.memref_slice %arg10[%c2_i32_655, %c0_i32_658, %c0_i32_659] : memref<8x8x128xf32, #tpu.memory_space<vmem>> -> memref<1x1x128xf32, #tpu.memory_space<vmem>>
    %620 = tpu.memref_squeeze %619 : memref<1x1x128xf32, #tpu.memory_space<vmem>> -> memref<1x128xf32, #tpu.memory_space<vmem>>
    tpu.wait_dma2 semaphore(%arg11 : memref<!tpu.dma_semaphore, #tpu.memory_space<semaphore_mem>>) src(%618 : memref<1x128xf32, #tpu.memory_space<any>>) dst(%620 : memref<1x128xf32, #tpu.memory_space<vmem>>)
    %c2_i32_660 = arith.constant 2 : i32
    %c0_i32_661 = arith.constant 0 : i32
    %c0_i32_662 = arith.constant 0 : i32
    %621 = tpu.memref_slice %arg6[%c0_i32_661, %c0_i32_662] : memref<256x128xf32, #tpu.memory_space<any>> -> memref<1x128xf32, #tpu.memory_space<any>>
    %c1_i32_663 = arith.constant 1 : i32
    %c0_i32_664 = arith.constant 0 : i32
    %622 = tpu.memref_slice %arg10[%c2_i32_660, %c1_i32_663, %c0_i32_664] : memref<8x8x128xf32, #tpu.memory_space<vmem>> -> memref<1x1x128xf32, #tpu.memory_space<vmem>>
    %623 = tpu.memref_squeeze %622 : memref<1x1x128xf32, #tpu.memory_space<vmem>> -> memref<1x128xf32, #tpu.memory_space<vmem>>
    tpu.wait_dma2 semaphore(%arg11 : memref<!tpu.dma_semaphore, #tpu.memory_space<semaphore_mem>>) src(%621 : memref<1x128xf32, #tpu.memory_space<any>>) dst(%623 : memref<1x128xf32, #tpu.memory_space<vmem>>)
    %c2_i32_665 = arith.constant 2 : i32
    %c0_i32_666 = arith.constant 0 : i32
    %c0_i32_667 = arith.constant 0 : i32
    %624 = tpu.memref_slice %arg6[%c0_i32_666, %c0_i32_667] : memref<256x128xf32, #tpu.memory_space<any>> -> memref<1x128xf32, #tpu.memory_space<any>>
    %c2_i32_668 = arith.constant 2 : i32
    %c0_i32_669 = arith.constant 0 : i32
    %625 = tpu.memref_slice %arg10[%c2_i32_665, %c2_i32_668, %c0_i32_669] : memref<8x8x128xf32, #tpu.memory_space<vmem>> -> memref<1x1x128xf32, #tpu.memory_space<vmem>>
    %626 = tpu.memref_squeeze %625 : memref<1x1x128xf32, #tpu.memory_space<vmem>> -> memref<1x128xf32, #tpu.memory_space<vmem>>
    tpu.wait_dma2 semaphore(%arg11 : memref<!tpu.dma_semaphore, #tpu.memory_space<semaphore_mem>>) src(%624 : memref<1x128xf32, #tpu.memory_space<any>>) dst(%626 : memref<1x128xf32, #tpu.memory_space<vmem>>)
    %c2_i32_670 = arith.constant 2 : i32
    %c0_i32_671 = arith.constant 0 : i32
    %c0_i32_672 = arith.constant 0 : i32
    %627 = tpu.memref_slice %arg6[%c0_i32_671, %c0_i32_672] : memref<256x128xf32, #tpu.memory_space<any>> -> memref<1x128xf32, #tpu.memory_space<any>>
    %c3_i32_673 = arith.constant 3 : i32
    %c0_i32_674 = arith.constant 0 : i32
    %628 = tpu.memref_slice %arg10[%c2_i32_670, %c3_i32_673, %c0_i32_674] : memref<8x8x128xf32, #tpu.memory_space<vmem>> -> memref<1x1x128xf32, #tpu.memory_space<vmem>>
    %629 = tpu.memref_squeeze %628 : memref<1x1x128xf32, #tpu.memory_space<vmem>> -> memref<1x128xf32, #tpu.memory_space<vmem>>
    tpu.wait_dma2 semaphore(%arg11 : memref<!tpu.dma_semaphore, #tpu.memory_space<semaphore_mem>>) src(%627 : memref<1x128xf32, #tpu.memory_space<any>>) dst(%629 : memref<1x128xf32, #tpu.memory_space<vmem>>)
    %c2_i32_675 = arith.constant 2 : i32
    %c0_i32_676 = arith.constant 0 : i32
    %c0_i32_677 = arith.constant 0 : i32
    %630 = tpu.memref_slice %arg6[%c0_i32_676, %c0_i32_677] : memref<256x128xf32, #tpu.memory_space<any>> -> memref<1x128xf32, #tpu.memory_space<any>>
    %c4_i32_678 = arith.constant 4 : i32
    %c0_i32_679 = arith.constant 0 : i32
    %631 = tpu.memref_slice %arg10[%c2_i32_675, %c4_i32_678, %c0_i32_679] : memref<8x8x128xf32, #tpu.memory_space<vmem>> -> memref<1x1x128xf32, #tpu.memory_space<vmem>>
    %632 = tpu.memref_squeeze %631 : memref<1x1x128xf32, #tpu.memory_space<vmem>> -> memref<1x128xf32, #tpu.memory_space<vmem>>
    tpu.wait_dma2 semaphore(%arg11 : memref<!tpu.dma_semaphore, #tpu.memory_space<semaphore_mem>>) src(%630 : memref<1x128xf32, #tpu.memory_space<any>>) dst(%632 : memref<1x128xf32, #tpu.memory_space<vmem>>)
    %c2_i32_680 = arith.constant 2 : i32
    %c0_i32_681 = arith.constant 0 : i32
    %c0_i32_682 = arith.constant 0 : i32
    %633 = tpu.memref_slice %arg6[%c0_i32_681, %c0_i32_682] : memref<256x128xf32, #tpu.memory_space<any>> -> memref<1x128xf32, #tpu.memory_space<any>>
    %c5_i32_683 = arith.constant 5 : i32
    %c0_i32_684 = arith.constant 0 : i32
    %634 = tpu.memref_slice %arg10[%c2_i32_680, %c5_i32_683, %c0_i32_684] : memref<8x8x128xf32, #tpu.memory_space<vmem>> -> memref<1x1x128xf32, #tpu.memory_space<vmem>>
    %635 = tpu.memref_squeeze %634 : memref<1x1x128xf32, #tpu.memory_space<vmem>> -> memref<1x128xf32, #tpu.memory_space<vmem>>
    tpu.wait_dma2 semaphore(%arg11 : memref<!tpu.dma_semaphore, #tpu.memory_space<semaphore_mem>>) src(%633 : memref<1x128xf32, #tpu.memory_space<any>>) dst(%635 : memref<1x128xf32, #tpu.memory_space<vmem>>)
    %c2_i32_685 = arith.constant 2 : i32
    %c0_i32_686 = arith.constant 0 : i32
    %c0_i32_687 = arith.constant 0 : i32
    %636 = tpu.memref_slice %arg6[%c0_i32_686, %c0_i32_687] : memref<256x128xf32, #tpu.memory_space<any>> -> memref<1x128xf32, #tpu.memory_space<any>>
    %c6_i32_688 = arith.constant 6 : i32
    %c0_i32_689 = arith.constant 0 : i32
    %637 = tpu.memref_slice %arg10[%c2_i32_685, %c6_i32_688, %c0_i32_689] : memref<8x8x128xf32, #tpu.memory_space<vmem>> -> memref<1x1x128xf32, #tpu.memory_space<vmem>>
    %638 = tpu.memref_squeeze %637 : memref<1x1x128xf32, #tpu.memory_space<vmem>> -> memref<1x128xf32, #tpu.memory_space<vmem>>
    tpu.wait_dma2 semaphore(%arg11 : memref<!tpu.dma_semaphore, #tpu.memory_space<semaphore_mem>>) src(%636 : memref<1x128xf32, #tpu.memory_space<any>>) dst(%638 : memref<1x128xf32, #tpu.memory_space<vmem>>)
    %c2_i32_690 = arith.constant 2 : i32
    %c0_i32_691 = arith.constant 0 : i32
    %c0_i32_692 = arith.constant 0 : i32
    %639 = tpu.memref_slice %arg6[%c0_i32_691, %c0_i32_692] : memref<256x128xf32, #tpu.memory_space<any>> -> memref<1x128xf32, #tpu.memory_space<any>>
    %c7_i32_693 = arith.constant 7 : i32
    %c0_i32_694 = arith.constant 0 : i32
    %640 = tpu.memref_slice %arg10[%c2_i32_690, %c7_i32_693, %c0_i32_694] : memref<8x8x128xf32, #tpu.memory_space<vmem>> -> memref<1x1x128xf32, #tpu.memory_space<vmem>>
    %641 = tpu.memref_squeeze %640 : memref<1x1x128xf32, #tpu.memory_space<vmem>> -> memref<1x128xf32, #tpu.memory_space<vmem>>
    tpu.wait_dma2 semaphore(%arg11 : memref<!tpu.dma_semaphore, #tpu.memory_space<semaphore_mem>>) src(%639 : memref<1x128xf32, #tpu.memory_space<any>>) dst(%641 : memref<1x128xf32, #tpu.memory_space<vmem>>)
    %c0_i32_695 = arith.constant 0 : i32
    %c0_i32_696 = arith.constant 0 : i32
    %642 = tpu.memref_slice %arg4[%c0_i32_695, %c0_i32_696] : memref<64x128xf32, #tpu.memory_space<any>> -> memref<1x128xf32, #tpu.memory_space<any>>
    %c3_i32_697 = arith.constant 3 : i32
    %c0_i32_698 = arith.constant 0 : i32
    %643 = tpu.memref_slice %arg8[%c3_i32_697, %c0_i32_698] : memref<8x128xf32, #tpu.memory_space<vmem>> -> memref<1x128xf32, #tpu.memory_space<vmem>>
    tpu.wait_dma2 semaphore(%arg11 : memref<!tpu.dma_semaphore, #tpu.memory_space<semaphore_mem>>) src(%642 : memref<1x128xf32, #tpu.memory_space<any>>) dst(%643 : memref<1x128xf32, #tpu.memory_space<vmem>>)
    %c3_i32_699 = arith.constant 3 : i32
    %c0_i32_700 = arith.constant 0 : i32
    %c0_i32_701 = arith.constant 0 : i32
    %644 = tpu.memref_slice %arg5[%c0_i32_700, %c0_i32_701] : memref<256x128xf32, #tpu.memory_space<any>> -> memref<1x128xf32, #tpu.memory_space<any>>
    %c0_i32_702 = arith.constant 0 : i32
    %c0_i32_703 = arith.constant 0 : i32
    %645 = tpu.memref_slice %arg9[%c3_i32_699, %c0_i32_702, %c0_i32_703] : memref<8x4x128xf32, #tpu.memory_space<vmem>> -> memref<1x1x128xf32, #tpu.memory_space<vmem>>
    %646 = tpu.memref_squeeze %645 : memref<1x1x128xf32, #tpu.memory_space<vmem>> -> memref<1x128xf32, #tpu.memory_space<vmem>>
    tpu.wait_dma2 semaphore(%arg11 : memref<!tpu.dma_semaphore, #tpu.memory_space<semaphore_mem>>) src(%644 : memref<1x128xf32, #tpu.memory_space<any>>) dst(%646 : memref<1x128xf32, #tpu.memory_space<vmem>>)
    %c3_i32_704 = arith.constant 3 : i32
    %c0_i32_705 = arith.constant 0 : i32
    %c0_i32_706 = arith.constant 0 : i32
    %647 = tpu.memref_slice %arg5[%c0_i32_705, %c0_i32_706] : memref<256x128xf32, #tpu.memory_space<any>> -> memref<1x128xf32, #tpu.memory_space<any>>
    %c1_i32_707 = arith.constant 1 : i32
    %c0_i32_708 = arith.constant 0 : i32
    %648 = tpu.memref_slice %arg9[%c3_i32_704, %c1_i32_707, %c0_i32_708] : memref<8x4x128xf32, #tpu.memory_space<vmem>> -> memref<1x1x128xf32, #tpu.memory_space<vmem>>
    %649 = tpu.memref_squeeze %648 : memref<1x1x128xf32, #tpu.memory_space<vmem>> -> memref<1x128xf32, #tpu.memory_space<vmem>>
    tpu.wait_dma2 semaphore(%arg11 : memref<!tpu.dma_semaphore, #tpu.memory_space<semaphore_mem>>) src(%647 : memref<1x128xf32, #tpu.memory_space<any>>) dst(%649 : memref<1x128xf32, #tpu.memory_space<vmem>>)
    %c3_i32_709 = arith.constant 3 : i32
    %c0_i32_710 = arith.constant 0 : i32
    %c0_i32_711 = arith.constant 0 : i32
    %650 = tpu.memref_slice %arg5[%c0_i32_710, %c0_i32_711] : memref<256x128xf32, #tpu.memory_space<any>> -> memref<1x128xf32, #tpu.memory_space<any>>
    %c2_i32_712 = arith.constant 2 : i32
    %c0_i32_713 = arith.constant 0 : i32
    %651 = tpu.memref_slice %arg9[%c3_i32_709, %c2_i32_712, %c0_i32_713] : memref<8x4x128xf32, #tpu.memory_space<vmem>> -> memref<1x1x128xf32, #tpu.memory_space<vmem>>
    %652 = tpu.memref_squeeze %651 : memref<1x1x128xf32, #tpu.memory_space<vmem>> -> memref<1x128xf32, #tpu.memory_space<vmem>>
    tpu.wait_dma2 semaphore(%arg11 : memref<!tpu.dma_semaphore, #tpu.memory_space<semaphore_mem>>) src(%650 : memref<1x128xf32, #tpu.memory_space<any>>) dst(%652 : memref<1x128xf32, #tpu.memory_space<vmem>>)
    %c3_i32_714 = arith.constant 3 : i32
    %c0_i32_715 = arith.constant 0 : i32
    %c0_i32_716 = arith.constant 0 : i32
    %653 = tpu.memref_slice %arg5[%c0_i32_715, %c0_i32_716] : memref<256x128xf32, #tpu.memory_space<any>> -> memref<1x128xf32, #tpu.memory_space<any>>
    %c3_i32_717 = arith.constant 3 : i32
    %c0_i32_718 = arith.constant 0 : i32
    %654 = tpu.memref_slice %arg9[%c3_i32_714, %c3_i32_717, %c0_i32_718] : memref<8x4x128xf32, #tpu.memory_space<vmem>> -> memref<1x1x128xf32, #tpu.memory_space<vmem>>
    %655 = tpu.memref_squeeze %654 : memref<1x1x128xf32, #tpu.memory_space<vmem>> -> memref<1x128xf32, #tpu.memory_space<vmem>>
    tpu.wait_dma2 semaphore(%arg11 : memref<!tpu.dma_semaphore, #tpu.memory_space<semaphore_mem>>) src(%653 : memref<1x128xf32, #tpu.memory_space<any>>) dst(%655 : memref<1x128xf32, #tpu.memory_space<vmem>>)
    %c3_i32_719 = arith.constant 3 : i32
    %c0_i32_720 = arith.constant 0 : i32
    %c0_i32_721 = arith.constant 0 : i32
    %656 = tpu.memref_slice %arg6[%c0_i32_720, %c0_i32_721] : memref<256x128xf32, #tpu.memory_space<any>> -> memref<1x128xf32, #tpu.memory_space<any>>
    %c0_i32_722 = arith.constant 0 : i32
    %c0_i32_723 = arith.constant 0 : i32
    %657 = tpu.memref_slice %arg10[%c3_i32_719, %c0_i32_722, %c0_i32_723] : memref<8x8x128xf32, #tpu.memory_space<vmem>> -> memref<1x1x128xf32, #tpu.memory_space<vmem>>
    %658 = tpu.memref_squeeze %657 : memref<1x1x128xf32, #tpu.memory_space<vmem>> -> memref<1x128xf32, #tpu.memory_space<vmem>>
    tpu.wait_dma2 semaphore(%arg11 : memref<!tpu.dma_semaphore, #tpu.memory_space<semaphore_mem>>) src(%656 : memref<1x128xf32, #tpu.memory_space<any>>) dst(%658 : memref<1x128xf32, #tpu.memory_space<vmem>>)
    %c3_i32_724 = arith.constant 3 : i32
    %c0_i32_725 = arith.constant 0 : i32
    %c0_i32_726 = arith.constant 0 : i32
    %659 = tpu.memref_slice %arg6[%c0_i32_725, %c0_i32_726] : memref<256x128xf32, #tpu.memory_space<any>> -> memref<1x128xf32, #tpu.memory_space<any>>
    %c1_i32_727 = arith.constant 1 : i32
    %c0_i32_728 = arith.constant 0 : i32
    %660 = tpu.memref_slice %arg10[%c3_i32_724, %c1_i32_727, %c0_i32_728] : memref<8x8x128xf32, #tpu.memory_space<vmem>> -> memref<1x1x128xf32, #tpu.memory_space<vmem>>
    %661 = tpu.memref_squeeze %660 : memref<1x1x128xf32, #tpu.memory_space<vmem>> -> memref<1x128xf32, #tpu.memory_space<vmem>>
    tpu.wait_dma2 semaphore(%arg11 : memref<!tpu.dma_semaphore, #tpu.memory_space<semaphore_mem>>) src(%659 : memref<1x128xf32, #tpu.memory_space<any>>) dst(%661 : memref<1x128xf32, #tpu.memory_space<vmem>>)
    %c3_i32_729 = arith.constant 3 : i32
    %c0_i32_730 = arith.constant 0 : i32
    %c0_i32_731 = arith.constant 0 : i32
    %662 = tpu.memref_slice %arg6[%c0_i32_730, %c0_i32_731] : memref<256x128xf32, #tpu.memory_space<any>> -> memref<1x128xf32, #tpu.memory_space<any>>
    %c2_i32_732 = arith.constant 2 : i32
    %c0_i32_733 = arith.constant 0 : i32
    %663 = tpu.memref_slice %arg10[%c3_i32_729, %c2_i32_732, %c0_i32_733] : memref<8x8x128xf32, #tpu.memory_space<vmem>> -> memref<1x1x128xf32, #tpu.memory_space<vmem>>
    %664 = tpu.memref_squeeze %663 : memref<1x1x128xf32, #tpu.memory_space<vmem>> -> memref<1x128xf32, #tpu.memory_space<vmem>>
    tpu.wait_dma2 semaphore(%arg11 : memref<!tpu.dma_semaphore, #tpu.memory_space<semaphore_mem>>) src(%662 : memref<1x128xf32, #tpu.memory_space<any>>) dst(%664 : memref<1x128xf32, #tpu.memory_space<vmem>>)
    %c3_i32_734 = arith.constant 3 : i32
    %c0_i32_735 = arith.constant 0 : i32
    %c0_i32_736 = arith.constant 0 : i32
    %665 = tpu.memref_slice %arg6[%c0_i32_735, %c0_i32_736] : memref<256x128xf32, #tpu.memory_space<any>> -> memref<1x128xf32, #tpu.memory_space<any>>
    %c3_i32_737 = arith.constant 3 : i32
    %c0_i32_738 = arith.constant 0 : i32
    %666 = tpu.memref_slice %arg10[%c3_i32_734, %c3_i32_737, %c0_i32_738] : memref<8x8x128xf32, #tpu.memory_space<vmem>> -> memref<1x1x128xf32, #tpu.memory_space<vmem>>
    %667 = tpu.memref_squeeze %666 : memref<1x1x128xf32, #tpu.memory_space<vmem>> -> memref<1x128xf32, #tpu.memory_space<vmem>>
    tpu.wait_dma2 semaphore(%arg11 : memref<!tpu.dma_semaphore, #tpu.memory_space<semaphore_mem>>) src(%665 : memref<1x128xf32, #tpu.memory_space<any>>) dst(%667 : memref<1x128xf32, #tpu.memory_space<vmem>>)
    %c3_i32_739 = arith.constant 3 : i32
    %c0_i32_740 = arith.constant 0 : i32
    %c0_i32_741 = arith.constant 0 : i32
    %668 = tpu.memref_slice %arg6[%c0_i32_740, %c0_i32_741] : memref<256x128xf32, #tpu.memory_space<any>> -> memref<1x128xf32, #tpu.memory_space<any>>
    %c4_i32_742 = arith.constant 4 : i32
    %c0_i32_743 = arith.constant 0 : i32
    %669 = tpu.memref_slice %arg10[%c3_i32_739, %c4_i32_742, %c0_i32_743] : memref<8x8x128xf32, #tpu.memory_space<vmem>> -> memref<1x1x128xf32, #tpu.memory_space<vmem>>
    %670 = tpu.memref_squeeze %669 : memref<1x1x128xf32, #tpu.memory_space<vmem>> -> memref<1x128xf32, #tpu.memory_space<vmem>>
    tpu.wait_dma2 semaphore(%arg11 : memref<!tpu.dma_semaphore, #tpu.memory_space<semaphore_mem>>) src(%668 : memref<1x128xf32, #tpu.memory_space<any>>) dst(%670 : memref<1x128xf32, #tpu.memory_space<vmem>>)
    %c3_i32_744 = arith.constant 3 : i32
    %c0_i32_745 = arith.constant 0 : i32
    %c0_i32_746 = arith.constant 0 : i32
    %671 = tpu.memref_slice %arg6[%c0_i32_745, %c0_i32_746] : memref<256x128xf32, #tpu.memory_space<any>> -> memref<1x128xf32, #tpu.memory_space<any>>
    %c5_i32_747 = arith.constant 5 : i32
    %c0_i32_748 = arith.constant 0 : i32
    %672 = tpu.memref_slice %arg10[%c3_i32_744, %c5_i32_747, %c0_i32_748] : memref<8x8x128xf32, #tpu.memory_space<vmem>> -> memref<1x1x128xf32, #tpu.memory_space<vmem>>
    %673 = tpu.memref_squeeze %672 : memref<1x1x128xf32, #tpu.memory_space<vmem>> -> memref<1x128xf32, #tpu.memory_space<vmem>>
    tpu.wait_dma2 semaphore(%arg11 : memref<!tpu.dma_semaphore, #tpu.memory_space<semaphore_mem>>) src(%671 : memref<1x128xf32, #tpu.memory_space<any>>) dst(%673 : memref<1x128xf32, #tpu.memory_space<vmem>>)
    %c3_i32_749 = arith.constant 3 : i32
    %c0_i32_750 = arith.constant 0 : i32
    %c0_i32_751 = arith.constant 0 : i32
    %674 = tpu.memref_slice %arg6[%c0_i32_750, %c0_i32_751] : memref<256x128xf32, #tpu.memory_space<any>> -> memref<1x128xf32, #tpu.memory_space<any>>
    %c6_i32_752 = arith.constant 6 : i32
    %c0_i32_753 = arith.constant 0 : i32
    %675 = tpu.memref_slice %arg10[%c3_i32_749, %c6_i32_752, %c0_i32_753] : memref<8x8x128xf32, #tpu.memory_space<vmem>> -> memref<1x1x128xf32, #tpu.memory_space<vmem>>
    %676 = tpu.memref_squeeze %675 : memref<1x1x128xf32, #tpu.memory_space<vmem>> -> memref<1x128xf32, #tpu.memory_space<vmem>>
    tpu.wait_dma2 semaphore(%arg11 : memref<!tpu.dma_semaphore, #tpu.memory_space<semaphore_mem>>) src(%674 : memref<1x128xf32, #tpu.memory_space<any>>) dst(%676 : memref<1x128xf32, #tpu.memory_space<vmem>>)
    %c3_i32_754 = arith.constant 3 : i32
    %c0_i32_755 = arith.constant 0 : i32
    %c0_i32_756 = arith.constant 0 : i32
    %677 = tpu.memref_slice %arg6[%c0_i32_755, %c0_i32_756] : memref<256x128xf32, #tpu.memory_space<any>> -> memref<1x128xf32, #tpu.memory_space<any>>
    %c7_i32_757 = arith.constant 7 : i32
    %c0_i32_758 = arith.constant 0 : i32
    %678 = tpu.memref_slice %arg10[%c3_i32_754, %c7_i32_757, %c0_i32_758] : memref<8x8x128xf32, #tpu.memory_space<vmem>> -> memref<1x1x128xf32, #tpu.memory_space<vmem>>
    %679 = tpu.memref_squeeze %678 : memref<1x1x128xf32, #tpu.memory_space<vmem>> -> memref<1x128xf32, #tpu.memory_space<vmem>>
    tpu.wait_dma2 semaphore(%arg11 : memref<!tpu.dma_semaphore, #tpu.memory_space<semaphore_mem>>) src(%677 : memref<1x128xf32, #tpu.memory_space<any>>) dst(%679 : memref<1x128xf32, #tpu.memory_space<vmem>>)
    %c0_i32_759 = arith.constant 0 : i32
    %c0_i32_760 = arith.constant 0 : i32
    %680 = tpu.memref_slice %arg4[%c0_i32_759, %c0_i32_760] : memref<64x128xf32, #tpu.memory_space<any>> -> memref<1x128xf32, #tpu.memory_space<any>>
    %c4_i32_761 = arith.constant 4 : i32
    %c0_i32_762 = arith.constant 0 : i32
    %681 = tpu.memref_slice %arg8[%c4_i32_761, %c0_i32_762] : memref<8x128xf32, #tpu.memory_space<vmem>> -> memref<1x128xf32, #tpu.memory_space<vmem>>
    tpu.wait_dma2 semaphore(%arg11 : memref<!tpu.dma_semaphore, #tpu.memory_space<semaphore_mem>>) src(%680 : memref<1x128xf32, #tpu.memory_space<any>>) dst(%681 : memref<1x128xf32, #tpu.memory_space<vmem>>)
    %c4_i32_763 = arith.constant 4 : i32
    %c0_i32_764 = arith.constant 0 : i32
    %c0_i32_765 = arith.constant 0 : i32
    %682 = tpu.memref_slice %arg5[%c0_i32_764, %c0_i32_765] : memref<256x128xf32, #tpu.memory_space<any>> -> memref<1x128xf32, #tpu.memory_space<any>>
    %c0_i32_766 = arith.constant 0 : i32
    %c0_i32_767 = arith.constant 0 : i32
    %683 = tpu.memref_slice %arg9[%c4_i32_763, %c0_i32_766, %c0_i32_767] : memref<8x4x128xf32, #tpu.memory_space<vmem>> -> memref<1x1x128xf32, #tpu.memory_space<vmem>>
    %684 = tpu.memref_squeeze %683 : memref<1x1x128xf32, #tpu.memory_space<vmem>> -> memref<1x128xf32, #tpu.memory_space<vmem>>
    tpu.wait_dma2 semaphore(%arg11 : memref<!tpu.dma_semaphore, #tpu.memory_space<semaphore_mem>>) src(%682 : memref<1x128xf32, #tpu.memory_space<any>>) dst(%684 : memref<1x128xf32, #tpu.memory_space<vmem>>)
    %c4_i32_768 = arith.constant 4 : i32
    %c0_i32_769 = arith.constant 0 : i32
    %c0_i32_770 = arith.constant 0 : i32
    %685 = tpu.memref_slice %arg5[%c0_i32_769, %c0_i32_770] : memref<256x128xf32, #tpu.memory_space<any>> -> memref<1x128xf32, #tpu.memory_space<any>>
    %c1_i32_771 = arith.constant 1 : i32
    %c0_i32_772 = arith.constant 0 : i32
    %686 = tpu.memref_slice %arg9[%c4_i32_768, %c1_i32_771, %c0_i32_772] : memref<8x4x128xf32, #tpu.memory_space<vmem>> -> memref<1x1x128xf32, #tpu.memory_space<vmem>>
    %687 = tpu.memref_squeeze %686 : memref<1x1x128xf32, #tpu.memory_space<vmem>> -> memref<1x128xf32, #tpu.memory_space<vmem>>
    tpu.wait_dma2 semaphore(%arg11 : memref<!tpu.dma_semaphore, #tpu.memory_space<semaphore_mem>>) src(%685 : memref<1x128xf32, #tpu.memory_space<any>>) dst(%687 : memref<1x128xf32, #tpu.memory_space<vmem>>)
    %c4_i32_773 = arith.constant 4 : i32
    %c0_i32_774 = arith.constant 0 : i32
    %c0_i32_775 = arith.constant 0 : i32
    %688 = tpu.memref_slice %arg5[%c0_i32_774, %c0_i32_775] : memref<256x128xf32, #tpu.memory_space<any>> -> memref<1x128xf32, #tpu.memory_space<any>>
    %c2_i32_776 = arith.constant 2 : i32
    %c0_i32_777 = arith.constant 0 : i32
    %689 = tpu.memref_slice %arg9[%c4_i32_773, %c2_i32_776, %c0_i32_777] : memref<8x4x128xf32, #tpu.memory_space<vmem>> -> memref<1x1x128xf32, #tpu.memory_space<vmem>>
    %690 = tpu.memref_squeeze %689 : memref<1x1x128xf32, #tpu.memory_space<vmem>> -> memref<1x128xf32, #tpu.memory_space<vmem>>
    tpu.wait_dma2 semaphore(%arg11 : memref<!tpu.dma_semaphore, #tpu.memory_space<semaphore_mem>>) src(%688 : memref<1x128xf32, #tpu.memory_space<any>>) dst(%690 : memref<1x128xf32, #tpu.memory_space<vmem>>)
    %c4_i32_778 = arith.constant 4 : i32
    %c0_i32_779 = arith.constant 0 : i32
    %c0_i32_780 = arith.constant 0 : i32
    %691 = tpu.memref_slice %arg5[%c0_i32_779, %c0_i32_780] : memref<256x128xf32, #tpu.memory_space<any>> -> memref<1x128xf32, #tpu.memory_space<any>>
    %c3_i32_781 = arith.constant 3 : i32
    %c0_i32_782 = arith.constant 0 : i32
    %692 = tpu.memref_slice %arg9[%c4_i32_778, %c3_i32_781, %c0_i32_782] : memref<8x4x128xf32, #tpu.memory_space<vmem>> -> memref<1x1x128xf32, #tpu.memory_space<vmem>>
    %693 = tpu.memref_squeeze %692 : memref<1x1x128xf32, #tpu.memory_space<vmem>> -> memref<1x128xf32, #tpu.memory_space<vmem>>
    tpu.wait_dma2 semaphore(%arg11 : memref<!tpu.dma_semaphore, #tpu.memory_space<semaphore_mem>>) src(%691 : memref<1x128xf32, #tpu.memory_space<any>>) dst(%693 : memref<1x128xf32, #tpu.memory_space<vmem>>)
    %c4_i32_783 = arith.constant 4 : i32
    %c0_i32_784 = arith.constant 0 : i32
    %c0_i32_785 = arith.constant 0 : i32
    %694 = tpu.memref_slice %arg6[%c0_i32_784, %c0_i32_785] : memref<256x128xf32, #tpu.memory_space<any>> -> memref<1x128xf32, #tpu.memory_space<any>>
    %c0_i32_786 = arith.constant 0 : i32
    %c0_i32_787 = arith.constant 0 : i32
    %695 = tpu.memref_slice %arg10[%c4_i32_783, %c0_i32_786, %c0_i32_787] : memref<8x8x128xf32, #tpu.memory_space<vmem>> -> memref<1x1x128xf32, #tpu.memory_space<vmem>>
    %696 = tpu.memref_squeeze %695 : memref<1x1x128xf32, #tpu.memory_space<vmem>> -> memref<1x128xf32, #tpu.memory_space<vmem>>
    tpu.wait_dma2 semaphore(%arg11 : memref<!tpu.dma_semaphore, #tpu.memory_space<semaphore_mem>>) src(%694 : memref<1x128xf32, #tpu.memory_space<any>>) dst(%696 : memref<1x128xf32, #tpu.memory_space<vmem>>)
    %c4_i32_788 = arith.constant 4 : i32
    %c0_i32_789 = arith.constant 0 : i32
    %c0_i32_790 = arith.constant 0 : i32
    %697 = tpu.memref_slice %arg6[%c0_i32_789, %c0_i32_790] : memref<256x128xf32, #tpu.memory_space<any>> -> memref<1x128xf32, #tpu.memory_space<any>>
    %c1_i32_791 = arith.constant 1 : i32
    %c0_i32_792 = arith.constant 0 : i32
    %698 = tpu.memref_slice %arg10[%c4_i32_788, %c1_i32_791, %c0_i32_792] : memref<8x8x128xf32, #tpu.memory_space<vmem>> -> memref<1x1x128xf32, #tpu.memory_space<vmem>>
    %699 = tpu.memref_squeeze %698 : memref<1x1x128xf32, #tpu.memory_space<vmem>> -> memref<1x128xf32, #tpu.memory_space<vmem>>
    tpu.wait_dma2 semaphore(%arg11 : memref<!tpu.dma_semaphore, #tpu.memory_space<semaphore_mem>>) src(%697 : memref<1x128xf32, #tpu.memory_space<any>>) dst(%699 : memref<1x128xf32, #tpu.memory_space<vmem>>)
    %c4_i32_793 = arith.constant 4 : i32
    %c0_i32_794 = arith.constant 0 : i32
    %c0_i32_795 = arith.constant 0 : i32
    %700 = tpu.memref_slice %arg6[%c0_i32_794, %c0_i32_795] : memref<256x128xf32, #tpu.memory_space<any>> -> memref<1x128xf32, #tpu.memory_space<any>>
    %c2_i32_796 = arith.constant 2 : i32
    %c0_i32_797 = arith.constant 0 : i32
    %701 = tpu.memref_slice %arg10[%c4_i32_793, %c2_i32_796, %c0_i32_797] : memref<8x8x128xf32, #tpu.memory_space<vmem>> -> memref<1x1x128xf32, #tpu.memory_space<vmem>>
    %702 = tpu.memref_squeeze %701 : memref<1x1x128xf32, #tpu.memory_space<vmem>> -> memref<1x128xf32, #tpu.memory_space<vmem>>
    tpu.wait_dma2 semaphore(%arg11 : memref<!tpu.dma_semaphore, #tpu.memory_space<semaphore_mem>>) src(%700 : memref<1x128xf32, #tpu.memory_space<any>>) dst(%702 : memref<1x128xf32, #tpu.memory_space<vmem>>)
    %c4_i32_798 = arith.constant 4 : i32
    %c0_i32_799 = arith.constant 0 : i32
    %c0_i32_800 = arith.constant 0 : i32
    %703 = tpu.memref_slice %arg6[%c0_i32_799, %c0_i32_800] : memref<256x128xf32, #tpu.memory_space<any>> -> memref<1x128xf32, #tpu.memory_space<any>>
    %c3_i32_801 = arith.constant 3 : i32
    %c0_i32_802 = arith.constant 0 : i32
    %704 = tpu.memref_slice %arg10[%c4_i32_798, %c3_i32_801, %c0_i32_802] : memref<8x8x128xf32, #tpu.memory_space<vmem>> -> memref<1x1x128xf32, #tpu.memory_space<vmem>>
    %705 = tpu.memref_squeeze %704 : memref<1x1x128xf32, #tpu.memory_space<vmem>> -> memref<1x128xf32, #tpu.memory_space<vmem>>
    tpu.wait_dma2 semaphore(%arg11 : memref<!tpu.dma_semaphore, #tpu.memory_space<semaphore_mem>>) src(%703 : memref<1x128xf32, #tpu.memory_space<any>>) dst(%705 : memref<1x128xf32, #tpu.memory_space<vmem>>)
    %c4_i32_803 = arith.constant 4 : i32
    %c0_i32_804 = arith.constant 0 : i32
    %c0_i32_805 = arith.constant 0 : i32
    %706 = tpu.memref_slice %arg6[%c0_i32_804, %c0_i32_805] : memref<256x128xf32, #tpu.memory_space<any>> -> memref<1x128xf32, #tpu.memory_space<any>>
    %c4_i32_806 = arith.constant 4 : i32
    %c0_i32_807 = arith.constant 0 : i32
    %707 = tpu.memref_slice %arg10[%c4_i32_803, %c4_i32_806, %c0_i32_807] : memref<8x8x128xf32, #tpu.memory_space<vmem>> -> memref<1x1x128xf32, #tpu.memory_space<vmem>>
    %708 = tpu.memref_squeeze %707 : memref<1x1x128xf32, #tpu.memory_space<vmem>> -> memref<1x128xf32, #tpu.memory_space<vmem>>
    tpu.wait_dma2 semaphore(%arg11 : memref<!tpu.dma_semaphore, #tpu.memory_space<semaphore_mem>>) src(%706 : memref<1x128xf32, #tpu.memory_space<any>>) dst(%708 : memref<1x128xf32, #tpu.memory_space<vmem>>)
    %c4_i32_808 = arith.constant 4 : i32
    %c0_i32_809 = arith.constant 0 : i32
    %c0_i32_810 = arith.constant 0 : i32
    %709 = tpu.memref_slice %arg6[%c0_i32_809, %c0_i32_810] : memref<256x128xf32, #tpu.memory_space<any>> -> memref<1x128xf32, #tpu.memory_space<any>>
    %c5_i32_811 = arith.constant 5 : i32
    %c0_i32_812 = arith.constant 0 : i32
    %710 = tpu.memref_slice %arg10[%c4_i32_808, %c5_i32_811, %c0_i32_812] : memref<8x8x128xf32, #tpu.memory_space<vmem>> -> memref<1x1x128xf32, #tpu.memory_space<vmem>>
    %711 = tpu.memref_squeeze %710 : memref<1x1x128xf32, #tpu.memory_space<vmem>> -> memref<1x128xf32, #tpu.memory_space<vmem>>
    tpu.wait_dma2 semaphore(%arg11 : memref<!tpu.dma_semaphore, #tpu.memory_space<semaphore_mem>>) src(%709 : memref<1x128xf32, #tpu.memory_space<any>>) dst(%711 : memref<1x128xf32, #tpu.memory_space<vmem>>)
    %c4_i32_813 = arith.constant 4 : i32
    %c0_i32_814 = arith.constant 0 : i32
    %c0_i32_815 = arith.constant 0 : i32
    %712 = tpu.memref_slice %arg6[%c0_i32_814, %c0_i32_815] : memref<256x128xf32, #tpu.memory_space<any>> -> memref<1x128xf32, #tpu.memory_space<any>>
    %c6_i32_816 = arith.constant 6 : i32
    %c0_i32_817 = arith.constant 0 : i32
    %713 = tpu.memref_slice %arg10[%c4_i32_813, %c6_i32_816, %c0_i32_817] : memref<8x8x128xf32, #tpu.memory_space<vmem>> -> memref<1x1x128xf32, #tpu.memory_space<vmem>>
    %714 = tpu.memref_squeeze %713 : memref<1x1x128xf32, #tpu.memory_space<vmem>> -> memref<1x128xf32, #tpu.memory_space<vmem>>
    tpu.wait_dma2 semaphore(%arg11 : memref<!tpu.dma_semaphore, #tpu.memory_space<semaphore_mem>>) src(%712 : memref<1x128xf32, #tpu.memory_space<any>>) dst(%714 : memref<1x128xf32, #tpu.memory_space<vmem>>)
    %c4_i32_818 = arith.constant 4 : i32
    %c0_i32_819 = arith.constant 0 : i32
    %c0_i32_820 = arith.constant 0 : i32
    %715 = tpu.memref_slice %arg6[%c0_i32_819, %c0_i32_820] : memref<256x128xf32, #tpu.memory_space<any>> -> memref<1x128xf32, #tpu.memory_space<any>>
    %c7_i32_821 = arith.constant 7 : i32
    %c0_i32_822 = arith.constant 0 : i32
    %716 = tpu.memref_slice %arg10[%c4_i32_818, %c7_i32_821, %c0_i32_822] : memref<8x8x128xf32, #tpu.memory_space<vmem>> -> memref<1x1x128xf32, #tpu.memory_space<vmem>>
    %717 = tpu.memref_squeeze %716 : memref<1x1x128xf32, #tpu.memory_space<vmem>> -> memref<1x128xf32, #tpu.memory_space<vmem>>
    tpu.wait_dma2 semaphore(%arg11 : memref<!tpu.dma_semaphore, #tpu.memory_space<semaphore_mem>>) src(%715 : memref<1x128xf32, #tpu.memory_space<any>>) dst(%717 : memref<1x128xf32, #tpu.memory_space<vmem>>)
    %c0_i32_823 = arith.constant 0 : i32
    %c0_i32_824 = arith.constant 0 : i32
    %718 = tpu.memref_slice %arg4[%c0_i32_823, %c0_i32_824] : memref<64x128xf32, #tpu.memory_space<any>> -> memref<1x128xf32, #tpu.memory_space<any>>
    %c5_i32_825 = arith.constant 5 : i32
    %c0_i32_826 = arith.constant 0 : i32
    %719 = tpu.memref_slice %arg8[%c5_i32_825, %c0_i32_826] : memref<8x128xf32, #tpu.memory_space<vmem>> -> memref<1x128xf32, #tpu.memory_space<vmem>>
    tpu.wait_dma2 semaphore(%arg11 : memref<!tpu.dma_semaphore, #tpu.memory_space<semaphore_mem>>) src(%718 : memref<1x128xf32, #tpu.memory_space<any>>) dst(%719 : memref<1x128xf32, #tpu.memory_space<vmem>>)
    %c5_i32_827 = arith.constant 5 : i32
    %c0_i32_828 = arith.constant 0 : i32
    %c0_i32_829 = arith.constant 0 : i32
    %720 = tpu.memref_slice %arg5[%c0_i32_828, %c0_i32_829] : memref<256x128xf32, #tpu.memory_space<any>> -> memref<1x128xf32, #tpu.memory_space<any>>
    %c0_i32_830 = arith.constant 0 : i32
    %c0_i32_831 = arith.constant 0 : i32
    %721 = tpu.memref_slice %arg9[%c5_i32_827, %c0_i32_830, %c0_i32_831] : memref<8x4x128xf32, #tpu.memory_space<vmem>> -> memref<1x1x128xf32, #tpu.memory_space<vmem>>
    %722 = tpu.memref_squeeze %721 : memref<1x1x128xf32, #tpu.memory_space<vmem>> -> memref<1x128xf32, #tpu.memory_space<vmem>>
    tpu.wait_dma2 semaphore(%arg11 : memref<!tpu.dma_semaphore, #tpu.memory_space<semaphore_mem>>) src(%720 : memref<1x128xf32, #tpu.memory_space<any>>) dst(%722 : memref<1x128xf32, #tpu.memory_space<vmem>>)
    %c5_i32_832 = arith.constant 5 : i32
    %c0_i32_833 = arith.constant 0 : i32
    %c0_i32_834 = arith.constant 0 : i32
    %723 = tpu.memref_slice %arg5[%c0_i32_833, %c0_i32_834] : memref<256x128xf32, #tpu.memory_space<any>> -> memref<1x128xf32, #tpu.memory_space<any>>
    %c1_i32_835 = arith.constant 1 : i32
    %c0_i32_836 = arith.constant 0 : i32
    %724 = tpu.memref_slice %arg9[%c5_i32_832, %c1_i32_835, %c0_i32_836] : memref<8x4x128xf32, #tpu.memory_space<vmem>> -> memref<1x1x128xf32, #tpu.memory_space<vmem>>
    %725 = tpu.memref_squeeze %724 : memref<1x1x128xf32, #tpu.memory_space<vmem>> -> memref<1x128xf32, #tpu.memory_space<vmem>>
    tpu.wait_dma2 semaphore(%arg11 : memref<!tpu.dma_semaphore, #tpu.memory_space<semaphore_mem>>) src(%723 : memref<1x128xf32, #tpu.memory_space<any>>) dst(%725 : memref<1x128xf32, #tpu.memory_space<vmem>>)
    %c5_i32_837 = arith.constant 5 : i32
    %c0_i32_838 = arith.constant 0 : i32
    %c0_i32_839 = arith.constant 0 : i32
    %726 = tpu.memref_slice %arg5[%c0_i32_838, %c0_i32_839] : memref<256x128xf32, #tpu.memory_space<any>> -> memref<1x128xf32, #tpu.memory_space<any>>
    %c2_i32_840 = arith.constant 2 : i32
    %c0_i32_841 = arith.constant 0 : i32
    %727 = tpu.memref_slice %arg9[%c5_i32_837, %c2_i32_840, %c0_i32_841] : memref<8x4x128xf32, #tpu.memory_space<vmem>> -> memref<1x1x128xf32, #tpu.memory_space<vmem>>
    %728 = tpu.memref_squeeze %727 : memref<1x1x128xf32, #tpu.memory_space<vmem>> -> memref<1x128xf32, #tpu.memory_space<vmem>>
    tpu.wait_dma2 semaphore(%arg11 : memref<!tpu.dma_semaphore, #tpu.memory_space<semaphore_mem>>) src(%726 : memref<1x128xf32, #tpu.memory_space<any>>) dst(%728 : memref<1x128xf32, #tpu.memory_space<vmem>>)
    %c5_i32_842 = arith.constant 5 : i32
    %c0_i32_843 = arith.constant 0 : i32
    %c0_i32_844 = arith.constant 0 : i32
    %729 = tpu.memref_slice %arg5[%c0_i32_843, %c0_i32_844] : memref<256x128xf32, #tpu.memory_space<any>> -> memref<1x128xf32, #tpu.memory_space<any>>
    %c3_i32_845 = arith.constant 3 : i32
    %c0_i32_846 = arith.constant 0 : i32
    %730 = tpu.memref_slice %arg9[%c5_i32_842, %c3_i32_845, %c0_i32_846] : memref<8x4x128xf32, #tpu.memory_space<vmem>> -> memref<1x1x128xf32, #tpu.memory_space<vmem>>
    %731 = tpu.memref_squeeze %730 : memref<1x1x128xf32, #tpu.memory_space<vmem>> -> memref<1x128xf32, #tpu.memory_space<vmem>>
    tpu.wait_dma2 semaphore(%arg11 : memref<!tpu.dma_semaphore, #tpu.memory_space<semaphore_mem>>) src(%729 : memref<1x128xf32, #tpu.memory_space<any>>) dst(%731 : memref<1x128xf32, #tpu.memory_space<vmem>>)
    %c5_i32_847 = arith.constant 5 : i32
    %c0_i32_848 = arith.constant 0 : i32
    %c0_i32_849 = arith.constant 0 : i32
    %732 = tpu.memref_slice %arg6[%c0_i32_848, %c0_i32_849] : memref<256x128xf32, #tpu.memory_space<any>> -> memref<1x128xf32, #tpu.memory_space<any>>
    %c0_i32_850 = arith.constant 0 : i32
    %c0_i32_851 = arith.constant 0 : i32
    %733 = tpu.memref_slice %arg10[%c5_i32_847, %c0_i32_850, %c0_i32_851] : memref<8x8x128xf32, #tpu.memory_space<vmem>> -> memref<1x1x128xf32, #tpu.memory_space<vmem>>
    %734 = tpu.memref_squeeze %733 : memref<1x1x128xf32, #tpu.memory_space<vmem>> -> memref<1x128xf32, #tpu.memory_space<vmem>>
    tpu.wait_dma2 semaphore(%arg11 : memref<!tpu.dma_semaphore, #tpu.memory_space<semaphore_mem>>) src(%732 : memref<1x128xf32, #tpu.memory_space<any>>) dst(%734 : memref<1x128xf32, #tpu.memory_space<vmem>>)
    %c5_i32_852 = arith.constant 5 : i32
    %c0_i32_853 = arith.constant 0 : i32
    %c0_i32_854 = arith.constant 0 : i32
    %735 = tpu.memref_slice %arg6[%c0_i32_853, %c0_i32_854] : memref<256x128xf32, #tpu.memory_space<any>> -> memref<1x128xf32, #tpu.memory_space<any>>
    %c1_i32_855 = arith.constant 1 : i32
    %c0_i32_856 = arith.constant 0 : i32
    %736 = tpu.memref_slice %arg10[%c5_i32_852, %c1_i32_855, %c0_i32_856] : memref<8x8x128xf32, #tpu.memory_space<vmem>> -> memref<1x1x128xf32, #tpu.memory_space<vmem>>
    %737 = tpu.memref_squeeze %736 : memref<1x1x128xf32, #tpu.memory_space<vmem>> -> memref<1x128xf32, #tpu.memory_space<vmem>>
    tpu.wait_dma2 semaphore(%arg11 : memref<!tpu.dma_semaphore, #tpu.memory_space<semaphore_mem>>) src(%735 : memref<1x128xf32, #tpu.memory_space<any>>) dst(%737 : memref<1x128xf32, #tpu.memory_space<vmem>>)
    %c5_i32_857 = arith.constant 5 : i32
    %c0_i32_858 = arith.constant 0 : i32
    %c0_i32_859 = arith.constant 0 : i32
    %738 = tpu.memref_slice %arg6[%c0_i32_858, %c0_i32_859] : memref<256x128xf32, #tpu.memory_space<any>> -> memref<1x128xf32, #tpu.memory_space<any>>
    %c2_i32_860 = arith.constant 2 : i32
    %c0_i32_861 = arith.constant 0 : i32
    %739 = tpu.memref_slice %arg10[%c5_i32_857, %c2_i32_860, %c0_i32_861] : memref<8x8x128xf32, #tpu.memory_space<vmem>> -> memref<1x1x128xf32, #tpu.memory_space<vmem>>
    %740 = tpu.memref_squeeze %739 : memref<1x1x128xf32, #tpu.memory_space<vmem>> -> memref<1x128xf32, #tpu.memory_space<vmem>>
    tpu.wait_dma2 semaphore(%arg11 : memref<!tpu.dma_semaphore, #tpu.memory_space<semaphore_mem>>) src(%738 : memref<1x128xf32, #tpu.memory_space<any>>) dst(%740 : memref<1x128xf32, #tpu.memory_space<vmem>>)
    %c5_i32_862 = arith.constant 5 : i32
    %c0_i32_863 = arith.constant 0 : i32
    %c0_i32_864 = arith.constant 0 : i32
    %741 = tpu.memref_slice %arg6[%c0_i32_863, %c0_i32_864] : memref<256x128xf32, #tpu.memory_space<any>> -> memref<1x128xf32, #tpu.memory_space<any>>
    %c3_i32_865 = arith.constant 3 : i32
    %c0_i32_866 = arith.constant 0 : i32
    %742 = tpu.memref_slice %arg10[%c5_i32_862, %c3_i32_865, %c0_i32_866] : memref<8x8x128xf32, #tpu.memory_space<vmem>> -> memref<1x1x128xf32, #tpu.memory_space<vmem>>
    %743 = tpu.memref_squeeze %742 : memref<1x1x128xf32, #tpu.memory_space<vmem>> -> memref<1x128xf32, #tpu.memory_space<vmem>>
    tpu.wait_dma2 semaphore(%arg11 : memref<!tpu.dma_semaphore, #tpu.memory_space<semaphore_mem>>) src(%741 : memref<1x128xf32, #tpu.memory_space<any>>) dst(%743 : memref<1x128xf32, #tpu.memory_space<vmem>>)
    %c5_i32_867 = arith.constant 5 : i32
    %c0_i32_868 = arith.constant 0 : i32
    %c0_i32_869 = arith.constant 0 : i32
    %744 = tpu.memref_slice %arg6[%c0_i32_868, %c0_i32_869] : memref<256x128xf32, #tpu.memory_space<any>> -> memref<1x128xf32, #tpu.memory_space<any>>
    %c4_i32_870 = arith.constant 4 : i32
    %c0_i32_871 = arith.constant 0 : i32
    %745 = tpu.memref_slice %arg10[%c5_i32_867, %c4_i32_870, %c0_i32_871] : memref<8x8x128xf32, #tpu.memory_space<vmem>> -> memref<1x1x128xf32, #tpu.memory_space<vmem>>
    %746 = tpu.memref_squeeze %745 : memref<1x1x128xf32, #tpu.memory_space<vmem>> -> memref<1x128xf32, #tpu.memory_space<vmem>>
    tpu.wait_dma2 semaphore(%arg11 : memref<!tpu.dma_semaphore, #tpu.memory_space<semaphore_mem>>) src(%744 : memref<1x128xf32, #tpu.memory_space<any>>) dst(%746 : memref<1x128xf32, #tpu.memory_space<vmem>>)
    %c5_i32_872 = arith.constant 5 : i32
    %c0_i32_873 = arith.constant 0 : i32
    %c0_i32_874 = arith.constant 0 : i32
    %747 = tpu.memref_slice %arg6[%c0_i32_873, %c0_i32_874] : memref<256x128xf32, #tpu.memory_space<any>> -> memref<1x128xf32, #tpu.memory_space<any>>
    %c5_i32_875 = arith.constant 5 : i32
    %c0_i32_876 = arith.constant 0 : i32
    %748 = tpu.memref_slice %arg10[%c5_i32_872, %c5_i32_875, %c0_i32_876] : memref<8x8x128xf32, #tpu.memory_space<vmem>> -> memref<1x1x128xf32, #tpu.memory_space<vmem>>
    %749 = tpu.memref_squeeze %748 : memref<1x1x128xf32, #tpu.memory_space<vmem>> -> memref<1x128xf32, #tpu.memory_space<vmem>>
    tpu.wait_dma2 semaphore(%arg11 : memref<!tpu.dma_semaphore, #tpu.memory_space<semaphore_mem>>) src(%747 : memref<1x128xf32, #tpu.memory_space<any>>) dst(%749 : memref<1x128xf32, #tpu.memory_space<vmem>>)
    %c5_i32_877 = arith.constant 5 : i32
    %c0_i32_878 = arith.constant 0 : i32
    %c0_i32_879 = arith.constant 0 : i32
    %750 = tpu.memref_slice %arg6[%c0_i32_878, %c0_i32_879] : memref<256x128xf32, #tpu.memory_space<any>> -> memref<1x128xf32, #tpu.memory_space<any>>
    %c6_i32_880 = arith.constant 6 : i32
    %c0_i32_881 = arith.constant 0 : i32
    %751 = tpu.memref_slice %arg10[%c5_i32_877, %c6_i32_880, %c0_i32_881] : memref<8x8x128xf32, #tpu.memory_space<vmem>> -> memref<1x1x128xf32, #tpu.memory_space<vmem>>
    %752 = tpu.memref_squeeze %751 : memref<1x1x128xf32, #tpu.memory_space<vmem>> -> memref<1x128xf32, #tpu.memory_space<vmem>>
    tpu.wait_dma2 semaphore(%arg11 : memref<!tpu.dma_semaphore, #tpu.memory_space<semaphore_mem>>) src(%750 : memref<1x128xf32, #tpu.memory_space<any>>) dst(%752 : memref<1x128xf32, #tpu.memory_space<vmem>>)
    %c5_i32_882 = arith.constant 5 : i32
    %c0_i32_883 = arith.constant 0 : i32
    %c0_i32_884 = arith.constant 0 : i32
    %753 = tpu.memref_slice %arg6[%c0_i32_883, %c0_i32_884] : memref<256x128xf32, #tpu.memory_space<any>> -> memref<1x128xf32, #tpu.memory_space<any>>
    %c7_i32_885 = arith.constant 7 : i32
    %c0_i32_886 = arith.constant 0 : i32
    %754 = tpu.memref_slice %arg10[%c5_i32_882, %c7_i32_885, %c0_i32_886] : memref<8x8x128xf32, #tpu.memory_space<vmem>> -> memref<1x1x128xf32, #tpu.memory_space<vmem>>
    %755 = tpu.memref_squeeze %754 : memref<1x1x128xf32, #tpu.memory_space<vmem>> -> memref<1x128xf32, #tpu.memory_space<vmem>>
    tpu.wait_dma2 semaphore(%arg11 : memref<!tpu.dma_semaphore, #tpu.memory_space<semaphore_mem>>) src(%753 : memref<1x128xf32, #tpu.memory_space<any>>) dst(%755 : memref<1x128xf32, #tpu.memory_space<vmem>>)
    %c0_i32_887 = arith.constant 0 : i32
    %c0_i32_888 = arith.constant 0 : i32
    %756 = tpu.memref_slice %arg4[%c0_i32_887, %c0_i32_888] : memref<64x128xf32, #tpu.memory_space<any>> -> memref<1x128xf32, #tpu.memory_space<any>>
    %c6_i32_889 = arith.constant 6 : i32
    %c0_i32_890 = arith.constant 0 : i32
    %757 = tpu.memref_slice %arg8[%c6_i32_889, %c0_i32_890] : memref<8x128xf32, #tpu.memory_space<vmem>> -> memref<1x128xf32, #tpu.memory_space<vmem>>
    tpu.wait_dma2 semaphore(%arg11 : memref<!tpu.dma_semaphore, #tpu.memory_space<semaphore_mem>>) src(%756 : memref<1x128xf32, #tpu.memory_space<any>>) dst(%757 : memref<1x128xf32, #tpu.memory_space<vmem>>)
    %c6_i32_891 = arith.constant 6 : i32
    %c0_i32_892 = arith.constant 0 : i32
    %c0_i32_893 = arith.constant 0 : i32
    %758 = tpu.memref_slice %arg5[%c0_i32_892, %c0_i32_893] : memref<256x128xf32, #tpu.memory_space<any>> -> memref<1x128xf32, #tpu.memory_space<any>>
    %c0_i32_894 = arith.constant 0 : i32
    %c0_i32_895 = arith.constant 0 : i32
    %759 = tpu.memref_slice %arg9[%c6_i32_891, %c0_i32_894, %c0_i32_895] : memref<8x4x128xf32, #tpu.memory_space<vmem>> -> memref<1x1x128xf32, #tpu.memory_space<vmem>>
    %760 = tpu.memref_squeeze %759 : memref<1x1x128xf32, #tpu.memory_space<vmem>> -> memref<1x128xf32, #tpu.memory_space<vmem>>
    tpu.wait_dma2 semaphore(%arg11 : memref<!tpu.dma_semaphore, #tpu.memory_space<semaphore_mem>>) src(%758 : memref<1x128xf32, #tpu.memory_space<any>>) dst(%760 : memref<1x128xf32, #tpu.memory_space<vmem>>)
    %c6_i32_896 = arith.constant 6 : i32
    %c0_i32_897 = arith.constant 0 : i32
    %c0_i32_898 = arith.constant 0 : i32
    %761 = tpu.memref_slice %arg5[%c0_i32_897, %c0_i32_898] : memref<256x128xf32, #tpu.memory_space<any>> -> memref<1x128xf32, #tpu.memory_space<any>>
    %c1_i32_899 = arith.constant 1 : i32
    %c0_i32_900 = arith.constant 0 : i32
    %762 = tpu.memref_slice %arg9[%c6_i32_896, %c1_i32_899, %c0_i32_900] : memref<8x4x128xf32, #tpu.memory_space<vmem>> -> memref<1x1x128xf32, #tpu.memory_space<vmem>>
    %763 = tpu.memref_squeeze %762 : memref<1x1x128xf32, #tpu.memory_space<vmem>> -> memref<1x128xf32, #tpu.memory_space<vmem>>
    tpu.wait_dma2 semaphore(%arg11 : memref<!tpu.dma_semaphore, #tpu.memory_space<semaphore_mem>>) src(%761 : memref<1x128xf32, #tpu.memory_space<any>>) dst(%763 : memref<1x128xf32, #tpu.memory_space<vmem>>)
    %c6_i32_901 = arith.constant 6 : i32
    %c0_i32_902 = arith.constant 0 : i32
    %c0_i32_903 = arith.constant 0 : i32
    %764 = tpu.memref_slice %arg5[%c0_i32_902, %c0_i32_903] : memref<256x128xf32, #tpu.memory_space<any>> -> memref<1x128xf32, #tpu.memory_space<any>>
    %c2_i32_904 = arith.constant 2 : i32
    %c0_i32_905 = arith.constant 0 : i32
    %765 = tpu.memref_slice %arg9[%c6_i32_901, %c2_i32_904, %c0_i32_905] : memref<8x4x128xf32, #tpu.memory_space<vmem>> -> memref<1x1x128xf32, #tpu.memory_space<vmem>>
    %766 = tpu.memref_squeeze %765 : memref<1x1x128xf32, #tpu.memory_space<vmem>> -> memref<1x128xf32, #tpu.memory_space<vmem>>
    tpu.wait_dma2 semaphore(%arg11 : memref<!tpu.dma_semaphore, #tpu.memory_space<semaphore_mem>>) src(%764 : memref<1x128xf32, #tpu.memory_space<any>>) dst(%766 : memref<1x128xf32, #tpu.memory_space<vmem>>)
    %c6_i32_906 = arith.constant 6 : i32
    %c0_i32_907 = arith.constant 0 : i32
    %c0_i32_908 = arith.constant 0 : i32
    %767 = tpu.memref_slice %arg5[%c0_i32_907, %c0_i32_908] : memref<256x128xf32, #tpu.memory_space<any>> -> memref<1x128xf32, #tpu.memory_space<any>>
    %c3_i32_909 = arith.constant 3 : i32
    %c0_i32_910 = arith.constant 0 : i32
    %768 = tpu.memref_slice %arg9[%c6_i32_906, %c3_i32_909, %c0_i32_910] : memref<8x4x128xf32, #tpu.memory_space<vmem>> -> memref<1x1x128xf32, #tpu.memory_space<vmem>>
    %769 = tpu.memref_squeeze %768 : memref<1x1x128xf32, #tpu.memory_space<vmem>> -> memref<1x128xf32, #tpu.memory_space<vmem>>
    tpu.wait_dma2 semaphore(%arg11 : memref<!tpu.dma_semaphore, #tpu.memory_space<semaphore_mem>>) src(%767 : memref<1x128xf32, #tpu.memory_space<any>>) dst(%769 : memref<1x128xf32, #tpu.memory_space<vmem>>)
    %c6_i32_911 = arith.constant 6 : i32
    %c0_i32_912 = arith.constant 0 : i32
    %c0_i32_913 = arith.constant 0 : i32
    %770 = tpu.memref_slice %arg6[%c0_i32_912, %c0_i32_913] : memref<256x128xf32, #tpu.memory_space<any>> -> memref<1x128xf32, #tpu.memory_space<any>>
    %c0_i32_914 = arith.constant 0 : i32
    %c0_i32_915 = arith.constant 0 : i32
    %771 = tpu.memref_slice %arg10[%c6_i32_911, %c0_i32_914, %c0_i32_915] : memref<8x8x128xf32, #tpu.memory_space<vmem>> -> memref<1x1x128xf32, #tpu.memory_space<vmem>>
    %772 = tpu.memref_squeeze %771 : memref<1x1x128xf32, #tpu.memory_space<vmem>> -> memref<1x128xf32, #tpu.memory_space<vmem>>
    tpu.wait_dma2 semaphore(%arg11 : memref<!tpu.dma_semaphore, #tpu.memory_space<semaphore_mem>>) src(%770 : memref<1x128xf32, #tpu.memory_space<any>>) dst(%772 : memref<1x128xf32, #tpu.memory_space<vmem>>)
    %c6_i32_916 = arith.constant 6 : i32
    %c0_i32_917 = arith.constant 0 : i32
    %c0_i32_918 = arith.constant 0 : i32
    %773 = tpu.memref_slice %arg6[%c0_i32_917, %c0_i32_918] : memref<256x128xf32, #tpu.memory_space<any>> -> memref<1x128xf32, #tpu.memory_space<any>>
    %c1_i32_919 = arith.constant 1 : i32
    %c0_i32_920 = arith.constant 0 : i32
    %774 = tpu.memref_slice %arg10[%c6_i32_916, %c1_i32_919, %c0_i32_920] : memref<8x8x128xf32, #tpu.memory_space<vmem>> -> memref<1x1x128xf32, #tpu.memory_space<vmem>>
    %775 = tpu.memref_squeeze %774 : memref<1x1x128xf32, #tpu.memory_space<vmem>> -> memref<1x128xf32, #tpu.memory_space<vmem>>
    tpu.wait_dma2 semaphore(%arg11 : memref<!tpu.dma_semaphore, #tpu.memory_space<semaphore_mem>>) src(%773 : memref<1x128xf32, #tpu.memory_space<any>>) dst(%775 : memref<1x128xf32, #tpu.memory_space<vmem>>)
    %c6_i32_921 = arith.constant 6 : i32
    %c0_i32_922 = arith.constant 0 : i32
    %c0_i32_923 = arith.constant 0 : i32
    %776 = tpu.memref_slice %arg6[%c0_i32_922, %c0_i32_923] : memref<256x128xf32, #tpu.memory_space<any>> -> memref<1x128xf32, #tpu.memory_space<any>>
    %c2_i32_924 = arith.constant 2 : i32
    %c0_i32_925 = arith.constant 0 : i32
    %777 = tpu.memref_slice %arg10[%c6_i32_921, %c2_i32_924, %c0_i32_925] : memref<8x8x128xf32, #tpu.memory_space<vmem>> -> memref<1x1x128xf32, #tpu.memory_space<vmem>>
    %778 = tpu.memref_squeeze %777 : memref<1x1x128xf32, #tpu.memory_space<vmem>> -> memref<1x128xf32, #tpu.memory_space<vmem>>
    tpu.wait_dma2 semaphore(%arg11 : memref<!tpu.dma_semaphore, #tpu.memory_space<semaphore_mem>>) src(%776 : memref<1x128xf32, #tpu.memory_space<any>>) dst(%778 : memref<1x128xf32, #tpu.memory_space<vmem>>)
    %c6_i32_926 = arith.constant 6 : i32
    %c0_i32_927 = arith.constant 0 : i32
    %c0_i32_928 = arith.constant 0 : i32
    %779 = tpu.memref_slice %arg6[%c0_i32_927, %c0_i32_928] : memref<256x128xf32, #tpu.memory_space<any>> -> memref<1x128xf32, #tpu.memory_space<any>>
    %c3_i32_929 = arith.constant 3 : i32
    %c0_i32_930 = arith.constant 0 : i32
    %780 = tpu.memref_slice %arg10[%c6_i32_926, %c3_i32_929, %c0_i32_930] : memref<8x8x128xf32, #tpu.memory_space<vmem>> -> memref<1x1x128xf32, #tpu.memory_space<vmem>>
    %781 = tpu.memref_squeeze %780 : memref<1x1x128xf32, #tpu.memory_space<vmem>> -> memref<1x128xf32, #tpu.memory_space<vmem>>
    tpu.wait_dma2 semaphore(%arg11 : memref<!tpu.dma_semaphore, #tpu.memory_space<semaphore_mem>>) src(%779 : memref<1x128xf32, #tpu.memory_space<any>>) dst(%781 : memref<1x128xf32, #tpu.memory_space<vmem>>)
    %c6_i32_931 = arith.constant 6 : i32
    %c0_i32_932 = arith.constant 0 : i32
    %c0_i32_933 = arith.constant 0 : i32
    %782 = tpu.memref_slice %arg6[%c0_i32_932, %c0_i32_933] : memref<256x128xf32, #tpu.memory_space<any>> -> memref<1x128xf32, #tpu.memory_space<any>>
    %c4_i32_934 = arith.constant 4 : i32
    %c0_i32_935 = arith.constant 0 : i32
    %783 = tpu.memref_slice %arg10[%c6_i32_931, %c4_i32_934, %c0_i32_935] : memref<8x8x128xf32, #tpu.memory_space<vmem>> -> memref<1x1x128xf32, #tpu.memory_space<vmem>>
    %784 = tpu.memref_squeeze %783 : memref<1x1x128xf32, #tpu.memory_space<vmem>> -> memref<1x128xf32, #tpu.memory_space<vmem>>
    tpu.wait_dma2 semaphore(%arg11 : memref<!tpu.dma_semaphore, #tpu.memory_space<semaphore_mem>>) src(%782 : memref<1x128xf32, #tpu.memory_space<any>>) dst(%784 : memref<1x128xf32, #tpu.memory_space<vmem>>)
    %c6_i32_936 = arith.constant 6 : i32
    %c0_i32_937 = arith.constant 0 : i32
    %c0_i32_938 = arith.constant 0 : i32
    %785 = tpu.memref_slice %arg6[%c0_i32_937, %c0_i32_938] : memref<256x128xf32, #tpu.memory_space<any>> -> memref<1x128xf32, #tpu.memory_space<any>>
    %c5_i32_939 = arith.constant 5 : i32
    %c0_i32_940 = arith.constant 0 : i32
    %786 = tpu.memref_slice %arg10[%c6_i32_936, %c5_i32_939, %c0_i32_940] : memref<8x8x128xf32, #tpu.memory_space<vmem>> -> memref<1x1x128xf32, #tpu.memory_space<vmem>>
    %787 = tpu.memref_squeeze %786 : memref<1x1x128xf32, #tpu.memory_space<vmem>> -> memref<1x128xf32, #tpu.memory_space<vmem>>
    tpu.wait_dma2 semaphore(%arg11 : memref<!tpu.dma_semaphore, #tpu.memory_space<semaphore_mem>>) src(%785 : memref<1x128xf32, #tpu.memory_space<any>>) dst(%787 : memref<1x128xf32, #tpu.memory_space<vmem>>)
    %c6_i32_941 = arith.constant 6 : i32
    %c0_i32_942 = arith.constant 0 : i32
    %c0_i32_943 = arith.constant 0 : i32
    %788 = tpu.memref_slice %arg6[%c0_i32_942, %c0_i32_943] : memref<256x128xf32, #tpu.memory_space<any>> -> memref<1x128xf32, #tpu.memory_space<any>>
    %c6_i32_944 = arith.constant 6 : i32
    %c0_i32_945 = arith.constant 0 : i32
    %789 = tpu.memref_slice %arg10[%c6_i32_941, %c6_i32_944, %c0_i32_945] : memref<8x8x128xf32, #tpu.memory_space<vmem>> -> memref<1x1x128xf32, #tpu.memory_space<vmem>>
    %790 = tpu.memref_squeeze %789 : memref<1x1x128xf32, #tpu.memory_space<vmem>> -> memref<1x128xf32, #tpu.memory_space<vmem>>
    tpu.wait_dma2 semaphore(%arg11 : memref<!tpu.dma_semaphore, #tpu.memory_space<semaphore_mem>>) src(%788 : memref<1x128xf32, #tpu.memory_space<any>>) dst(%790 : memref<1x128xf32, #tpu.memory_space<vmem>>)
    %c6_i32_946 = arith.constant 6 : i32
    %c0_i32_947 = arith.constant 0 : i32
    %c0_i32_948 = arith.constant 0 : i32
    %791 = tpu.memref_slice %arg6[%c0_i32_947, %c0_i32_948] : memref<256x128xf32, #tpu.memory_space<any>> -> memref<1x128xf32, #tpu.memory_space<any>>
    %c7_i32_949 = arith.constant 7 : i32
    %c0_i32_950 = arith.constant 0 : i32
    %792 = tpu.memref_slice %arg10[%c6_i32_946, %c7_i32_949, %c0_i32_950] : memref<8x8x128xf32, #tpu.memory_space<vmem>> -> memref<1x1x128xf32, #tpu.memory_space<vmem>>
    %793 = tpu.memref_squeeze %792 : memref<1x1x128xf32, #tpu.memory_space<vmem>> -> memref<1x128xf32, #tpu.memory_space<vmem>>
    tpu.wait_dma2 semaphore(%arg11 : memref<!tpu.dma_semaphore, #tpu.memory_space<semaphore_mem>>) src(%791 : memref<1x128xf32, #tpu.memory_space<any>>) dst(%793 : memref<1x128xf32, #tpu.memory_space<vmem>>)
    %c0_i32_951 = arith.constant 0 : i32
    %c0_i32_952 = arith.constant 0 : i32
    %794 = tpu.memref_slice %arg4[%c0_i32_951, %c0_i32_952] : memref<64x128xf32, #tpu.memory_space<any>> -> memref<1x128xf32, #tpu.memory_space<any>>
    %c7_i32_953 = arith.constant 7 : i32
    %c0_i32_954 = arith.constant 0 : i32
    %795 = tpu.memref_slice %arg8[%c7_i32_953, %c0_i32_954] : memref<8x128xf32, #tpu.memory_space<vmem>> -> memref<1x128xf32, #tpu.memory_space<vmem>>
    tpu.wait_dma2 semaphore(%arg11 : memref<!tpu.dma_semaphore, #tpu.memory_space<semaphore_mem>>) src(%794 : memref<1x128xf32, #tpu.memory_space<any>>) dst(%795 : memref<1x128xf32, #tpu.memory_space<vmem>>)
    %c7_i32_955 = arith.constant 7 : i32
    %c0_i32_956 = arith.constant 0 : i32
    %c0_i32_957 = arith.constant 0 : i32
    %796 = tpu.memref_slice %arg5[%c0_i32_956, %c0_i32_957] : memref<256x128xf32, #tpu.memory_space<any>> -> memref<1x128xf32, #tpu.memory_space<any>>
    %c0_i32_958 = arith.constant 0 : i32
    %c0_i32_959 = arith.constant 0 : i32
    %797 = tpu.memref_slice %arg9[%c7_i32_955, %c0_i32_958, %c0_i32_959] : memref<8x4x128xf32, #tpu.memory_space<vmem>> -> memref<1x1x128xf32, #tpu.memory_space<vmem>>
    %798 = tpu.memref_squeeze %797 : memref<1x1x128xf32, #tpu.memory_space<vmem>> -> memref<1x128xf32, #tpu.memory_space<vmem>>
    tpu.wait_dma2 semaphore(%arg11 : memref<!tpu.dma_semaphore, #tpu.memory_space<semaphore_mem>>) src(%796 : memref<1x128xf32, #tpu.memory_space<any>>) dst(%798 : memref<1x128xf32, #tpu.memory_space<vmem>>)
    %c7_i32_960 = arith.constant 7 : i32
    %c0_i32_961 = arith.constant 0 : i32
    %c0_i32_962 = arith.constant 0 : i32
    %799 = tpu.memref_slice %arg5[%c0_i32_961, %c0_i32_962] : memref<256x128xf32, #tpu.memory_space<any>> -> memref<1x128xf32, #tpu.memory_space<any>>
    %c1_i32_963 = arith.constant 1 : i32
    %c0_i32_964 = arith.constant 0 : i32
    %800 = tpu.memref_slice %arg9[%c7_i32_960, %c1_i32_963, %c0_i32_964] : memref<8x4x128xf32, #tpu.memory_space<vmem>> -> memref<1x1x128xf32, #tpu.memory_space<vmem>>
    %801 = tpu.memref_squeeze %800 : memref<1x1x128xf32, #tpu.memory_space<vmem>> -> memref<1x128xf32, #tpu.memory_space<vmem>>
    tpu.wait_dma2 semaphore(%arg11 : memref<!tpu.dma_semaphore, #tpu.memory_space<semaphore_mem>>) src(%799 : memref<1x128xf32, #tpu.memory_space<any>>) dst(%801 : memref<1x128xf32, #tpu.memory_space<vmem>>)
    %c7_i32_965 = arith.constant 7 : i32
    %c0_i32_966 = arith.constant 0 : i32
    %c0_i32_967 = arith.constant 0 : i32
    %802 = tpu.memref_slice %arg5[%c0_i32_966, %c0_i32_967] : memref<256x128xf32, #tpu.memory_space<any>> -> memref<1x128xf32, #tpu.memory_space<any>>
    %c2_i32_968 = arith.constant 2 : i32
    %c0_i32_969 = arith.constant 0 : i32
    %803 = tpu.memref_slice %arg9[%c7_i32_965, %c2_i32_968, %c0_i32_969] : memref<8x4x128xf32, #tpu.memory_space<vmem>> -> memref<1x1x128xf32, #tpu.memory_space<vmem>>
    %804 = tpu.memref_squeeze %803 : memref<1x1x128xf32, #tpu.memory_space<vmem>> -> memref<1x128xf32, #tpu.memory_space<vmem>>
    tpu.wait_dma2 semaphore(%arg11 : memref<!tpu.dma_semaphore, #tpu.memory_space<semaphore_mem>>) src(%802 : memref<1x128xf32, #tpu.memory_space<any>>) dst(%804 : memref<1x128xf32, #tpu.memory_space<vmem>>)
    %c7_i32_970 = arith.constant 7 : i32
    %c0_i32_971 = arith.constant 0 : i32
    %c0_i32_972 = arith.constant 0 : i32
    %805 = tpu.memref_slice %arg5[%c0_i32_971, %c0_i32_972] : memref<256x128xf32, #tpu.memory_space<any>> -> memref<1x128xf32, #tpu.memory_space<any>>
    %c3_i32_973 = arith.constant 3 : i32
    %c0_i32_974 = arith.constant 0 : i32
    %806 = tpu.memref_slice %arg9[%c7_i32_970, %c3_i32_973, %c0_i32_974] : memref<8x4x128xf32, #tpu.memory_space<vmem>> -> memref<1x1x128xf32, #tpu.memory_space<vmem>>
    %807 = tpu.memref_squeeze %806 : memref<1x1x128xf32, #tpu.memory_space<vmem>> -> memref<1x128xf32, #tpu.memory_space<vmem>>
    tpu.wait_dma2 semaphore(%arg11 : memref<!tpu.dma_semaphore, #tpu.memory_space<semaphore_mem>>) src(%805 : memref<1x128xf32, #tpu.memory_space<any>>) dst(%807 : memref<1x128xf32, #tpu.memory_space<vmem>>)
    %c7_i32_975 = arith.constant 7 : i32
    %c0_i32_976 = arith.constant 0 : i32
    %c0_i32_977 = arith.constant 0 : i32
    %808 = tpu.memref_slice %arg6[%c0_i32_976, %c0_i32_977] : memref<256x128xf32, #tpu.memory_space<any>> -> memref<1x128xf32, #tpu.memory_space<any>>
    %c0_i32_978 = arith.constant 0 : i32
    %c0_i32_979 = arith.constant 0 : i32
    %809 = tpu.memref_slice %arg10[%c7_i32_975, %c0_i32_978, %c0_i32_979] : memref<8x8x128xf32, #tpu.memory_space<vmem>> -> memref<1x1x128xf32, #tpu.memory_space<vmem>>
    %810 = tpu.memref_squeeze %809 : memref<1x1x128xf32, #tpu.memory_space<vmem>> -> memref<1x128xf32, #tpu.memory_space<vmem>>
    tpu.wait_dma2 semaphore(%arg11 : memref<!tpu.dma_semaphore, #tpu.memory_space<semaphore_mem>>) src(%808 : memref<1x128xf32, #tpu.memory_space<any>>) dst(%810 : memref<1x128xf32, #tpu.memory_space<vmem>>)
    %c7_i32_980 = arith.constant 7 : i32
    %c0_i32_981 = arith.constant 0 : i32
    %c0_i32_982 = arith.constant 0 : i32
    %811 = tpu.memref_slice %arg6[%c0_i32_981, %c0_i32_982] : memref<256x128xf32, #tpu.memory_space<any>> -> memref<1x128xf32, #tpu.memory_space<any>>
    %c1_i32_983 = arith.constant 1 : i32
    %c0_i32_984 = arith.constant 0 : i32
    %812 = tpu.memref_slice %arg10[%c7_i32_980, %c1_i32_983, %c0_i32_984] : memref<8x8x128xf32, #tpu.memory_space<vmem>> -> memref<1x1x128xf32, #tpu.memory_space<vmem>>
    %813 = tpu.memref_squeeze %812 : memref<1x1x128xf32, #tpu.memory_space<vmem>> -> memref<1x128xf32, #tpu.memory_space<vmem>>
    tpu.wait_dma2 semaphore(%arg11 : memref<!tpu.dma_semaphore, #tpu.memory_space<semaphore_mem>>) src(%811 : memref<1x128xf32, #tpu.memory_space<any>>) dst(%813 : memref<1x128xf32, #tpu.memory_space<vmem>>)
    %c7_i32_985 = arith.constant 7 : i32
    %c0_i32_986 = arith.constant 0 : i32
    %c0_i32_987 = arith.constant 0 : i32
    %814 = tpu.memref_slice %arg6[%c0_i32_986, %c0_i32_987] : memref<256x128xf32, #tpu.memory_space<any>> -> memref<1x128xf32, #tpu.memory_space<any>>
    %c2_i32_988 = arith.constant 2 : i32
    %c0_i32_989 = arith.constant 0 : i32
    %815 = tpu.memref_slice %arg10[%c7_i32_985, %c2_i32_988, %c0_i32_989] : memref<8x8x128xf32, #tpu.memory_space<vmem>> -> memref<1x1x128xf32, #tpu.memory_space<vmem>>
    %816 = tpu.memref_squeeze %815 : memref<1x1x128xf32, #tpu.memory_space<vmem>> -> memref<1x128xf32, #tpu.memory_space<vmem>>
    tpu.wait_dma2 semaphore(%arg11 : memref<!tpu.dma_semaphore, #tpu.memory_space<semaphore_mem>>) src(%814 : memref<1x128xf32, #tpu.memory_space<any>>) dst(%816 : memref<1x128xf32, #tpu.memory_space<vmem>>)
    %c7_i32_990 = arith.constant 7 : i32
    %c0_i32_991 = arith.constant 0 : i32
    %c0_i32_992 = arith.constant 0 : i32
    %817 = tpu.memref_slice %arg6[%c0_i32_991, %c0_i32_992] : memref<256x128xf32, #tpu.memory_space<any>> -> memref<1x128xf32, #tpu.memory_space<any>>
    %c3_i32_993 = arith.constant 3 : i32
    %c0_i32_994 = arith.constant 0 : i32
    %818 = tpu.memref_slice %arg10[%c7_i32_990, %c3_i32_993, %c0_i32_994] : memref<8x8x128xf32, #tpu.memory_space<vmem>> -> memref<1x1x128xf32, #tpu.memory_space<vmem>>
    %819 = tpu.memref_squeeze %818 : memref<1x1x128xf32, #tpu.memory_space<vmem>> -> memref<1x128xf32, #tpu.memory_space<vmem>>
    tpu.wait_dma2 semaphore(%arg11 : memref<!tpu.dma_semaphore, #tpu.memory_space<semaphore_mem>>) src(%817 : memref<1x128xf32, #tpu.memory_space<any>>) dst(%819 : memref<1x128xf32, #tpu.memory_space<vmem>>)
    %c7_i32_995 = arith.constant 7 : i32
    %c0_i32_996 = arith.constant 0 : i32
    %c0_i32_997 = arith.constant 0 : i32
    %820 = tpu.memref_slice %arg6[%c0_i32_996, %c0_i32_997] : memref<256x128xf32, #tpu.memory_space<any>> -> memref<1x128xf32, #tpu.memory_space<any>>
    %c4_i32_998 = arith.constant 4 : i32
    %c0_i32_999 = arith.constant 0 : i32
    %821 = tpu.memref_slice %arg10[%c7_i32_995, %c4_i32_998, %c0_i32_999] : memref<8x8x128xf32, #tpu.memory_space<vmem>> -> memref<1x1x128xf32, #tpu.memory_space<vmem>>
    %822 = tpu.memref_squeeze %821 : memref<1x1x128xf32, #tpu.memory_space<vmem>> -> memref<1x128xf32, #tpu.memory_space<vmem>>
    tpu.wait_dma2 semaphore(%arg11 : memref<!tpu.dma_semaphore, #tpu.memory_space<semaphore_mem>>) src(%820 : memref<1x128xf32, #tpu.memory_space<any>>) dst(%822 : memref<1x128xf32, #tpu.memory_space<vmem>>)
    %c7_i32_1000 = arith.constant 7 : i32
    %c0_i32_1001 = arith.constant 0 : i32
    %c0_i32_1002 = arith.constant 0 : i32
    %823 = tpu.memref_slice %arg6[%c0_i32_1001, %c0_i32_1002] : memref<256x128xf32, #tpu.memory_space<any>> -> memref<1x128xf32, #tpu.memory_space<any>>
    %c5_i32_1003 = arith.constant 5 : i32
    %c0_i32_1004 = arith.constant 0 : i32
    %824 = tpu.memref_slice %arg10[%c7_i32_1000, %c5_i32_1003, %c0_i32_1004] : memref<8x8x128xf32, #tpu.memory_space<vmem>> -> memref<1x1x128xf32, #tpu.memory_space<vmem>>
    %825 = tpu.memref_squeeze %824 : memref<1x1x128xf32, #tpu.memory_space<vmem>> -> memref<1x128xf32, #tpu.memory_space<vmem>>
    tpu.wait_dma2 semaphore(%arg11 : memref<!tpu.dma_semaphore, #tpu.memory_space<semaphore_mem>>) src(%823 : memref<1x128xf32, #tpu.memory_space<any>>) dst(%825 : memref<1x128xf32, #tpu.memory_space<vmem>>)
    %c7_i32_1005 = arith.constant 7 : i32
    %c0_i32_1006 = arith.constant 0 : i32
    %c0_i32_1007 = arith.constant 0 : i32
    %826 = tpu.memref_slice %arg6[%c0_i32_1006, %c0_i32_1007] : memref<256x128xf32, #tpu.memory_space<any>> -> memref<1x128xf32, #tpu.memory_space<any>>
    %c6_i32_1008 = arith.constant 6 : i32
    %c0_i32_1009 = arith.constant 0 : i32
    %827 = tpu.memref_slice %arg10[%c7_i32_1005, %c6_i32_1008, %c0_i32_1009] : memref<8x8x128xf32, #tpu.memory_space<vmem>> -> memref<1x1x128xf32, #tpu.memory_space<vmem>>
    %828 = tpu.memref_squeeze %827 : memref<1x1x128xf32, #tpu.memory_space<vmem>> -> memref<1x128xf32, #tpu.memory_space<vmem>>
    tpu.wait_dma2 semaphore(%arg11 : memref<!tpu.dma_semaphore, #tpu.memory_space<semaphore_mem>>) src(%826 : memref<1x128xf32, #tpu.memory_space<any>>) dst(%828 : memref<1x128xf32, #tpu.memory_space<vmem>>)
    %c7_i32_1010 = arith.constant 7 : i32
    %c0_i32_1011 = arith.constant 0 : i32
    %c0_i32_1012 = arith.constant 0 : i32
    %829 = tpu.memref_slice %arg6[%c0_i32_1011, %c0_i32_1012] : memref<256x128xf32, #tpu.memory_space<any>> -> memref<1x128xf32, #tpu.memory_space<any>>
    %c7_i32_1013 = arith.constant 7 : i32
    %c0_i32_1014 = arith.constant 0 : i32
    %830 = tpu.memref_slice %arg10[%c7_i32_1010, %c7_i32_1013, %c0_i32_1014] : memref<8x8x128xf32, #tpu.memory_space<vmem>> -> memref<1x1x128xf32, #tpu.memory_space<vmem>>
    %831 = tpu.memref_squeeze %830 : memref<1x1x128xf32, #tpu.memory_space<vmem>> -> memref<1x128xf32, #tpu.memory_space<vmem>>
    tpu.wait_dma2 semaphore(%arg11 : memref<!tpu.dma_semaphore, #tpu.memory_space<semaphore_mem>>) src(%829 : memref<1x128xf32, #tpu.memory_space<any>>) dst(%831 : memref<1x128xf32, #tpu.memory_space<vmem>>)
    %c0_1015 = arith.constant 0 : index
    %c0_1016 = arith.constant 0 : index
    %832 = vector.load %arg8[%c0_1015, %c0_1016] : memref<8x128xf32, #tpu.memory_space<vmem>>, vector<8x128xf32>
    %c0_1017 = arith.constant 0 : index
    %c0_1018 = arith.constant 0 : index
    %c0_1019 = arith.constant 0 : index
    %833 = vector.load %arg9[%c0_1017, %c0_1018, %c0_1019] : memref<8x4x128xf32, #tpu.memory_space<vmem>>, vector<8x4x128xf32>
    %cst = arith.constant dense<0.000000e+00> : vector<8x128xf32>
    %834 = vector.multi_reduction <add>, %833, %cst [1] : vector<8x4x128xf32> to vector<8x128xf32>
    %835 = arith.addf %832, %834 : vector<8x128xf32>
    %836 = vector.shape_cast %835 : vector<8x128xf32> to vector<8x1x128xf32>
    %c0_1020 = arith.constant 0 : index
    %c0_1021 = arith.constant 0 : index
    %c0_1022 = arith.constant 0 : index
    %837 = vector.load %arg10[%c0_1020, %c0_1021, %c0_1022] : memref<8x8x128xf32, #tpu.memory_space<vmem>>, vector<8x8x128xf32>
    "tpu.trace_start"() <{level = 10 : i32, message = "bqv,bnv->bqn"}> : () -> ()
    %cst_1023 = arith.constant dense<0.000000e+00> : vector<8x1x8xf32>
    %838 = tpu.matmul %836, %837, %cst_1023 {dimension_numbers = #tpu.dot_dimension_numbers<[2], [2], [1], [1], [0, 0, 0, 1, 1, 1], [0], [0]>} : vector<8x1x128xf32>, vector<8x8x128xf32>, vector<8x1x8xf32> -> vector<8x1x8xf32>
    "tpu.trace_stop"() : () -> ()
    %839 = vector.shape_cast %838 : vector<8x1x8xf32> to vector<8x8xf32>
    %c0_1024 = arith.constant 0 : index
    %c0_1025 = arith.constant 0 : index
    %840 = vector.load %arg7[%c0_1024, %c0_1025] : memref<8x8xf32, #tpu.memory_space<vmem>>, vector<8x8xf32>
    tpu.vector_store %arg7[%c0_1024, %c0_1025], %839 {strides = array<i32>} : memref<8x8xf32, #tpu.memory_space<vmem>>, vector<8x8xf32>,
    return
  }
  func.func @transform_3(%arg0: i32, %arg1: memref<16xi32, #tpu.memory_space<smem>>, %arg2: memref<16x4xi32, #tpu.memory_space<smem>>, %arg3: memref<16x8xi32, #tpu.memory_space<smem>>) -> (i32, i32) {
    %c0_i32 = arith.constant 0 : i32
    %c0_i32_0 = arith.constant 0 : i32
    return %arg0, %c0_i32 : i32, i32
  }
}

</mosaic_0001>

<bundles_post_ra>
// kernel: tpu_custom_call.1
= control target key start
LH: loop header
LB: loop body
LE: loop exit
PB: predicated region body
PF: predicated region fallthrough
CT: control target
= control target key end

     0   :  { %s7822_s0 = inlined_call_operand.vmem [shape: s32[16], index: 0, kind: input, shape index: {}]   ;;  %s7823_s3 = inlined_call_operand.hbm [shape: f32[64,128], index: 3, kind: input, shape index: {}]   ;;  %s7824_s4 = inlined_call_operand.hbm [shape: f32[256,128], index: 4, kind: input, shape index: {}]   ;;  %s7825_s5 = inlined_call_operand.hbm [shape: f32[256,128], index: 5, kind: input, shape index: {}]   ;;  %s7826_s6 = inlined_call_operand.vmem [shape: f32[16,8], index: 6, kind: output, shape index: {}]   ;;  %s7827_s1 = inlined_call_operand.vmem [shape: s32[16,4], index: 1, kind: input, shape index: {}]   ;;  %s7828_s2 = inlined_call_operand.vmem [shape: s32[16,8], index: 2, kind: input, shape index: {}]  }
   0x1   :  { %7854 = sst [smem:[#allocation226_spill]] %s7826_s6  ;;  %s11_s23 = sshll.u32 %s7822_s0, 4  ;;  %s12_s23 = int_to_ptr.vmem [resolvable:$true] %s11_s23 }
   0x2   :  { %s15_s26 = sshll.u32 %s7827_s1, 4  ;;  %s3212_s27 = scalar_lea.vmem %s12_s23, 16  ;;  %s16_s26 = int_to_ptr.vmem [resolvable:$true] %s15_s26 }
   0x3   :  { %p3213_p0 = scmp.ne.s32.totalorder %s12_s23, %s3212_s27  ;;  %p3217_p1 = scmp.lt.s32.totalorder %s12_s23, %s12_s23 }
   0x4   :  { %p3218_p2 = scmp.lt.s32.totalorder %s3212_s27, %s3212_s27 }
   0x6   :  { %p3219_p3 = por %p3218_p2, %p3217_p1 }
   0x8   :  { %p3220_p4 = pnand %p3219_p3, %p3213_p0 }
   0xa   :  { %3223 = shalt.err (!%p3220_p4)  }
   0xb   :  { %s5756_s28 = smov [#allocation7]   ;;  %s3224_s29 = scalar_lea.vmem %s16_s26, 256 }
   0xc   :  { %14 = dma.vmem_to_smem %s12_s23, 16, %s5756_s28, [#allocation6] }
   0xd   :  { %p3225_p5 = scmp.ne.s32.totalorder %s16_s26, %s3224_s29  ;;  %p3229_p6 = scmp.lt.s32.totalorder %s16_s26, %s16_s26 }
   0xe   :  { %p3230_p7 = scmp.lt.s32.totalorder %s3224_s29, %s3224_s29 }
  0x10   :  { %p3231_p8 = por %p3230_p7, %p3229_p6 }
  0x12   :  { %p3232_p9 = pnand %p3231_p8, %p3225_p5 }
  0x14   :  { %3235 = shalt.err (!%p3232_p9)  }
  0x15   :  { %s5757_s0 = smov [#allocation8]   ;;  %s19_s7 = sshll.u32 %s7828_s2, 4  ;;  %s20_s7 = int_to_ptr.vmem [resolvable:$true] %s19_s7 }
  0x16   :  { %18 = dma.vmem_to_smem %s16_s26, 256, %s5757_s0, [#allocation6] }
  0x17   :  { %s3236_s8 = scalar_lea.vmem %s20_s7, 256  ;;  %p3241_p11 = scmp.lt.s32.totalorder %s20_s7, %s20_s7 }
  0x18   :  { %p3237_p10 = scmp.ne.s32.totalorder %s20_s7, %s3236_s8  ;;  %p3242_p12 = scmp.lt.s32.totalorder %s3236_s8, %s3236_s8 }
  0x1a   :  { %p3243_p13 = por %p3242_p12, %p3241_p11 }
  0x1c   :  { %p3244_p0 = pnand %p3243_p13, %p3237_p10 }
  0x1e   :  { %3247 = shalt.err (!%p3244_p0)  }
  0x1f   :  { %s5758_s9 = smov [#allocation9]  }
  0x20   :  { %22 = dma.vmem_to_smem %s20_s7, 256, %s5758_s9, [#allocation6] }
  0x21   :  { %5748 = dma.done.wait [#allocation6], 528 }
  0x22   :  { %5749 = vsyncadd [#allocation6], 4294966768 }
  0x23   :  { %24 = sfence }
  0x24   :  { %s5910_s10 = smov 0  }
  0x25 LB: > { %7855 = sst [smem:[#allocation222_spill]] %s5754_s10  ;;  %p2898_p1 = scmp.ge.s32.totalorder %s5754_s10, 2  ;;  %s5754_s10 = sphi %s5910_s10, %s30_s10  }
  0x27   : > { %55 = sbr.rel (%p2898_p1) target bundleno = 2689 (0xa81), region = 12 }
  0x2e   : > { %p62_p2 = scmp.lt.s32.totalorder %s5754_s10, 1  ;;  %s5918_s2 = sshll.u32 %s5754_s10, 3 }
  0x2f   : > { %s67_s11 = sld [smem:[#allocation7 + %s5918_s2]]  ;;  %s5759_s13 = smov [#allocation2]  }
  0x30   : > { %s63_s12 = scalar_select %p62_p2, %s5754_s10, 1 }
  0x31   : > { %s77_s14 = sshll.u32 %s5759_s13, 4  ;;  %s5923_s15 = sshll.u32 %s5754_s10, 10  ;;  %s5925_s14 = int_to_ptr.vmem [resolvable:$true] %s77_s14 }
  0x32   : > { %s2899_s16 = sshll.u32 %s63_s12, 3  ;;  %s7856_s6 = sld [smem:[#allocation226_spill]] }
  0x33   : > { %s5933_s20 = sld [smem:[#allocation8 + %s5923_s15]]  ;;  %s96_s21 = sadd.s32 1, %s5923_s15 }
  0x34   : > { %s5760_s23 = smov [#allocation3]   ;;  %s5944_s1 = scalar_lea.hbm %s7823_s3, 1024 }
  0x35   : > { %s2901_s22 = sshll.u32 %s67_s11, 4  ;;  %s92_s24 = sshll.u32 %s5760_s23, 4  ;;  %s5939_s24 = int_to_ptr.vmem [resolvable:$true] %s92_s24 }
  0x36   : > { %s69_s27 = scalar_lea.hbm %s7823_s3, %s2901_s22 }
  0x37   : > { %s3248_s28 = scalar_lea.hbm %s69_s27, 16  ;;  %p3251_p4 = scmp.lt.u32.totalorder %s69_s27, %s7823_s3 }
  0x38   : > { %s5930_s19 = scalar_lea.vmem %s7856_s6, %s2899_s16  ;;  %p3249_p3 = scmp.ne.s32.totalorder %s69_s27, %s3248_s28 }
  0x39   : > { %7857 = sst [smem:[#allocation223_spill]] %s5930_s19  ;;  %p3252_p5 = scmp.lt.u32.totalorder %s5944_s1, %s3248_s28 }
  0x3a   : > { %p3254_p7 = scmp.lt.u32.totalorder %s3248_s28, %s69_s27 }
  0x3b   : > { %p3253_p6 = por %p3252_p5, %p3251_p4 }
  0x3d   : > { %p3255_p8 = por %p3254_p7, %p3253_p6 }
  0x3f   : > { %p3256_p9 = pnand %p3255_p8, %p3249_p3 }
  0x41   : > { %3259 = shalt.err (!%p3256_p9)  }
  0x42   : > { %s3260_s8 = scalar_lea.vmem %s5925_s14, 16  ;;  %s5953_s9 = scalar_lea.vmem %s5925_s14, 128 }
  0x43   : > { %p3261_p10 = scmp.ne.s32.totalorder %s5925_s14, %s3260_s8  ;;  %7858 = sst [smem:[#allocation224_spill]] %s5953_s9 }
  0x44   : > { %p3265_p11 = scmp.lt.s32.totalorder %s5925_s14, %s5925_s14  ;;  %p3266_p12 = scmp.lt.s32.totalorder %s5953_s9, %s3260_s8 }
  0x46   : > { %p3267_p13 = por %p3266_p12, %p3265_p11 }
  0x48   : > { %p3268_p0 = pnand %p3267_p13, %p3261_p10 }
  0x4a   : > { %3271 = shalt.err (!%p3268_p0)  }
  0x4b   : > { %80 = dma.hbm_to_vmem [thread:$0]  %s69_s27, 16, %s5925_s14, [#allocation5] }
  0x4c   : > { %s5961_s11 = sld [smem:[#allocation8 + %s96_s21]]  ;;  %s2903_s12 = sshll.u32 %s5933_s20, 4 }
  0x4d   : > { %s5761_s13 = smov [#allocation3 + $0x1]   ;;  %s84_s22 = scalar_lea.hbm %s7824_s4, %s2903_s12 }
  0x4e   : > { %s108_s16 = sshll.u32 %s5761_s13, 4  ;;  %s3272_s23 = scalar_lea.hbm %s84_s22, 16  ;;  %s5967_s16 = int_to_ptr.vmem [resolvable:$true] %s108_s16 }
  0x4f   : > { %p3273_p1 = scmp.ne.s32.totalorder %s84_s22, %s3272_s23  ;;  %s5972_s28 = scalar_lea.hbm %s7824_s4, 4096 }
  0x50   : > { %p3275_p2 = scmp.lt.u32.totalorder %s84_s22, %s7824_s4  ;;  %p3276_p3 = scmp.lt.u32.totalorder %s5972_s28, %s3272_s23 }
  0x51   : > { %p3278_p5 = scmp.lt.u32.totalorder %s3272_s23, %s84_s22 }
  0x52   : > { %p3277_p4 = por %p3276_p3, %p3275_p2 }
  0x54   : > { %p3279_p6 = por %p3278_p5, %p3277_p4 }
  0x56   : > { %p3280_p7 = pnand %p3279_p6, %p3273_p1 }
  0x58   : > { %3283 = shalt.err (!%p3280_p7)  }
  0x59   : > { %s3284_s20 = scalar_lea.vmem %s5939_s24, 16  ;;  %s5981_s0 = scalar_lea.vmem %s5939_s24, 512 }
  0x5a   : > { %p3285_p8 = scmp.ne.s32.totalorder %s5939_s24, %s3284_s20  ;;  %7859 = sst [smem:[#allocation225_spill]] %s5981_s0 }
  0x5b   : > { %p3289_p9 = scmp.lt.s32.totalorder %s5939_s24, %s5939_s24  ;;  %p3290_p10 = scmp.lt.s32.totalorder %s5981_s0, %s3284_s20 }
  0x5d   : > { %p3291_p11 = por %p3290_p10, %p3289_p9 }
  0x5f   : > { %p3292_p12 = pnand %p3291_p11, %p3285_p8 }
  0x61   : > { %3295 = shalt.err (!%p3292_p12)  }
  0x62   : > { %95 = dma.hbm_to_vmem [thread:$0]  %s84_s22, 16, %s5939_s24, [#allocation5] }
  0x63   : > { %s7829_s30 = sadd.s32 2, %s5923_s15  ;;  %s5762_s8 = smov [#allocation3 + $0x2]  }
  0x64   : > { %s5990_s7 = sld [smem:[#allocation8 + %s7829_s30]]  ;;  %s124_s12 = sshll.u32 %s5762_s8, 4  ;;  %s5993_s12 = int_to_ptr.vmem [resolvable:$true] %s124_s12 }
  0x65   : > { %s2904_s13 = sshll.u32 %s5961_s11, 4  ;;  %s7830_s25 = sadd.s32 3, %s5923_s15 }
  0x66   : > { %s99_s23 = scalar_lea.hbm %s7824_s4, %s2904_s13 }
  0x67   : > { %s3296_s26 = scalar_lea.hbm %s99_s23, 16  ;;  %p3299_p0 = scmp.lt.u32.totalorder %s99_s23, %s7824_s4 }
  0x68   : > { %p3297_p13 = scmp.ne.s32.totalorder %s99_s23, %s3296_s26  ;;  %p3300_p1 = scmp.lt.u32.totalorder %s5972_s28, %s3296_s26 }
  0x69   : > { %p3302_p3 = scmp.lt.u32.totalorder %s3296_s26, %s99_s23 }
  0x6a   : > { %p3301_p2 = por %p3300_p1, %p3299_p0 }
  0x6c   : > { %p3303_p4 = por %p3302_p3, %p3301_p2 }
  0x6e   : > { %p3304_p5 = pnand %p3303_p4, %p3297_p13 }
  0x70   : > { %3307 = shalt.err (!%p3304_p5)  }
  0x71   : > { %s3308_s11 = scalar_lea.vmem %s5967_s16, 16  ;;  %p3313_p7 = scmp.lt.s32.totalorder %s5967_s16, %s5939_s24 }
  0x72   : > { %p3309_p6 = scmp.ne.s32.totalorder %s5967_s16, %s3308_s11  ;;  %p3314_p8 = scmp.lt.s32.totalorder %s5981_s0, %s3308_s11 }
  0x74   : > { %p3315_p9 = por %p3314_p8, %p3313_p7 }
  0x76   : > { %p3316_p10 = pnand %p3315_p9, %p3309_p6 }
  0x78   : > { %3319 = shalt.err (!%p3316_p10)  }
  0x79   : > { %111 = dma.hbm_to_vmem [thread:$0]  %s99_s23, 16, %s5967_s16, [#allocation5] }
  0x7a   : > { %s6011_s22 = sld [smem:[#allocation8 + %s7830_s25]]  ;;  %s5763_s20 = smov [#allocation3 + $0x3]  }
  0x7b   : > { %s140_s8 = sshll.u32 %s5763_s20, 4  ;;  %s6014_s13 = sld [smem:[#allocation9 + %s5923_s15]]  ;;  %s6017_s8 = int_to_ptr.vmem [resolvable:$true] %s140_s8 }
  0x7c   : > { %s2905_s17 = sshll.u32 %s5990_s7, 4 }
  0x7d   : > { %s115_s27 = scalar_lea.hbm %s7824_s4, %s2905_s17 }
  0x7e   : > { %s3320_s29 = scalar_lea.hbm %s115_s27, 16  ;;  %p3323_p12 = scmp.lt.u32.totalorder %s115_s27, %s7824_s4 }
  0x7f   : > { %p3321_p11 = scmp.ne.s32.totalorder %s115_s27, %s3320_s29  ;;  %p3324_p13 = scmp.lt.u32.totalorder %s5972_s28, %s3320_s29 }
  0x80   : > { %p3326_p1 = scmp.lt.u32.totalorder %s3320_s29, %s115_s27 }
  0x81   : > { %p3325_p0 = por %p3324_p13, %p3323_p12 }
  0x83   : > { %p3327_p2 = por %p3326_p1, %p3325_p0 }
  0x85   : > { %p3328_p3 = pnand %p3327_p2, %p3321_p11 }
  0x87   : > { %3331 = shalt.err (!%p3328_p3)  }
  0x88   : > { %s3332_s16 = scalar_lea.vmem %s5993_s12, 16  ;;  %p3337_p5 = scmp.lt.s32.totalorder %s5993_s12, %s5939_s24 }
  0x89   : > { %p3333_p4 = scmp.ne.s32.totalorder %s5993_s12, %s3332_s16  ;;  %p3338_p6 = scmp.lt.s32.totalorder %s5981_s0, %s3332_s16 }
  0x8b   : > { %p3339_p7 = por %p3338_p6, %p3337_p5 }
  0x8d   : > { %p3340_p8 = pnand %p3339_p7, %p3333_p4 }
  0x8f   : > { %3343 = shalt.err (!%p3340_p8)  }
  0x90   : > { %127 = dma.hbm_to_vmem [thread:$0]  %s115_s27, 16, %s5993_s12, [#allocation5] }
  0x91   : > { %s5764_s30 = smov [#allocation4]   ;;  %s6034_s23 = sld [smem:[#allocation9 + %s96_s21]] }
  0x92   : > { %s154_s7 = sshll.u32 %s5764_s30, 4  ;;  %s2906_s20 = sshll.u32 %s6011_s22, 4  ;;  %s6037_s7 = int_to_ptr.vmem [resolvable:$true] %s154_s7 }
  0x93   : > { %s131_s26 = scalar_lea.hbm %s7824_s4, %s2906_s20  ;;  %s2907_s29 = sshll.u32 %s6014_s13, 4 }
  0x94   : > { %s3344_s11 = scalar_lea.hbm %s131_s26, 16  ;;  %p3347_p10 = scmp.lt.u32.totalorder %s131_s26, %s7824_s4 }
  0x95   : > { %p3345_p9 = scmp.ne.s32.totalorder %s131_s26, %s3344_s11  ;;  %p3348_p11 = scmp.lt.u32.totalorder %s5972_s28, %s3344_s11 }
  0x96   : > { %p3350_p13 = scmp.lt.u32.totalorder %s3344_s11, %s131_s26 }
  0x97   : > { %p3349_p12 = por %p3348_p11, %p3347_p10 }
  0x99   : > { %p3351_p0 = por %p3350_p13, %p3349_p12 }
  0x9b   : > { %p3352_p1 = pnand %p3351_p0, %p3345_p9 }
  0x9d   : > { %3355 = shalt.err (!%p3352_p1)  }
  0x9e   : > { %s3356_s21 = scalar_lea.vmem %s6017_s8, 16  ;;  %p3361_p3 = scmp.lt.s32.totalorder %s6017_s8, %s5939_s24 }
  0x9f   : > { %p3357_p2 = scmp.ne.s32.totalorder %s6017_s8, %s3356_s21  ;;  %p3362_p4 = scmp.lt.s32.totalorder %s5981_s0, %s3356_s21 }
  0xa1   : > { %p3363_p5 = por %p3362_p4, %p3361_p3 }
  0xa3   : > { %p3364_p6 = pnand %p3363_p5, %p3357_p2 }
  0xa5   : > { %3367 = shalt.err (!%p3364_p6)  }
  0xa6   : > { %143 = dma.hbm_to_vmem [thread:$0]  %s131_s26, 16, %s6017_s8, [#allocation5] }
  0xa7   : > { %s146_s22 = scalar_lea.hbm %s7825_s5, %s2907_s29  ;;  %s6059_s20 = scalar_lea.hbm %s7825_s5, 4096 }
  0xa8   : > { %s3368_s13 = scalar_lea.hbm %s146_s22, 16  ;;  %p3371_p8 = scmp.lt.u32.totalorder %s146_s22, %s7825_s5 }
  0xa9   : > { %p3369_p7 = scmp.ne.s32.totalorder %s146_s22, %s3368_s13  ;;  %p3372_p9 = scmp.lt.u32.totalorder %s6059_s20, %s3368_s13 }
  0xaa   : > { %p3374_p11 = scmp.lt.u32.totalorder %s3368_s13, %s146_s22 }
  0xab   : > { %p3373_p10 = por %p3372_p9, %p3371_p8 }
  0xad   : > { %p3375_p12 = por %p3374_p11, %p3373_p10 }
  0xaf   : > { %p3376_p13 = pnand %p3375_p12, %p3369_p7 }
  0xb1   : > { %3379 = shalt.err (!%p3376_p13)  }
  0xb2   : > { %s3380_s8 = scalar_lea.vmem %s6037_s7, 16  ;;  %s6068_s26 = scalar_lea.vmem %s6037_s7, 1024 }
  0xb3   : > { %p3381_p0 = scmp.ne.s32.totalorder %s6037_s7, %s3380_s8  ;;  %p3385_p1 = scmp.lt.s32.totalorder %s6037_s7, %s6037_s7 }
  0xb4   : > { %p3386_p2 = scmp.lt.s32.totalorder %s6068_s26, %s3380_s8 }
  0xb6   : > { %p3387_p3 = por %p3386_p2, %p3385_p1 }
  0xb8   : > { %p3388_p4 = pnand %p3387_p3, %p3381_p0 }
  0xba   : > { %3391 = shalt.err (!%p3388_p4)  }
  0xbb   : > { %157 = dma.hbm_to_vmem [thread:$0]  %s146_s22, 16, %s6037_s7, [#allocation5] }
  0xbc   : > { %s2908_s29 = sshll.u32 %s6034_s23, 4  ;;  %s5765_s11 = smov [#allocation4 + $0x1]  }
  0xbd   : > { %s169_s16 = sshll.u32 %s5765_s11, 4  ;;  %s160_s25 = scalar_lea.hbm %s7825_s5, %s2908_s29  ;;  %s170_s16 = int_to_ptr.vmem [resolvable:$true] %s169_s16 }
  0xbe   : > { %s3392_s13 = scalar_lea.hbm %s160_s25, 16  ;;  %p3395_p6 = scmp.lt.u32.totalorder %s160_s25, %s7825_s5 }
  0xbf   : > { %p3393_p5 = scmp.ne.s32.totalorder %s160_s25, %s3392_s13  ;;  %p3396_p7 = scmp.lt.u32.totalorder %s6059_s20, %s3392_s13 }
  0xc0   : > { %p3398_p9 = scmp.lt.u32.totalorder %s3392_s13, %s160_s25 }
  0xc1   : > { %p3397_p8 = por %p3396_p7, %p3395_p6 }
  0xc3   : > { %p3399_p10 = por %p3398_p9, %p3397_p8 }
  0xc5   : > { %p3400_p11 = pnand %p3399_p10, %p3393_p5 }
  0xc7   : > { %3403 = shalt.err (!%p3400_p11)  }
  0xc8   : > { %s3404_s23 = scalar_lea.vmem %s170_s16, 16  ;;  %p3409_p13 = scmp.lt.s32.totalorder %s170_s16, %s6037_s7 }
  0xc9   : > { %p3405_p12 = scmp.ne.s32.totalorder %s170_s16, %s3404_s23  ;;  %p3410_p0 = scmp.lt.s32.totalorder %s6068_s26, %s3404_s23 }
  0xcb   : > { %p3411_p1 = por %p3410_p0, %p3409_p13 }
  0xcd   : > { %p3412_p2 = pnand %p3411_p1, %p3405_p12 }
  0xcf   : > { %3415 = shalt.err (!%p3412_p2)  }
  0xd0   : > { %172 = dma.hbm_to_vmem [thread:$0]  %s160_s25, 16, %s170_s16, [#allocation5] }
  0xd1   : > { %s7860_s22 = sadd.s32 2, %s5923_s15  ;;  %s5766_s18 = smov [#allocation4 + $0x2]  }
  0xd2   : > { %s173_s17 = sld [smem:[#allocation9 + %s7860_s22]]  ;;  %s184_s8 = sshll.u32 %s5766_s18, 4  ;;  %s185_s8 = int_to_ptr.vmem [resolvable:$true] %s184_s8 }
  0xd3   : > { %s7861_s29 = sadd.s32 3, %s5923_s15  ;;  %s5767_s21 = smov [#allocation4 + $0x3]  }
  0xd4   : > { %s6088_s11 = sld [smem:[#allocation9 + %s7861_s29]]  ;;  %s199_s12 = sshll.u32 %s5767_s21, 4  ;;  %s6091_s12 = int_to_ptr.vmem [resolvable:$true] %s199_s12 }
  0xd5   : > { %s203_s13 = sadd.s32 4, %s5923_s15  ;;  %s219_s25 = sadd.s32 5, %s5923_s15 }
  0xd6   : > { %s6093_s16 = sld [smem:[#allocation9 + %s203_s13]]  ;;  %s5768_s30 = smov [#allocation4 + $0x4]  }
  0xd7   : > { %s215_s23 = sshll.u32 %s5768_s30, 4  ;;  %s6109_s23 = int_to_ptr.vmem [resolvable:$true] %s215_s23 }
  0xd8   : > { %s2909_s27 = sshll.u32 %s173_s17, 4 }
  0xd9   : > { %s175_s18 = scalar_lea.hbm %s7825_s5, %s2909_s27 }
  0xda   : > { %s2910_s29 = sshll.u32 %s6088_s11, 4  ;;  %s3416_s10 = scalar_lea.hbm %s175_s18, 16 }
  0xdb   : > { %p3417_p3 = scmp.ne.s32.totalorder %s175_s18, %s3416_s10  ;;  %p3419_p4 = scmp.lt.u32.totalorder %s175_s18, %s7825_s5 }
  0xdc   : > { %p3420_p5 = scmp.lt.u32.totalorder %s6059_s20, %s3416_s10  ;;  %p3422_p7 = scmp.lt.u32.totalorder %s3416_s10, %s175_s18 }
  0xde   : > { %p3421_p6 = por %p3420_p5, %p3419_p4 }
  0xe0   : > { %p3423_p8 = por %p3422_p7, %p3421_p6 }
  0xe2   : > { %p3424_p9 = pnand %p3423_p8, %p3417_p3 }
  0xe4   : > { %3427 = shalt.err (!%p3424_p9)  }
  0xe5   : > { %s3428_s17 = scalar_lea.vmem %s185_s8, 16  ;;  %p3433_p11 = scmp.lt.s32.totalorder %s185_s8, %s6037_s7 }
  0xe6   : > { %p3429_p10 = scmp.ne.s32.totalorder %s185_s8, %s3428_s17  ;;  %p3434_p12 = scmp.lt.s32.totalorder %s6068_s26, %s3428_s17 }
  0xe8   : > { %p3435_p13 = por %p3434_p12, %p3433_p11 }
  0xea   : > { %p3436_p0 = pnand %p3435_p13, %p3429_p10 }
  0xec   : > { %3439 = shalt.err (!%p3436_p0)  }
  0xed   : > { %187 = dma.hbm_to_vmem [thread:$0]  %s175_s18, 16, %s185_s8, [#allocation5] }
  0xee   : > { %s190_s19 = scalar_lea.hbm %s7825_s5, %s2910_s29 }
  0xef   : > { %s3440_s10 = scalar_lea.hbm %s190_s19, 16  ;;  %p3443_p2 = scmp.lt.u32.totalorder %s190_s19, %s7825_s5 }
  0xf0   : > { %p3441_p1 = scmp.ne.s32.totalorder %s190_s19, %s3440_s10  ;;  %p3444_p3 = scmp.lt.u32.totalorder %s6059_s20, %s3440_s10 }
  0xf1   : > { %p3446_p5 = scmp.lt.u32.totalorder %s3440_s10, %s190_s19 }
  0xf2   : > { %p3445_p4 = por %p3444_p3, %p3443_p2 }
  0xf4   : > { %p3447_p6 = por %p3446_p5, %p3445_p4 }
  0xf6   : > { %p3448_p7 = pnand %p3447_p6, %p3441_p1 }
  0xf8   : > { %3451 = shalt.err (!%p3448_p7)  }
  0xf9   : > { %s3452_s8 = scalar_lea.vmem %s6091_s12, 16  ;;  %p3457_p9 = scmp.lt.s32.totalorder %s6091_s12, %s6037_s7 }
  0xfa   : > { %p3453_p8 = scmp.ne.s32.totalorder %s6091_s12, %s3452_s8  ;;  %p3458_p10 = scmp.lt.s32.totalorder %s6068_s26, %s3452_s8 }
  0xfc   : > { %p3459_p11 = por %p3458_p10, %p3457_p9 }
  0xfe   : > { %p3460_p12 = pnand %p3459_p11, %p3453_p8 }
 0x100   : > { %3463 = shalt.err (!%p3460_p12)  }
 0x101   : > { %202 = dma.hbm_to_vmem [thread:$0]  %s190_s19, 16, %s6091_s12, [#allocation5] }
 0x102   : > { %s2911_s13 = sshll.u32 %s6093_s16, 4  ;;  %s6124_s27 = sld [smem:[#allocation9 + %s219_s25]] }
 0x103   : > { %s206_s18 = scalar_lea.hbm %s7825_s5, %s2911_s13 }
 0x104   : > { %s3464_s29 = scalar_lea.hbm %s206_s18, 16  ;;  %p3467_p0 = scmp.lt.u32.totalorder %s206_s18, %s7825_s5 }
 0x105   : > { %p3465_p13 = scmp.ne.s32.totalorder %s206_s18, %s3464_s29  ;;  %p3468_p1 = scmp.lt.u32.totalorder %s6059_s20, %s3464_s29 }
 0x106   : > { %p3470_p3 = scmp.lt.u32.totalorder %s3464_s29, %s206_s18 }
 0x107   : > { %p3469_p2 = por %p3468_p1, %p3467_p0 }
 0x109   : > { %p3471_p4 = por %p3470_p3, %p3469_p2 }
 0x10b   : > { %p3472_p5 = pnand %p3471_p4, %p3465_p13 }
 0x10d   : > { %3475 = shalt.err (!%p3472_p5)  }
 0x10e   : > { %s3476_s12 = scalar_lea.vmem %s6109_s23, 16  ;;  %p3481_p7 = scmp.lt.s32.totalorder %s6109_s23, %s6037_s7 }
 0x10f   : > { %p3477_p6 = scmp.ne.s32.totalorder %s6109_s23, %s3476_s12  ;;  %p3482_p8 = scmp.lt.s32.totalorder %s6068_s26, %s3476_s12 }
 0x111   : > { %p3483_p9 = por %p3482_p8, %p3481_p7 }
 0x113   : > { %p3484_p10 = pnand %p3483_p9, %p3477_p6 }
 0x115   : > { %3487 = shalt.err (!%p3484_p10)  }
 0x116   : > { %218 = dma.hbm_to_vmem [thread:$0]  %s206_s18, 16, %s6109_s23, [#allocation5] }
 0x117   : > { %s5769_s16 = smov [#allocation4 + $0x5]   ;;  %s235_s11 = sadd.s32 6, %s5923_s15 }
 0x118   : > { %s231_s25 = sshll.u32 %s5769_s16, 4  ;;  %s6140_s19 = sld [smem:[#allocation9 + %s235_s11]]  ;;  %s232_s25 = int_to_ptr.vmem [resolvable:$true] %s231_s25 }
 0x119   : > { %s251_s10 = sadd.s32 7, %s5923_s15  ;;  %s2912_s0 = sshll.u32 %s6124_s27, 4 }
 0x11a   : > { %s5770_s21 = smov [#allocation4 + $0x6]   ;;  %s222_s22 = scalar_lea.hbm %s7825_s5, %s2912_s0 }
 0x11b   : > { %s247_s8 = sshll.u32 %s5770_s21, 4  ;;  %s3488_s29 = scalar_lea.hbm %s222_s22, 16  ;;  %s6147_s8 = int_to_ptr.vmem [resolvable:$true] %s247_s8 }
 0x11c   : > { %p3489_p11 = scmp.ne.s32.totalorder %s222_s22, %s3488_s29  ;;  %p3491_p12 = scmp.lt.u32.totalorder %s222_s22, %s7825_s5 }
 0x11d   : > { %p3492_p13 = scmp.lt.u32.totalorder %s6059_s20, %s3488_s29  ;;  %p3494_p1 = scmp.lt.u32.totalorder %s3488_s29, %s222_s22 }
 0x11f   : > { %p3493_p0 = por %p3492_p13, %p3491_p12 }
 0x121   : > { %p3495_p2 = por %p3494_p1, %p3493_p0 }
 0x123   : > { %p3496_p3 = pnand %p3495_p2, %p3489_p11 }
 0x125   : > { %3499 = shalt.err (!%p3496_p3)  }
 0x126   : > { %s3500_s27 = scalar_lea.vmem %s232_s25, 16  ;;  %p3505_p5 = scmp.lt.s32.totalorder %s232_s25, %s6037_s7 }
 0x127   : > { %p3501_p4 = scmp.ne.s32.totalorder %s232_s25, %s3500_s27  ;;  %p3506_p6 = scmp.lt.s32.totalorder %s6068_s26, %s3500_s27 }
 0x129   : > { %p3507_p7 = por %p3506_p6, %p3505_p5 }
 0x12b   : > { %p3508_p8 = pnand %p3507_p7, %p3501_p4 }
 0x12d   : > { %3511 = shalt.err (!%p3508_p8)  }
 0x12e   : > { %234 = dma.hbm_to_vmem [thread:$0]  %s222_s22, 16, %s232_s25, [#allocation5] }
 0x12f   : > { %s6155_s18 = sld [smem:[#allocation9 + %s251_s10]]  ;;  %s2913_s6 = sshll.u32 %s6140_s19, 4 }
 0x130   : > { %s5771_s12 = smov [#allocation4 + $0x7]   ;;  %s238_s21 = scalar_lea.hbm %s7825_s5, %s2913_s6 }
 0x131   : > { %s263_s16 = sshll.u32 %s5771_s12, 4  ;;  %s3512_s13 = scalar_lea.hbm %s238_s21, 16  ;;  %s6161_s16 = int_to_ptr.vmem [resolvable:$true] %s263_s16 }
 0x132   : > { %p3513_p9 = scmp.ne.s32.totalorder %s238_s21, %s3512_s13  ;;  %p3515_p10 = scmp.lt.u32.totalorder %s238_s21, %s7825_s5 }
 0x133   : > { %p3516_p11 = scmp.lt.u32.totalorder %s6059_s20, %s3512_s13  ;;  %p3518_p13 = scmp.lt.u32.totalorder %s3512_s13, %s238_s21 }
 0x135   : > { %p3517_p12 = por %p3516_p11, %p3515_p10 }
 0x137   : > { %p3519_p0 = por %p3518_p13, %p3517_p12 }
 0x139   : > { %p3520_p1 = pnand %p3519_p0, %p3513_p9 }
 0x13b   : > { %3523 = shalt.err (!%p3520_p1)  }
 0x13c   : > { %s3524_s25 = scalar_lea.vmem %s6147_s8, 16  ;;  %p3529_p3 = scmp.lt.s32.totalorder %s6147_s8, %s6037_s7 }
 0x13d   : > { %p3525_p2 = scmp.ne.s32.totalorder %s6147_s8, %s3524_s25  ;;  %p3530_p4 = scmp.lt.s32.totalorder %s6068_s26, %s3524_s25 }
 0x13f   : > { %p3531_p5 = por %p3530_p4, %p3529_p3 }
 0x141   : > { %p3532_p6 = pnand %p3531_p5, %p3525_p2 }
 0x143   : > { %3535 = shalt.err (!%p3532_p6)  }
 0x144   : > { %250 = dma.hbm_to_vmem [thread:$0]  %s238_s21, 16, %s6147_s8, [#allocation5] }
 0x145   : > { %s267_s19 = sadd.s32 1, %s5918_s2  ;;  %s5772_s22 = smov [#allocation2 + $0x1]  }
 0x146   : > { %s6174_s10 = sld [smem:[#allocation7 + %s267_s19]]  ;;  %s279_s17 = sshll.u32 %s5772_s22, 4  ;;  %s6177_s17 = int_to_ptr.vmem [resolvable:$true] %s279_s17 }
 0x147   : > { %s2914_s23 = sshll.u32 %s6155_s18, 4  ;;  %s6183_s11 = sadd.s32 128, %s5923_s15 }
 0x148   : > { %s254_s12 = scalar_lea.hbm %s7825_s5, %s2914_s23 }
 0x149   : > { %s3536_s0 = scalar_lea.hbm %s254_s12, 16  ;;  %p3539_p8 = scmp.lt.u32.totalorder %s254_s12, %s7825_s5 }
 0x14a   : > { %p3537_p7 = scmp.ne.s32.totalorder %s254_s12, %s3536_s0  ;;  %p3540_p9 = scmp.lt.u32.totalorder %s6059_s20, %s3536_s0 }
 0x14b   : > { %p3542_p11 = scmp.lt.u32.totalorder %s3536_s0, %s254_s12 }
 0x14c   : > { %p3541_p10 = por %p3540_p9, %p3539_p8 }
 0x14e   : > { %p3543_p12 = por %p3542_p11, %p3541_p10 }
 0x150   : > { %p3544_p13 = pnand %p3543_p12, %p3537_p7 }
 0x152   : > { %3547 = shalt.err (!%p3544_p13)  }
 0x153   : > { %s3548_s8 = scalar_lea.vmem %s6161_s16, 16  ;;  %p3553_p1 = scmp.lt.s32.totalorder %s6161_s16, %s6037_s7 }
 0x154   : > { %p3549_p0 = scmp.ne.s32.totalorder %s6161_s16, %s3548_s8  ;;  %p3554_p2 = scmp.lt.s32.totalorder %s6068_s26, %s3548_s8 }
 0x156   : > { %p3555_p3 = por %p3554_p2, %p3553_p1 }
 0x158   : > { %p3556_p4 = pnand %p3555_p3, %p3549_p0 }
 0x15a   : > { %3559 = shalt.err (!%p3556_p4)  }
 0x15b   : > { %266 = dma.hbm_to_vmem [thread:$0]  %s254_s12, 16, %s6161_s16, [#allocation5] }
 0x15c   : > { %s6196_s18 = sld [smem:[#allocation8 + %s6183_s11]]  ;;  %s5773_s21 = smov [#allocation3 + $0x4]  }
 0x15d   : > { %s295_s29 = sshll.u32 %s5773_s21, 4  ;;  %s299_s25 = sadd.s32 1, %s6183_s11  ;;  %s6200_s29 = int_to_ptr.vmem [resolvable:$true] %s295_s29 }
 0x15e   : > { %s2915_s19 = sshll.u32 %s6174_s10, 4  ;;  %s6207_s6 = sld [smem:[#allocation8 + %s299_s25]] }
 0x15f   : > { %s270_s27 = scalar_lea.hbm %s7823_s3, %s2915_s19 }
 0x160   : > { %s3560_s0 = scalar_lea.hbm %s270_s27, 16  ;;  %p3563_p6 = scmp.lt.u32.totalorder %s270_s27, %s7823_s3 }
 0x161   : > { %p3561_p5 = scmp.ne.s32.totalorder %s270_s27, %s3560_s0  ;;  %p3564_p7 = scmp.lt.u32.totalorder %s5944_s1, %s3560_s0 }
 0x162   : > { %p3566_p9 = scmp.lt.u32.totalorder %s3560_s0, %s270_s27 }
 0x163   : > { %p3565_p8 = por %p3564_p7, %p3563_p6 }
 0x165   : > { %p3567_p10 = por %p3566_p9, %p3565_p8 }
 0x167   : > { %p3568_p11 = pnand %p3567_p10, %p3561_p5 }
 0x169   : > { %3571 = shalt.err (!%p3568_p11)  }
 0x16a   : > { %s3572_s16 = scalar_lea.vmem %s6177_s17, 16  ;;  %p3577_p13 = scmp.lt.s32.totalorder %s6177_s17, %s5925_s14 }
 0x16b   : > { %p3573_p12 = scmp.ne.s32.totalorder %s6177_s17, %s3572_s16  ;;  %p3578_p0 = scmp.lt.s32.totalorder %s5953_s9, %s3572_s16 }
 0x16d   : > { %p3579_p1 = por %p3578_p0, %p3577_p13 }
 0x16f   : > { %p3580_p2 = pnand %p3579_p1, %p3573_p12 }
 0x171   : > { %3583 = shalt.err (!%p3580_p2)  }
 0x172   : > { %282 = dma.hbm_to_vmem [thread:$0]  %s270_s27, 16, %s6177_s17, [#allocation5] }
 0x173   : > { %s7834_s10 = sadd.s32 2, %s6183_s11  ;;  %s2917_s12 = sshll.u32 %s6196_s18, 4 }
 0x174   : > { %s5774_s8 = smov [#allocation3 + $0x5]   ;;  %s286_s23 = scalar_lea.hbm %s7824_s4, %s2917_s12 }
 0x175   : > { %s311_s21 = sshll.u32 %s5774_s8, 4  ;;  %s3584_s0 = scalar_lea.hbm %s286_s23, 16  ;;  %s6224_s21 = int_to_ptr.vmem [resolvable:$true] %s311_s21 }
 0x176   : > { %p3585_p3 = scmp.ne.s32.totalorder %s286_s23, %s3584_s0  ;;  %p3587_p4 = scmp.lt.u32.totalorder %s286_s23, %s7824_s4 }
 0x177   : > { %p3588_p5 = scmp.lt.u32.totalorder %s5972_s28, %s3584_s0  ;;  %p3590_p7 = scmp.lt.u32.totalorder %s3584_s0, %s286_s23 }
 0x179   : > { %p3589_p6 = por %p3588_p5, %p3587_p4 }
 0x17b   : > { %p3591_p8 = por %p3590_p7, %p3589_p6 }
 0x17d   : > { %p3592_p9 = pnand %p3591_p8, %p3585_p3 }
 0x17f   : > { %3595 = shalt.err (!%p3592_p9)  }
 0x180   : > { %s7862_s17 = sld [smem:[#allocation225_spill]]  ;;  %s3596_s18 = scalar_lea.vmem %s6200_s29, 16 }
 0x181   : > { %p3597_p10 = scmp.ne.s32.totalorder %s6200_s29, %s3596_s18  ;;  %p3601_p11 = scmp.lt.s32.totalorder %s6200_s29, %s5939_s24 }
 0x186   : > { %p3602_p12 = scmp.lt.s32.totalorder %s7862_s17, %s3596_s18 }
 0x188   : > { %p3603_p13 = por %p3602_p12, %p3601_p11 }
 0x18a   : > { %p3604_p0 = pnand %p3603_p13, %p3597_p10 }
 0x18c   : > { %3607 = shalt.err (!%p3604_p0)  }
 0x18d   : > { %298 = dma.hbm_to_vmem [thread:$0]  %s286_s23, 16, %s6200_s29, [#allocation5] }
 0x18e   : > { %s2918_s27 = sshll.u32 %s6207_s6, 4  ;;  %s6239_s16 = sld [smem:[#allocation8 + %s7834_s10]] }
 0x18f   : > { %s302_s19 = scalar_lea.hbm %s7824_s4, %s2918_s27 }
 0x190   : > { %s3608_s22 = scalar_lea.hbm %s302_s19, 16  ;;  %p3611_p2 = scmp.lt.u32.totalorder %s302_s19, %s7824_s4 }
 0x191   : > { %p3609_p1 = scmp.ne.s32.totalorder %s302_s19, %s3608_s22  ;;  %p3612_p3 = scmp.lt.u32.totalorder %s5972_s28, %s3608_s22 }
 0x192   : > { %p3614_p5 = scmp.lt.u32.totalorder %s3608_s22, %s302_s19 }
 0x193   : > { %p3613_p4 = por %p3612_p3, %p3611_p2 }
 0x195   : > { %p3615_p6 = por %p3614_p5, %p3613_p4 }
 0x197   : > { %p3616_p7 = pnand %p3615_p6, %p3609_p1 }
 0x199   : > { %3619 = shalt.err (!%p3616_p7)  }
 0x19a   : > { %s3620_s29 = scalar_lea.vmem %s6224_s21, 16  ;;  %p3625_p9 = scmp.lt.s32.totalorder %s6224_s21, %s5939_s24 }
 0x19b   : > { %p3621_p8 = scmp.ne.s32.totalorder %s6224_s21, %s3620_s29  ;;  %p3626_p10 = scmp.lt.s32.totalorder %s7862_s17, %s3620_s29 }
 0x19d   : > { %p3627_p11 = por %p3626_p10, %p3625_p9 }
 0x19f   : > { %p3628_p12 = pnand %p3627_p11, %p3621_p8 }
 0x1a1   : > { %3631 = shalt.err (!%p3628_p12)  }
 0x1a2   : > { %314 = dma.hbm_to_vmem [thread:$0]  %s302_s19, 16, %s6224_s21, [#allocation5] }
 0x1a3   : > { %s5775_s6 = smov [#allocation3 + $0x6]   ;;  %s7835_s30 = sadd.s32 3, %s6183_s11 }
 0x1a4   : > { %s327_s23 = sshll.u32 %s5775_s6, 4  ;;  %s6257_s18 = sld [smem:[#allocation8 + %s7835_s30]]  ;;  %s328_s23 = int_to_ptr.vmem [resolvable:$true] %s327_s23 }
 0x1a5   : > { %s6260_s27 = sld [smem:[#allocation9 + %s6183_s11]]  ;;  %s2919_s12 = sshll.u32 %s6239_s16, 4 }
 0x1a6   : > { %s5776_s8 = smov [#allocation3 + $0x7]   ;;  %s318_s29 = scalar_lea.hbm %s7824_s4, %s2919_s12 }
 0x1a7   : > { %s343_s22 = sshll.u32 %s5776_s8, 4  ;;  %s3632_s10 = scalar_lea.hbm %s318_s29, 16  ;;  %s6266_s22 = int_to_ptr.vmem [resolvable:$true] %s343_s22 }
 0x1a8   : > { %p3633_p13 = scmp.ne.s32.totalorder %s318_s29, %s3632_s10  ;;  %p3635_p0 = scmp.lt.u32.totalorder %s318_s29, %s7824_s4 }
 0x1a9   : > { %p3636_p1 = scmp.lt.u32.totalorder %s5972_s28, %s3632_s10  ;;  %p3638_p3 = scmp.lt.u32.totalorder %s3632_s10, %s318_s29 }
 0x1ab   : > { %p3637_p2 = por %p3636_p1, %p3635_p0 }
 0x1ad   : > { %p3639_p4 = por %p3638_p3, %p3637_p2 }
 0x1af   : > { %p3640_p5 = pnand %p3639_p4, %p3633_p13 }
 0x1b1   : > { %3643 = shalt.err (!%p3640_p5)  }
 0x1b2   : > { %s3644_s16 = scalar_lea.vmem %s328_s23, 16  ;;  %p3649_p7 = scmp.lt.s32.totalorder %s328_s23, %s5939_s24 }
 0x1b3   : > { %p3645_p6 = scmp.ne.s32.totalorder %s328_s23, %s3644_s16  ;;  %p3650_p8 = scmp.lt.s32.totalorder %s7862_s17, %s3644_s16 }
 0x1b5   : > { %p3651_p9 = por %p3650_p8, %p3649_p7 }
 0x1b7   : > { %p3652_p10 = pnand %p3651_p9, %p3645_p6 }
 0x1b9   : > { %3655 = shalt.err (!%p3652_p10)  }
 0x1ba   : > { %330 = dma.hbm_to_vmem [thread:$0]  %s318_s29, 16, %s328_s23, [#allocation5] }
 0x1bb   : > { %s6276_s6 = sld [smem:[#allocation9 + %s299_s25]]  ;;  %s2920_s10 = sshll.u32 %s6257_s18, 4 }
 0x1bc   : > { %s5777_s12 = smov [#allocation4 + $0x8]   ;;  %s334_s21 = scalar_lea.hbm %s7824_s4, %s2920_s10 }
 0x1bd   : > { %s358_s8 = sshll.u32 %s5777_s12, 4  ;;  %s2921_s19 = sshll.u32 %s6260_s27, 4  ;;  %s359_s8 = int_to_ptr.vmem [resolvable:$true] %s358_s8 }
 0x1be   : > { %s3656_s16 = scalar_lea.hbm %s334_s21, 16  ;;  %p3659_p12 = scmp.lt.u32.totalorder %s334_s21, %s7824_s4 }
 0x1bf   : > { %p3657_p11 = scmp.ne.s32.totalorder %s334_s21, %s3656_s16  ;;  %p3660_p13 = scmp.lt.u32.totalorder %s5972_s28, %s3656_s16 }
 0x1c0   : > { %p3662_p1 = scmp.lt.u32.totalorder %s3656_s16, %s334_s21 }
 0x1c1   : > { %p3661_p0 = por %p3660_p13, %p3659_p12 }
 0x1c3   : > { %p3663_p2 = por %p3662_p1, %p3661_p0 }
 0x1c5   : > { %p3664_p3 = pnand %p3663_p2, %p3657_p11 }
 0x1c7   : > { %3667 = shalt.err (!%p3664_p3)  }
 0x1c8   : > { %s3668_s25 = scalar_lea.vmem %s6266_s22, 16  ;;  %p3673_p5 = scmp.lt.s32.totalorder %s6266_s22, %s5939_s24 }
 0x1c9   : > { %p3669_p4 = scmp.ne.s32.totalorder %s6266_s22, %s3668_s25  ;;  %p3674_p6 = scmp.lt.s32.totalorder %s7862_s17, %s3668_s25 }
 0x1cb   : > { %p3675_p7 = por %p3674_p6, %p3673_p5 }
 0x1cd   : > { %p3676_p8 = pnand %p3675_p7, %p3669_p4 }
 0x1cf   : > { %3679 = shalt.err (!%p3676_p8)  }
 0x1d0   : > { %346 = dma.hbm_to_vmem [thread:$0]  %s334_s21, 16, %s6266_s22, [#allocation5] }
 0x1d1   : > { %s349_s30 = scalar_lea.hbm %s7825_s5, %s2921_s19 }
 0x1d2   : > { %s3680_s18 = scalar_lea.hbm %s349_s30, 16  ;;  %p3683_p10 = scmp.lt.u32.totalorder %s349_s30, %s7825_s5 }
 0x1d3   : > { %p3681_p9 = scmp.ne.s32.totalorder %s349_s30, %s3680_s18  ;;  %p3684_p11 = scmp.lt.u32.totalorder %s6059_s20, %s3680_s18 }
 0x1d4   : > { %p3686_p13 = scmp.lt.u32.totalorder %s3680_s18, %s349_s30 }
 0x1d5   : > { %p3685_p12 = por %p3684_p11, %p3683_p10 }
 0x1d7   : > { %p3687_p0 = por %p3686_p13, %p3685_p12 }
 0x1d9   : > { %p3688_p1 = pnand %p3687_p0, %p3681_p9 }
 0x1db   : > { %3691 = shalt.err (!%p3688_p1)  }
 0x1dc   : > { %s3692_s10 = scalar_lea.vmem %s359_s8, 16  ;;  %p3697_p3 = scmp.lt.s32.totalorder %s359_s8, %s6037_s7 }
 0x1dd   : > { %p3693_p2 = scmp.ne.s32.totalorder %s359_s8, %s3692_s10  ;;  %p3698_p4 = scmp.lt.s32.totalorder %s6068_s26, %s3692_s10 }
 0x1df   : > { %p3699_p5 = por %p3698_p4, %p3697_p3 }
 0x1e1   : > { %p3700_p6 = pnand %p3699_p5, %p3693_p2 }
 0x1e3   : > { %3703 = shalt.err (!%p3700_p6)  }
 0x1e4   : > { %361 = dma.hbm_to_vmem [thread:$0]  %s349_s30, 16, %s359_s8, [#allocation5] }
 0x1e5   : > { %s2922_s22 = sshll.u32 %s6276_s6, 4  ;;  %s5778_s21 = smov [#allocation4 + $0x9]  }
 0x1e6   : > { %s364_s13 = scalar_lea.hbm %s7825_s5, %s2922_s22  ;;  %s373_s19 = sshll.u32 %s5778_s21, 4  ;;  %s374_s19 = int_to_ptr.vmem [resolvable:$true] %s373_s19 }
 0x1e7   : > { %s7863_s16 = sadd.s32 2, %s6183_s11  ;;  %s3704_s9 = scalar_lea.hbm %s364_s13, 16 }
 0x1e8   : > { %s6308_s25 = sld [smem:[#allocation9 + %s7863_s16]]  ;;  %p3705_p7 = scmp.ne.s32.totalorder %s364_s13, %s3704_s9 }
 0x1e9   : > { %p3707_p8 = scmp.lt.u32.totalorder %s364_s13, %s7825_s5  ;;  %p3708_p9 = scmp.lt.u32.totalorder %s6059_s20, %s3704_s9 }
 0x1ea   : > { %p3710_p11 = scmp.lt.u32.totalorder %s3704_s9, %s364_s13 }
 0x1eb   : > { %p3709_p10 = por %p3708_p9, %p3707_p8 }
 0x1ed   : > { %p3711_p12 = por %p3710_p11, %p3709_p10 }
 0x1ef   : > { %p3712_p13 = pnand %p3711_p12, %p3705_p7 }
 0x1f1   : > { %3715 = shalt.err (!%p3712_p13)  }
 0x1f2   : > { %s3716_s6 = scalar_lea.vmem %s374_s19, 16  ;;  %p3721_p1 = scmp.lt.s32.totalorder %s374_s19, %s6037_s7 }
 0x1f3   : > { %p3717_p0 = scmp.ne.s32.totalorder %s374_s19, %s3716_s6  ;;  %p3722_p2 = scmp.lt.s32.totalorder %s6068_s26, %s3716_s6 }
 0x1f5   : > { %p3723_p3 = por %p3722_p2, %p3721_p1 }
 0x1f7   : > { %p3724_p4 = pnand %p3723_p3, %p3717_p0 }
 0x1f9   : > { %3727 = shalt.err (!%p3724_p4)  }
 0x1fa   : > { %376 = dma.hbm_to_vmem [thread:$0]  %s364_s13, 16, %s374_s19, [#allocation5] }
 0x1fb   : > { %s7864_s8 = sadd.s32 3, %s6183_s11  ;;  %s5779_s27 = smov [#allocation4 + $0xa]  }
 0x1fc   : > { %s6318_s30 = sld [smem:[#allocation9 + %s7864_s8]]  ;;  %s388_s29 = sshll.u32 %s5779_s27, 4  ;;  %s389_s29 = int_to_ptr.vmem [resolvable:$true] %s388_s29 }
 0x1fd   : > { %s5780_s10 = smov [#allocation4 + $0xb]   ;;  %s407_s12 = sadd.s32 4, %s6183_s11 }
 0x1fe   : > { %s403_s22 = sshll.u32 %s5780_s10, 4  ;;  %s2923_s0 = sshll.u32 %s6308_s25, 4  ;;  %s6320_s22 = int_to_ptr.vmem [resolvable:$true] %s403_s22 }
 0x1ff   : > { %s6324_s21 = sld [smem:[#allocation9 + %s407_s12]]  ;;  %s379_s19 = scalar_lea.hbm %s7825_s5, %s2923_s0 }
 0x200   : > { %s3728_s9 = scalar_lea.hbm %s379_s19, 16  ;;  %p3731_p6 = scmp.lt.u32.totalorder %s379_s19, %s7825_s5 }
 0x201   : > { %p3729_p5 = scmp.ne.s32.totalorder %s379_s19, %s3728_s9  ;;  %p3732_p7 = scmp.lt.u32.totalorder %s6059_s20, %s3728_s9 }
 0x202   : > { %p3734_p9 = scmp.lt.u32.totalorder %s3728_s9, %s379_s19 }
 0x203   : > { %p3733_p8 = por %p3732_p7, %p3731_p6 }
 0x205   : > { %p3735_p10 = por %p3734_p9, %p3733_p8 }
 0x207   : > { %p3736_p11 = pnand %p3735_p10, %p3729_p5 }
 0x209   : > { %3739 = shalt.err (!%p3736_p11)  }
 0x20a   : > { %s3740_s6 = scalar_lea.vmem %s389_s29, 16  ;;  %p3745_p13 = scmp.lt.s32.totalorder %s389_s29, %s6037_s7 }
 0x20b   : > { %p3741_p12 = scmp.ne.s32.totalorder %s389_s29, %s3740_s6  ;;  %p3746_p0 = scmp.lt.s32.totalorder %s6068_s26, %s3740_s6 }
 0x20d   : > { %p3747_p1 = por %p3746_p0, %p3745_p13 }
 0x20f   : > { %p3748_p2 = pnand %p3747_p1, %p3741_p12 }
 0x211   : > { %3751 = shalt.err (!%p3748_p2)  }
 0x212   : > { %391 = dma.hbm_to_vmem [thread:$0]  %s379_s19, 16, %s389_s29, [#allocation5] }
 0x213   : > { %s2924_s25 = sshll.u32 %s6318_s30, 4  ;;  %s5781_s8 = smov [#allocation4 + $0xc]  }
 0x214   : > { %s419_s27 = sshll.u32 %s5781_s8, 4  ;;  %s394_s0 = scalar_lea.hbm %s7825_s5, %s2924_s25  ;;  %s6339_s27 = int_to_ptr.vmem [resolvable:$true] %s419_s27 }
 0x215   : > { %s3752_s16 = scalar_lea.hbm %s394_s0, 16  ;;  %p3755_p4 = scmp.lt.u32.totalorder %s394_s0, %s7825_s5 }
 0x216   : > { %p3753_p3 = scmp.ne.s32.totalorder %s394_s0, %s3752_s16  ;;  %p3756_p5 = scmp.lt.u32.totalorder %s6059_s20, %s3752_s16 }
 0x217   : > { %p3758_p7 = scmp.lt.u32.totalorder %s3752_s16, %s394_s0 }
 0x218   : > { %p3757_p6 = por %p3756_p5, %p3755_p4 }
 0x21a   : > { %p3759_p8 = por %p3758_p7, %p3757_p6 }
 0x21c   : > { %p3760_p9 = pnand %p3759_p8, %p3753_p3 }
 0x21e   : > { %3763 = shalt.err (!%p3760_p9)  }
 0x21f   : > { %s3764_s30 = scalar_lea.vmem %s6320_s22, 16  ;;  %p3769_p11 = scmp.lt.s32.totalorder %s6320_s22, %s6037_s7 }
 0x220   : > { %p3765_p10 = scmp.ne.s32.totalorder %s6320_s22, %s3764_s30  ;;  %p3770_p12 = scmp.lt.s32.totalorder %s6068_s26, %s3764_s30 }
 0x222   : > { %p3771_p13 = por %p3770_p12, %p3769_p11 }
 0x224   : > { %p3772_p0 = pnand %p3771_p13, %p3765_p10 }
 0x226   : > { %3775 = shalt.err (!%p3772_p0)  }
 0x227   : > { %406 = dma.hbm_to_vmem [thread:$0]  %s394_s0, 16, %s6320_s22, [#allocation5] }
 0x228   : > { %s2925_s29 = sshll.u32 %s6324_s21, 4  ;;  %s423_s19 = sadd.s32 5, %s6183_s11 }
 0x229   : > { %s410_s6 = scalar_lea.hbm %s7825_s5, %s2925_s29  ;;  %s6356_s25 = sld [smem:[#allocation9 + %s423_s19]] }
 0x22a   : > { %s3776_s8 = scalar_lea.hbm %s410_s6, 16  ;;  %p3779_p2 = scmp.lt.u32.totalorder %s410_s6, %s7825_s5 }
 0x22b   : > { %p3777_p1 = scmp.ne.s32.totalorder %s410_s6, %s3776_s8  ;;  %p3780_p3 = scmp.lt.u32.totalorder %s6059_s20, %s3776_s8 }
 0x22c   : > { %p3782_p5 = scmp.lt.u32.totalorder %s3776_s8, %s410_s6 }
 0x22d   : > { %p3781_p4 = por %p3780_p3, %p3779_p2 }
 0x22f   : > { %p3783_p6 = por %p3782_p5, %p3781_p4 }
 0x231   : > { %p3784_p7 = pnand %p3783_p6, %p3777_p1 }
 0x233   : > { %3787 = shalt.err (!%p3784_p7)  }
 0x234   : > { %s3788_s22 = scalar_lea.vmem %s6339_s27, 16  ;;  %p3793_p9 = scmp.lt.s32.totalorder %s6339_s27, %s6037_s7 }
 0x235   : > { %p3789_p8 = scmp.ne.s32.totalorder %s6339_s27, %s3788_s22  ;;  %p3794_p10 = scmp.lt.s32.totalorder %s6068_s26, %s3788_s22 }
 0x237   : > { %p3795_p11 = por %p3794_p10, %p3793_p9 }
 0x239   : > { %p3796_p12 = pnand %p3795_p11, %p3789_p8 }
 0x23b   : > { %3799 = shalt.err (!%p3796_p12)  }
 0x23c   : > { %422 = dma.hbm_to_vmem [thread:$0]  %s410_s6, 16, %s6339_s27, [#allocation5] }
 0x23d   : > { %s439_s21 = sadd.s32 6, %s6183_s11  ;;  %s5782_s0 = smov [#allocation4 + $0xd]  }
 0x23e   : > { %s435_s16 = sshll.u32 %s5782_s0, 4  ;;  %s440_s13 = sld [smem:[#allocation9 + %s439_s21]]  ;;  %s436_s16 = int_to_ptr.vmem [resolvable:$true] %s435_s16 }
 0x23f   : > { %s5783_s9 = smov [#allocation4 + $0xe]   ;;  %s455_s29 = sadd.s32 7, %s6183_s11 }
 0x240   : > { %s451_s30 = sshll.u32 %s5783_s9, 4  ;;  %s2926_s19 = sshll.u32 %s6356_s25, 4  ;;  %s6371_s30 = int_to_ptr.vmem [resolvable:$true] %s451_s30 }
 0x241   : > { %s426_s8 = scalar_lea.hbm %s7825_s5, %s2926_s19  ;;  %s6376_s10 = sld [smem:[#allocation9 + %s455_s29]] }
 0x242   : > { %s3800_s12 = scalar_lea.hbm %s426_s8, 16  ;;  %p3803_p0 = scmp.lt.u32.totalorder %s426_s8, %s7825_s5 }
 0x243   : > { %p3801_p13 = scmp.ne.s32.totalorder %s426_s8, %s3800_s12  ;;  %p3804_p1 = scmp.lt.u32.totalorder %s6059_s20, %s3800_s12 }
 0x244   : > { %p3806_p3 = scmp.lt.u32.totalorder %s3800_s12, %s426_s8 }
 0x245   : > { %p3805_p2 = por %p3804_p1, %p3803_p0 }
 0x247   : > { %p3807_p4 = por %p3806_p3, %p3805_p2 }
 0x249   : > { %p3808_p5 = pnand %p3807_p4, %p3801_p13 }
 0x24b   : > { %3811 = shalt.err (!%p3808_p5)  }
 0x24c   : > { %s3812_s11 = scalar_lea.vmem %s436_s16, 16  ;;  %p3817_p7 = scmp.lt.s32.totalorder %s436_s16, %s6037_s7 }
 0x24d   : > { %p3813_p6 = scmp.ne.s32.totalorder %s436_s16, %s3812_s11  ;;  %p3818_p8 = scmp.lt.s32.totalorder %s6068_s26, %s3812_s11 }
 0x24f   : > { %p3819_p9 = por %p3818_p8, %p3817_p7 }
 0x251   : > { %p3820_p10 = pnand %p3819_p9, %p3813_p6 }
 0x253   : > { %3823 = shalt.err (!%p3820_p10)  }
 0x254   : > { %438 = dma.hbm_to_vmem [thread:$0]  %s426_s8, 16, %s436_s16, [#allocation5] }
 0x255   : > { %s2927_s25 = sshll.u32 %s440_s13, 4  ;;  %s5784_s9 = smov [#allocation4 + $0xf]  }
 0x256   : > { %s442_s0 = scalar_lea.hbm %s7825_s5, %s2927_s25  ;;  %s467_s29 = sshll.u32 %s5784_s9, 4  ;;  %s468_s29 = int_to_ptr.vmem [resolvable:$true] %s467_s29 }
 0x257   : > { %s3824_s19 = scalar_lea.hbm %s442_s0, 16  ;;  %p3827_p12 = scmp.lt.u32.totalorder %s442_s0, %s7825_s5 }
 0x258   : > { %p3825_p11 = scmp.ne.s32.totalorder %s442_s0, %s3824_s19  ;;  %p3828_p13 = scmp.lt.u32.totalorder %s6059_s20, %s3824_s19 }
 0x259   : > { %p3830_p1 = scmp.lt.u32.totalorder %s3824_s19, %s442_s0 }
 0x25a   : > { %p3829_p0 = por %p3828_p13, %p3827_p12 }
 0x25c   : > { %p3831_p2 = por %p3830_p1, %p3829_p0 }
 0x25e   : > { %p3832_p3 = pnand %p3831_p2, %p3825_p11 }
 0x260   : > { %3835 = shalt.err (!%p3832_p3)  }
 0x261   : > { %s3836_s16 = scalar_lea.vmem %s6371_s30, 16  ;;  %p3841_p5 = scmp.lt.s32.totalorder %s6371_s30, %s6037_s7 }
 0x262   : > { %p3837_p4 = scmp.ne.s32.totalorder %s6371_s30, %s3836_s16  ;;  %p3842_p6 = scmp.lt.s32.totalorder %s6068_s26, %s3836_s16 }
 0x264   : > { %p3843_p7 = por %p3842_p6, %p3841_p5 }
 0x266   : > { %p3844_p8 = pnand %p3843_p7, %p3837_p4 }
 0x268   : > { %3847 = shalt.err (!%p3844_p8)  }
 0x269   : > { %454 = dma.hbm_to_vmem [thread:$0]  %s442_s0, 16, %s6371_s30, [#allocation5] }
 0x26a   : > { %s471_s13 = sadd.s32 2, %s5918_s2  ;;  %s2928_s8 = sshll.u32 %s6376_s10, 4 }
 0x26b   : > { %s6399_s12 = sld [smem:[#allocation7 + %s471_s13]]  ;;  %s458_s11 = scalar_lea.hbm %s7825_s5, %s2928_s8 }
 0x26c   : > { %s3848_s25 = scalar_lea.hbm %s458_s11, 16  ;;  %p3851_p10 = scmp.lt.u32.totalorder %s458_s11, %s7825_s5 }
 0x26d   : > { %p3849_p9 = scmp.ne.s32.totalorder %s458_s11, %s3848_s25  ;;  %p3852_p11 = scmp.lt.u32.totalorder %s6059_s20, %s3848_s25 }
 0x26e   : > { %p3854_p13 = scmp.lt.u32.totalorder %s3848_s25, %s458_s11 }
 0x26f   : > { %p3853_p12 = por %p3852_p11, %p3851_p10 }
 0x271   : > { %p3855_p0 = por %p3854_p13, %p3853_p12 }
 0x273   : > { %p3856_p1 = pnand %p3855_p0, %p3849_p9 }
 0x275   : > { %3859 = shalt.err (!%p3856_p1)  }
 0x276   : > { %s3860_s30 = scalar_lea.vmem %s468_s29, 16  ;;  %p3865_p3 = scmp.lt.s32.totalorder %s468_s29, %s6037_s7 }
 0x277   : > { %p3861_p2 = scmp.ne.s32.totalorder %s468_s29, %s3860_s30  ;;  %p3866_p4 = scmp.lt.s32.totalorder %s6068_s26, %s3860_s30 }
 0x279   : > { %p3867_p5 = por %p3866_p4, %p3865_p3 }
 0x27b   : > { %p3868_p6 = pnand %p3867_p5, %p3861_p2 }
 0x27d   : > { %3871 = shalt.err (!%p3868_p6)  }
 0x27e   : > { %470 = dma.hbm_to_vmem [thread:$0]  %s458_s11, 16, %s468_s29, [#allocation5] }
 0x27f   : > { %s5785_s10 = smov [#allocation2 + $0x2]   ;;  %s6411_s9 = sadd.s32 256, %s5923_s15 }
 0x280   : > { %s483_s0 = sshll.u32 %s5785_s10, 4  ;;  %s6414_s19 = sld [smem:[#allocation8 + %s6411_s9]]  ;;  %s484_s0 = int_to_ptr.vmem [resolvable:$true] %s483_s0 }
 0x281   : > { %s7838_s23 = sadd.s32 1, %s6411_s9  ;;  %s2929_s18 = sshll.u32 %s6399_s12, 4 }
 0x282   : > { %s5786_s16 = smov [#allocation3 + $0x8]   ;;  %s474_s29 = scalar_lea.hbm %s7823_s3, %s2929_s18 }
 0x283   : > { %s499_s13 = sshll.u32 %s5786_s16, 4  ;;  %s3872_s6 = scalar_lea.hbm %s474_s29, 16  ;;  %s6421_s13 = int_to_ptr.vmem [resolvable:$true] %s499_s13 }
 0x284   : > { %p3873_p7 = scmp.ne.s32.totalorder %s474_s29, %s3872_s6  ;;  %p3875_p8 = scmp.lt.u32.totalorder %s474_s29, %s7823_s3 }
 0x285   : > { %p3876_p9 = scmp.lt.u32.totalorder %s5944_s1, %s3872_s6  ;;  %p3878_p11 = scmp.lt.u32.totalorder %s3872_s6, %s474_s29 }
 0x287   : > { %p3877_p10 = por %p3876_p9, %p3875_p8 }
 0x289   : > { %p3879_p12 = por %p3878_p11, %p3877_p10 }
 0x28b   : > { %p3880_p13 = pnand %p3879_p12, %p3873_p7 }
 0x28d   : > { %3883 = shalt.err (!%p3880_p13)  }
 0x28e   : > { %s3884_s12 = scalar_lea.vmem %s484_s0, 16  ;;  %s7865_s22 = sld [smem:[#allocation224_spill]] }
 0x28f   : > { %p3885_p0 = scmp.ne.s32.totalorder %s484_s0, %s3884_s12  ;;  %p3889_p1 = scmp.lt.s32.totalorder %s484_s0, %s5925_s14 }
 0x294   : > { %p3890_p2 = scmp.lt.s32.totalorder %s7865_s22, %s3884_s12 }
 0x296   : > { %p3891_p3 = por %p3890_p2, %p3889_p1 }
 0x298   : > { %p3892_p4 = pnand %p3891_p3, %p3885_p0 }
 0x29a   : > { %3895 = shalt.err (!%p3892_p4)  }
 0x29b   : > { %486 = dma.hbm_to_vmem [thread:$0]  %s474_s29, 16, %s484_s0, [#allocation5] }
 0x29c   : > { %s6431_s21 = sld [smem:[#allocation8 + %s7838_s23]]  ;;  %s2931_s30 = sshll.u32 %s6414_s19, 4 }
 0x29d   : > { %s5787_s10 = smov [#allocation3 + $0x9]   ;;  %s490_s27 = scalar_lea.hbm %s7824_s4, %s2931_s30 }
 0x29e   : > { %s515_s18 = sshll.u32 %s5787_s10, 4  ;;  %s3896_s6 = scalar_lea.hbm %s490_s27, 16  ;;  %s6437_s18 = int_to_ptr.vmem [resolvable:$true] %s515_s18 }
 0x29f   : > { %p3897_p5 = scmp.ne.s32.totalorder %s490_s27, %s3896_s6  ;;  %p3899_p6 = scmp.lt.u32.totalorder %s490_s27, %s7824_s4 }
 0x2a0   : > { %p3900_p7 = scmp.lt.u32.totalorder %s5972_s28, %s3896_s6  ;;  %p3902_p9 = scmp.lt.u32.totalorder %s3896_s6, %s490_s27 }
 0x2a2   : > { %p3901_p8 = por %p3900_p7, %p3899_p6 }
 0x2a4   : > { %p3903_p10 = por %p3902_p9, %p3901_p8 }
 0x2a6   : > { %p3904_p11 = pnand %p3903_p10, %p3897_p5 }
 0x2a8   : > { %3907 = shalt.err (!%p3904_p11)  }
 0x2a9   : > { %s3908_s0 = scalar_lea.vmem %s6421_s13, 16  ;;  %p3913_p13 = scmp.lt.s32.totalorder %s6421_s13, %s5939_s24 }
 0x2aa   : > { %p3909_p12 = scmp.ne.s32.totalorder %s6421_s13, %s3908_s0  ;;  %p3914_p0 = scmp.lt.s32.totalorder %s7862_s17, %s3908_s0 }
 0x2ac   : > { %p3915_p1 = por %p3914_p0, %p3913_p13 }
 0x2ae   : > { %p3916_p2 = pnand %p3915_p1, %p3909_p12 }
 0x2b0   : > { %3919 = shalt.err (!%p3916_p2)  }
 0x2b1   : > { %502 = dma.hbm_to_vmem [thread:$0]  %s490_s27, 16, %s6421_s13, [#allocation5] }
 0x2b2   : > { %s7839_s19 = sadd.s32 2, %s6411_s9  ;;  %s5788_s12 = smov [#allocation3 + $0xa]  }
 0x2b3   : > { %s6452_s29 = sld [smem:[#allocation8 + %s7839_s19]]  ;;  %s531_s30 = sshll.u32 %s5788_s12, 4  ;;  %s6455_s30 = int_to_ptr.vmem [resolvable:$true] %s531_s30 }
 0x2b4   : > { %s2932_s10 = sshll.u32 %s6431_s21, 4  ;;  %s7840_s11 = sadd.s32 3, %s6411_s9 }
 0x2b5   : > { %s506_s6 = scalar_lea.hbm %s7824_s4, %s2932_s10 }
 0x2b6   : > { %s3920_s25 = scalar_lea.hbm %s506_s6, 16  ;;  %p3923_p4 = scmp.lt.u32.totalorder %s506_s6, %s7824_s4 }
 0x2b7   : > { %p3921_p3 = scmp.ne.s32.totalorder %s506_s6, %s3920_s25  ;;  %p3924_p5 = scmp.lt.u32.totalorder %s5972_s28, %s3920_s25 }
 0x2b8   : > { %p3926_p7 = scmp.lt.u32.totalorder %s3920_s25, %s506_s6 }
 0x2b9   : > { %p3925_p6 = por %p3924_p5, %p3923_p4 }
 0x2bb   : > { %p3927_p8 = por %p3926_p7, %p3925_p6 }
 0x2bd   : > { %p3928_p9 = pnand %p3927_p8, %p3921_p3 }
 0x2bf   : > { %3931 = shalt.err (!%p3928_p9)  }
 0x2c0   : > { %s3932_s13 = scalar_lea.vmem %s6437_s18, 16  ;;  %p3937_p11 = scmp.lt.s32.totalorder %s6437_s18, %s5939_s24 }
 0x2c1   : > { %p3933_p10 = scmp.ne.s32.totalorder %s6437_s18, %s3932_s13  ;;  %p3938_p12 = scmp.lt.s32.totalorder %s7862_s17, %s3932_s13 }
 0x2c3   : > { %p3939_p13 = por %p3938_p12, %p3937_p11 }
 0x2c5   : > { %p3940_p0 = pnand %p3939_p13, %p3933_p10 }
 0x2c7   : > { %3943 = shalt.err (!%p3940_p0)  }
 0x2c8   : > { %518 = dma.hbm_to_vmem [thread:$0]  %s506_s6, 16, %s6437_s18, [#allocation5] }
 0x2c9   : > { %s6473_s23 = sld [smem:[#allocation8 + %s7840_s11]]  ;;  %s5789_s21 = smov [#allocation3 + $0xb]  }
 0x2ca   : > { %s547_s27 = sshll.u32 %s5789_s21, 4  ;;  %s6476_s12 = sld [smem:[#allocation9 + %s6411_s9]]  ;;  %s6479_s27 = int_to_ptr.vmem [resolvable:$true] %s547_s27 }
 0x2cb   : > { %s2933_s10 = sshll.u32 %s6452_s29, 4 }
 0x2cc   : > { %s522_s25 = scalar_lea.hbm %s7824_s4, %s2933_s10 }
 0x2cd   : > { %s3944_s0 = scalar_lea.hbm %s522_s25, 16  ;;  %p3947_p2 = scmp.lt.u32.totalorder %s522_s25, %s7824_s4 }
 0x2ce   : > { %p3945_p1 = scmp.ne.s32.totalorder %s522_s25, %s3944_s0  ;;  %p3948_p3 = scmp.lt.u32.totalorder %s5972_s28, %s3944_s0 }
 0x2cf   : > { %p3950_p5 = scmp.lt.u32.totalorder %s3944_s0, %s522_s25 }
 0x2d0   : > { %p3949_p4 = por %p3948_p3, %p3947_p2 }
 0x2d2   : > { %p3951_p6 = por %p3950_p5, %p3949_p4 }
 0x2d4   : > { %p3952_p7 = pnand %p3951_p6, %p3945_p1 }
 0x2d6   : > { %3955 = shalt.err (!%p3952_p7)  }
 0x2d7   : > { %s3956_s18 = scalar_lea.vmem %s6455_s30, 16  ;;  %p3961_p9 = scmp.lt.s32.totalorder %s6455_s30, %s5939_s24 }
 0x2d8   : > { %p3957_p8 = scmp.ne.s32.totalorder %s6455_s30, %s3956_s18  ;;  %p3962_p10 = scmp.lt.s32.totalorder %s7862_s17, %s3956_s18 }
 0x2da   : > { %p3963_p11 = por %p3962_p10, %p3961_p9 }
 0x2dc   : > { %p3964_p12 = pnand %p3963_p11, %p3957_p8 }
 0x2de   : > { %3967 = shalt.err (!%p3964_p12)  }
 0x2df   : > { %534 = dma.hbm_to_vmem [thread:$0]  %s522_s25, 16, %s6455_s30, [#allocation5] }
 0x2e0   : > { %s5790_s19 = smov [#allocation4 + $0x10]   ;;  %s7866_s6 = sadd.s32 1, %s6411_s9 }
 0x2e1   : > { %s562_s29 = sshll.u32 %s5790_s19, 4  ;;  %s6496_s21 = sld [smem:[#allocation9 + %s7866_s6]]  ;;  %s6499_s29 = int_to_ptr.vmem [resolvable:$true] %s562_s29 }
 0x2e2   : > { %s2934_s10 = sshll.u32 %s6473_s23, 4  ;;  %s2935_s13 = sshll.u32 %s6476_s12, 4 }
 0x2e3   : > { %s538_s0 = scalar_lea.hbm %s7824_s4, %s2934_s10 }
 0x2e4   : > { %s3968_s18 = scalar_lea.hbm %s538_s0, 16  ;;  %p3971_p0 = scmp.lt.u32.totalorder %s538_s0, %s7824_s4 }
 0x2e5   : > { %p3969_p13 = scmp.ne.s32.totalorder %s538_s0, %s3968_s18  ;;  %p3972_p1 = scmp.lt.u32.totalorder %s5972_s28, %s3968_s18 }
 0x2e6   : > { %p3974_p3 = scmp.lt.u32.totalorder %s3968_s18, %s538_s0 }
 0x2e7   : > { %p3973_p2 = por %p3972_p1, %p3971_p0 }
 0x2e9   : > { %p3975_p4 = por %p3974_p3, %p3973_p2 }
 0x2eb   : > { %p3976_p5 = pnand %p3975_p4, %p3969_p13 }
 0x2ed   : > { %3979 = shalt.err (!%p3976_p5)  }
 0x2ee   : > { %s3980_s30 = scalar_lea.vmem %s6479_s27, 16  ;;  %p3985_p7 = scmp.lt.s32.totalorder %s6479_s27, %s5939_s24 }
 0x2ef   : > { %p3981_p6 = scmp.ne.s32.totalorder %s6479_s27, %s3980_s30  ;;  %p3986_p8 = scmp.lt.s32.totalorder %s7862_s17, %s3980_s30 }
 0x2f1   : > { %p3987_p9 = por %p3986_p8, %p3985_p7 }
 0x2f3   : > { %p3988_p10 = pnand %p3987_p9, %p3981_p6 }
 0x2f5   : > { %3991 = shalt.err (!%p3988_p10)  }
 0x2f6   : > { %550 = dma.hbm_to_vmem [thread:$0]  %s538_s0, 16, %s6479_s27, [#allocation5] }
 0x2f7   : > { %s553_s23 = scalar_lea.hbm %s7825_s5, %s2935_s13 }
 0x2f8   : > { %s3992_s12 = scalar_lea.hbm %s553_s23, 16  ;;  %p3995_p12 = scmp.lt.u32.totalorder %s553_s23, %s7825_s5 }
 0x2f9   : > { %p3993_p11 = scmp.ne.s32.totalorder %s553_s23, %s3992_s12  ;;  %p3996_p13 = scmp.lt.u32.totalorder %s6059_s20, %s3992_s12 }
 0x2fa   : > { %p3998_p1 = scmp.lt.u32.totalorder %s3992_s12, %s553_s23 }
 0x2fb   : > { %p3997_p0 = por %p3996_p13, %p3995_p12 }
 0x2fd   : > { %p3999_p2 = por %p3998_p1, %p3997_p0 }
 0x2ff   : > { %p4000_p3 = pnand %p3999_p2, %p3993_p11 }
 0x301   : > { %4003 = shalt.err (!%p4000_p3)  }
 0x302   : > { %s4004_s27 = scalar_lea.vmem %s6499_s29, 16  ;;  %p4009_p5 = scmp.lt.s32.totalorder %s6499_s29, %s6037_s7 }
 0x303   : > { %p4005_p4 = scmp.ne.s32.totalorder %s6499_s29, %s4004_s27  ;;  %p4010_p6 = scmp.lt.s32.totalorder %s6068_s26, %s4004_s27 }
 0x305   : > { %p4011_p7 = por %p4010_p6, %p4009_p5 }
 0x307   : > { %p4012_p8 = pnand %p4011_p7, %p4005_p4 }
 0x309   : > { %4015 = shalt.err (!%p4012_p8)  }
 0x30a   : > { %565 = dma.hbm_to_vmem [thread:$0]  %s553_s23, 16, %s6499_s29, [#allocation5] }
 0x30b   : > { %s2936_s6 = sshll.u32 %s6496_s21, 4  ;;  %s5791_s10 = smov [#allocation4 + $0x11]  }
 0x30c   : > { %s577_s16 = sshll.u32 %s5791_s10, 4  ;;  %s568_s13 = scalar_lea.hbm %s7825_s5, %s2936_s6  ;;  %s578_s16 = int_to_ptr.vmem [resolvable:$true] %s577_s16 }
 0x30d   : > { %s4016_s18 = scalar_lea.hbm %s568_s13, 16  ;;  %p4019_p10 = scmp.lt.u32.totalorder %s568_s13, %s7825_s5 }
 0x30e   : > { %p4017_p9 = scmp.ne.s32.totalorder %s568_s13, %s4016_s18  ;;  %p4020_p11 = scmp.lt.u32.totalorder %s6059_s20, %s4016_s18 }
 0x30f   : > { %p4022_p13 = scmp.lt.u32.totalorder %s4016_s18, %s568_s13 }
 0x310   : > { %p4021_p12 = por %p4020_p11, %p4019_p10 }
 0x312   : > { %p4023_p0 = por %p4022_p13, %p4021_p12 }
 0x314   : > { %p4024_p1 = pnand %p4023_p0, %p4017_p9 }
 0x316   : > { %4027 = shalt.err (!%p4024_p1)  }
 0x317   : > { %s4028_s29 = scalar_lea.vmem %s578_s16, 16  ;;  %p4033_p3 = scmp.lt.s32.totalorder %s578_s16, %s6037_s7 }
 0x318   : > { %p4029_p2 = scmp.ne.s32.totalorder %s578_s16, %s4028_s29  ;;  %p4034_p4 = scmp.lt.s32.totalorder %s6068_s26, %s4028_s29 }
 0x31a   : > { %p4035_p5 = por %p4034_p4, %p4033_p3 }
 0x31c   : > { %p4036_p6 = pnand %p4035_p5, %p4029_p2 }
 0x31e   : > { %4039 = shalt.err (!%p4036_p6)  }
 0x31f   : > { %580 = dma.hbm_to_vmem [thread:$0]  %s568_s13, 16, %s578_s16, [#allocation5] }
 0x320   : > { %s7867_s21 = sadd.s32 2, %s6411_s9  ;;  %s5792_s23 = smov [#allocation4 + $0x12]  }
 0x321   : > { %s581_s11 = sld [smem:[#allocation9 + %s7867_s21]]  ;;  %s592_s12 = sshll.u32 %s5792_s23, 4  ;;  %s593_s12 = int_to_ptr.vmem [resolvable:$true] %s592_s12 }
 0x322   : > { %s7868_s25 = sadd.s32 3, %s6411_s9  ;;  %s5793_s27 = smov [#allocation4 + $0x13]  }
 0x323   : > { %s6542_s19 = sld [smem:[#allocation9 + %s7868_s25]]  ;;  %s607_s6 = sshll.u32 %s5793_s27, 4  ;;  %s6545_s6 = int_to_ptr.vmem [resolvable:$true] %s607_s6 }
 0x324   : > { %s611_s10 = sadd.s32 4, %s6411_s9  ;;  %s627_s8 = sadd.s32 5, %s6411_s9 }
 0x325   : > { %s6547_s16 = sld [smem:[#allocation9 + %s611_s10]]  ;;  %s5794_s13 = smov [#allocation4 + $0x14]  }
 0x326   : > { %s623_s18 = sshll.u32 %s5794_s13, 4  ;;  %s6563_s18 = int_to_ptr.vmem [resolvable:$true] %s623_s18 }
 0x327   : > { %s2937_s0 = sshll.u32 %s581_s11, 4 }
 0x328   : > { %s583_s29 = scalar_lea.hbm %s7825_s5, %s2937_s0 }
 0x329   : > { %s2938_s21 = sshll.u32 %s6542_s19, 4  ;;  %s4040_s23 = scalar_lea.hbm %s583_s29, 16 }
 0x32a   : > { %p4041_p7 = scmp.ne.s32.totalorder %s583_s29, %s4040_s23  ;;  %p4043_p8 = scmp.lt.u32.totalorder %s583_s29, %s7825_s5 }
 0x32b   : > { %p4044_p9 = scmp.lt.u32.totalorder %s6059_s20, %s4040_s23  ;;  %p4046_p11 = scmp.lt.u32.totalorder %s4040_s23, %s583_s29 }
 0x32d   : > { %p4045_p10 = por %p4044_p9, %p4043_p8 }
 0x32f   : > { %p4047_p12 = por %p4046_p11, %p4045_p10 }
 0x331   : > { %p4048_p13 = pnand %p4047_p12, %p4041_p7 }
 0x333   : > { %4051 = shalt.err (!%p4048_p13)  }
 0x334   : > { %s4052_s11 = scalar_lea.vmem %s593_s12, 16  ;;  %p4057_p1 = scmp.lt.s32.totalorder %s593_s12, %s6037_s7 }
 0x335   : > { %p4053_p0 = scmp.ne.s32.totalorder %s593_s12, %s4052_s11  ;;  %p4058_p2 = scmp.lt.s32.totalorder %s6068_s26, %s4052_s11 }
 0x337   : > { %p4059_p3 = por %p4058_p2, %p4057_p1 }
 0x339   : > { %p4060_p4 = pnand %p4059_p3, %p4053_p0 }
 0x33b   : > { %4063 = shalt.err (!%p4060_p4)  }
 0x33c   : > { %595 = dma.hbm_to_vmem [thread:$0]  %s583_s29, 16, %s593_s12, [#allocation5] }
 0x33d   : > { %s598_s17 = scalar_lea.hbm %s7825_s5, %s2938_s21 }
 0x33e   : > { %s4064_s10 = scalar_lea.hbm %s598_s17, 16  ;;  %p4067_p6 = scmp.lt.u32.totalorder %s598_s17, %s7825_s5 }
 0x33f   : > { %p4065_p5 = scmp.ne.s32.totalorder %s598_s17, %s4064_s10  ;;  %p4068_p7 = scmp.lt.u32.totalorder %s6059_s20, %s4064_s10 }
 0x340   : > { %p4070_p9 = scmp.lt.u32.totalorder %s4064_s10, %s598_s17 }
 0x341   : > { %p4069_p8 = por %p4068_p7, %p4067_p6 }
 0x343   : > { %p4071_p10 = por %p4070_p9, %p4069_p8 }
 0x345   : > { %p4072_p11 = pnand %p4071_p10, %p4065_p5 }
 0x347   : > { %4075 = shalt.err (!%p4072_p11)  }
 0x348   : > { %s4076_s12 = scalar_lea.vmem %s6545_s6, 16  ;;  %p4081_p13 = scmp.lt.s32.totalorder %s6545_s6, %s6037_s7 }
 0x349   : > { %p4077_p12 = scmp.ne.s32.totalorder %s6545_s6, %s4076_s12  ;;  %p4082_p0 = scmp.lt.s32.totalorder %s6068_s26, %s4076_s12 }
 0x34b   : > { %p4083_p1 = por %p4082_p0, %p4081_p13 }
 0x34d   : > { %p4084_p2 = pnand %p4083_p1, %p4077_p12 }
 0x34f   : > { %4087 = shalt.err (!%p4084_p2)  }
 0x350   : > { %610 = dma.hbm_to_vmem [thread:$0]  %s598_s17, 16, %s6545_s6, [#allocation5] }
 0x351   : > { %s2939_s30 = sshll.u32 %s6547_s16, 4  ;;  %s6578_s22 = sld [smem:[#allocation9 + %s627_s8]] }
 0x352   : > { %s614_s23 = scalar_lea.hbm %s7825_s5, %s2939_s30 }
 0x353   : > { %s4088_s25 = scalar_lea.hbm %s614_s23, 16  ;;  %p4091_p4 = scmp.lt.u32.totalorder %s614_s23, %s7825_s5 }
 0x354   : > { %p4089_p3 = scmp.ne.s32.totalorder %s614_s23, %s4088_s25  ;;  %p4092_p5 = scmp.lt.u32.totalorder %s6059_s20, %s4088_s25 }
 0x355   : > { %p4094_p7 = scmp.lt.u32.totalorder %s4088_s25, %s614_s23 }
 0x356   : > { %p4093_p6 = por %p4092_p5, %p4091_p4 }
 0x358   : > { %p4095_p8 = por %p4094_p7, %p4093_p6 }
 0x35a   : > { %p4096_p9 = pnand %p4095_p8, %p4089_p3 }
 0x35c   : > { %4099 = shalt.err (!%p4096_p9)  }
 0x35d   : > { %s4100_s6 = scalar_lea.vmem %s6563_s18, 16  ;;  %p4105_p11 = scmp.lt.s32.totalorder %s6563_s18, %s6037_s7 }
 0x35e   : > { %p4101_p10 = scmp.ne.s32.totalorder %s6563_s18, %s4100_s6  ;;  %p4106_p12 = scmp.lt.s32.totalorder %s6068_s26, %s4100_s6 }
 0x360   : > { %p4107_p13 = por %p4106_p12, %p4105_p11 }
 0x362   : > { %p4108_p0 = pnand %p4107_p13, %p4101_p10 }
 0x364   : > { %4111 = shalt.err (!%p4108_p0)  }
 0x365   : > { %626 = dma.hbm_to_vmem [thread:$0]  %s614_s23, 16, %s6563_s18, [#allocation5] }
 0x366   : > { %s5795_s16 = smov [#allocation4 + $0x15]   ;;  %s643_s27 = sadd.s32 6, %s6411_s9 }
 0x367   : > { %s639_s8 = sshll.u32 %s5795_s16, 4  ;;  %s6594_s17 = sld [smem:[#allocation9 + %s643_s27]]  ;;  %s640_s8 = int_to_ptr.vmem [resolvable:$true] %s639_s8 }
 0x368   : > { %s659_s10 = sadd.s32 7, %s6411_s9  ;;  %s2940_s0 = sshll.u32 %s6578_s22, 4 }
 0x369   : > { %s5796_s13 = smov [#allocation4 + $0x16]   ;;  %s630_s21 = scalar_lea.hbm %s7825_s5, %s2940_s0 }
 0x36a   : > { %s655_s12 = sshll.u32 %s5796_s13, 4  ;;  %s4112_s25 = scalar_lea.hbm %s630_s21, 16  ;;  %s6601_s12 = int_to_ptr.vmem [resolvable:$true] %s655_s12 }
 0x36b   : > { %p4113_p1 = scmp.ne.s32.totalorder %s630_s21, %s4112_s25  ;;  %p4115_p2 = scmp.lt.u32.totalorder %s630_s21, %s7825_s5 }
 0x36c   : > { %p4116_p3 = scmp.lt.u32.totalorder %s6059_s20, %s4112_s25  ;;  %p4118_p5 = scmp.lt.u32.totalorder %s4112_s25, %s630_s21 }
 0x36e   : > { %p4117_p4 = por %p4116_p3, %p4115_p2 }
 0x370   : > { %p4119_p6 = por %p4118_p5, %p4117_p4 }
 0x372   : > { %p4120_p7 = pnand %p4119_p6, %p4113_p1 }
 0x374   : > { %4123 = shalt.err (!%p4120_p7)  }
 0x375   : > { %s4124_s9 = scalar_lea.vmem %s640_s8, 16  ;;  %p4129_p9 = scmp.lt.s32.totalorder %s640_s8, %s6037_s7 }
 0x376   : > { %p4125_p8 = scmp.ne.s32.totalorder %s640_s8, %s4124_s9  ;;  %p4130_p10 = scmp.lt.s32.totalorder %s6068_s26, %s4124_s9 }
 0x378   : > { %p4131_p11 = por %p4130_p10, %p4129_p9 }
 0x37a   : > { %p4132_p12 = pnand %p4131_p11, %p4125_p8 }
 0x37c   : > { %4135 = shalt.err (!%p4132_p12)  }
 0x37d   : > { %642 = dma.hbm_to_vmem [thread:$0]  %s630_s21, 16, %s640_s8, [#allocation5] }
 0x37e   : > { %s6609_s22 = sld [smem:[#allocation9 + %s659_s10]]  ;;  %s2941_s23 = sshll.u32 %s6594_s17, 4 }
 0x37f   : > { %s5797_s19 = smov [#allocation4 + $0x17]   ;;  %s646_s0 = scalar_lea.hbm %s7825_s5, %s2941_s23 }
 0x380   : > { %s671_s6 = sshll.u32 %s5797_s19, 4  ;;  %s4136_s13 = scalar_lea.hbm %s646_s0, 16  ;;  %s6615_s6 = int_to_ptr.vmem [resolvable:$true] %s671_s6 }
 0x381   : > { %p4137_p13 = scmp.ne.s32.totalorder %s646_s0, %s4136_s13  ;;  %p4139_p0 = scmp.lt.u32.totalorder %s646_s0, %s7825_s5 }
 0x382   : > { %p4140_p1 = scmp.lt.u32.totalorder %s6059_s20, %s4136_s13  ;;  %p4142_p3 = scmp.lt.u32.totalorder %s4136_s13, %s646_s0 }
 0x384   : > { %p4141_p2 = por %p4140_p1, %p4139_p0 }
 0x386   : > { %p4143_p4 = por %p4142_p3, %p4141_p2 }
 0x388   : > { %p4144_p5 = pnand %p4143_p4, %p4137_p13 }
 0x38a   : > { %4147 = shalt.err (!%p4144_p5)  }
 0x38b   : > { %s4148_s8 = scalar_lea.vmem %s6601_s12, 16  ;;  %p4153_p7 = scmp.lt.s32.totalorder %s6601_s12, %s6037_s7 }
 0x38c   : > { %p4149_p6 = scmp.ne.s32.totalorder %s6601_s12, %s4148_s8  ;;  %p4154_p8 = scmp.lt.s32.totalorder %s6068_s26, %s4148_s8 }
 0x38e   : > { %p4155_p9 = por %p4154_p8, %p4153_p7 }
 0x390   : > { %p4156_p10 = pnand %p4155_p9, %p4149_p6 }
 0x392   : > { %4159 = shalt.err (!%p4156_p10)  }
 0x393   : > { %658 = dma.hbm_to_vmem [thread:$0]  %s646_s0, 16, %s6601_s12, [#allocation5] }
 0x394   : > { %s675_s17 = sadd.s32 3, %s5918_s2  ;;  %s5798_s21 = smov [#allocation2 + $0x3]  }
 0x395   : > { %s6628_s10 = sld [smem:[#allocation7 + %s675_s17]]  ;;  %s687_s25 = sshll.u32 %s5798_s21, 4  ;;  %s6631_s25 = int_to_ptr.vmem [resolvable:$true] %s687_s25 }
 0x396   : > { %s2942_s11 = sshll.u32 %s6609_s22, 4  ;;  %s6637_s19 = sadd.s32 384, %s5923_s15 }
 0x397   : > { %s662_s23 = scalar_lea.hbm %s7825_s5, %s2942_s11 }
 0x398   : > { %s4160_s16 = scalar_lea.hbm %s662_s23, 16  ;;  %p4163_p12 = scmp.lt.u32.totalorder %s662_s23, %s7825_s5 }
 0x399   : > { %p4161_p11 = scmp.ne.s32.totalorder %s662_s23, %s4160_s16  ;;  %p4164_p13 = scmp.lt.u32.totalorder %s6059_s20, %s4160_s16 }
 0x39a   : > { %p4166_p1 = scmp.lt.u32.totalorder %s4160_s16, %s662_s23 }
 0x39b   : > { %p4165_p0 = por %p4164_p13, %p4163_p12 }
 0x39d   : > { %p4167_p2 = por %p4166_p1, %p4165_p0 }
 0x39f   : > { %p4168_p3 = pnand %p4167_p2, %p4161_p11 }
 0x3a1   : > { %4171 = shalt.err (!%p4168_p3)  }
 0x3a2   : > { %s4172_s12 = scalar_lea.vmem %s6615_s6, 16  ;;  %p4177_p5 = scmp.lt.s32.totalorder %s6615_s6, %s6037_s7 }
 0x3a3   : > { %p4173_p4 = scmp.ne.s32.totalorder %s6615_s6, %s4172_s12  ;;  %p4178_p6 = scmp.lt.s32.totalorder %s6068_s26, %s4172_s12 }
 0x3a5   : > { %p4179_p7 = por %p4178_p6, %p4177_p5 }
 0x3a7   : > { %p4180_p8 = pnand %p4179_p7, %p4173_p4 }
 0x3a9   : > { %4183 = shalt.err (!%p4180_p8)  }
 0x3aa   : > { %674 = dma.hbm_to_vmem [thread:$0]  %s662_s23, 16, %s6615_s6, [#allocation5] }
 0x3ab   : > { %s6650_s22 = sld [smem:[#allocation8 + %s6637_s19]]  ;;  %s5799_s0 = smov [#allocation3 + $0xc]  }
 0x3ac   : > { %s703_s30 = sshll.u32 %s5799_s0, 4  ;;  %s707_s29 = sadd.s32 1, %s6637_s19  ;;  %s6654_s30 = int_to_ptr.vmem [resolvable:$true] %s703_s30 }
 0x3ad   : > { %s2943_s8 = sshll.u32 %s6628_s10, 4  ;;  %s6661_s18 = sld [smem:[#allocation8 + %s707_s29]] }
 0x3ae   : > { %s678_s11 = scalar_lea.hbm %s7823_s3, %s2943_s8 }
 0x3af   : > { %s4184_s9 = scalar_lea.hbm %s678_s11, 16  ;;  %p4187_p10 = scmp.lt.u32.totalorder %s678_s11, %s7823_s3 }
 0x3b0   : > { %p4185_p9 = scmp.ne.s32.totalorder %s678_s11, %s4184_s9  ;;  %p4188_p11 = scmp.lt.u32.totalorder %s5944_s1, %s4184_s9 }
 0x3b1   : > { %p4190_p13 = scmp.lt.u32.totalorder %s4184_s9, %s678_s11 }
 0x3b2   : > { %p4189_p12 = por %p4188_p11, %p4187_p10 }
 0x3b4   : > { %p4191_p0 = por %p4190_p13, %p4189_p12 }
 0x3b6   : > { %p4192_p1 = pnand %p4191_p0, %p4185_p9 }
 0x3b8   : > { %4195 = shalt.err (!%p4192_p1)  }
 0x3b9   : > { %s7869_s6 = sld [smem:[#allocation224_spill]]  ;;  %s4196_s10 = scalar_lea.vmem %s6631_s25, 16 }
 0x3ba   : > { %p4197_p2 = scmp.ne.s32.totalorder %s6631_s25, %s4196_s10  ;;  %p4201_p3 = scmp.lt.s32.totalorder %s6631_s25, %s5925_s14 }
 0x3bf   : > { %p4202_p4 = scmp.lt.s32.totalorder %s7869_s6, %s4196_s10 }
 0x3c1   : > { %p4203_p5 = por %p4202_p4, %p4201_p3 }
 0x3c3   : > { %p4204_p6 = pnand %p4203_p5, %p4197_p2 }
 0x3c5   : > { %4207 = shalt.err (!%p4204_p6)  }
 0x3c6   : > { %690 = dma.hbm_to_vmem [thread:$0]  %s678_s11, 16, %s6631_s25, [#allocation5] }
 0x3c7   : > { %s7842_s23 = sadd.s32 2, %s6637_s19  ;;  %s2945_s13 = sshll.u32 %s6650_s22, 4 }
 0x3c8   : > { %s5800_s12 = smov [#allocation3 + $0xd]   ;;  %s694_s21 = scalar_lea.hbm %s7824_s4, %s2945_s13 }
 0x3c9   : > { %s719_s0 = sshll.u32 %s5800_s12, 4  ;;  %s4208_s9 = scalar_lea.hbm %s694_s21, 16  ;;  %s6678_s0 = int_to_ptr.vmem [resolvable:$true] %s719_s0 }
 0x3ca   : > { %p4209_p7 = scmp.ne.s32.totalorder %s694_s21, %s4208_s9  ;;  %p4211_p8 = scmp.lt.u32.totalorder %s694_s21, %s7824_s4 }
 0x3cb   : > { %p4212_p9 = scmp.lt.u32.totalorder %s5972_s28, %s4208_s9  ;;  %p4214_p11 = scmp.lt.u32.totalorder %s4208_s9, %s694_s21 }
 0x3cd   : > { %p4213_p10 = por %p4212_p9, %p4211_p8 }
 0x3cf   : > { %p4215_p12 = por %p4214_p11, %p4213_p10 }
 0x3d1   : > { %p4216_p13 = pnand %p4215_p12, %p4209_p7 }
 0x3d3   : > { %4219 = shalt.err (!%p4216_p13)  }
 0x3d4   : > { %s7870_s25 = sld [smem:[#allocation225_spill]]  ;;  %s4220_s22 = scalar_lea.vmem %s6654_s30, 16 }
 0x3d5   : > { %p4221_p0 = scmp.ne.s32.totalorder %s6654_s30, %s4220_s22  ;;  %p4225_p1 = scmp.lt.s32.totalorder %s6654_s30, %s5939_s24 }
 0x3da   : > { %p4226_p2 = scmp.lt.s32.totalorder %s7870_s25, %s4220_s22 }
 0x3dc   : > { %p4227_p3 = por %p4226_p2, %p4225_p1 }
 0x3de   : > { %p4228_p4 = pnand %p4227_p3, %p4221_p0 }
 0x3e0   : > { %4231 = shalt.err (!%p4228_p4)  }
 0x3e1   : > { %706 = dma.hbm_to_vmem [thread:$0]  %s694_s21, 16, %s6654_s30, [#allocation5] }
 0x3e2   : > { %s2946_s11 = sshll.u32 %s6661_s18, 4  ;;  %s6693_s10 = sld [smem:[#allocation8 + %s7842_s23]] }
 0x3e3   : > { %s710_s8 = scalar_lea.hbm %s7824_s4, %s2946_s11 }
 0x3e4   : > { %s4232_s17 = scalar_lea.hbm %s710_s8, 16  ;;  %p4235_p6 = scmp.lt.u32.totalorder %s710_s8, %s7824_s4 }
 0x3e5   : > { %p4233_p5 = scmp.ne.s32.totalorder %s710_s8, %s4232_s17  ;;  %p4236_p7 = scmp.lt.u32.totalorder %s5972_s28, %s4232_s17 }
 0x3e6   : > { %p4238_p9 = scmp.lt.u32.totalorder %s4232_s17, %s710_s8 }
 0x3e7   : > { %p4237_p8 = por %p4236_p7, %p4235_p6 }
 0x3e9   : > { %p4239_p10 = por %p4238_p9, %p4237_p8 }
 0x3eb   : > { %p4240_p11 = pnand %p4239_p10, %p4233_p5 }
 0x3ed   : > { %4243 = shalt.err (!%p4240_p11)  }
 0x3ee   : > { %s4244_s30 = scalar_lea.vmem %s6678_s0, 16  ;;  %p4249_p13 = scmp.lt.s32.totalorder %s6678_s0, %s5939_s24 }
 0x3ef   : > { %p4245_p12 = scmp.ne.s32.totalorder %s6678_s0, %s4244_s30  ;;  %p4250_p0 = scmp.lt.s32.totalorder %s7870_s25, %s4244_s30 }
 0x3f1   : > { %p4251_p1 = por %p4250_p0, %p4249_p13 }
 0x3f3   : > { %p4252_p2 = pnand %p4251_p1, %p4245_p12 }
 0x3f5   : > { %4255 = shalt.err (!%p4252_p2)  }
 0x3f6   : > { %722 = dma.hbm_to_vmem [thread:$0]  %s710_s8, 16, %s6678_s0, [#allocation5] }
 0x3f7   : > { %s5801_s18 = smov [#allocation3 + $0xe]   ;;  %s7843_s27 = sadd.s32 3, %s6637_s19 }
 0x3f8   : > { %s735_s21 = sshll.u32 %s5801_s18, 4  ;;  %s6711_s22 = sld [smem:[#allocation8 + %s7843_s27]]  ;;  %s736_s21 = int_to_ptr.vmem [resolvable:$true] %s735_s21 }
 0x3f9   : > { %s6714_s11 = sld [smem:[#allocation9 + %s6637_s19]]  ;;  %s2947_s13 = sshll.u32 %s6693_s10, 4 }
 0x3fa   : > { %s5802_s12 = smov [#allocation3 + $0xf]   ;;  %s726_s30 = scalar_lea.hbm %s7824_s4, %s2947_s13 }
 0x3fb   : > { %s751_s17 = sshll.u32 %s5802_s12, 4  ;;  %s4256_s23 = scalar_lea.hbm %s726_s30, 16  ;;  %s6720_s17 = int_to_ptr.vmem [resolvable:$true] %s751_s17 }
 0x3fc   : > { %p4257_p3 = scmp.ne.s32.totalorder %s726_s30, %s4256_s23  ;;  %p4259_p4 = scmp.lt.u32.totalorder %s726_s30, %s7824_s4 }
 0x3fd   : > { %p4260_p5 = scmp.lt.u32.totalorder %s5972_s28, %s4256_s23  ;;  %p4262_p7 = scmp.lt.u32.totalorder %s4256_s23, %s726_s30 }
 0x3ff   : > { %p4261_p6 = por %p4260_p5, %p4259_p4 }
 0x401   : > { %p4263_p8 = por %p4262_p7, %p4261_p6 }
 0x403   : > { %p4264_p9 = pnand %p4263_p8, %p4257_p3 }
 0x405   : > { %4267 = shalt.err (!%p4264_p9)  }
 0x406   : > { %s4268_s10 = scalar_lea.vmem %s736_s21, 16  ;;  %p4273_p11 = scmp.lt.s32.totalorder %s736_s21, %s5939_s24 }
 0x407   : > { %p4269_p10 = scmp.ne.s32.totalorder %s736_s21, %s4268_s10  ;;  %p4274_p12 = scmp.lt.s32.totalorder %s7870_s25, %s4268_s10 }
 0x409   : > { %p4275_p13 = por %p4274_p12, %p4273_p11 }
 0x40b   : > { %p4276_p0 = pnand %p4275_p13, %p4269_p10 }
 0x40d   : > { %4279 = shalt.err (!%p4276_p0)  }
 0x40e   : > { %738 = dma.hbm_to_vmem [thread:$0]  %s726_s30, 16, %s736_s21, [#allocation5] }
 0x40f   : > { %s6730_s18 = sld [smem:[#allocation9 + %s707_s29]]  ;;  %s2948_s23 = sshll.u32 %s6711_s22, 4 }
 0x410   : > { %s5803_s13 = smov [#allocation4 + $0x18]   ;;  %s742_s0 = scalar_lea.hbm %s7824_s4, %s2948_s23 }
 0x411   : > { %s766_s12 = sshll.u32 %s5803_s13, 4  ;;  %s2949_s8 = sshll.u32 %s6714_s11, 4  ;;  %s767_s12 = int_to_ptr.vmem [resolvable:$true] %s766_s12 }
 0x412   : > { %s4280_s10 = scalar_lea.hbm %s742_s0, 16  ;;  %p4283_p2 = scmp.lt.u32.totalorder %s742_s0, %s7824_s4 }
 0x413   : > { %p4281_p1 = scmp.ne.s32.totalorder %s742_s0, %s4280_s10  ;;  %p4284_p3 = scmp.lt.u32.totalorder %s5972_s28, %s4280_s10 }
 0x414   : > { %p4286_p5 = scmp.lt.u32.totalorder %s4280_s10, %s742_s0 }
 0x415   : > { %p4285_p4 = por %p4284_p3, %p4283_p2 }
 0x417   : > { %p4287_p6 = por %p4286_p5, %p4285_p4 }
 0x419   : > { %p4288_p7 = pnand %p4287_p6, %p4281_p1 }
 0x41b   : > { %4291 = shalt.err (!%p4288_p7)  }
 0x41c   : > { %s4292_s29 = scalar_lea.vmem %s6720_s17, 16  ;;  %p4297_p9 = scmp.lt.s32.totalorder %s6720_s17, %s5939_s24 }
 0x41d   : > { %p4293_p8 = scmp.ne.s32.totalorder %s6720_s17, %s4292_s29  ;;  %p4298_p10 = scmp.lt.s32.totalorder %s7870_s25, %s4292_s29 }
 0x41f   : > { %p4299_p11 = por %p4298_p10, %p4297_p9 }
 0x421   : > { %p4300_p12 = pnand %p4299_p11, %p4293_p8 }
 0x423   : > { %4303 = shalt.err (!%p4300_p12)  }
 0x424   : > { %754 = dma.hbm_to_vmem [thread:$0]  %s742_s0, 16, %s6720_s17, [#allocation5] }
 0x425   : > { %s757_s27 = scalar_lea.hbm %s7825_s5, %s2949_s8 }
 0x426   : > { %s4304_s22 = scalar_lea.hbm %s757_s27, 16  ;;  %p4307_p0 = scmp.lt.u32.totalorder %s757_s27, %s7825_s5 }
 0x427   : > { %p4305_p13 = scmp.ne.s32.totalorder %s757_s27, %s4304_s22  ;;  %p4308_p1 = scmp.lt.u32.totalorder %s6059_s20, %s4304_s22 }
 0x428   : > { %p4310_p3 = scmp.lt.u32.totalorder %s4304_s22, %s757_s27 }
 0x429   : > { %p4309_p2 = por %p4308_p1, %p4307_p0 }
 0x42b   : > { %p4311_p4 = por %p4310_p3, %p4309_p2 }
 0x42d   : > { %p4312_p5 = pnand %p4311_p4, %p4305_p13 }
 0x42f   : > { %4315 = shalt.err (!%p4312_p5)  }
 0x430   : > { %s4316_s23 = scalar_lea.vmem %s767_s12, 16  ;;  %p4321_p7 = scmp.lt.s32.totalorder %s767_s12, %s6037_s7 }
 0x431   : > { %p4317_p6 = scmp.ne.s32.totalorder %s767_s12, %s4316_s23  ;;  %p4322_p8 = scmp.lt.s32.totalorder %s6068_s26, %s4316_s23 }
 0x433   : > { %p4323_p9 = por %p4322_p8, %p4321_p7 }
 0x435   : > { %p4324_p10 = pnand %p4323_p9, %p4317_p6 }
 0x437   : > { %4327 = shalt.err (!%p4324_p10)  }
 0x438   : > { %769 = dma.hbm_to_vmem [thread:$0]  %s757_s27, 16, %s767_s12, [#allocation5] }
 0x439   : > { %s2950_s17 = sshll.u32 %s6730_s18, 4  ;;  %s5804_s0 = smov [#allocation4 + $0x19]  }
 0x43a   : > { %s772_s16 = scalar_lea.hbm %s7825_s5, %s2950_s17  ;;  %s781_s8 = sshll.u32 %s5804_s0, 4  ;;  %s782_s8 = int_to_ptr.vmem [resolvable:$true] %s781_s8 }
 0x43b   : > { %s7871_s10 = sadd.s32 2, %s6637_s19  ;;  %s4328_s6 = scalar_lea.hbm %s772_s16, 16 }
 0x43c   : > { %s6762_s29 = sld [smem:[#allocation9 + %s7871_s10]]  ;;  %p4329_p11 = scmp.ne.s32.totalorder %s772_s16, %s4328_s6 }
 0x43d   : > { %p4331_p12 = scmp.lt.u32.totalorder %s772_s16, %s7825_s5  ;;  %p4332_p13 = scmp.lt.u32.totalorder %s6059_s20, %s4328_s6 }
 0x43e   : > { %p4334_p1 = scmp.lt.u32.totalorder %s4328_s6, %s772_s16 }
 0x43f   : > { %p4333_p0 = por %p4332_p13, %p4331_p12 }
 0x441   : > { %p4335_p2 = por %p4334_p1, %p4333_p0 }
 0x443   : > { %p4336_p3 = pnand %p4335_p2, %p4329_p11 }
 0x445   : > { %4339 = shalt.err (!%p4336_p3)  }
 0x446   : > { %s4340_s18 = scalar_lea.vmem %s782_s8, 16  ;;  %p4345_p5 = scmp.lt.s32.totalorder %s782_s8, %s6037_s7 }
 0x447   : > { %p4341_p4 = scmp.ne.s32.totalorder %s782_s8, %s4340_s18  ;;  %p4346_p6 = scmp.lt.s32.totalorder %s6068_s26, %s4340_s18 }
 0x449   : > { %p4347_p7 = por %p4346_p6, %p4345_p5 }
 0x44b   : > { %p4348_p8 = pnand %p4347_p7, %p4341_p4 }
 0x44d   : > { %4351 = shalt.err (!%p4348_p8)  }
 0x44e   : > { %784 = dma.hbm_to_vmem [thread:$0]  %s772_s16, 16, %s782_s8, [#allocation5] }
 0x44f   : > { %s7872_s12 = sadd.s32 3, %s6637_s19  ;;  %s5805_s11 = smov [#allocation4 + $0x1a]  }
 0x450   : > { %s6772_s27 = sld [smem:[#allocation9 + %s7872_s12]]  ;;  %s796_s30 = sshll.u32 %s5805_s11, 4  ;;  %s797_s30 = int_to_ptr.vmem [resolvable:$true] %s796_s30 }
 0x451   : > { %s5806_s23 = smov [#allocation4 + $0x1b]   ;;  %s815_s13 = sadd.s32 4, %s6637_s19 }
 0x452   : > { %s811_s17 = sshll.u32 %s5806_s23, 4  ;;  %s2951_s9 = sshll.u32 %s6762_s29, 4  ;;  %s6774_s17 = int_to_ptr.vmem [resolvable:$true] %s811_s17 }
 0x453   : > { %s6778_s0 = sld [smem:[#allocation9 + %s815_s13]]  ;;  %s787_s8 = scalar_lea.hbm %s7825_s5, %s2951_s9 }
 0x454   : > { %s4352_s6 = scalar_lea.hbm %s787_s8, 16  ;;  %p4355_p10 = scmp.lt.u32.totalorder %s787_s8, %s7825_s5 }
 0x455   : > { %p4353_p9 = scmp.ne.s32.totalorder %s787_s8, %s4352_s6  ;;  %p4356_p11 = scmp.lt.u32.totalorder %s6059_s20, %s4352_s6 }
 0x456   : > { %p4358_p13 = scmp.lt.u32.totalorder %s4352_s6, %s787_s8 }
 0x457   : > { %p4357_p12 = por %p4356_p11, %p4355_p10 }
 0x459   : > { %p4359_p0 = por %p4358_p13, %p4357_p12 }
 0x45b   : > { %p4360_p1 = pnand %p4359_p0, %p4353_p9 }
 0x45d   : > { %4363 = shalt.err (!%p4360_p1)  }
 0x45e   : > { %s4364_s18 = scalar_lea.vmem %s797_s30, 16  ;;  %p4369_p3 = scmp.lt.s32.totalorder %s797_s30, %s6037_s7 }
 0x45f   : > { %p4365_p2 = scmp.ne.s32.totalorder %s797_s30, %s4364_s18  ;;  %p4370_p4 = scmp.lt.s32.totalorder %s6068_s26, %s4364_s18 }
 0x461   : > { %p4371_p5 = por %p4370_p4, %p4369_p3 }
 0x463   : > { %p4372_p6 = pnand %p4371_p5, %p4365_p2 }
 0x465   : > { %4375 = shalt.err (!%p4372_p6)  }
 0x466   : > { %799 = dma.hbm_to_vmem [thread:$0]  %s787_s8, 16, %s797_s30, [#allocation5] }
 0x467   : > { %s2952_s29 = sshll.u32 %s6772_s27, 4  ;;  %s5807_s12 = smov [#allocation4 + $0x1c]  }
 0x468   : > { %s827_s11 = sshll.u32 %s5807_s12, 4  ;;  %s802_s9 = scalar_lea.hbm %s7825_s5, %s2952_s29  ;;  %s6793_s11 = int_to_ptr.vmem [resolvable:$true] %s827_s11 }
 0x469   : > { %s4376_s10 = scalar_lea.hbm %s802_s9, 16  ;;  %p4379_p8 = scmp.lt.u32.totalorder %s802_s9, %s7825_s5 }
 0x46a   : > { %p4377_p7 = scmp.ne.s32.totalorder %s802_s9, %s4376_s10  ;;  %p4380_p9 = scmp.lt.u32.totalorder %s6059_s20, %s4376_s10 }
 0x46b   : > { %p4382_p11 = scmp.lt.u32.totalorder %s4376_s10, %s802_s9 }
 0x46c   : > { %p4381_p10 = por %p4380_p9, %p4379_p8 }
 0x46e   : > { %p4383_p12 = por %p4382_p11, %p4381_p10 }
 0x470   : > { %p4384_p13 = pnand %p4383_p12, %p4377_p7 }
 0x472   : > { %4387 = shalt.err (!%p4384_p13)  }
 0x473   : > { %s4388_s27 = scalar_lea.vmem %s6774_s17, 16  ;;  %p4393_p1 = scmp.lt.s32.totalorder %s6774_s17, %s6037_s7 }
 0x474   : > { %p4389_p0 = scmp.ne.s32.totalorder %s6774_s17, %s4388_s27  ;;  %p4394_p2 = scmp.lt.s32.totalorder %s6068_s26, %s4388_s27 }
 0x476   : > { %p4395_p3 = por %p4394_p2, %p4393_p1 }
 0x478   : > { %p4396_p4 = pnand %p4395_p3, %p4389_p0 }
 0x47a   : > { %4399 = shalt.err (!%p4396_p4)  }
 0x47b   : > { %814 = dma.hbm_to_vmem [thread:$0]  %s802_s9, 16, %s6774_s17, [#allocation5] }
 0x47c   : > { %s2953_s30 = sshll.u32 %s6778_s0, 4  ;;  %s831_s8 = sadd.s32 5, %s6637_s19 }
 0x47d   : > { %s818_s18 = scalar_lea.hbm %s7825_s5, %s2953_s30  ;;  %s6810_s29 = sld [smem:[#allocation9 + %s831_s8]] }
 0x47e   : > { %s4400_s12 = scalar_lea.hbm %s818_s18, 16  ;;  %p4403_p6 = scmp.lt.u32.totalorder %s818_s18, %s7825_s5 }
 0x47f   : > { %p4401_p5 = scmp.ne.s32.totalorder %s818_s18, %s4400_s12  ;;  %p4404_p7 = scmp.lt.u32.totalorder %s6059_s20, %s4400_s12 }
 0x480   : > { %p4406_p9 = scmp.lt.u32.totalorder %s4400_s12, %s818_s18 }
 0x481   : > { %p4405_p8 = por %p4404_p7, %p4403_p6 }
 0x483   : > { %p4407_p10 = por %p4406_p9, %p4405_p8 }
 0x485   : > { %p4408_p11 = pnand %p4407_p10, %p4401_p5 }
 0x487   : > { %4411 = shalt.err (!%p4408_p11)  }
 0x488   : > { %s4412_s17 = scalar_lea.vmem %s6793_s11, 16  ;;  %p4417_p13 = scmp.lt.s32.totalorder %s6793_s11, %s6037_s7 }
 0x489   : > { %p4413_p12 = scmp.ne.s32.totalorder %s6793_s11, %s4412_s17  ;;  %p4418_p0 = scmp.lt.s32.totalorder %s6068_s26, %s4412_s17 }
 0x48b   : > { %p4419_p1 = por %p4418_p0, %p4417_p13 }
 0x48d   : > { %p4420_p2 = pnand %p4419_p1, %p4413_p12 }
 0x48f   : > { %4423 = shalt.err (!%p4420_p2)  }
 0x490   : > { %830 = dma.hbm_to_vmem [thread:$0]  %s818_s18, 16, %s6793_s11, [#allocation5] }
 0x491   : > { %s847_s0 = sadd.s32 6, %s6637_s19  ;;  %s5808_s9 = smov [#allocation4 + $0x1d]  }
 0x492   : > { %s843_s10 = sshll.u32 %s5808_s9, 4  ;;  %s848_s16 = sld [smem:[#allocation9 + %s847_s0]]  ;;  %s844_s10 = int_to_ptr.vmem [resolvable:$true] %s843_s10 }
 0x493   : > { %s5809_s6 = smov [#allocation4 + $0x1e]   ;;  %s863_s30 = sadd.s32 7, %s6637_s19 }
 0x494   : > { %s859_s27 = sshll.u32 %s5809_s6, 4  ;;  %s2954_s8 = sshll.u32 %s6810_s29, 4  ;;  %s6825_s27 = int_to_ptr.vmem [resolvable:$true] %s859_s27 }
 0x495   : > { %s834_s12 = scalar_lea.hbm %s7825_s5, %s2954_s8  ;;  %s6830_s23 = sld [smem:[#allocation9 + %s863_s30]] }
 0x496   : > { %s4424_s13 = scalar_lea.hbm %s834_s12, 16  ;;  %p4427_p4 = scmp.lt.u32.totalorder %s834_s12, %s7825_s5 }
 0x497   : > { %p4425_p3 = scmp.ne.s32.totalorder %s834_s12, %s4424_s13  ;;  %p4428_p5 = scmp.lt.u32.totalorder %s6059_s20, %s4424_s13 }
 0x498   : > { %p4430_p7 = scmp.lt.u32.totalorder %s4424_s13, %s834_s12 }
 0x499   : > { %p4429_p6 = por %p4428_p5, %p4427_p4 }
 0x49b   : > { %p4431_p8 = por %p4430_p7, %p4429_p6 }
 0x49d   : > { %p4432_p9 = pnand %p4431_p8, %p4425_p3 }
 0x49f   : > { %4435 = shalt.err (!%p4432_p9)  }
 0x4a0   : > { %s4436_s19 = scalar_lea.vmem %s844_s10, 16  ;;  %p4441_p11 = scmp.lt.s32.totalorder %s844_s10, %s6037_s7 }
 0x4a1   : > { %p4437_p10 = scmp.ne.s32.totalorder %s844_s10, %s4436_s19  ;;  %p4442_p12 = scmp.lt.s32.totalorder %s6068_s26, %s4436_s19 }
 0x4a3   : > { %p4443_p13 = por %p4442_p12, %p4441_p11 }
 0x4a5   : > { %p4444_p0 = pnand %p4443_p13, %p4437_p10 }
 0x4a7   : > { %4447 = shalt.err (!%p4444_p0)  }
 0x4a8   : > { %846 = dma.hbm_to_vmem [thread:$0]  %s834_s12, 16, %s844_s10, [#allocation5] }
 0x4a9   : > { %s2955_s29 = sshll.u32 %s848_s16, 4  ;;  %s5810_s6 = smov [#allocation4 + $0x1f]  }
 0x4aa   : > { %s850_s9 = scalar_lea.hbm %s7825_s5, %s2955_s29  ;;  %s875_s30 = sshll.u32 %s5810_s6, 4  ;;  %s876_s30 = int_to_ptr.vmem [resolvable:$true] %s875_s30 }
 0x4ab   : > { %s4448_s8 = scalar_lea.hbm %s850_s9, 16  ;;  %p4451_p2 = scmp.lt.u32.totalorder %s850_s9, %s7825_s5 }
 0x4ac   : > { %p4449_p1 = scmp.ne.s32.totalorder %s850_s9, %s4448_s8  ;;  %p4452_p3 = scmp.lt.u32.totalorder %s6059_s20, %s4448_s8 }
 0x4ad   : > { %p4454_p5 = scmp.lt.u32.totalorder %s4448_s8, %s850_s9 }
 0x4ae   : > { %p4453_p4 = por %p4452_p3, %p4451_p2 }
 0x4b0   : > { %p4455_p6 = por %p4454_p5, %p4453_p4 }
 0x4b2   : > { %p4456_p7 = pnand %p4455_p6, %p4449_p1 }
 0x4b4   : > { %4459 = shalt.err (!%p4456_p7)  }
 0x4b5   : > { %s4460_s10 = scalar_lea.vmem %s6825_s27, 16  ;;  %p4465_p9 = scmp.lt.s32.totalorder %s6825_s27, %s6037_s7 }
 0x4b6   : > { %p4461_p8 = scmp.ne.s32.totalorder %s6825_s27, %s4460_s10  ;;  %p4466_p10 = scmp.lt.s32.totalorder %s6068_s26, %s4460_s10 }
 0x4b8   : > { %p4467_p11 = por %p4466_p10, %p4465_p9 }
 0x4ba   : > { %p4468_p12 = pnand %p4467_p11, %p4461_p8 }
 0x4bc   : > { %4471 = shalt.err (!%p4468_p12)  }
 0x4bd   : > { %862 = dma.hbm_to_vmem [thread:$0]  %s850_s9, 16, %s6825_s27, [#allocation5] }
 0x4be   : > { %s879_s16 = sadd.s32 4, %s5918_s2  ;;  %s2956_s12 = sshll.u32 %s6830_s23, 4 }
 0x4bf   : > { %s6853_s13 = sld [smem:[#allocation7 + %s879_s16]]  ;;  %s866_s19 = scalar_lea.hbm %s7825_s5, %s2956_s12 }
 0x4c0   : > { %s4472_s29 = scalar_lea.hbm %s866_s19, 16  ;;  %p4475_p0 = scmp.lt.u32.totalorder %s866_s19, %s7825_s5 }
 0x4c1   : > { %p4473_p13 = scmp.ne.s32.totalorder %s866_s19, %s4472_s29  ;;  %p4476_p1 = scmp.lt.u32.totalorder %s6059_s20, %s4472_s29 }
 0x4c2   : > { %p4478_p3 = scmp.lt.u32.totalorder %s4472_s29, %s866_s19 }
 0x4c3   : > { %p4477_p2 = por %p4476_p1, %p4475_p0 }
 0x4c5   : > { %p4479_p4 = por %p4478_p3, %p4477_p2 }
 0x4c7   : > { %p4480_p5 = pnand %p4479_p4, %p4473_p13 }
 0x4c9   : > { %4483 = shalt.err (!%p4480_p5)  }
 0x4ca   : > { %s4484_s27 = scalar_lea.vmem %s876_s30, 16  ;;  %p4489_p7 = scmp.lt.s32.totalorder %s876_s30, %s6037_s7 }
 0x4cb   : > { %p4485_p6 = scmp.ne.s32.totalorder %s876_s30, %s4484_s27  ;;  %p4490_p8 = scmp.lt.s32.totalorder %s6068_s26, %s4484_s27 }
 0x4cd   : > { %p4491_p9 = por %p4490_p8, %p4489_p7 }
 0x4cf   : > { %p4492_p10 = pnand %p4491_p9, %p4485_p6 }
 0x4d1   : > { %4495 = shalt.err (!%p4492_p10)  }
 0x4d2   : > { %878 = dma.hbm_to_vmem [thread:$0]  %s866_s19, 16, %s876_s30, [#allocation5] }
 0x4d3   : > { %s5811_s23 = smov [#allocation2 + $0x4]   ;;  %s6865_s6 = sadd.s32 512, %s5923_s15 }
 0x4d4   : > { %s891_s9 = sshll.u32 %s5811_s23, 4  ;;  %s6868_s8 = sld [smem:[#allocation8 + %s6865_s6]]  ;;  %s892_s9 = int_to_ptr.vmem [resolvable:$true] %s891_s9 }
 0x4d5   : > { %s7844_s21 = sadd.s32 1, %s6865_s6  ;;  %s2957_s22 = sshll.u32 %s6853_s13, 4 }
 0x4d6   : > { %s5812_s10 = smov [#allocation3 + $0x10]   ;;  %s882_s30 = scalar_lea.hbm %s7823_s3, %s2957_s22 }
 0x4d7   : > { %s907_s16 = sshll.u32 %s5812_s10, 4  ;;  %s4496_s18 = scalar_lea.hbm %s882_s30, 16  ;;  %s6875_s16 = int_to_ptr.vmem [resolvable:$true] %s907_s16 }
 0x4d8   : > { %p4497_p11 = scmp.ne.s32.totalorder %s882_s30, %s4496_s18  ;;  %p4499_p12 = scmp.lt.u32.totalorder %s882_s30, %s7823_s3 }
 0x4d9   : > { %p4500_p13 = scmp.lt.u32.totalorder %s5944_s1, %s4496_s18  ;;  %p4502_p1 = scmp.lt.u32.totalorder %s4496_s18, %s882_s30 }
 0x4db   : > { %p4501_p0 = por %p4500_p13, %p4499_p12 }
 0x4dd   : > { %p4503_p2 = por %p4502_p1, %p4501_p0 }
 0x4df   : > { %p4504_p3 = pnand %p4503_p2, %p4497_p11 }
 0x4e1   : > { %4507 = shalt.err (!%p4504_p3)  }
 0x4e2   : > { %s4508_s13 = scalar_lea.vmem %s892_s9, 16  ;;  %s7873_s17 = sld [smem:[#allocation224_spill]] }
 0x4e3   : > { %p4509_p4 = scmp.ne.s32.totalorder %s892_s9, %s4508_s13  ;;  %p4513_p5 = scmp.lt.s32.totalorder %s892_s9, %s5925_s14 }
 0x4e8   : > { %p4514_p6 = scmp.lt.s32.totalorder %s7873_s17, %s4508_s13 }
 0x4ea   : > { %p4515_p7 = por %p4514_p6, %p4513_p5 }
 0x4ec   : > { %p4516_p8 = pnand %p4515_p7, %p4509_p4 }
 0x4ee   : > { %4519 = shalt.err (!%p4516_p8)  }
 0x4ef   : > { %894 = dma.hbm_to_vmem [thread:$0]  %s882_s30, 16, %s892_s9, [#allocation5] }
 0x4f0   : > { %s6885_s0 = sld [smem:[#allocation8 + %s7844_s21]]  ;;  %s2959_s27 = sshll.u32 %s6868_s8, 4 }
 0x4f1   : > { %s5813_s23 = smov [#allocation3 + $0x11]   ;;  %s898_s11 = scalar_lea.hbm %s7824_s4, %s2959_s27 }
 0x4f2   : > { %s923_s22 = sshll.u32 %s5813_s23, 4  ;;  %s4520_s18 = scalar_lea.hbm %s898_s11, 16  ;;  %s6891_s22 = int_to_ptr.vmem [resolvable:$true] %s923_s22 }
 0x4f3   : > { %p4521_p9 = scmp.ne.s32.totalorder %s898_s11, %s4520_s18  ;;  %p4523_p10 = scmp.lt.u32.totalorder %s898_s11, %s7824_s4 }
 0x4f4   : > { %p4524_p11 = scmp.lt.u32.totalorder %s5972_s28, %s4520_s18  ;;  %p4526_p13 = scmp.lt.u32.totalorder %s4520_s18, %s898_s11 }
 0x4f6   : > { %p4525_p12 = por %p4524_p11, %p4523_p10 }
 0x4f8   : > { %p4527_p0 = por %p4526_p13, %p4525_p12 }
 0x4fa   : > { %p4528_p1 = pnand %p4527_p0, %p4521_p9 }
 0x4fc   : > { %4531 = shalt.err (!%p4528_p1)  }
 0x4fd   : > { %s4532_s9 = scalar_lea.vmem %s6875_s16, 16  ;;  %p4537_p3 = scmp.lt.s32.totalorder %s6875_s16, %s5939_s24 }
 0x4fe   : > { %p4533_p2 = scmp.ne.s32.totalorder %s6875_s16, %s4532_s9  ;;  %p4538_p4 = scmp.lt.s32.totalorder %s7870_s25, %s4532_s9 }
 0x500   : > { %p4539_p5 = por %p4538_p4, %p4537_p3 }
 0x502   : > { %p4540_p6 = pnand %p4539_p5, %p4533_p2 }
 0x504   : > { %4543 = shalt.err (!%p4540_p6)  }
 0x505   : > { %910 = dma.hbm_to_vmem [thread:$0]  %s898_s11, 16, %s6875_s16, [#allocation5] }
 0x506   : > { %s7845_s8 = sadd.s32 2, %s6865_s6  ;;  %s5814_s13 = smov [#allocation3 + $0x12]  }
 0x507   : > { %s6906_s30 = sld [smem:[#allocation8 + %s7845_s8]]  ;;  %s939_s27 = sshll.u32 %s5814_s13, 4  ;;  %s6909_s27 = int_to_ptr.vmem [resolvable:$true] %s939_s27 }
 0x508   : > { %s2960_s23 = sshll.u32 %s6885_s0, 4  ;;  %s7846_s19 = sadd.s32 3, %s6865_s6 }
 0x509   : > { %s914_s18 = scalar_lea.hbm %s7824_s4, %s2960_s23 }
 0x50a   : > { %s4544_s29 = scalar_lea.hbm %s914_s18, 16  ;;  %p4547_p8 = scmp.lt.u32.totalorder %s914_s18, %s7824_s4 }
 0x50b   : > { %p4545_p7 = scmp.ne.s32.totalorder %s914_s18, %s4544_s29  ;;  %p4548_p9 = scmp.lt.u32.totalorder %s5972_s28, %s4544_s29 }
 0x50c   : > { %p4550_p11 = scmp.lt.u32.totalorder %s4544_s29, %s914_s18 }
 0x50d   : > { %p4549_p10 = por %p4548_p9, %p4547_p8 }
 0x50f   : > { %p4551_p12 = por %p4550_p11, %p4549_p10 }
 0x511   : > { %p4552_p13 = pnand %p4551_p12, %p4545_p7 }
 0x513   : > { %4555 = shalt.err (!%p4552_p13)  }
 0x514   : > { %s4556_s16 = scalar_lea.vmem %s6891_s22, 16  ;;  %p4561_p1 = scmp.lt.s32.totalorder %s6891_s22, %s5939_s24 }
 0x515   : > { %p4557_p0 = scmp.ne.s32.totalorder %s6891_s22, %s4556_s16  ;;  %p4562_p2 = scmp.lt.s32.totalorder %s7870_s25, %s4556_s16 }
 0x517   : > { %p4563_p3 = por %p4562_p2, %p4561_p1 }
 0x519   : > { %p4564_p4 = pnand %p4563_p3, %p4557_p0 }
 0x51b   : > { %4567 = shalt.err (!%p4564_p4)  }
 0x51c   : > { %926 = dma.hbm_to_vmem [thread:$0]  %s914_s18, 16, %s6891_s22, [#allocation5] }
 0x51d   : > { %s6927_s21 = sld [smem:[#allocation8 + %s7846_s19]]  ;;  %s5815_s0 = smov [#allocation3 + $0x13]  }
 0x51e   : > { %s955_s11 = sshll.u32 %s5815_s0, 4  ;;  %s6930_s13 = sld [smem:[#allocation9 + %s6865_s6]]  ;;  %s6933_s11 = int_to_ptr.vmem [resolvable:$true] %s955_s11 }
 0x51f   : > { %s2961_s23 = sshll.u32 %s6906_s30, 4 }
 0x520   : > { %s930_s29 = scalar_lea.hbm %s7824_s4, %s2961_s23 }
 0x521   : > { %s4568_s9 = scalar_lea.hbm %s930_s29, 16  ;;  %p4571_p6 = scmp.lt.u32.totalorder %s930_s29, %s7824_s4 }
 0x522   : > { %p4569_p5 = scmp.ne.s32.totalorder %s930_s29, %s4568_s9  ;;  %p4572_p7 = scmp.lt.u32.totalorder %s5972_s28, %s4568_s9 }
 0x523   : > { %p4574_p9 = scmp.lt.u32.totalorder %s4568_s9, %s930_s29 }
 0x524   : > { %p4573_p8 = por %p4572_p7, %p4571_p6 }
 0x526   : > { %p4575_p10 = por %p4574_p9, %p4573_p8 }
 0x528   : > { %p4576_p11 = pnand %p4575_p10, %p4569_p5 }
 0x52a   : > { %4579 = shalt.err (!%p4576_p11)  }
 0x52b   : > { %s4580_s22 = scalar_lea.vmem %s6909_s27, 16  ;;  %p4585_p13 = scmp.lt.s32.totalorder %s6909_s27, %s5939_s24 }
 0x52c   : > { %p4581_p12 = scmp.ne.s32.totalorder %s6909_s27, %s4580_s22  ;;  %p4586_p0 = scmp.lt.s32.totalorder %s7870_s25, %s4580_s22 }
 0x52e   : > { %p4587_p1 = por %p4586_p0, %p4585_p13 }
 0x530   : > { %p4588_p2 = pnand %p4587_p1, %p4581_p12 }
 0x532   : > { %4591 = shalt.err (!%p4588_p2)  }
 0x533   : > { %942 = dma.hbm_to_vmem [thread:$0]  %s930_s29, 16, %s6909_s27, [#allocation5] }
 0x534   : > { %s5816_s8 = smov [#allocation4 + $0x20]   ;;  %s7874_s18 = sadd.s32 1, %s6865_s6 }
 0x535   : > { %s970_s30 = sshll.u32 %s5816_s8, 4  ;;  %s6950_s0 = sld [smem:[#allocation9 + %s7874_s18]]  ;;  %s6953_s30 = int_to_ptr.vmem [resolvable:$true] %s970_s30 }
 0x536   : > { %s2962_s23 = sshll.u32 %s6927_s21, 4  ;;  %s2963_s16 = sshll.u32 %s6930_s13, 4 }
 0x537   : > { %s946_s9 = scalar_lea.hbm %s7824_s4, %s2962_s23 }
 0x538   : > { %s4592_s22 = scalar_lea.hbm %s946_s9, 16  ;;  %p4595_p4 = scmp.lt.u32.totalorder %s946_s9, %s7824_s4 }
 0x539   : > { %p4593_p3 = scmp.ne.s32.totalorder %s946_s9, %s4592_s22  ;;  %p4596_p5 = scmp.lt.u32.totalorder %s5972_s28, %s4592_s22 }
 0x53a   : > { %p4598_p7 = scmp.lt.u32.totalorder %s4592_s22, %s946_s9 }
 0x53b   : > { %p4597_p6 = por %p4596_p5, %p4595_p4 }
 0x53d   : > { %p4599_p8 = por %p4598_p7, %p4597_p6 }
 0x53f   : > { %p4600_p9 = pnand %p4599_p8, %p4593_p3 }
 0x541   : > { %4603 = shalt.err (!%p4600_p9)  }
 0x542   : > { %s4604_s27 = scalar_lea.vmem %s6933_s11, 16  ;;  %p4609_p11 = scmp.lt.s32.totalorder %s6933_s11, %s5939_s24 }
 0x543   : > { %p4605_p10 = scmp.ne.s32.totalorder %s6933_s11, %s4604_s27  ;;  %p4610_p12 = scmp.lt.s32.totalorder %s7870_s25, %s4604_s27 }
 0x545   : > { %p4611_p13 = por %p4610_p12, %p4609_p11 }
 0x547   : > { %p4612_p0 = pnand %p4611_p13, %p4605_p10 }
 0x549   : > { %4615 = shalt.err (!%p4612_p0)  }
 0x54a   : > { %958 = dma.hbm_to_vmem [thread:$0]  %s946_s9, 16, %s6933_s11, [#allocation5] }
 0x54b   : > { %s961_s21 = scalar_lea.hbm %s7825_s5, %s2963_s16 }
 0x54c   : > { %s4616_s13 = scalar_lea.hbm %s961_s21, 16  ;;  %p4619_p2 = scmp.lt.u32.totalorder %s961_s21, %s7825_s5 }
 0x54d   : > { %p4617_p1 = scmp.ne.s32.totalorder %s961_s21, %s4616_s13  ;;  %p4620_p3 = scmp.lt.u32.totalorder %s6059_s20, %s4616_s13 }
 0x54e   : > { %p4622_p5 = scmp.lt.u32.totalorder %s4616_s13, %s961_s21 }
 0x54f   : > { %p4621_p4 = por %p4620_p3, %p4619_p2 }
 0x551   : > { %p4623_p6 = por %p4622_p5, %p4621_p4 }
 0x553   : > { %p4624_p7 = pnand %p4623_p6, %p4617_p1 }
 0x555   : > { %4627 = shalt.err (!%p4624_p7)  }
 0x556   : > { %s4628_s11 = scalar_lea.vmem %s6953_s30, 16  ;;  %p4633_p9 = scmp.lt.s32.totalorder %s6953_s30, %s6037_s7 }
 0x557   : > { %p4629_p8 = scmp.ne.s32.totalorder %s6953_s30, %s4628_s11  ;;  %p4634_p10 = scmp.lt.s32.totalorder %s6068_s26, %s4628_s11 }
 0x559   : > { %p4635_p11 = por %p4634_p10, %p4633_p9 }
 0x55b   : > { %p4636_p12 = pnand %p4635_p11, %p4629_p8 }
 0x55d   : > { %4639 = shalt.err (!%p4636_p12)  }
 0x55e   : > { %973 = dma.hbm_to_vmem [thread:$0]  %s961_s21, 16, %s6953_s30, [#allocation5] }
 0x55f   : > { %s2964_s18 = sshll.u32 %s6950_s0, 4  ;;  %s5817_s23 = smov [#allocation4 + $0x21]  }
 0x560   : > { %s985_s10 = sshll.u32 %s5817_s23, 4  ;;  %s976_s16 = scalar_lea.hbm %s7825_s5, %s2964_s18  ;;  %s986_s10 = int_to_ptr.vmem [resolvable:$true] %s985_s10 }
 0x561   : > { %s4640_s22 = scalar_lea.hbm %s976_s16, 16  ;;  %p4643_p0 = scmp.lt.u32.totalorder %s976_s16, %s7825_s5 }
 0x562   : > { %p4641_p13 = scmp.ne.s32.totalorder %s976_s16, %s4640_s22  ;;  %p4644_p1 = scmp.lt.u32.totalorder %s6059_s20, %s4640_s22 }
 0x563   : > { %p4646_p3 = scmp.lt.u32.totalorder %s4640_s22, %s976_s16 }
 0x564   : > { %p4645_p2 = por %p4644_p1, %p4643_p0 }
 0x566   : > { %p4647_p4 = por %p4646_p3, %p4645_p2 }
 0x568   : > { %p4648_p5 = pnand %p4647_p4, %p4641_p13 }
 0x56a   : > { %4651 = shalt.err (!%p4648_p5)  }
 0x56b   : > { %s4652_s30 = scalar_lea.vmem %s986_s10, 16  ;;  %p4657_p7 = scmp.lt.s32.totalorder %s986_s10, %s6037_s7 }
 0x56c   : > { %p4653_p6 = scmp.ne.s32.totalorder %s986_s10, %s4652_s30  ;;  %p4658_p8 = scmp.lt.s32.totalorder %s6068_s26, %s4652_s30 }
 0x56e   : > { %p4659_p9 = por %p4658_p8, %p4657_p7 }
 0x570   : > { %p4660_p10 = pnand %p4659_p9, %p4653_p6 }
 0x572   : > { %4663 = shalt.err (!%p4660_p10)  }
 0x573   : > { %988 = dma.hbm_to_vmem [thread:$0]  %s976_s16, 16, %s986_s10, [#allocation5] }
 0x574   : > { %s7875_s0 = sadd.s32 2, %s6865_s6  ;;  %s5818_s21 = smov [#allocation4 + $0x22]  }
 0x575   : > { %s989_s19 = sld [smem:[#allocation9 + %s7875_s0]]  ;;  %s1000_s13 = sshll.u32 %s5818_s21, 4  ;;  %s1001_s13 = int_to_ptr.vmem [resolvable:$true] %s1000_s13 }
 0x576   : > { %s7876_s29 = sadd.s32 3, %s6865_s6  ;;  %s5819_s11 = smov [#allocation4 + $0x23]  }
 0x577   : > { %s6996_s8 = sld [smem:[#allocation9 + %s7876_s29]]  ;;  %s1015_s18 = sshll.u32 %s5819_s11, 4  ;;  %s6999_s18 = int_to_ptr.vmem [resolvable:$true] %s1015_s18 }
 0x578   : > { %s1019_s23 = sadd.s32 4, %s6865_s6  ;;  %s1035_s12 = sadd.s32 5, %s6865_s6 }
 0x579   : > { %s7001_s10 = sld [smem:[#allocation9 + %s1019_s23]]  ;;  %s5820_s16 = smov [#allocation4 + $0x24]  }
 0x57a   : > { %s1031_s22 = sshll.u32 %s5820_s16, 4  ;;  %s7017_s22 = int_to_ptr.vmem [resolvable:$true] %s1031_s22 }
 0x57b   : > { %s2965_s9 = sshll.u32 %s989_s19, 4 }
 0x57c   : > { %s991_s30 = scalar_lea.hbm %s7825_s5, %s2965_s9 }
 0x57d   : > { %s2966_s0 = sshll.u32 %s6996_s8, 4  ;;  %s4664_s21 = scalar_lea.hbm %s991_s30, 16 }
 0x57e   : > { %p4665_p11 = scmp.ne.s32.totalorder %s991_s30, %s4664_s21  ;;  %p4667_p12 = scmp.lt.u32.totalorder %s991_s30, %s7825_s5 }
 0x57f   : > { %p4668_p13 = scmp.lt.u32.totalorder %s6059_s20, %s4664_s21  ;;  %p4670_p1 = scmp.lt.u32.totalorder %s4664_s21, %s991_s30 }
 0x581   : > { %p4669_p0 = por %p4668_p13, %p4667_p12 }
 0x583   : > { %p4671_p2 = por %p4670_p1, %p4669_p0 }
 0x585   : > { %p4672_p3 = pnand %p4671_p2, %p4665_p11 }
 0x587   : > { %4675 = shalt.err (!%p4672_p3)  }
 0x588   : > { %s4676_s19 = scalar_lea.vmem %s1001_s13, 16  ;;  %p4681_p5 = scmp.lt.s32.totalorder %s1001_s13, %s6037_s7 }
 0x589   : > { %p4677_p4 = scmp.ne.s32.totalorder %s1001_s13, %s4676_s19  ;;  %p4682_p6 = scmp.lt.s32.totalorder %s6068_s26, %s4676_s19 }
 0x58b   : > { %p4683_p7 = por %p4682_p6, %p4681_p5 }
 0x58d   : > { %p4684_p8 = pnand %p4683_p7, %p4677_p4 }
 0x58f   : > { %4687 = shalt.err (!%p4684_p8)  }
 0x590   : > { %1003 = dma.hbm_to_vmem [thread:$0]  %s991_s30, 16, %s1001_s13, [#allocation5] }
 0x591   : > { %s1006_s25 = scalar_lea.hbm %s7825_s5, %s2966_s0 }
 0x592   : > { %s4688_s23 = scalar_lea.hbm %s1006_s25, 16  ;;  %p4691_p10 = scmp.lt.u32.totalorder %s1006_s25, %s7825_s5 }
 0x593   : > { %p4689_p9 = scmp.ne.s32.totalorder %s1006_s25, %s4688_s23  ;;  %p4692_p11 = scmp.lt.u32.totalorder %s6059_s20, %s4688_s23 }
 0x594   : > { %p4694_p13 = scmp.lt.u32.totalorder %s4688_s23, %s1006_s25 }
 0x595   : > { %p4693_p12 = por %p4692_p11, %p4691_p10 }
 0x597   : > { %p4695_p0 = por %p4694_p13, %p4693_p12 }
 0x599   : > { %p4696_p1 = pnand %p4695_p0, %p4689_p9 }
 0x59b   : > { %4699 = shalt.err (!%p4696_p1)  }
 0x59c   : > { %s4700_s13 = scalar_lea.vmem %s6999_s18, 16  ;;  %p4705_p3 = scmp.lt.s32.totalorder %s6999_s18, %s6037_s7 }
 0x59d   : > { %p4701_p2 = scmp.ne.s32.totalorder %s6999_s18, %s4700_s13  ;;  %p4706_p4 = scmp.lt.s32.totalorder %s6068_s26, %s4700_s13 }
 0x59f   : > { %p4707_p5 = por %p4706_p4, %p4705_p3 }
 0x5a1   : > { %p4708_p6 = pnand %p4707_p5, %p4701_p2 }
 0x5a3   : > { %4711 = shalt.err (!%p4708_p6)  }
 0x5a4   : > { %1018 = dma.hbm_to_vmem [thread:$0]  %s1006_s25, 16, %s6999_s18, [#allocation5] }
 0x5a5   : > { %s2967_s27 = sshll.u32 %s7001_s10, 4  ;;  %s7032_s17 = sld [smem:[#allocation9 + %s1035_s12]] }
 0x5a6   : > { %s1022_s21 = scalar_lea.hbm %s7825_s5, %s2967_s27 }
 0x5a7   : > { %s4712_s29 = scalar_lea.hbm %s1022_s21, 16  ;;  %p4715_p8 = scmp.lt.u32.totalorder %s1022_s21, %s7825_s5 }
 0x5a8   : > { %p4713_p7 = scmp.ne.s32.totalorder %s1022_s21, %s4712_s29  ;;  %p4716_p9 = scmp.lt.u32.totalorder %s6059_s20, %s4712_s29 }
 0x5a9   : > { %p4718_p11 = scmp.lt.u32.totalorder %s4712_s29, %s1022_s21 }
 0x5aa   : > { %p4717_p10 = por %p4716_p9, %p4715_p8 }
 0x5ac   : > { %p4719_p12 = por %p4718_p11, %p4717_p10 }
 0x5ae   : > { %p4720_p13 = pnand %p4719_p12, %p4713_p7 }
 0x5b0   : > { %4723 = shalt.err (!%p4720_p13)  }
 0x5b1   : > { %s4724_s18 = scalar_lea.vmem %s7017_s22, 16  ;;  %p4729_p1 = scmp.lt.s32.totalorder %s7017_s22, %s6037_s7 }
 0x5b2   : > { %p4725_p0 = scmp.ne.s32.totalorder %s7017_s22, %s4724_s18  ;;  %p4730_p2 = scmp.lt.s32.totalorder %s6068_s26, %s4724_s18 }
 0x5b4   : > { %p4731_p3 = por %p4730_p2, %p4729_p1 }
 0x5b6   : > { %p4732_p4 = pnand %p4731_p3, %p4725_p0 }
 0x5b8   : > { %4735 = shalt.err (!%p4732_p4)  }
 0x5b9   : > { %1034 = dma.hbm_to_vmem [thread:$0]  %s1022_s21, 16, %s7017_s22, [#allocation5] }
 0x5ba   : > { %s5821_s10 = smov [#allocation4 + $0x25]   ;;  %s1051_s11 = sadd.s32 6, %s6865_s6 }
 0x5bb   : > { %s1047_s12 = sshll.u32 %s5821_s10, 4  ;;  %s7048_s25 = sld [smem:[#allocation9 + %s1051_s11]]  ;;  %s1048_s12 = int_to_ptr.vmem [resolvable:$true] %s1047_s12 }
 0x5bc   : > { %s1067_s23 = sadd.s32 7, %s6865_s6  ;;  %s2968_s9 = sshll.u32 %s7032_s17, 4 }
 0x5bd   : > { %s5822_s16 = smov [#allocation4 + $0x26]   ;;  %s1038_s0 = scalar_lea.hbm %s7825_s5, %s2968_s9 }
 0x5be   : > { %s1063_s13 = sshll.u32 %s5822_s16, 4  ;;  %s4736_s29 = scalar_lea.hbm %s1038_s0, 16  ;;  %s7055_s13 = int_to_ptr.vmem [resolvable:$true] %s1063_s13 }
 0x5bf   : > { %p4737_p5 = scmp.ne.s32.totalorder %s1038_s0, %s4736_s29  ;;  %p4739_p6 = scmp.lt.u32.totalorder %s1038_s0, %s7825_s5 }
 0x5c0   : > { %p4740_p7 = scmp.lt.u32.totalorder %s6059_s20, %s4736_s29  ;;  %p4742_p9 = scmp.lt.u32.totalorder %s4736_s29, %s1038_s0 }
 0x5c2   : > { %p4741_p8 = por %p4740_p7, %p4739_p6 }
 0x5c4   : > { %p4743_p10 = por %p4742_p9, %p4741_p8 }
 0x5c6   : > { %p4744_p11 = pnand %p4743_p10, %p4737_p5 }
 0x5c8   : > { %4747 = shalt.err (!%p4744_p11)  }
 0x5c9   : > { %s4748_s6 = scalar_lea.vmem %s1048_s12, 16  ;;  %p4753_p13 = scmp.lt.s32.totalorder %s1048_s12, %s6037_s7 }
 0x5ca   : > { %p4749_p12 = scmp.ne.s32.totalorder %s1048_s12, %s4748_s6  ;;  %p4754_p0 = scmp.lt.s32.totalorder %s6068_s26, %s4748_s6 }
 0x5cc   : > { %p4755_p1 = por %p4754_p0, %p4753_p13 }
 0x5ce   : > { %p4756_p2 = pnand %p4755_p1, %p4749_p12 }
 0x5d0   : > { %4759 = shalt.err (!%p4756_p2)  }
 0x5d1   : > { %1050 = dma.hbm_to_vmem [thread:$0]  %s1038_s0, 16, %s1048_s12, [#allocation5] }
 0x5d2   : > { %s7063_s17 = sld [smem:[#allocation9 + %s1067_s23]]  ;;  %s2969_s21 = sshll.u32 %s7048_s25, 4 }
 0x5d3   : > { %s5823_s8 = smov [#allocation4 + $0x27]   ;;  %s1054_s9 = scalar_lea.hbm %s7825_s5, %s2969_s21 }
 0x5d4   : > { %s1079_s18 = sshll.u32 %s5823_s8, 4  ;;  %s4760_s16 = scalar_lea.hbm %s1054_s9, 16  ;;  %s7069_s18 = int_to_ptr.vmem [resolvable:$true] %s1079_s18 }
 0x5d5   : > { %p4761_p3 = scmp.ne.s32.totalorder %s1054_s9, %s4760_s16  ;;  %p4763_p4 = scmp.lt.u32.totalorder %s1054_s9, %s7825_s5 }
 0x5d6   : > { %p4764_p5 = scmp.lt.u32.totalorder %s6059_s20, %s4760_s16  ;;  %p4766_p7 = scmp.lt.u32.totalorder %s4760_s16, %s1054_s9 }
 0x5d8   : > { %p4765_p6 = por %p4764_p5, %p4763_p4 }
 0x5da   : > { %p4767_p8 = por %p4766_p7, %p4765_p6 }
 0x5dc   : > { %p4768_p9 = pnand %p4767_p8, %p4761_p3 }
 0x5de   : > { %4771 = shalt.err (!%p4768_p9)  }
 0x5df   : > { %s4772_s12 = scalar_lea.vmem %s7055_s13, 16  ;;  %p4777_p11 = scmp.lt.s32.totalorder %s7055_s13, %s6037_s7 }
 0x5e0   : > { %p4773_p10 = scmp.ne.s32.totalorder %s7055_s13, %s4772_s12  ;;  %p4778_p12 = scmp.lt.s32.totalorder %s6068_s26, %s4772_s12 }
 0x5e2   : > { %p4779_p13 = por %p4778_p12, %p4777_p11 }
 0x5e4   : > { %p4780_p0 = pnand %p4779_p13, %p4773_p10 }
 0x5e6   : > { %4783 = shalt.err (!%p4780_p0)  }
 0x5e7   : > { %1066 = dma.hbm_to_vmem [thread:$0]  %s1054_s9, 16, %s7055_s13, [#allocation5] }
 0x5e8   : > { %s1083_s25 = sadd.s32 5, %s5918_s2  ;;  %s5824_s0 = smov [#allocation2 + $0x5]  }
 0x5e9   : > { %s7082_s23 = sld [smem:[#allocation7 + %s1083_s25]]  ;;  %s1095_s29 = sshll.u32 %s5824_s0, 4  ;;  %s7085_s29 = int_to_ptr.vmem [resolvable:$true] %s1095_s29 }
 0x5ea   : > { %s2970_s19 = sshll.u32 %s7063_s17, 4  ;;  %s7091_s8 = sadd.s32 640, %s5923_s15 }
 0x5eb   : > { %s1070_s21 = scalar_lea.hbm %s7825_s5, %s2970_s19 }
 0x5ec   : > { %s4784_s10 = scalar_lea.hbm %s1070_s21, 16  ;;  %p4787_p2 = scmp.lt.u32.totalorder %s1070_s21, %s7825_s5 }
 0x5ed   : > { %p4785_p1 = scmp.ne.s32.totalorder %s1070_s21, %s4784_s10  ;;  %p4788_p3 = scmp.lt.u32.totalorder %s6059_s20, %s4784_s10 }
 0x5ee   : > { %p4790_p5 = scmp.lt.u32.totalorder %s4784_s10, %s1070_s21 }
 0x5ef   : > { %p4789_p4 = por %p4788_p3, %p4787_p2 }
 0x5f1   : > { %p4791_p6 = por %p4790_p5, %p4789_p4 }
 0x5f3   : > { %p4792_p7 = pnand %p4791_p6, %p4785_p1 }
 0x5f5   : > { %4795 = shalt.err (!%p4792_p7)  }
 0x5f6   : > { %s4796_s13 = scalar_lea.vmem %s7069_s18, 16  ;;  %p4801_p9 = scmp.lt.s32.totalorder %s7069_s18, %s6037_s7 }
 0x5f7   : > { %p4797_p8 = scmp.ne.s32.totalorder %s7069_s18, %s4796_s13  ;;  %p4802_p10 = scmp.lt.s32.totalorder %s6068_s26, %s4796_s13 }
 0x5f9   : > { %p4803_p11 = por %p4802_p10, %p4801_p9 }
 0x5fb   : > { %p4804_p12 = pnand %p4803_p11, %p4797_p8 }
 0x5fd   : > { %4807 = shalt.err (!%p4804_p12)  }
 0x5fe   : > { %1082 = dma.hbm_to_vmem [thread:$0]  %s1070_s21, 16, %s7069_s18, [#allocation5] }
 0x5ff   : > { %s7104_s17 = sld [smem:[#allocation8 + %s7091_s8]]  ;;  %s5825_s9 = smov [#allocation3 + $0x14]  }
 0x600   : > { %s1111_s27 = sshll.u32 %s5825_s9, 4  ;;  %s1115_s30 = sadd.s32 1, %s7091_s8  ;;  %s7108_s27 = int_to_ptr.vmem [resolvable:$true] %s1111_s27 }
 0x601   : > { %s2971_s12 = sshll.u32 %s7082_s23, 4  ;;  %s7115_s22 = sld [smem:[#allocation8 + %s1115_s30]] }
 0x602   : > { %s1086_s19 = scalar_lea.hbm %s7823_s3, %s2971_s12 }
 0x603   : > { %s4808_s6 = scalar_lea.hbm %s1086_s19, 16  ;;  %p4811_p0 = scmp.lt.u32.totalorder %s1086_s19, %s7823_s3 }
 0x604   : > { %p4809_p13 = scmp.ne.s32.totalorder %s1086_s19, %s4808_s6  ;;  %p4812_p1 = scmp.lt.u32.totalorder %s5944_s1, %s4808_s6 }
 0x605   : > { %p4814_p3 = scmp.lt.u32.totalorder %s4808_s6, %s1086_s19 }
 0x606   : > { %p4813_p2 = por %p4812_p1, %p4811_p0 }
 0x608   : > { %p4815_p4 = por %p4814_p3, %p4813_p2 }
 0x60a   : > { %p4816_p5 = pnand %p4815_p4, %p4809_p13 }
 0x60c   : > { %4819 = shalt.err (!%p4816_p5)  }
 0x60d   : > { %s7877_s18 = sld [smem:[#allocation224_spill]]  ;;  %s4820_s23 = scalar_lea.vmem %s7085_s29, 16 }
 0x60e   : > { %p4821_p6 = scmp.ne.s32.totalorder %s7085_s29, %s4820_s23  ;;  %p4825_p7 = scmp.lt.s32.totalorder %s7085_s29, %s5925_s14 }
 0x613   : > { %p4826_p8 = scmp.lt.s32.totalorder %s7877_s18, %s4820_s23 }
 0x615   : > { %p4827_p9 = por %p4826_p8, %p4825_p7 }
 0x617   : > { %p4828_p10 = pnand %p4827_p9, %p4821_p6 }
 0x619   : > { %4831 = shalt.err (!%p4828_p10)  }
 0x61a   : > { %1098 = dma.hbm_to_vmem [thread:$0]  %s1086_s19, 16, %s7085_s29, [#allocation5] }
 0x61b   : > { %s7848_s21 = sadd.s32 2, %s7091_s8  ;;  %s2973_s16 = sshll.u32 %s7104_s17, 4 }
 0x61c   : > { %s5826_s13 = smov [#allocation3 + $0x15]   ;;  %s1102_s0 = scalar_lea.hbm %s7824_s4, %s2973_s16 }
 0x61d   : > { %s1127_s9 = sshll.u32 %s5826_s13, 4  ;;  %s4832_s6 = scalar_lea.hbm %s1102_s0, 16  ;;  %s7132_s9 = int_to_ptr.vmem [resolvable:$true] %s1127_s9 }
 0x61e   : > { %p4833_p11 = scmp.ne.s32.totalorder %s1102_s0, %s4832_s6  ;;  %p4835_p12 = scmp.lt.u32.totalorder %s1102_s0, %s7824_s4 }
 0x61f   : > { %p4836_p13 = scmp.lt.u32.totalorder %s5972_s28, %s4832_s6  ;;  %p4838_p1 = scmp.lt.u32.totalorder %s4832_s6, %s1102_s0 }
 0x621   : > { %p4837_p0 = por %p4836_p13, %p4835_p12 }
 0x623   : > { %p4839_p2 = por %p4838_p1, %p4837_p0 }
 0x625   : > { %p4840_p3 = pnand %p4839_p2, %p4833_p11 }
 0x627   : > { %4843 = shalt.err (!%p4840_p3)  }
 0x628   : > { %s7878_s29 = sld [smem:[#allocation225_spill]]  ;;  %s4844_s17 = scalar_lea.vmem %s7108_s27, 16 }
 0x629   : > { %p4845_p4 = scmp.ne.s32.totalorder %s7108_s27, %s4844_s17  ;;  %p4849_p5 = scmp.lt.s32.totalorder %s7108_s27, %s5939_s24 }
 0x62e   : > { %p4850_p6 = scmp.lt.s32.totalorder %s7878_s29, %s4844_s17 }
 0x630   : > { %p4851_p7 = por %p4850_p6, %p4849_p5 }
 0x632   : > { %p4852_p8 = pnand %p4851_p7, %p4845_p4 }
 0x634   : > { %4855 = shalt.err (!%p4852_p8)  }
 0x635   : > { %1114 = dma.hbm_to_vmem [thread:$0]  %s1102_s0, 16, %s7108_s27, [#allocation5] }
 0x636   : > { %s2974_s19 = sshll.u32 %s7115_s22, 4  ;;  %s7147_s23 = sld [smem:[#allocation8 + %s7848_s21]] }
 0x637   : > { %s1118_s12 = scalar_lea.hbm %s7824_s4, %s2974_s19 }
 0x638   : > { %s4856_s25 = scalar_lea.hbm %s1118_s12, 16  ;;  %p4859_p10 = scmp.lt.u32.totalorder %s1118_s12, %s7824_s4 }
 0x639   : > { %p4857_p9 = scmp.ne.s32.totalorder %s1118_s12, %s4856_s25  ;;  %p4860_p11 = scmp.lt.u32.totalorder %s5972_s28, %s4856_s25 }
 0x63a   : > { %p4862_p13 = scmp.lt.u32.totalorder %s4856_s25, %s1118_s12 }
 0x63b   : > { %p4861_p12 = por %p4860_p11, %p4859_p10 }
 0x63d   : > { %p4863_p0 = por %p4862_p13, %p4861_p12 }
 0x63f   : > { %p4864_p1 = pnand %p4863_p0, %p4857_p9 }
 0x641   : > { %4867 = shalt.err (!%p4864_p1)  }
 0x642   : > { %s4868_s27 = scalar_lea.vmem %s7132_s9, 16  ;;  %p4873_p3 = scmp.lt.s32.totalorder %s7132_s9, %s5939_s24 }
 0x643   : > { %p4869_p2 = scmp.ne.s32.totalorder %s7132_s9, %s4868_s27  ;;  %p4874_p4 = scmp.lt.s32.totalorder %s7878_s29, %s4868_s27 }
 0x645   : > { %p4875_p5 = por %p4874_p4, %p4873_p3 }
 0x647   : > { %p4876_p6 = pnand %p4875_p5, %p4869_p2 }
 0x649   : > { %4879 = shalt.err (!%p4876_p6)  }
 0x64a   : > { %1130 = dma.hbm_to_vmem [thread:$0]  %s1118_s12, 16, %s7132_s9, [#allocation5] }
 0x64b   : > { %s5827_s22 = smov [#allocation3 + $0x16]   ;;  %s7849_s11 = sadd.s32 3, %s7091_s8 }
 0x64c   : > { %s1143_s0 = sshll.u32 %s5827_s22, 4  ;;  %s7165_s17 = sld [smem:[#allocation8 + %s7849_s11]]  ;;  %s1144_s0 = int_to_ptr.vmem [resolvable:$true] %s1143_s0 }
 0x64d   : > { %s7168_s19 = sld [smem:[#allocation9 + %s7091_s8]]  ;;  %s2975_s16 = sshll.u32 %s7147_s23, 4 }
 0x64e   : > { %s5828_s13 = smov [#allocation3 + $0x17]   ;;  %s1134_s27 = scalar_lea.hbm %s7824_s4, %s2975_s16 }
 0x64f   : > { %s1159_s25 = sshll.u32 %s5828_s13, 4  ;;  %s4880_s21 = scalar_lea.hbm %s1134_s27, 16  ;;  %s7174_s25 = int_to_ptr.vmem [resolvable:$true] %s1159_s25 }
 0x650   : > { %p4881_p7 = scmp.ne.s32.totalorder %s1134_s27, %s4880_s21  ;;  %p4883_p8 = scmp.lt.u32.totalorder %s1134_s27, %s7824_s4 }
 0x651   : > { %p4884_p9 = scmp.lt.u32.totalorder %s5972_s28, %s4880_s21  ;;  %p4886_p11 = scmp.lt.u32.totalorder %s4880_s21, %s1134_s27 }
 0x653   : > { %p4885_p10 = por %p4884_p9, %p4883_p8 }
 0x655   : > { %p4887_p12 = por %p4886_p11, %p4885_p10 }
 0x657   : > { %p4888_p13 = pnand %p4887_p12, %p4881_p7 }
 0x659   : > { %4891 = shalt.err (!%p4888_p13)  }
 0x65a   : > { %s4892_s23 = scalar_lea.vmem %s1144_s0, 16  ;;  %p4897_p1 = scmp.lt.s32.totalorder %s1144_s0, %s5939_s24 }
 0x65b   : > { %p4893_p0 = scmp.ne.s32.totalorder %s1144_s0, %s4892_s23  ;;  %p4898_p2 = scmp.lt.s32.totalorder %s7878_s29, %s4892_s23 }
 0x65d   : > { %p4899_p3 = por %p4898_p2, %p4897_p1 }
 0x65f   : > { %p4900_p4 = pnand %p4899_p3, %p4893_p0 }
 0x661   : > { %4903 = shalt.err (!%p4900_p4)  }
 0x662   : > { %1146 = dma.hbm_to_vmem [thread:$0]  %s1134_s27, 16, %s1144_s0, [#allocation5] }
 0x663   : > { %s7184_s22 = sld [smem:[#allocation9 + %s1115_s30]]  ;;  %s2976_s21 = sshll.u32 %s7165_s17, 4 }
 0x664   : > { %s5829_s16 = smov [#allocation4 + $0x28]   ;;  %s1150_s9 = scalar_lea.hbm %s7824_s4, %s2976_s21 }
 0x665   : > { %s1174_s13 = sshll.u32 %s5829_s16, 4  ;;  %s2977_s12 = sshll.u32 %s7168_s19, 4  ;;  %s1175_s13 = int_to_ptr.vmem [resolvable:$true] %s1174_s13 }
 0x666   : > { %s4904_s23 = scalar_lea.hbm %s1150_s9, 16  ;;  %p4907_p6 = scmp.lt.u32.totalorder %s1150_s9, %s7824_s4 }
 0x667   : > { %p4905_p5 = scmp.ne.s32.totalorder %s1150_s9, %s4904_s23  ;;  %p4908_p7 = scmp.lt.u32.totalorder %s5972_s28, %s4904_s23 }
 0x668   : > { %p4910_p9 = scmp.lt.u32.totalorder %s4904_s23, %s1150_s9 }
 0x669   : > { %p4909_p8 = por %p4908_p7, %p4907_p6 }
 0x66b   : > { %p4911_p10 = por %p4910_p9, %p4909_p8 }
 0x66d   : > { %p4912_p11 = pnand %p4911_p10, %p4905_p5 }
 0x66f   : > { %4915 = shalt.err (!%p4912_p11)  }
 0x670   : > { %s4916_s30 = scalar_lea.vmem %s7174_s25, 16  ;;  %p4921_p13 = scmp.lt.s32.totalorder %s7174_s25, %s5939_s24 }
 0x671   : > { %p4917_p12 = scmp.ne.s32.totalorder %s7174_s25, %s4916_s30  ;;  %p4922_p0 = scmp.lt.s32.totalorder %s7878_s29, %s4916_s30 }
 0x673   : > { %p4923_p1 = por %p4922_p0, %p4921_p13 }
 0x675   : > { %p4924_p2 = pnand %p4923_p1, %p4917_p12 }
 0x677   : > { %4927 = shalt.err (!%p4924_p2)  }
 0x678   : > { %1162 = dma.hbm_to_vmem [thread:$0]  %s1150_s9, 16, %s7174_s25, [#allocation5] }
 0x679   : > { %s1165_s11 = scalar_lea.hbm %s7825_s5, %s2977_s12 }
 0x67a   : > { %s4928_s17 = scalar_lea.hbm %s1165_s11, 16  ;;  %p4931_p4 = scmp.lt.u32.totalorder %s1165_s11, %s7825_s5 }
 0x67b   : > { %p4929_p3 = scmp.ne.s32.totalorder %s1165_s11, %s4928_s17  ;;  %p4932_p5 = scmp.lt.u32.totalorder %s6059_s20, %s4928_s17 }
 0x67c   : > { %p4934_p7 = scmp.lt.u32.totalorder %s4928_s17, %s1165_s11 }
 0x67d   : > { %p4933_p6 = por %p4932_p5, %p4931_p4 }
 0x67f   : > { %p4935_p8 = por %p4934_p7, %p4933_p6 }
 0x681   : > { %p4936_p9 = pnand %p4935_p8, %p4929_p3 }
 0x683   : > { %4939 = shalt.err (!%p4936_p9)  }
 0x684   : > { %s4940_s21 = scalar_lea.vmem %s1175_s13, 16  ;;  %p4945_p11 = scmp.lt.s32.totalorder %s1175_s13, %s6037_s7 }
 0x685   : > { %p4941_p10 = scmp.ne.s32.totalorder %s1175_s13, %s4940_s21  ;;  %p4946_p12 = scmp.lt.s32.totalorder %s6068_s26, %s4940_s21 }
 0x687   : > { %p4947_p13 = por %p4946_p12, %p4945_p11 }
 0x689   : > { %p4948_p0 = pnand %p4947_p13, %p4941_p10 }
 0x68b   : > { %4951 = shalt.err (!%p4948_p0)  }
 0x68c   : > { %1177 = dma.hbm_to_vmem [thread:$0]  %s1165_s11, 16, %s1175_s13, [#allocation5] }
 0x68d   : > { %s2978_s25 = sshll.u32 %s7184_s22, 4  ;;  %s5830_s9 = smov [#allocation4 + $0x29]  }
 0x68e   : > { %s1180_s10 = scalar_lea.hbm %s7825_s5, %s2978_s25  ;;  %s1189_s12 = sshll.u32 %s5830_s9, 4  ;;  %s1190_s12 = int_to_ptr.vmem [resolvable:$true] %s1189_s12 }
 0x68f   : > { %s7879_s23 = sadd.s32 2, %s7091_s8  ;;  %s4952_s18 = scalar_lea.hbm %s1180_s10, 16 }
 0x690   : > { %s7216_s30 = sld [smem:[#allocation9 + %s7879_s23]]  ;;  %p4953_p1 = scmp.ne.s32.totalorder %s1180_s10, %s4952_s18 }
 0x691   : > { %p4955_p2 = scmp.lt.u32.totalorder %s1180_s10, %s7825_s5  ;;  %p4956_p3 = scmp.lt.u32.totalorder %s6059_s20, %s4952_s18 }
 0x692   : > { %p4958_p5 = scmp.lt.u32.totalorder %s4952_s18, %s1180_s10 }
 0x693   : > { %p4957_p4 = por %p4956_p3, %p4955_p2 }
 0x695   : > { %p4959_p6 = por %p4958_p5, %p4957_p4 }
 0x697   : > { %p4960_p7 = pnand %p4959_p6, %p4953_p1 }
 0x699   : > { %4963 = shalt.err (!%p4960_p7)  }
 0x69a   : > { %s4964_s22 = scalar_lea.vmem %s1190_s12, 16  ;;  %p4969_p9 = scmp.lt.s32.totalorder %s1190_s12, %s6037_s7 }
 0x69b   : > { %p4965_p8 = scmp.ne.s32.totalorder %s1190_s12, %s4964_s22  ;;  %p4970_p10 = scmp.lt.s32.totalorder %s6068_s26, %s4964_s22 }
 0x69d   : > { %p4971_p11 = por %p4970_p10, %p4969_p9 }
 0x69f   : > { %p4972_p12 = pnand %p4971_p11, %p4965_p8 }
 0x6a1   : > { %4975 = shalt.err (!%p4972_p12)  }
 0x6a2   : > { %1192 = dma.hbm_to_vmem [thread:$0]  %s1180_s10, 16, %s1190_s12, [#allocation5] }
 0x6a3   : > { %s7880_s13 = sadd.s32 3, %s7091_s8  ;;  %s5831_s19 = smov [#allocation4 + $0x2a]  }
 0x6a4   : > { %s7226_s11 = sld [smem:[#allocation9 + %s7880_s13]]  ;;  %s1204_s27 = sshll.u32 %s5831_s19, 4  ;;  %s1205_s27 = int_to_ptr.vmem [resolvable:$true] %s1204_s27 }
 0x6a5   : > { %s5832_s21 = smov [#allocation4 + $0x2b]   ;;  %s1223_s16 = sadd.s32 4, %s7091_s8 }
 0x6a6   : > { %s1219_s25 = sshll.u32 %s5832_s21, 4  ;;  %s2979_s6 = sshll.u32 %s7216_s30, 4  ;;  %s7228_s25 = int_to_ptr.vmem [resolvable:$true] %s1219_s25 }
 0x6a7   : > { %s7232_s9 = sld [smem:[#allocation9 + %s1223_s16]]  ;;  %s1195_s12 = scalar_lea.hbm %s7825_s5, %s2979_s6 }
 0x6a8   : > { %s4976_s18 = scalar_lea.hbm %s1195_s12, 16  ;;  %p4979_p0 = scmp.lt.u32.totalorder %s1195_s12, %s7825_s5 }
 0x6a9   : > { %p4977_p13 = scmp.ne.s32.totalorder %s1195_s12, %s4976_s18  ;;  %p4980_p1 = scmp.lt.u32.totalorder %s6059_s20, %s4976_s18 }
 0x6aa   : > { %p4982_p3 = scmp.lt.u32.totalorder %s4976_s18, %s1195_s12 }
 0x6ab   : > { %p4981_p2 = por %p4980_p1, %p4979_p0 }
 0x6ad   : > { %p4983_p4 = por %p4982_p3, %p4981_p2 }
 0x6af   : > { %p4984_p5 = pnand %p4983_p4, %p4977_p13 }
 0x6b1   : > { %4987 = shalt.err (!%p4984_p5)  }
 0x6b2   : > { %s4988_s22 = scalar_lea.vmem %s1205_s27, 16  ;;  %p4993_p7 = scmp.lt.s32.totalorder %s1205_s27, %s6037_s7 }
 0x6b3   : > { %p4989_p6 = scmp.ne.s32.totalorder %s1205_s27, %s4988_s22  ;;  %p4994_p8 = scmp.lt.s32.totalorder %s6068_s26, %s4988_s22 }
 0x6b5   : > { %p4995_p9 = por %p4994_p8, %p4993_p7 }
 0x6b7   : > { %p4996_p10 = pnand %p4995_p9, %p4989_p6 }
 0x6b9   : > { %4999 = shalt.err (!%p4996_p10)  }
 0x6ba   : > { %1207 = dma.hbm_to_vmem [thread:$0]  %s1195_s12, 16, %s1205_s27, [#allocation5] }
 0x6bb   : > { %s2980_s30 = sshll.u32 %s7226_s11, 4  ;;  %s5833_s13 = smov [#allocation4 + $0x2c]  }
 0x6bc   : > { %s1235_s19 = sshll.u32 %s5833_s13, 4  ;;  %s1210_s6 = scalar_lea.hbm %s7825_s5, %s2980_s30  ;;  %s7247_s19 = int_to_ptr.vmem [resolvable:$true] %s1235_s19 }
 0x6bd   : > { %s5000_s23 = scalar_lea.hbm %s1210_s6, 16  ;;  %p5003_p12 = scmp.lt.u32.totalorder %s1210_s6, %s7825_s5 }
 0x6be   : > { %p5001_p11 = scmp.ne.s32.totalorder %s1210_s6, %s5000_s23  ;;  %p5004_p13 = scmp.lt.u32.totalorder %s6059_s20, %s5000_s23 }
 0x6bf   : > { %p5006_p1 = scmp.lt.u32.totalorder %s5000_s23, %s1210_s6 }
 0x6c0   : > { %p5005_p0 = por %p5004_p13, %p5003_p12 }
 0x6c2   : > { %p5007_p2 = por %p5006_p1, %p5005_p0 }
 0x6c4   : > { %p5008_p3 = pnand %p5007_p2, %p5001_p11 }
 0x6c6   : > { %5011 = shalt.err (!%p5008_p3)  }
 0x6c7   : > { %s5012_s11 = scalar_lea.vmem %s7228_s25, 16  ;;  %p5017_p5 = scmp.lt.s32.totalorder %s7228_s25, %s6037_s7 }
 0x6c8   : > { %p5013_p4 = scmp.ne.s32.totalorder %s7228_s25, %s5012_s11  ;;  %p5018_p6 = scmp.lt.s32.totalorder %s6068_s26, %s5012_s11 }
 0x6ca   : > { %p5019_p7 = por %p5018_p6, %p5017_p5 }
 0x6cc   : > { %p5020_p8 = pnand %p5019_p7, %p5013_p4 }
 0x6ce   : > { %5023 = shalt.err (!%p5020_p8)  }
 0x6cf   : > { %1222 = dma.hbm_to_vmem [thread:$0]  %s1210_s6, 16, %s7228_s25, [#allocation5] }
 0x6d0   : > { %s2981_s27 = sshll.u32 %s7232_s9, 4  ;;  %s1239_s12 = sadd.s32 5, %s7091_s8 }
 0x6d1   : > { %s1226_s22 = scalar_lea.hbm %s7825_s5, %s2981_s27  ;;  %s7264_s30 = sld [smem:[#allocation9 + %s1239_s12]] }
 0x6d2   : > { %s5024_s13 = scalar_lea.hbm %s1226_s22, 16  ;;  %p5027_p10 = scmp.lt.u32.totalorder %s1226_s22, %s7825_s5 }
 0x6d3   : > { %p5025_p9 = scmp.ne.s32.totalorder %s1226_s22, %s5024_s13  ;;  %p5028_p11 = scmp.lt.u32.totalorder %s6059_s20, %s5024_s13 }
 0x6d4   : > { %p5030_p13 = scmp.lt.u32.totalorder %s5024_s13, %s1226_s22 }
 0x6d5   : > { %p5029_p12 = por %p5028_p11, %p5027_p10 }
 0x6d7   : > { %p5031_p0 = por %p5030_p13, %p5029_p12 }
 0x6d9   : > { %p5032_p1 = pnand %p5031_p0, %p5025_p9 }
 0x6db   : > { %5035 = shalt.err (!%p5032_p1)  }
 0x6dc   : > { %s5036_s25 = scalar_lea.vmem %s7247_s19, 16  ;;  %p5041_p3 = scmp.lt.s32.totalorder %s7247_s19, %s6037_s7 }
 0x6dd   : > { %p5037_p2 = scmp.ne.s32.totalorder %s7247_s19, %s5036_s25  ;;  %p5042_p4 = scmp.lt.s32.totalorder %s6068_s26, %s5036_s25 }
 0x6df   : > { %p5043_p5 = por %p5042_p4, %p5041_p3 }
 0x6e1   : > { %p5044_p6 = pnand %p5043_p5, %p5037_p2 }
 0x6e3   : > { %5047 = shalt.err (!%p5044_p6)  }
 0x6e4   : > { %1238 = dma.hbm_to_vmem [thread:$0]  %s1226_s22, 16, %s7247_s19, [#allocation5] }
 0x6e5   : > { %s1255_s9 = sadd.s32 6, %s7091_s8  ;;  %s5834_s6 = smov [#allocation4 + $0x2d]  }
 0x6e6   : > { %s1251_s23 = sshll.u32 %s5834_s6, 4  ;;  %s1256_s10 = sld [smem:[#allocation9 + %s1255_s9]]  ;;  %s1252_s23 = int_to_ptr.vmem [resolvable:$true] %s1251_s23 }
 0x6e7   : > { %s5835_s18 = smov [#allocation4 + $0x2e]   ;;  %s1271_s27 = sadd.s32 7, %s7091_s8 }
 0x6e8   : > { %s1267_s11 = sshll.u32 %s5835_s18, 4  ;;  %s2982_s12 = sshll.u32 %s7264_s30, 4  ;;  %s7279_s11 = int_to_ptr.vmem [resolvable:$true] %s1267_s11 }
 0x6e9   : > { %s1242_s13 = scalar_lea.hbm %s7825_s5, %s2982_s12  ;;  %s7284_s21 = sld [smem:[#allocation9 + %s1271_s27]] }
 0x6ea   : > { %s5048_s16 = scalar_lea.hbm %s1242_s13, 16  ;;  %p5051_p8 = scmp.lt.u32.totalorder %s1242_s13, %s7825_s5 }
 0x6eb   : > { %p5049_p7 = scmp.ne.s32.totalorder %s1242_s13, %s5048_s16  ;;  %p5052_p9 = scmp.lt.u32.totalorder %s6059_s20, %s5048_s16 }
 0x6ec   : > { %p5054_p11 = scmp.lt.u32.totalorder %s5048_s16, %s1242_s13 }
 0x6ed   : > { %p5053_p10 = por %p5052_p9, %p5051_p8 }
 0x6ef   : > { %p5055_p12 = por %p5054_p11, %p5053_p10 }
 0x6f1   : > { %p5056_p13 = pnand %p5055_p12, %p5049_p7 }
 0x6f3   : > { %5059 = shalt.err (!%p5056_p13)  }
 0x6f4   : > { %s5060_s8 = scalar_lea.vmem %s1252_s23, 16  ;;  %p5065_p1 = scmp.lt.s32.totalorder %s1252_s23, %s6037_s7 }
 0x6f5   : > { %p5061_p0 = scmp.ne.s32.totalorder %s1252_s23, %s5060_s8  ;;  %p5066_p2 = scmp.lt.s32.totalorder %s6068_s26, %s5060_s8 }
 0x6f7   : > { %p5067_p3 = por %p5066_p2, %p5065_p1 }
 0x6f9   : > { %p5068_p4 = pnand %p5067_p3, %p5061_p0 }
 0x6fb   : > { %5071 = shalt.err (!%p5068_p4)  }
 0x6fc   : > { %1254 = dma.hbm_to_vmem [thread:$0]  %s1242_s13, 16, %s1252_s23, [#allocation5] }
 0x6fd   : > { %s2983_s30 = sshll.u32 %s1256_s10, 4  ;;  %s5836_s18 = smov [#allocation4 + $0x2f]  }
 0x6fe   : > { %s1258_s6 = scalar_lea.hbm %s7825_s5, %s2983_s30  ;;  %s1283_s27 = sshll.u32 %s5836_s18, 4  ;;  %s1284_s27 = int_to_ptr.vmem [resolvable:$true] %s1283_s27 }
 0x6ff   : > { %s5072_s12 = scalar_lea.hbm %s1258_s6, 16  ;;  %p5075_p6 = scmp.lt.u32.totalorder %s1258_s6, %s7825_s5 }
 0x700   : > { %p5073_p5 = scmp.ne.s32.totalorder %s1258_s6, %s5072_s12  ;;  %p5076_p7 = scmp.lt.u32.totalorder %s6059_s20, %s5072_s12 }
 0x701   : > { %p5078_p9 = scmp.lt.u32.totalorder %s5072_s12, %s1258_s6 }
 0x702   : > { %p5077_p8 = por %p5076_p7, %p5075_p6 }
 0x704   : > { %p5079_p10 = por %p5078_p9, %p5077_p8 }
 0x706   : > { %p5080_p11 = pnand %p5079_p10, %p5073_p5 }
 0x708   : > { %5083 = shalt.err (!%p5080_p11)  }
 0x709   : > { %s5084_s23 = scalar_lea.vmem %s7279_s11, 16  ;;  %p5089_p13 = scmp.lt.s32.totalorder %s7279_s11, %s6037_s7 }
 0x70a   : > { %p5085_p12 = scmp.ne.s32.totalorder %s7279_s11, %s5084_s23  ;;  %p5090_p0 = scmp.lt.s32.totalorder %s6068_s26, %s5084_s23 }
 0x70c   : > { %p5091_p1 = por %p5090_p0, %p5089_p13 }
 0x70e   : > { %p5092_p2 = pnand %p5091_p1, %p5085_p12 }
 0x710   : > { %5095 = shalt.err (!%p5092_p2)  }
 0x711   : > { %1270 = dma.hbm_to_vmem [thread:$0]  %s1258_s6, 16, %s7279_s11, [#allocation5] }
 0x712   : > { %s1287_s10 = sadd.s32 6, %s5918_s2  ;;  %s2984_s13 = sshll.u32 %s7284_s21, 4 }
 0x713   : > { %s7307_s16 = sld [smem:[#allocation7 + %s1287_s10]]  ;;  %s1274_s8 = scalar_lea.hbm %s7825_s5, %s2984_s13 }
 0x714   : > { %s5096_s30 = scalar_lea.hbm %s1274_s8, 16  ;;  %p5099_p4 = scmp.lt.u32.totalorder %s1274_s8, %s7825_s5 }
 0x715   : > { %p5097_p3 = scmp.ne.s32.totalorder %s1274_s8, %s5096_s30  ;;  %p5100_p5 = scmp.lt.u32.totalorder %s6059_s20, %s5096_s30 }
 0x716   : > { %p5102_p7 = scmp.lt.u32.totalorder %s5096_s30, %s1274_s8 }
 0x717   : > { %p5101_p6 = por %p5100_p5, %p5099_p4 }
 0x719   : > { %p5103_p8 = por %p5102_p7, %p5101_p6 }
 0x71b   : > { %p5104_p9 = pnand %p5103_p8, %p5097_p3 }
 0x71d   : > { %5107 = shalt.err (!%p5104_p9)  }
 0x71e   : > { %s5108_s11 = scalar_lea.vmem %s1284_s27, 16  ;;  %p5113_p11 = scmp.lt.s32.totalorder %s1284_s27, %s6037_s7 }
 0x71f   : > { %p5109_p10 = scmp.ne.s32.totalorder %s1284_s27, %s5108_s11  ;;  %p5114_p12 = scmp.lt.s32.totalorder %s6068_s26, %s5108_s11 }
 0x721   : > { %p5115_p13 = por %p5114_p12, %p5113_p11 }
 0x723   : > { %p5116_p0 = pnand %p5115_p13, %p5109_p10 }
 0x725   : > { %5119 = shalt.err (!%p5116_p0)  }
 0x726   : > { %1286 = dma.hbm_to_vmem [thread:$0]  %s1274_s8, 16, %s1284_s27, [#allocation5] }
 0x727   : > { %s5837_s21 = smov [#allocation2 + $0x6]   ;;  %s7319_s18 = sadd.s32 768, %s5923_s15 }
 0x728   : > { %s1299_s6 = sshll.u32 %s5837_s21, 4  ;;  %s7322_s12 = sld [smem:[#allocation8 + %s7319_s18]]  ;;  %s1300_s6 = int_to_ptr.vmem [resolvable:$true] %s1299_s6 }
 0x729   : > { %s7850_s0 = sadd.s32 1, %s7319_s18  ;;  %s2985_s17 = sshll.u32 %s7307_s16, 4 }
 0x72a   : > { %s5838_s23 = smov [#allocation3 + $0x18]   ;;  %s1290_s27 = scalar_lea.hbm %s7823_s3, %s2985_s17 }
 0x72b   : > { %s1315_s10 = sshll.u32 %s5838_s23, 4  ;;  %s5120_s22 = scalar_lea.hbm %s1290_s27, 16  ;;  %s7329_s10 = int_to_ptr.vmem [resolvable:$true] %s1315_s10 }
 0x72c   : > { %p5121_p1 = scmp.ne.s32.totalorder %s1290_s27, %s5120_s22  ;;  %p5123_p2 = scmp.lt.u32.totalorder %s1290_s27, %s7823_s3 }
 0x72d   : > { %p5124_p3 = scmp.lt.u32.totalorder %s5944_s1, %s5120_s22  ;;  %p5126_p5 = scmp.lt.u32.totalorder %s5120_s22, %s1290_s27 }
 0x72f   : > { %p5125_p4 = por %p5124_p3, %p5123_p2 }
 0x731   : > { %p5127_p6 = por %p5126_p5, %p5125_p4 }
 0x733   : > { %p5128_p7 = pnand %p5127_p6, %p5121_p1 }
 0x735   : > { %5131 = shalt.err (!%p5128_p7)  }
 0x736   : > { %s5132_s16 = scalar_lea.vmem %s1300_s6, 16  ;;  %s7881_s25 = sld [smem:[#allocation224_spill]] }
 0x737   : > { %p5133_p8 = scmp.ne.s32.totalorder %s1300_s6, %s5132_s16  ;;  %p5137_p9 = scmp.lt.s32.totalorder %s1300_s6, %s5925_s14 }
 0x73c   : > { %p5138_p10 = scmp.lt.s32.totalorder %s7881_s25, %s5132_s16 }
 0x73e   : > { %p5139_p11 = por %p5138_p10, %p5137_p9 }
 0x740   : > { %p5140_p12 = pnand %p5139_p11, %p5133_p8 }
 0x742   : > { %5143 = shalt.err (!%p5140_p12)  }
 0x743   : > { %1302 = dma.hbm_to_vmem [thread:$0]  %s1290_s27, 16, %s1300_s6, [#allocation5] }
 0x744   : > { %s7339_s9 = sld [smem:[#allocation8 + %s7850_s0]]  ;;  %s2987_s11 = sshll.u32 %s7322_s12, 4 }
 0x745   : > { %s5839_s21 = smov [#allocation3 + $0x19]   ;;  %s1306_s19 = scalar_lea.hbm %s7824_s4, %s2987_s11 }
 0x746   : > { %s1331_s17 = sshll.u32 %s5839_s21, 4  ;;  %s5144_s22 = scalar_lea.hbm %s1306_s19, 16  ;;  %s7345_s17 = int_to_ptr.vmem [resolvable:$true] %s1331_s17 }
 0x747   : > { %p5145_p13 = scmp.ne.s32.totalorder %s1306_s19, %s5144_s22  ;;  %p5147_p0 = scmp.lt.u32.totalorder %s1306_s19, %s7824_s4 }
 0x748   : > { %p5148_p1 = scmp.lt.u32.totalorder %s5972_s28, %s5144_s22  ;;  %p5150_p3 = scmp.lt.u32.totalorder %s5144_s22, %s1306_s19 }
 0x74a   : > { %p5149_p2 = por %p5148_p1, %p5147_p0 }
 0x74c   : > { %p5151_p4 = por %p5150_p3, %p5149_p2 }
 0x74e   : > { %p5152_p5 = pnand %p5151_p4, %p5145_p13 }
 0x750   : > { %5155 = shalt.err (!%p5152_p5)  }
 0x751   : > { %s5156_s6 = scalar_lea.vmem %s7329_s10, 16  ;;  %p5161_p7 = scmp.lt.s32.totalorder %s7329_s10, %s5939_s24 }
 0x752   : > { %p5157_p6 = scmp.ne.s32.totalorder %s7329_s10, %s5156_s6  ;;  %p5162_p8 = scmp.lt.s32.totalorder %s7878_s29, %s5156_s6 }
 0x754   : > { %p5163_p9 = por %p5162_p8, %p5161_p7 }
 0x756   : > { %p5164_p10 = pnand %p5163_p9, %p5157_p6 }
 0x758   : > { %5167 = shalt.err (!%p5164_p10)  }
 0x759   : > { %1318 = dma.hbm_to_vmem [thread:$0]  %s1306_s19, 16, %s7329_s10, [#allocation5] }
 0x75a   : > { %s7851_s12 = sadd.s32 2, %s7319_s18  ;;  %s5840_s16 = smov [#allocation3 + $0x1a]  }
 0x75b   : > { %s7360_s27 = sld [smem:[#allocation8 + %s7851_s12]]  ;;  %s1347_s11 = sshll.u32 %s5840_s16, 4  ;;  %s7363_s11 = int_to_ptr.vmem [resolvable:$true] %s1347_s11 }
 0x75c   : > { %s2988_s21 = sshll.u32 %s7339_s9, 4  ;;  %s7852_s8 = sadd.s32 3, %s7319_s18 }
 0x75d   : > { %s1322_s22 = scalar_lea.hbm %s7824_s4, %s2988_s21 }
 0x75e   : > { %s5168_s30 = scalar_lea.hbm %s1322_s22, 16  ;;  %p5171_p12 = scmp.lt.u32.totalorder %s1322_s22, %s7824_s4 }
 0x75f   : > { %p5169_p11 = scmp.ne.s32.totalorder %s1322_s22, %s5168_s30  ;;  %p5172_p13 = scmp.lt.u32.totalorder %s5972_s28, %s5168_s30 }
 0x760   : > { %p5174_p1 = scmp.lt.u32.totalorder %s5168_s30, %s1322_s22 }
 0x761   : > { %p5173_p0 = por %p5172_p13, %p5171_p12 }
 0x763   : > { %p5175_p2 = por %p5174_p1, %p5173_p0 }
 0x765   : > { %p5176_p3 = pnand %p5175_p2, %p5169_p11 }
 0x767   : > { %5179 = shalt.err (!%p5176_p3)  }
 0x768   : > { %s5180_s10 = scalar_lea.vmem %s7345_s17, 16  ;;  %p5185_p5 = scmp.lt.s32.totalorder %s7345_s17, %s5939_s24 }
 0x769   : > { %p5181_p4 = scmp.ne.s32.totalorder %s7345_s17, %s5180_s10  ;;  %p5186_p6 = scmp.lt.s32.totalorder %s7878_s29, %s5180_s10 }
 0x76b   : > { %p5187_p7 = por %p5186_p6, %p5185_p5 }
 0x76d   : > { %p5188_p8 = pnand %p5187_p7, %p5181_p4 }
 0x76f   : > { %5191 = shalt.err (!%p5188_p8)  }
 0x770   : > { %1334 = dma.hbm_to_vmem [thread:$0]  %s1322_s22, 16, %s7345_s17, [#allocation5] }
 0x771   : > { %s7381_s0 = sld [smem:[#allocation8 + %s7852_s8]]  ;;  %s5841_s9 = smov [#allocation3 + $0x1b]  }
 0x772   : > { %s1363_s19 = sshll.u32 %s5841_s9, 4  ;;  %s7384_s16 = sld [smem:[#allocation9 + %s7319_s18]]  ;;  %s7387_s19 = int_to_ptr.vmem [resolvable:$true] %s1363_s19 }
 0x773   : > { %s2989_s21 = sshll.u32 %s7360_s27, 4 }
 0x774   : > { %s1338_s30 = scalar_lea.hbm %s7824_s4, %s2989_s21 }
 0x775   : > { %s5192_s6 = scalar_lea.hbm %s1338_s30, 16  ;;  %p5195_p10 = scmp.lt.u32.totalorder %s1338_s30, %s7824_s4 }
 0x776   : > { %p5193_p9 = scmp.ne.s32.totalorder %s1338_s30, %s5192_s6  ;;  %p5196_p11 = scmp.lt.u32.totalorder %s5972_s28, %s5192_s6 }
 0x777   : > { %p5198_p13 = scmp.lt.u32.totalorder %s5192_s6, %s1338_s30 }
 0x778   : > { %p5197_p12 = por %p5196_p11, %p5195_p10 }
 0x77a   : > { %p5199_p0 = por %p5198_p13, %p5197_p12 }
 0x77c   : > { %p5200_p1 = pnand %p5199_p0, %p5193_p9 }
 0x77e   : > { %5203 = shalt.err (!%p5200_p1)  }
 0x77f   : > { %s5204_s17 = scalar_lea.vmem %s7363_s11, 16  ;;  %p5209_p3 = scmp.lt.s32.totalorder %s7363_s11, %s5939_s24 }
 0x780   : > { %p5205_p2 = scmp.ne.s32.totalorder %s7363_s11, %s5204_s17  ;;  %p5210_p4 = scmp.lt.s32.totalorder %s7878_s29, %s5204_s17 }
 0x782   : > { %p5211_p5 = por %p5210_p4, %p5209_p3 }
 0x784   : > { %p5212_p6 = pnand %p5211_p5, %p5205_p2 }
 0x786   : > { %5215 = shalt.err (!%p5212_p6)  }
 0x787   : > { %1350 = dma.hbm_to_vmem [thread:$0]  %s1338_s30, 16, %s7363_s11, [#allocation5] }
 0x788   : > { %s5842_s12 = smov [#allocation4 + $0x30]   ;;  %s7882_s22 = sadd.s32 1, %s7319_s18 }
 0x789   : > { %s1378_s27 = sshll.u32 %s5842_s12, 4  ;;  %s7404_s9 = sld [smem:[#allocation9 + %s7882_s22]]  ;;  %s7407_s27 = int_to_ptr.vmem [resolvable:$true] %s1378_s27 }
 0x78a   : > { %s2990_s21 = sshll.u32 %s7381_s0, 4  ;;  %s2991_s10 = sshll.u32 %s7384_s16, 4 }
 0x78b   : > { %s1354_s6 = scalar_lea.hbm %s7824_s4, %s2990_s21 }
 0x78c   : > { %s5216_s17 = scalar_lea.hbm %s1354_s6, 16  ;;  %p5219_p8 = scmp.lt.u32.totalorder %s1354_s6, %s7824_s4 }
 0x78d   : > { %p5217_p7 = scmp.ne.s32.totalorder %s1354_s6, %s5216_s17  ;;  %p5220_p9 = scmp.lt.u32.totalorder %s5972_s28, %s5216_s17 }
 0x78e   : > { %p5222_p11 = scmp.lt.u32.totalorder %s5216_s17, %s1354_s6 }
 0x78f   : > { %p5221_p10 = por %p5220_p9, %p5219_p8 }
 0x791   : > { %p5223_p12 = por %p5222_p11, %p5221_p10 }
 0x793   : > { %p5224_p13 = pnand %p5223_p12, %p5217_p7 }
 0x795   : > { %5227 = shalt.err (!%p5224_p13)  }
 0x796   : > { %s5228_s11 = scalar_lea.vmem %s7387_s19, 16  ;;  %p5233_p1 = scmp.lt.s32.totalorder %s7387_s19, %s5939_s24 }
 0x797   : > { %p5229_p0 = scmp.ne.s32.totalorder %s7387_s19, %s5228_s11  ;;  %p5234_p2 = scmp.lt.s32.totalorder %s7878_s29, %s5228_s11 }
 0x799   : > { %p5235_p3 = por %p5234_p2, %p5233_p1 }
 0x79b   : > { %p5236_p4 = pnand %p5235_p3, %p5229_p0 }
 0x79d   : > { %5239 = shalt.err (!%p5236_p4)  }
 0x79e   : > { %1366 = dma.hbm_to_vmem [thread:$0]  %s1354_s6, 16, %s7387_s19, [#allocation5] }
 0x79f   : > { %s1369_s0 = scalar_lea.hbm %s7825_s5, %s2991_s10 }
 0x7a0   : > { %s5240_s16 = scalar_lea.hbm %s1369_s0, 16  ;;  %p5243_p6 = scmp.lt.u32.totalorder %s1369_s0, %s7825_s5 }
 0x7a1   : > { %p5241_p5 = scmp.ne.s32.totalorder %s1369_s0, %s5240_s16  ;;  %p5244_p7 = scmp.lt.u32.totalorder %s6059_s20, %s5240_s16 }
 0x7a2   : > { %p5246_p9 = scmp.lt.u32.totalorder %s5240_s16, %s1369_s0 }
 0x7a3   : > { %p5245_p8 = por %p5244_p7, %p5243_p6 }
 0x7a5   : > { %p5247_p10 = por %p5246_p9, %p5245_p8 }
 0x7a7   : > { %p5248_p11 = pnand %p5247_p10, %p5241_p5 }
 0x7a9   : > { %5251 = shalt.err (!%p5248_p11)  }
 0x7aa   : > { %s5252_s19 = scalar_lea.vmem %s7407_s27, 16  ;;  %p5257_p13 = scmp.lt.s32.totalorder %s7407_s27, %s6037_s7 }
 0x7ab   : > { %p5253_p12 = scmp.ne.s32.totalorder %s7407_s27, %s5252_s19  ;;  %p5258_p0 = scmp.lt.s32.totalorder %s6068_s26, %s5252_s19 }
 0x7ad   : > { %p5259_p1 = por %p5258_p0, %p5257_p13 }
 0x7af   : > { %p5260_p2 = pnand %p5259_p1, %p5253_p12 }
 0x7b1   : > { %5263 = shalt.err (!%p5260_p2)  }
 0x7b2   : > { %1381 = dma.hbm_to_vmem [thread:$0]  %s1369_s0, 16, %s7407_s27, [#allocation5] }
 0x7b3   : > { %s2992_s22 = sshll.u32 %s7404_s9, 4  ;;  %s5843_s21 = smov [#allocation4 + $0x31]  }
 0x7b4   : > { %s1393_s23 = sshll.u32 %s5843_s21, 4  ;;  %s1384_s10 = scalar_lea.hbm %s7825_s5, %s2992_s22  ;;  %s1394_s23 = int_to_ptr.vmem [resolvable:$true] %s1393_s23 }
 0x7b5   : > { %s5264_s17 = scalar_lea.hbm %s1384_s10, 16  ;;  %p5267_p4 = scmp.lt.u32.totalorder %s1384_s10, %s7825_s5 }
 0x7b6   : > { %p5265_p3 = scmp.ne.s32.totalorder %s1384_s10, %s5264_s17  ;;  %p5268_p5 = scmp.lt.u32.totalorder %s6059_s20, %s5264_s17 }
 0x7b7   : > { %p5270_p7 = scmp.lt.u32.totalorder %s5264_s17, %s1384_s10 }
 0x7b8   : > { %p5269_p6 = por %p5268_p5, %p5267_p4 }
 0x7ba   : > { %p5271_p8 = por %p5270_p7, %p5269_p6 }
 0x7bc   : > { %p5272_p9 = pnand %p5271_p8, %p5265_p3 }
 0x7be   : > { %5275 = shalt.err (!%p5272_p9)  }
 0x7bf   : > { %s5276_s27 = scalar_lea.vmem %s1394_s23, 16  ;;  %p5281_p11 = scmp.lt.s32.totalorder %s1394_s23, %s6037_s7 }
 0x7c0   : > { %p5277_p10 = scmp.ne.s32.totalorder %s1394_s23, %s5276_s27  ;;  %p5282_p12 = scmp.lt.s32.totalorder %s6068_s26, %s5276_s27 }
 0x7c2   : > { %p5283_p13 = por %p5282_p12, %p5281_p11 }
 0x7c4   : > { %p5284_p0 = pnand %p5283_p13, %p5277_p10 }
 0x7c6   : > { %5287 = shalt.err (!%p5284_p0)  }
 0x7c7   : > { %1396 = dma.hbm_to_vmem [thread:$0]  %s1384_s10, 16, %s1394_s23, [#allocation5] }
 0x7c8   : > { %s7883_s9 = sadd.s32 2, %s7319_s18  ;;  %s5844_s0 = smov [#allocation4 + $0x32]  }
 0x7c9   : > { %s1397_s8 = sld [smem:[#allocation9 + %s7883_s9]]  ;;  %s1408_s16 = sshll.u32 %s5844_s0, 4  ;;  %s1409_s16 = int_to_ptr.vmem [resolvable:$true] %s1408_s16 }
 0x7ca   : > { %s7884_s30 = sadd.s32 3, %s7319_s18  ;;  %s5845_s19 = smov [#allocation4 + $0x33]  }
 0x7cb   : > { %s7450_s12 = sld [smem:[#allocation9 + %s7884_s30]]  ;;  %s1423_s22 = sshll.u32 %s5845_s19, 4  ;;  %s7453_s22 = int_to_ptr.vmem [resolvable:$true] %s1423_s22 }
 0x7cc   : > { %s1427_s21 = sadd.s32 4, %s7319_s18  ;;  %s1443_s13 = sadd.s32 5, %s7319_s18 }
 0x7cd   : > { %s7455_s23 = sld [smem:[#allocation9 + %s1427_s21]]  ;;  %s5846_s10 = smov [#allocation4 + $0x34]  }
 0x7ce   : > { %s1439_s17 = sshll.u32 %s5846_s10, 4  ;;  %s7471_s17 = int_to_ptr.vmem [resolvable:$true] %s1439_s17 }
 0x7cf   : > { %s2993_s6 = sshll.u32 %s1397_s8, 4 }
 0x7d0   : > { %s1399_s27 = scalar_lea.hbm %s7825_s5, %s2993_s6 }
 0x7d1   : > { %s2994_s9 = sshll.u32 %s7450_s12, 4  ;;  %s5288_s0 = scalar_lea.hbm %s1399_s27, 16 }
 0x7d2   : > { %p5289_p1 = scmp.ne.s32.totalorder %s1399_s27, %s5288_s0  ;;  %p5291_p2 = scmp.lt.u32.totalorder %s1399_s27, %s7825_s5 }
 0x7d3   : > { %p5292_p3 = scmp.lt.u32.totalorder %s6059_s20, %s5288_s0  ;;  %p5294_p5 = scmp.lt.u32.totalorder %s5288_s0, %s1399_s27 }
 0x7d5   : > { %p5293_p4 = por %p5292_p3, %p5291_p2 }
 0x7d7   : > { %p5295_p6 = por %p5294_p5, %p5293_p4 }
 0x7d9   : > { %p5296_p7 = pnand %p5295_p6, %p5289_p1 }
 0x7db   : > { %5299 = shalt.err (!%p5296_p7)  }
 0x7dc   : > { %s5300_s8 = scalar_lea.vmem %s1409_s16, 16  ;;  %p5305_p9 = scmp.lt.s32.totalorder %s1409_s16, %s6037_s7 }
 0x7dd   : > { %p5301_p8 = scmp.ne.s32.totalorder %s1409_s16, %s5300_s8  ;;  %p5306_p10 = scmp.lt.s32.totalorder %s6068_s26, %s5300_s8 }
 0x7df   : > { %p5307_p11 = por %p5306_p10, %p5305_p9 }
 0x7e1   : > { %p5308_p12 = pnand %p5307_p11, %p5301_p8 }
 0x7e3   : > { %5311 = shalt.err (!%p5308_p12)  }
 0x7e4   : > { %1411 = dma.hbm_to_vmem [thread:$0]  %s1399_s27, 16, %s1409_s16, [#allocation5] }
 0x7e5   : > { %s1414_s29 = scalar_lea.hbm %s7825_s5, %s2994_s9 }
 0x7e6   : > { %s5312_s21 = scalar_lea.hbm %s1414_s29, 16  ;;  %p5315_p0 = scmp.lt.u32.totalorder %s1414_s29, %s7825_s5 }
 0x7e7   : > { %p5313_p13 = scmp.ne.s32.totalorder %s1414_s29, %s5312_s21  ;;  %p5316_p1 = scmp.lt.u32.totalorder %s6059_s20, %s5312_s21 }
 0x7e8   : > { %p5318_p3 = scmp.lt.u32.totalorder %s5312_s21, %s1414_s29 }
 0x7e9   : > { %p5317_p2 = por %p5316_p1, %p5315_p0 }
 0x7eb   : > { %p5319_p4 = por %p5318_p3, %p5317_p2 }
 0x7ed   : > { %p5320_p5 = pnand %p5319_p4, %p5313_p13 }
 0x7ef   : > { %5323 = shalt.err (!%p5320_p5)  }
 0x7f0   : > { %s5324_s16 = scalar_lea.vmem %s7453_s22, 16  ;;  %p5329_p7 = scmp.lt.s32.totalorder %s7453_s22, %s6037_s7 }
 0x7f1   : > { %p5325_p6 = scmp.ne.s32.totalorder %s7453_s22, %s5324_s16  ;;  %p5330_p8 = scmp.lt.s32.totalorder %s6068_s26, %s5324_s16 }
 0x7f3   : > { %p5331_p9 = por %p5330_p8, %p5329_p7 }
 0x7f5   : > { %p5332_p10 = pnand %p5331_p9, %p5325_p6 }
 0x7f7   : > { %5335 = shalt.err (!%p5332_p10)  }
 0x7f8   : > { %1426 = dma.hbm_to_vmem [thread:$0]  %s1414_s29, 16, %s7453_s22, [#allocation5] }
 0x7f9   : > { %s2995_s11 = sshll.u32 %s7455_s23, 4  ;;  %s7486_s25 = sld [smem:[#allocation9 + %s1443_s13]] }
 0x7fa   : > { %s1430_s0 = scalar_lea.hbm %s7825_s5, %s2995_s11 }
 0x7fb   : > { %s5336_s30 = scalar_lea.hbm %s1430_s0, 16  ;;  %p5339_p12 = scmp.lt.u32.totalorder %s1430_s0, %s7825_s5 }
 0x7fc   : > { %p5337_p11 = scmp.ne.s32.totalorder %s1430_s0, %s5336_s30  ;;  %p5340_p13 = scmp.lt.u32.totalorder %s6059_s20, %s5336_s30 }
 0x7fd   : > { %p5342_p1 = scmp.lt.u32.totalorder %s5336_s30, %s1430_s0 }
 0x7fe   : > { %p5341_p0 = por %p5340_p13, %p5339_p12 }
 0x800   : > { %p5343_p2 = por %p5342_p1, %p5341_p0 }
 0x802   : > { %p5344_p3 = pnand %p5343_p2, %p5337_p11 }
 0x804   : > { %5347 = shalt.err (!%p5344_p3)  }
 0x805   : > { %s5348_s22 = scalar_lea.vmem %s7471_s17, 16  ;;  %p5353_p5 = scmp.lt.s32.totalorder %s7471_s17, %s6037_s7 }
 0x806   : > { %p5349_p4 = scmp.ne.s32.totalorder %s7471_s17, %s5348_s22  ;;  %p5354_p6 = scmp.lt.s32.totalorder %s6068_s26, %s5348_s22 }
 0x808   : > { %p5355_p7 = por %p5354_p6, %p5353_p5 }
 0x80a   : > { %p5356_p8 = pnand %p5355_p7, %p5349_p4 }
 0x80c   : > { %5359 = shalt.err (!%p5356_p8)  }
 0x80d   : > { %1442 = dma.hbm_to_vmem [thread:$0]  %s1430_s0, 16, %s7471_s17, [#allocation5] }
 0x80e   : > { %s5847_s23 = smov [#allocation4 + $0x35]   ;;  %s1459_s19 = sadd.s32 6, %s7319_s18 }
 0x80f   : > { %s1455_s13 = sshll.u32 %s5847_s23, 4  ;;  %s7502_s29 = sld [smem:[#allocation9 + %s1459_s19]]  ;;  %s1456_s13 = int_to_ptr.vmem [resolvable:$true] %s1455_s13 }
 0x810   : > { %s1475_s21 = sadd.s32 7, %s7319_s18  ;;  %s2996_s6 = sshll.u32 %s7486_s25, 4 }
 0x811   : > { %s5848_s10 = smov [#allocation4 + $0x36]   ;;  %s1446_s9 = scalar_lea.hbm %s7825_s5, %s2996_s6 }
 0x812   : > { %s1471_s16 = sshll.u32 %s5848_s10, 4  ;;  %s5360_s30 = scalar_lea.hbm %s1446_s9, 16  ;;  %s7509_s16 = int_to_ptr.vmem [resolvable:$true] %s1471_s16 }
 0x813   : > { %p5361_p9 = scmp.ne.s32.totalorder %s1446_s9, %s5360_s30  ;;  %p5363_p10 = scmp.lt.u32.totalorder %s1446_s9, %s7825_s5 }
 0x814   : > { %p5364_p11 = scmp.lt.u32.totalorder %s6059_s20, %s5360_s30  ;;  %p5366_p13 = scmp.lt.u32.totalorder %s5360_s30, %s1446_s9 }
 0x816   : > { %p5365_p12 = por %p5364_p11, %p5363_p10 }
 0x818   : > { %p5367_p0 = por %p5366_p13, %p5365_p12 }
 0x81a   : > { %p5368_p1 = pnand %p5367_p0, %p5361_p9 }
 0x81c   : > { %5371 = shalt.err (!%p5368_p1)  }
 0x81d   : > { %s5372_s18 = scalar_lea.vmem %s1456_s13, 16  ;;  %p5377_p3 = scmp.lt.s32.totalorder %s1456_s13, %s6037_s7 }
 0x81e   : > { %p5373_p2 = scmp.ne.s32.totalorder %s1456_s13, %s5372_s18  ;;  %p5378_p4 = scmp.lt.s32.totalorder %s6068_s26, %s5372_s18 }
 0x820   : > { %p5379_p5 = por %p5378_p4, %p5377_p3 }
 0x822   : > { %p5380_p6 = pnand %p5379_p5, %p5373_p2 }
 0x824   : > { %5383 = shalt.err (!%p5380_p6)  }
 0x825   : > { %1458 = dma.hbm_to_vmem [thread:$0]  %s1446_s9, 16, %s1456_s13, [#allocation5] }
 0x826   : > { %s7517_s25 = sld [smem:[#allocation9 + %s1475_s21]]  ;;  %s2997_s0 = sshll.u32 %s7502_s29, 4 }
 0x827   : > { %s5849_s12 = smov [#allocation4 + $0x37]   ;;  %s1462_s6 = scalar_lea.hbm %s7825_s5, %s2997_s0 }
 0x828   : > { %s1487_s22 = sshll.u32 %s5849_s12, 4  ;;  %s5384_s10 = scalar_lea.hbm %s1462_s6, 16  ;;  %s7523_s22 = int_to_ptr.vmem [resolvable:$true] %s1487_s22 }
 0x829   : > { %p5385_p7 = scmp.ne.s32.totalorder %s1462_s6, %s5384_s10  ;;  %p5387_p8 = scmp.lt.u32.totalorder %s1462_s6, %s7825_s5 }
 0x82a   : > { %p5388_p9 = scmp.lt.u32.totalorder %s6059_s20, %s5384_s10  ;;  %p5390_p11 = scmp.lt.u32.totalorder %s5384_s10, %s1462_s6 }
 0x82c   : > { %p5389_p10 = por %p5388_p9, %p5387_p8 }
 0x82e   : > { %p5391_p12 = por %p5390_p11, %p5389_p10 }
 0x830   : > { %p5392_p13 = pnand %p5391_p12, %p5385_p7 }
 0x832   : > { %5395 = shalt.err (!%p5392_p13)  }
 0x833   : > { %s5396_s13 = scalar_lea.vmem %s7509_s16, 16  ;;  %p5401_p1 = scmp.lt.s32.totalorder %s7509_s16, %s6037_s7 }
 0x834   : > { %p5397_p0 = scmp.ne.s32.totalorder %s7509_s16, %s5396_s13  ;;  %p5402_p2 = scmp.lt.s32.totalorder %s6068_s26, %s5396_s13 }
 0x836   : > { %p5403_p3 = por %p5402_p2, %p5401_p1 }
 0x838   : > { %p5404_p4 = pnand %p5403_p3, %p5397_p0 }
 0x83a   : > { %5407 = shalt.err (!%p5404_p4)  }
 0x83b   : > { %1474 = dma.hbm_to_vmem [thread:$0]  %s1462_s6, 16, %s7509_s16, [#allocation5] }
 0x83c   : > { %s1491_s29 = sadd.s32 7, %s5918_s2  ;;  %s5850_s9 = smov [#allocation2 + $0x7]  }
 0x83d   : > { %s7536_s21 = sld [smem:[#allocation7 + %s1491_s29]]  ;;  %s1503_s30 = sshll.u32 %s5850_s9, 4  ;;  %s7539_s30 = int_to_ptr.vmem [resolvable:$true] %s1503_s30 }
 0x83e   : > { %s2998_s8 = sshll.u32 %s7517_s25, 4  ;;  %s7545_s12 = sadd.s32 896, %s5923_s15 }
 0x83f   : > { %s1478_s0 = scalar_lea.hbm %s7825_s5, %s2998_s8 }
 0x840   : > { %s5408_s23 = scalar_lea.hbm %s1478_s0, 16  ;;  %p5411_p6 = scmp.lt.u32.totalorder %s1478_s0, %s7825_s5 }
 0x841   : > { %p5409_p5 = scmp.ne.s32.totalorder %s1478_s0, %s5408_s23  ;;  %p5412_p7 = scmp.lt.u32.totalorder %s6059_s20, %s5408_s23 }
 0x842   : > { %p5414_p9 = scmp.lt.u32.totalorder %s5408_s23, %s1478_s0 }
 0x843   : > { %p5413_p8 = por %p5412_p7, %p5411_p6 }
 0x845   : > { %p5415_p10 = por %p5414_p9, %p5413_p8 }
 0x847   : > { %p5416_p11 = pnand %p5415_p10, %p5409_p5 }
 0x849   : > { %5419 = shalt.err (!%p5416_p11)  }
 0x84a   : > { %s5420_s2 = scalar_lea.vmem %s7523_s22, 16  ;;  %p5425_p13 = scmp.lt.s32.totalorder %s7523_s22, %s6037_s7 }
 0x84b   : > { %p5421_p12 = scmp.ne.s32.totalorder %s7523_s22, %s5420_s2  ;;  %p5426_p0 = scmp.lt.s32.totalorder %s6068_s26, %s5420_s2 }
 0x84d   : > { %p5427_p1 = por %p5426_p0, %p5425_p13 }
 0x84f   : > { %p5428_p2 = pnand %p5427_p1, %p5421_p12 }
 0x851   : > { %5431 = shalt.err (!%p5428_p2)  }
 0x852   : > { %1490 = dma.hbm_to_vmem [thread:$0]  %s1478_s0, 16, %s7523_s22, [#allocation5] }
 0x853   : > { %s7558_s15 = sld [smem:[#allocation8 + %s7545_s12]]  ;;  %s5851_s16 = smov [#allocation3 + $0x1c]  }
 0x854   : > { %s1519_s25 = sshll.u32 %s5851_s16, 4  ;;  %s1523_s6 = sadd.s32 1, %s7545_s12  ;;  %s7562_s25 = int_to_ptr.vmem [resolvable:$true] %s1519_s25 }
 0x855   : > { %s2999_s11 = sshll.u32 %s7536_s21, 4  ;;  %s7569_s9 = sld [smem:[#allocation8 + %s1523_s6]] }
 0x856   : > { %s1494_s29 = scalar_lea.hbm %s7823_s3, %s2999_s11 }
 0x857   : > { %s5432_s8 = scalar_lea.hbm %s1494_s29, 16  ;;  %p5435_p4 = scmp.lt.u32.totalorder %s1494_s29, %s7823_s3 }
 0x858   : > { %p5433_p3 = scmp.ne.s32.totalorder %s1494_s29, %s5432_s8  ;;  %p5436_p5 = scmp.lt.u32.totalorder %s5944_s1, %s5432_s8 }
 0x859   : > { %p5438_p7 = scmp.lt.u32.totalorder %s5432_s8, %s1494_s29 }
 0x85a   : > { %p5437_p6 = por %p5436_p5, %p5435_p4 }
 0x85c   : > { %p5439_p8 = por %p5438_p7, %p5437_p6 }
 0x85e   : > { %p5440_p9 = pnand %p5439_p8, %p5433_p3 }
 0x860   : > { %5443 = shalt.err (!%p5440_p9)  }
 0x861   : > { %s7885_s22 = sld [smem:[#allocation224_spill]]  ;;  %s5444_s21 = scalar_lea.vmem %s7539_s30, 16 }
 0x862   : > { %p5445_p10 = scmp.ne.s32.totalorder %s7539_s30, %s5444_s21  ;;  %p5449_p11 = scmp.lt.s32.totalorder %s7539_s30, %s5925_s14 }
 0x867   : > { %p5450_p12 = scmp.lt.s32.totalorder %s7885_s22, %s5444_s21 }
 0x869   : > { %p5451_p13 = por %p5450_p12, %p5449_p11 }
 0x86b   : > { %p5452_p0 = pnand %p5451_p13, %p5445_p10 }
 0x86d   : > { %5455 = shalt.err (!%p5452_p0)  }
 0x86e   : > { %1506 = dma.hbm_to_vmem [thread:$0]  %s1494_s29, 16, %s7539_s30, [#allocation5] }
 0x86f   : > { %s1539_s1 = sadd.s32 2, %s7545_s12  ;;  %s3001_s0 = sshll.u32 %s7558_s15, 4 }
 0x870   : > { %s5852_s23 = smov [#allocation3 + $0x1d]   ;;  %s1510_s16 = scalar_lea.hbm %s7824_s4, %s3001_s0 }
 0x871   : > { %s1535_s19 = sshll.u32 %s5852_s23, 4  ;;  %s5456_s14 = scalar_lea.hbm %s1510_s16, 16  ;;  %s7586_s19 = int_to_ptr.vmem [resolvable:$true] %s1535_s19 }
 0x872   : > { %p5457_p1 = scmp.ne.s32.totalorder %s1510_s16, %s5456_s14  ;;  %p5459_p2 = scmp.lt.u32.totalorder %s1510_s16, %s7824_s4 }
 0x873   : > { %p5460_p3 = scmp.lt.u32.totalorder %s5972_s28, %s5456_s14  ;;  %p5462_p5 = scmp.lt.u32.totalorder %s5456_s14, %s1510_s16 }
 0x875   : > { %p5461_p4 = por %p5460_p3, %p5459_p2 }
 0x877   : > { %p5463_p6 = por %p5462_p5, %p5461_p4 }
 0x879   : > { %p5464_p7 = pnand %p5463_p6, %p5457_p1 }
 0x87b   : > { %5467 = shalt.err (!%p5464_p7)  }
 0x87c   : > { %s7886_s30 = sld [smem:[#allocation225_spill]]  ;;  %s5468_s15 = scalar_lea.vmem %s7562_s25, 16 }
 0x87d   : > { %p5469_p8 = scmp.ne.s32.totalorder %s7562_s25, %s5468_s15  ;;  %p5473_p9 = scmp.lt.s32.totalorder %s7562_s25, %s5939_s24 }
 0x882   : > { %p5474_p10 = scmp.lt.s32.totalorder %s7886_s30, %s5468_s15 }
 0x884   : > { %p5475_p11 = por %p5474_p10, %p5473_p9 }
 0x886   : > { %p5476_p12 = pnand %p5475_p11, %p5469_p8 }
 0x888   : > { %5479 = shalt.err (!%p5476_p12)  }
 0x889   : > { %1522 = dma.hbm_to_vmem [thread:$0]  %s1510_s16, 16, %s7562_s25, [#allocation5] }
 0x88a   : > { %s3002_s13 = sshll.u32 %s7569_s9, 4  ;;  %s7601_s29 = sld [smem:[#allocation8 + %s1539_s1]] }
 0x88b   : > { %s1526_s18 = scalar_lea.hbm %s7824_s4, %s3002_s13 }
 0x88c   : > { %s5480_s22 = scalar_lea.hbm %s1526_s18, 16  ;;  %p5483_p0 = scmp.lt.u32.totalorder %s1526_s18, %s7824_s4 }
 0x88d   : > { %p5481_p13 = scmp.ne.s32.totalorder %s1526_s18, %s5480_s22  ;;  %p5484_p1 = scmp.lt.u32.totalorder %s5972_s28, %s5480_s22 }
 0x88e   : > { %p5486_p3 = scmp.lt.u32.totalorder %s5480_s22, %s1526_s18 }
 0x88f   : > { %p5485_p2 = por %p5484_p1, %p5483_p0 }
 0x891   : > { %p5487_p4 = por %p5486_p3, %p5485_p2 }
 0x893   : > { %p5488_p5 = pnand %p5487_p4, %p5481_p13 }
 0x895   : > { %5491 = shalt.err (!%p5488_p5)  }
 0x896   : > { %s5492_s25 = scalar_lea.vmem %s7586_s19, 16  ;;  %p5497_p7 = scmp.lt.s32.totalorder %s7586_s19, %s5939_s24 }
 0x897   : > { %p5493_p6 = scmp.ne.s32.totalorder %s7586_s19, %s5492_s25  ;;  %p5498_p8 = scmp.lt.s32.totalorder %s7886_s30, %s5492_s25 }
 0x899   : > { %p5499_p9 = por %p5498_p8, %p5497_p7 }
 0x89b   : > { %p5500_p10 = pnand %p5499_p9, %p5493_p6 }
 0x89d   : > { %5503 = shalt.err (!%p5500_p10)  }
 0x89e   : > { %1538 = dma.hbm_to_vmem [thread:$0]  %s1526_s18, 16, %s7586_s19, [#allocation5] }
 0x89f   : > { %s5853_s9 = smov [#allocation3 + $0x1e]   ;;  %s1555_s10 = sadd.s32 3, %s7545_s12 }
 0x8a0   : > { %s1551_s23 = sshll.u32 %s5853_s9, 4  ;;  %s7619_s2 = sld [smem:[#allocation8 + %s1555_s10]]  ;;  %s1552_s23 = int_to_ptr.vmem [resolvable:$true] %s1551_s23 }
 0x8a1   : > { %s7622_s16 = sld [smem:[#allocation9 + %s7545_s12]]  ;;  %s3003_s14 = sshll.u32 %s7601_s29, 4 }
 0x8a2   : > { %s5854_s11 = smov [#allocation3 + $0x1f]   ;;  %s1542_s8 = scalar_lea.hbm %s7824_s4, %s3003_s14 }
 0x8a3   : > { %s1567_s27 = sshll.u32 %s5854_s11, 4  ;;  %s5504_s17 = scalar_lea.hbm %s1542_s8, 16  ;;  %s7628_s27 = int_to_ptr.vmem [resolvable:$true] %s1567_s27 }
 0x8a4   : > { %p5505_p11 = scmp.ne.s32.totalorder %s1542_s8, %s5504_s17  ;;  %p5507_p12 = scmp.lt.u32.totalorder %s1542_s8, %s7824_s4 }
 0x8a5   : > { %p5508_p13 = scmp.lt.u32.totalorder %s5972_s28, %s5504_s17  ;;  %p5510_p1 = scmp.lt.u32.totalorder %s5504_s17, %s1542_s8 }
 0x8a7   : > { %p5509_p0 = por %p5508_p13, %p5507_p12 }
 0x8a9   : > { %p5511_p2 = por %p5510_p1, %p5509_p0 }
 0x8ab   : > { %p5512_p3 = pnand %p5511_p2, %p5505_p11 }
 0x8ad   : > { %5515 = shalt.err (!%p5512_p3)  }
 0x8ae   : > { %s5516_s29 = scalar_lea.vmem %s1552_s23, 16  ;;  %p5521_p5 = scmp.lt.s32.totalorder %s1552_s23, %s5939_s24 }
 0x8af   : > { %p5517_p4 = scmp.ne.s32.totalorder %s1552_s23, %s5516_s29  ;;  %p5522_p6 = scmp.lt.s32.totalorder %s7886_s30, %s5516_s29 }
 0x8b1   : > { %p5523_p7 = por %p5522_p6, %p5521_p5 }
 0x8b3   : > { %p5524_p8 = pnand %p5523_p7, %p5517_p4 }
 0x8b5   : > { %5527 = shalt.err (!%p5524_p8)  }
 0x8b6   : > { %1554 = dma.hbm_to_vmem [thread:$0]  %s1542_s8, 16, %s1552_s23, [#allocation5] }
 0x8b7   : > { %s7638_s22 = sld [smem:[#allocation9 + %s1523_s6]]  ;;  %s3004_s21 = sshll.u32 %s7619_s2, 4 }
 0x8b8   : > { %s5855_s0 = smov [#allocation4 + $0x38]   ;;  %s1558_s11 = scalar_lea.hbm %s7824_s4, %s3004_s21 }
 0x8b9   : > { %s1582_s25 = sshll.u32 %s5855_s0, 4  ;;  %s3005_s15 = sshll.u32 %s7622_s16, 4  ;;  %s1583_s25 = int_to_ptr.vmem [resolvable:$true] %s1582_s25 }
 0x8ba   : > { %s5528_s13 = scalar_lea.hbm %s1558_s11, 16  ;;  %p5531_p10 = scmp.lt.u32.totalorder %s1558_s11, %s7824_s4 }
 0x8bb   : > { %p5529_p9 = scmp.ne.s32.totalorder %s1558_s11, %s5528_s13  ;;  %p5532_p11 = scmp.lt.u32.totalorder %s5972_s28, %s5528_s13 }
 0x8bc   : > { %p5534_p13 = scmp.lt.u32.totalorder %s5528_s13, %s1558_s11 }
 0x8bd   : > { %p5533_p12 = por %p5532_p11, %p5531_p10 }
 0x8bf   : > { %p5535_p0 = por %p5534_p13, %p5533_p12 }
 0x8c1   : > { %p5536_p1 = pnand %p5535_p0, %p5529_p9 }
 0x8c3   : > { %5539 = shalt.err (!%p5536_p1)  }
 0x8c4   : > { %s5540_s6 = scalar_lea.vmem %s7628_s27, 16  ;;  %p5545_p3 = scmp.lt.s32.totalorder %s7628_s27, %s5939_s24 }
 0x8c5   : > { %p5541_p2 = scmp.ne.s32.totalorder %s7628_s27, %s5540_s6  ;;  %p5546_p4 = scmp.lt.s32.totalorder %s7886_s30, %s5540_s6 }
 0x8c7   : > { %p5547_p5 = por %p5546_p4, %p5545_p3 }
 0x8c9   : > { %p5548_p6 = pnand %p5547_p5, %p5541_p2 }
 0x8cb   : > { %5551 = shalt.err (!%p5548_p6)  }
 0x8cc   : > { %1570 = dma.hbm_to_vmem [thread:$0]  %s1558_s11, 16, %s7628_s27, [#allocation5] }
 0x8cd   : > { %s1573_s2 = scalar_lea.hbm %s7825_s5, %s3005_s15 }
 0x8ce   : > { %s5552_s16 = scalar_lea.hbm %s1573_s2, 16  ;;  %p5555_p8 = scmp.lt.u32.totalorder %s1573_s2, %s7825_s5 }
 0x8cf   : > { %p5553_p7 = scmp.ne.s32.totalorder %s1573_s2, %s5552_s16  ;;  %p5556_p9 = scmp.lt.u32.totalorder %s6059_s20, %s5552_s16 }
 0x8d0   : > { %p5558_p11 = scmp.lt.u32.totalorder %s5552_s16, %s1573_s2 }
 0x8d1   : > { %p5557_p10 = por %p5556_p9, %p5555_p8 }
 0x8d3   : > { %p5559_p12 = por %p5558_p11, %p5557_p10 }
 0x8d5   : > { %p5560_p13 = pnand %p5559_p12, %p5553_p7 }
 0x8d7   : > { %5563 = shalt.err (!%p5560_p13)  }
 0x8d8   : > { %s5564_s24 = scalar_lea.vmem %s1583_s25, 16  ;;  %p5569_p1 = scmp.lt.s32.totalorder %s1583_s25, %s6037_s7 }
 0x8d9   : > { %p5565_p0 = scmp.ne.s32.totalorder %s1583_s25, %s5564_s24  ;;  %p5570_p2 = scmp.lt.s32.totalorder %s6068_s26, %s5564_s24 }
 0x8db   : > { %p5571_p3 = por %p5570_p2, %p5569_p1 }
 0x8dd   : > { %p5572_p4 = pnand %p5571_p3, %p5565_p0 }
 0x8df   : > { %5575 = shalt.err (!%p5572_p4)  }
 0x8e0   : > { %1585 = dma.hbm_to_vmem [thread:$0]  %s1573_s2, 16, %s1583_s25, [#allocation5] }
 0x8e1   : > { %s3006_s30 = sshll.u32 %s7638_s22, 4  ;;  %s5856_s0 = smov [#allocation4 + $0x39]  }
 0x8e2   : > { %s1588_s21 = scalar_lea.hbm %s7825_s5, %s3006_s30  ;;  %s1597_s9 = sshll.u32 %s5856_s0, 4  ;;  %s1598_s9 = int_to_ptr.vmem [resolvable:$true] %s1597_s9 }
 0x8e3   : > { %s7670_s14 = sld [smem:[#allocation9 + %s1539_s1]]  ;;  %s5576_s11 = scalar_lea.hbm %s1588_s21, 16 }
 0x8e4   : > { %p5577_p5 = scmp.ne.s32.totalorder %s1588_s21, %s5576_s11  ;;  %p5579_p6 = scmp.lt.u32.totalorder %s1588_s21, %s7825_s5 }
 0x8e5   : > { %p5580_p7 = scmp.lt.u32.totalorder %s6059_s20, %s5576_s11  ;;  %p5582_p9 = scmp.lt.u32.totalorder %s5576_s11, %s1588_s21 }
 0x8e7   : > { %p5581_p8 = por %p5580_p7, %p5579_p6 }
 0x8e9   : > { %p5583_p10 = por %p5582_p9, %p5581_p8 }
 0x8eb   : > { %p5584_p11 = pnand %p5583_p10, %p5577_p5 }
 0x8ed   : > { %5587 = shalt.err (!%p5584_p11)  }
 0x8ee   : > { %s5588_s22 = scalar_lea.vmem %s1598_s9, 16  ;;  %p5593_p13 = scmp.lt.s32.totalorder %s1598_s9, %s6037_s7 }
 0x8ef   : > { %p5589_p12 = scmp.ne.s32.totalorder %s1598_s9, %s5588_s22  ;;  %p5594_p0 = scmp.lt.s32.totalorder %s6068_s26, %s5588_s22 }
 0x8f1   : > { %p5595_p1 = por %p5594_p0, %p5593_p13 }
 0x8f3   : > { %p5596_p2 = pnand %p5595_p1, %p5589_p12 }
 0x8f5   : > { %5599 = shalt.err (!%p5596_p2)  }
 0x8f6   : > { %1600 = dma.hbm_to_vmem [thread:$0]  %s1588_s21, 16, %s1598_s9, [#allocation5] }
 0x8f7   : > { %s7680_s1 = sld [smem:[#allocation9 + %s1555_s10]]  ;;  %s5857_s25 = smov [#allocation4 + $0x3a]  }
 0x8f8   : > { %s1612_s17 = sshll.u32 %s5857_s25, 4  ;;  %s5858_s19 = smov [#allocation4 + $0x3b]   ;;  %s1613_s17 = int_to_ptr.vmem [resolvable:$true] %s1612_s17 }
 0x8f9   : > { %s1627_s6 = sshll.u32 %s5858_s19, 4  ;;  %s1631_s28 = sadd.s32 4, %s7545_s12  ;;  %s7682_s6 = int_to_ptr.vmem [resolvable:$true] %s1627_s6 }
 0x8fa   : > { %s3007_s23 = sshll.u32 %s7670_s14, 4  ;;  %s7686_s2 = sld [smem:[#allocation9 + %s1631_s28]] }
 0x8fb   : > { %s1603_s18 = scalar_lea.hbm %s7825_s5, %s3007_s23 }
 0x8fc   : > { %s5600_s24 = scalar_lea.hbm %s1603_s18, 16  ;;  %p5603_p4 = scmp.lt.u32.totalorder %s1603_s18, %s7825_s5 }
 0x8fd   : > { %p5601_p3 = scmp.ne.s32.totalorder %s1603_s18, %s5600_s24  ;;  %p5604_p5 = scmp.lt.u32.totalorder %s6059_s20, %s5600_s24 }
 0x8fe   : > { %p5606_p7 = scmp.lt.u32.totalorder %s5600_s24, %s1603_s18 }
 0x8ff   : > { %p5605_p6 = por %p5604_p5, %p5603_p4 }
 0x901   : > { %p5607_p8 = por %p5606_p7, %p5605_p6 }
 0x903   : > { %p5608_p9 = pnand %p5607_p8, %p5601_p3 }
 0x905   : > { %5611 = shalt.err (!%p5608_p9)  }
 0x906   : > { %s5612_s27 = scalar_lea.vmem %s1613_s17, 16  ;;  %p5617_p11 = scmp.lt.s32.totalorder %s1613_s17, %s6037_s7 }
 0x907   : > { %p5613_p10 = scmp.ne.s32.totalorder %s1613_s17, %s5612_s27  ;;  %p5618_p12 = scmp.lt.s32.totalorder %s6068_s26, %s5612_s27 }
 0x909   : > { %p5619_p13 = por %p5618_p12, %p5617_p11 }
 0x90b   : > { %p5620_p0 = pnand %p5619_p13, %p5613_p10 }
 0x90d   : > { %5623 = shalt.err (!%p5620_p0)  }
 0x90e   : > { %1615 = dma.hbm_to_vmem [thread:$0]  %s1603_s18, 16, %s1613_s17, [#allocation5] }
 0x90f   : > { %s3008_s29 = sshll.u32 %s7680_s1, 4  ;;  %s5859_s21 = smov [#allocation4 + $0x3c]  }
 0x910   : > { %s1643_s0 = sshll.u32 %s5859_s21, 4  ;;  %s1618_s11 = scalar_lea.hbm %s7825_s5, %s3008_s29  ;;  %s7701_s0 = int_to_ptr.vmem [resolvable:$true] %s1643_s0 }
 0x911   : > { %s5624_s15 = scalar_lea.hbm %s1618_s11, 16  ;;  %p5627_p2 = scmp.lt.u32.totalorder %s1618_s11, %s7825_s5 }
 0x912   : > { %p5625_p1 = scmp.ne.s32.totalorder %s1618_s11, %s5624_s15  ;;  %p5628_p3 = scmp.lt.u32.totalorder %s6059_s20, %s5624_s15 }
 0x913   : > { %p5630_p5 = scmp.lt.u32.totalorder %s5624_s15, %s1618_s11 }
 0x914   : > { %p5629_p4 = por %p5628_p3, %p5627_p2 }
 0x916   : > { %p5631_p6 = por %p5630_p5, %p5629_p4 }
 0x918   : > { %p5632_p7 = pnand %p5631_p6, %p5625_p1 }
 0x91a   : > { %5635 = shalt.err (!%p5632_p7)  }
 0x91b   : > { %s5636_s1 = scalar_lea.vmem %s7682_s6, 16  ;;  %p5641_p9 = scmp.lt.s32.totalorder %s7682_s6, %s6037_s7 }
 0x91c   : > { %p5637_p8 = scmp.ne.s32.totalorder %s7682_s6, %s5636_s1  ;;  %p5642_p10 = scmp.lt.s32.totalorder %s6068_s26, %s5636_s1 }
 0x91e   : > { %p5643_p11 = por %p5642_p10, %p5641_p9 }
 0x920   : > { %p5644_p12 = pnand %p5643_p11, %p5637_p8 }
 0x922   : > { %5647 = shalt.err (!%p5644_p12)  }
 0x923   : > { %1630 = dma.hbm_to_vmem [thread:$0]  %s1618_s11, 16, %s7682_s6, [#allocation5] }
 0x924   : > { %s3009_s25 = sshll.u32 %s7686_s2, 4  ;;  %s1647_s17 = sadd.s32 5, %s7545_s12 }
 0x925   : > { %s1634_s23 = scalar_lea.hbm %s7825_s5, %s3009_s25  ;;  %s7718_s16 = sld [smem:[#allocation9 + %s1647_s17]] }
 0x926   : > { %s5648_s8 = scalar_lea.hbm %s1634_s23, 16  ;;  %p5651_p0 = scmp.lt.u32.totalorder %s1634_s23, %s7825_s5 }
 0x927   : > { %p5649_p13 = scmp.ne.s32.totalorder %s1634_s23, %s5648_s8  ;;  %p5652_p1 = scmp.lt.u32.totalorder %s6059_s20, %s5648_s8 }
 0x928   : > { %p5654_p3 = scmp.lt.u32.totalorder %s5648_s8, %s1634_s23 }
 0x929   : > { %p5653_p2 = por %p5652_p1, %p5651_p0 }
 0x92b   : > { %p5655_p4 = por %p5654_p3, %p5653_p2 }
 0x92d   : > { %p5656_p5 = pnand %p5655_p4, %p5649_p13 }
 0x92f   : > { %5659 = shalt.err (!%p5656_p5)  }
 0x930   : > { %s5660_s6 = scalar_lea.vmem %s7701_s0, 16  ;;  %p5665_p7 = scmp.lt.s32.totalorder %s7701_s0, %s6037_s7 }
 0x931   : > { %p5661_p6 = scmp.ne.s32.totalorder %s7701_s0, %s5660_s6  ;;  %p5666_p8 = scmp.lt.s32.totalorder %s6068_s26, %s5660_s6 }
 0x933   : > { %p5667_p9 = por %p5666_p8, %p5665_p7 }
 0x935   : > { %p5668_p10 = pnand %p5667_p9, %p5661_p6 }
 0x937   : > { %5671 = shalt.err (!%p5668_p10)  }
 0x938   : > { %1646 = dma.hbm_to_vmem [thread:$0]  %s1634_s23, 16, %s7701_s0, [#allocation5] }
 0x939   : > { %s1663_s2 = sadd.s32 6, %s7545_s12  ;;  %s5860_s30 = smov [#allocation4 + $0x3d]  }
 0x93a   : > { %s1659_s10 = sshll.u32 %s5860_s30, 4  ;;  %s1664_s27 = sld [smem:[#allocation9 + %s1663_s2]]  ;;  %s1660_s10 = int_to_ptr.vmem [resolvable:$true] %s1659_s10 }
 0x93b   : > { %s5861_s29 = smov [#allocation4 + $0x3e]   ;;  %s1679_s9 = sadd.s32 7, %s7545_s12 }
 0x93c   : > { %s1675_s21 = sshll.u32 %s5861_s29, 4  ;;  %s3010_s14 = sshll.u32 %s7718_s16, 4  ;;  %s7733_s21 = int_to_ptr.vmem [resolvable:$true] %s1675_s21 }
 0x93d   : > { %s1650_s13 = scalar_lea.hbm %s7825_s5, %s3010_s14  ;;  %s7738_s22 = sld [smem:[#allocation9 + %s1679_s9]] }
 0x93e   : > { %s5672_s1 = scalar_lea.hbm %s1650_s13, 16  ;;  %p5675_p12 = scmp.lt.u32.totalorder %s1650_s13, %s7825_s5 }
 0x93f   : > { %p5673_p11 = scmp.ne.s32.totalorder %s1650_s13, %s5672_s1  ;;  %p5676_p13 = scmp.lt.u32.totalorder %s6059_s20, %s5672_s1 }
 0x940   : > { %p5678_p1 = scmp.lt.u32.totalorder %s5672_s1, %s1650_s13 }
 0x941   : > { %p5677_p0 = por %p5676_p13, %p5675_p12 }
 0x943   : > { %p5679_p2 = por %p5678_p1, %p5677_p0 }
 0x945   : > { %p5680_p3 = pnand %p5679_p2, %p5673_p11 }
 0x947   : > { %5683 = shalt.err (!%p5680_p3)  }
 0x948   : > { %s5684_s12 = scalar_lea.vmem %s1660_s10, 16  ;;  %p5689_p5 = scmp.lt.s32.totalorder %s1660_s10, %s6037_s7 }
 0x949   : > { %p5685_p4 = scmp.ne.s32.totalorder %s1660_s10, %s5684_s12  ;;  %p5690_p6 = scmp.lt.s32.totalorder %s6068_s26, %s5684_s12 }
 0x94b   : > { %p5691_p7 = por %p5690_p6, %p5689_p5 }
 0x94d   : > { %p5692_p8 = pnand %p5691_p7, %p5685_p4 }
 0x94f   : > { %5695 = shalt.err (!%p5692_p8)  }
 0x950   : > { %1662 = dma.hbm_to_vmem [thread:$0]  %s1650_s13, 16, %s1660_s10, [#allocation5] }
 0x951   : > { %s3011_s17 = sshll.u32 %s1664_s27, 4  ;;  %s5862_s16 = smov [#allocation4 + $0x3f]  }
 0x952   : > { %s1666_s23 = scalar_lea.hbm %s7825_s5, %s3011_s17  ;;  %s1691_s8 = sshll.u32 %s5862_s16, 4  ;;  %s1692_s8 = int_to_ptr.vmem [resolvable:$true] %s1691_s8 }
 0x953   : > { %s5696_s18 = scalar_lea.hbm %s1666_s23, 16  ;;  %p5699_p10 = scmp.lt.u32.totalorder %s1666_s23, %s7825_s5 }
 0x954   : > { %p5697_p9 = scmp.ne.s32.totalorder %s1666_s23, %s5696_s18  ;;  %p5700_p11 = scmp.lt.u32.totalorder %s6059_s20, %s5696_s18 }
 0x955   : > { %p5702_p13 = scmp.lt.u32.totalorder %s5696_s18, %s1666_s23 }
 0x956   : > { %p5701_p12 = por %p5700_p11, %p5699_p10 }
 0x958   : > { %p5703_p0 = por %p5702_p13, %p5701_p12 }
 0x95a   : > { %p5704_p1 = pnand %p5703_p0, %p5697_p9 }
 0x95c   : > { %5707 = shalt.err (!%p5704_p1)  }
 0x95d   : > { %s5708_s2 = scalar_lea.vmem %s7733_s21, 16  ;;  %p5713_p3 = scmp.lt.s32.totalorder %s7733_s21, %s6037_s7 }
 0x95e   : > { %p5709_p2 = scmp.ne.s32.totalorder %s7733_s21, %s5708_s2  ;;  %p5714_p4 = scmp.lt.s32.totalorder %s6068_s26, %s5708_s2 }
 0x960   : > { %p5715_p5 = por %p5714_p4, %p5713_p3 }
 0x962   : > { %p5716_p6 = pnand %p5715_p5, %p5709_p2 }
 0x964   : > { %5719 = shalt.err (!%p5716_p6)  }
 0x965   : > { %1678 = dma.hbm_to_vmem [thread:$0]  %s1666_s23, 16, %s7733_s21, [#allocation5] }
 0x966   : > { %s3012_s30 = sshll.u32 %s7738_s22, 4 }
 0x967   : > { %s1682_s29 = scalar_lea.hbm %s7825_s5, %s3012_s30 }
 0x968   : > { %s5720_s9 = scalar_lea.hbm %s1682_s29, 16  ;;  %p5723_p8 = scmp.lt.u32.totalorder %s1682_s29, %s7825_s5 }
 0x969   : > { %p5721_p7 = scmp.ne.s32.totalorder %s1682_s29, %s5720_s9  ;;  %p5724_p9 = scmp.lt.u32.totalorder %s6059_s20, %s5720_s9 }
 0x96a   : > { %p5726_p11 = scmp.lt.u32.totalorder %s5720_s9, %s1682_s29 }
 0x96b   : > { %p5725_p10 = por %p5724_p9, %p5723_p8 }
 0x96d   : > { %p5727_p12 = por %p5726_p11, %p5725_p10 }
 0x96f   : > { %p5728_p13 = pnand %p5727_p12, %p5721_p7 }
 0x971   : > { %5731 = shalt.err (!%p5728_p13)  }
 0x972   : > { %s5732_s15 = scalar_lea.vmem %s1692_s8, 16  ;;  %p5737_p1 = scmp.lt.s32.totalorder %s1692_s8, %s6037_s7 }
 0x973   : > { %p5733_p0 = scmp.ne.s32.totalorder %s1692_s8, %s5732_s15  ;;  %p5738_p2 = scmp.lt.s32.totalorder %s6068_s26, %s5732_s15 }
 0x975   : > { %p5739_p3 = por %p5738_p2, %p5737_p1 }
 0x977   : > { %p5740_p4 = pnand %p5739_p3, %p5733_p0 }
 0x979   : > { %5743 = shalt.err (!%p5740_p4)  }
 0x97a   : > { %1694 = dma.hbm_to_vmem [thread:$0]  %s1682_s29, 16, %s1692_s8, [#allocation5] }
 0x97b   : > { %5750 = dma.done.wait [#allocation5], 1664 }
 0x97c   : > { %5751 = vsyncadd [#allocation5], 4294965632  ;;  %v5863_v0 = vmov 0.0   ;;  %vm5864_vm0 = vmmov 0   ;;  %v2052_v1 = vld [vmem:[#allocation4] sm:$0xff]  ;;  %v2053_v2 = vld [vmem:[#allocation4 + $0x8] sm:$0xff]  ;;  %v1999_v14 = vlaneseq }
 0x97d   : > { %3054 = vmatprep.subr.mxu0 %v5863_v0  ;;  %3059 = vmatprep.subr.mxu1 %v5863_v0  ;;  %vm1913_vm1 = vcmask 1043456   ;;  %v1905_v3 = vld [vmem:[#allocation3] sm:$0xf]  ;;  %v1906_v4 = vld [vmem:[#allocation3 + $0x4] sm:$0xf]  ;;  %vm1978_vm2 = vcmask 1041409  }
 0x97e   : > { %3056 = vmatprep.mubr.msk.f32.mxu0 %vm5864_vm0, %v5863_v0  ;;  %3061 = vmatprep.mubr.msk.f32.mxu1 %vm5864_vm0, %v5863_v0  ;;  %v1907_v5 = vld [vmem:[#allocation3 + $0x8] sm:$0xf]  ;;  %v1908_v6 = vld [vmem:[#allocation3 + $0xc] sm:$0xf]  ;;  %v1909_v7 = vld [vmem:[#allocation3 + $0x10] sm:$0xf] }
 0x97f   : > { %3055 = vmatpush3.xpose.msra.mxu0 %v2052_v1  ;;  %3060 = vmatpush3.xpose.msra.mxu1 %v2053_v2  ;;  %v1910_v8 = vld [vmem:[#allocation3 + $0x14] sm:$0xf]  ;;  %v1911_v9 = vld [vmem:[#allocation3 + $0x18] sm:$0xf]  ;;  %v1914_v10 = vsel %vm1913_vm1, %v1905_v3, 0.0  ;;  %v1921_v11 = vsel %vm1913_vm1, %v1906_v4, 0.0 }
 0x980   : > { %3064 = vmatprep.subr.mxu0 %v5863_v0  ;;  %3069 = vmatprep.subr.mxu1 %v5863_v0  ;;  %v5865_v12 = vmov 1966171168   ;;  %v1912_v15 = vld [vmem:[#allocation3 + $0x1c] sm:$0xf]  ;;  %v1915_v16 = vrot.slane %v1914_v10, 4  ;;  %v1922_v17 = vrot.slane %v1921_v11, 4 }
 0x981   : > { %v7779_v13 = vunpack.c.l.s4 %v5865_v12  ;;  %v1928_v18 = vsel %vm1913_vm1, %v1907_v5, 0.0  ;;  %v1935_v19 = vsel %vm1913_vm1, %v1908_v6, 0.0  ;;  %v1942_v22 = vsel %vm1913_vm1, %v1909_v7, 0.0  ;;  %s7887_s7 = sld [smem:[#allocation223_spill]] }
 0x982   : > { %v1929_v20 = vrot.slane %v1928_v18, 4  ;;  %v1936_v21 = vrot.slane %v1935_v19, 4  ;;  %v1949_v23 = vsel %vm1913_vm1, %v1910_v8, 0.0  ;;  %v1916_v24 = vadd.f32 %v1915_v16, %v1914_v10 }
 0x983   : > { %v1923_v25 = vadd.f32 %v1922_v17, %v1921_v11  ;;  %v1943_v26 = vrot.slane %v1942_v22, 4  ;;  %v1950_v27 = vrot.slane %v1949_v23, 4  ;;  %vm1980_vm3 = vcmask 1042434  }
 0x984   : > { %v1930_v28 = vadd.f32 %v1929_v20, %v1928_v18  ;;  %v1937_v29 = vadd.f32 %v1936_v21, %v1935_v19  ;;  %v1956_v30 = vsel %vm1913_vm1, %v1911_v9, 0.0  ;;  %v1963_v31 = vsel %vm1913_vm1, %v1912_v15, 0.0  ;;  %v1904_v15 = vld [vmem:[#allocation2] sm:$0xff] }
 0x985   : > { %vm1982_vm4 = vcmask 1043459   ;;  %v1917_v32 = vrot.slane %v1916_v24, 2  ;;  %v1924_v33 = vrot.slane %v1923_v25, 2  ;;  %v1944_v34 = vadd.f32 %v1943_v26, %v1942_v22  ;;  %v2054_v22 = vld [vmem:[#allocation4 + $0x10] sm:$0xff] }
 0x986   : > { %v1951_v35 = vadd.f32 %v1950_v27, %v1949_v23  ;;  %vm1984_vm5 = vcmask 1044484   ;;  %v1931_v36 = vrot.slane %v1930_v28, 2  ;;  %v1938_v37 = vrot.slane %v1937_v29, 2  ;;  %v2055_v27 = vld [vmem:[#allocation4 + $0x18] sm:$0xff] }
 0x987   : > { %v1957_v38 = vrot.slane %v1956_v30, 4  ;;  %v1964_v39 = vrot.slane %v1963_v31, 4  ;;  %vm1986_vm6 = vcmask 1045509   ;;  %v1918_v40 = vadd.f32 %v1917_v32, %v1916_v24 }
 0x988   : > { %v1925_v41 = vadd.f32 %v1924_v33, %v1923_v25  ;;  %v1945_v42 = vrot.slane %v1944_v34, 2  ;;  %v1952_v43 = vrot.slane %v1951_v35, 2  ;;  %v1932_v44 = vadd.f32 %v1931_v36, %v1930_v28  ;;  %v2058_v33 = vld [vmem:[#allocation4 + $0x30] sm:$0xff] }
 0x989   : > { %v1939_v45 = vadd.f32 %v1938_v37, %v1937_v29  ;;  %v1958_v46 = vadd.f32 %v1957_v38, %v1956_v30  ;;  %v1965_v47 = vadd.f32 %v1964_v39, %v1963_v31  ;;  %v1919_v48 = vrot.slane %v1918_v40, 1  ;;  %v2056_v29 = vld [vmem:[#allocation4 + $0x20] sm:$0xff]  ;;  %v2057_v31 = vld [vmem:[#allocation4 + $0x28] sm:$0xff] }
 0x98a   : > { %v1926_v49 = vrot.slane %v1925_v41, 1  ;;  %v1946_v50 = vadd.f32 %v1945_v42, %v1944_v34  ;;  %v1953_v51 = vadd.f32 %v1952_v43, %v1951_v35  ;;  %v1933_v52 = vrot.slane %v1932_v44, 1  ;;  %v2059_v35 = vld [vmem:[#allocation4 + $0x38] sm:$0xff] }
 0x98b   : > { %v1940_v53 = vrot.slane %v1939_v45, 1  ;;  %v1959_v54 = vrot.slane %v1958_v46, 2  ;;  %v1966_v55 = vrot.slane %v1965_v47, 2  ;;  %v1920_v56 = vadd.f32 %v1919_v48, %v1918_v40 }
 0x98c   : > { %v1927_v57 = vadd.f32 %v1926_v49, %v1925_v41  ;;  %v1947_v58 = vrot.slane %v1946_v50, 1  ;;  %v1954_v59 = vrot.slane %v1953_v51, 1  ;;  %v1934_v60 = vadd.f32 %v1933_v52, %v1932_v44 }
 0x98d   : > { %v1941_v61 = vadd.f32 %v1940_v53, %v1939_v45  ;;  %v1960_v62 = vadd.f32 %v1959_v54, %v1958_v46  ;;  %v1967_v63 = vadd.f32 %v1966_v55, %v1965_v47  ;;  %v2000_v4 = vshrl.u32 %v1999_v14, 7 }
 0x98e   : > { %v1948_v1 = vadd.f32 %v1947_v58, %v1946_v50  ;;  %v1955_v2 = vadd.f32 %v1954_v59, %v1953_v51  ;;  %v1979_v3 = vsel %vm1978_vm2, %v1927_v57, %v1920_v56  ;;  %v1998_v8 = vunpack.c.0.s8 %v7779_v13 }
 0x98f   : > { %v1961_v5 = vrot.slane %v1960_v62, 1  ;;  %v1968_v6 = vrot.slane %v1967_v63, 1  ;;  %v1981_v7 = vsel %vm1980_vm3, %v1934_v60, %v1979_v3  ;;  %vm1988_vm7 = vcmask 1046534  }
 0x990   : > { %v1983_v9 = vsel %vm1982_vm4, %v1941_v61, %v1981_v7  ;;  %vm1990_vm8 = vcmask 1047559   ;;  %v2001_v14 = vsub.s32 %v1998_v8, %v2000_v4  ;;  %vm2643_vm9 = vcmask 64512  }
 0x991   : > { %v1962_v10 = vadd.f32 %v1961_v5, %v1960_v62  ;;  %v1969_v11 = vadd.f32 %v1968_v6, %v1967_v63  ;;  %v1985_v12 = vsel %vm1984_vm5, %v1948_v1, %v1983_v9 }
 0x992   : > { %v1987_v16 = vsel %vm1986_vm6, %v1955_v2, %v1985_v12 }
 0x993   : > { %v1989_v17 = vsel %vm1988_vm7, %v1962_v10, %v1987_v16 }
 0x994   : > { %v1991_v18 = vsel %vm1990_vm8, %v1969_v11, %v1989_v17 }
 0x995   : > { %v1993_v19 = vadd.f32 %v1991_v18, %v1904_v15 }
 0x997   : > { %v1995_v20 = vcombine.high %v1993_v19, %v1993_v19  ;;  %v2002_v21 = vrot.slane %v1993_v19, %v2001_v14 }
 0x999   : > { %v2018_v13 = vrot.slane %v2002_v21, %v2001_v14  ;;  %v2010_v23 = vcombine.high %v2002_v21, %v2002_v21  ;;  %v2009_v24 = vrot.slane %v1995_v20, %v2001_v14 }
 0x99b   : > { %v2040_v25 = vcombine.high %v2018_v13, %v2018_v13  ;;  %3057 = vmatmul.mubr.f32.vlgmr.msra.gmra.mrb[0].mxu0 %v2018_v13  ;;  %v2032_v26 = vrot.slane %v2010_v23, %v2001_v14  ;;  %v2011_v30 = vcombine.high %v2009_v24, %v2009_v24  ;;  %v2025_v32 = vrot.slane %v2009_v24, %v2001_v14 }
 0x99c   : > { %3065 = vmatpush3.xpose.msra.mxu0 %v2054_v22  ;;  %3066 = vmatprep.mubr.msk.f32.mxu0 %vm5864_vm0, %v5863_v0 }
 0x99d   : > { %v2042_v28 = vcombine.high %v2032_v26, %v2032_v26  ;;  %3062 = vmatmul.mubr.f32.vlgmr.msra.gmra.mrb[0].mxu1 %v2032_v26  ;;  %3074 = vmatprep.subr.mxu0 %v5863_v0  ;;  %v2039_v34 = vrot.slane %v2011_v30, %v2001_v14  ;;  %v2041_v36 = vcombine.high %v2025_v32, %v2025_v32 }
 0x99e   : > { %3070 = vmatpush3.xpose.msra.mxu1 %v2055_v27  ;;  %3071 = vmatprep.mubr.msk.f32.mxu1 %vm5864_vm0, %v5863_v0 }
 0x99f   : > { %3067 = vmatmul.mubr.f32.vlgmr.msra.gmra.mrb[2].mxu0 %v2040_v25  ;;  %3079 = vmatprep.subr.mxu1 %v5863_v0  ;;  %v2043_v37 = vcombine.high %v2039_v34, %v2039_v34 }
 0x9a0   : > { %3075 = vmatpush3.xpose.msra.mxu0 %v2056_v29  ;;  %3076 = vmatprep.mubr.msk.f32.mxu0 %vm5864_vm0, %v5863_v0 }
 0x9a1   : > { %3072 = vmatmul.mubr.f32.vlgmr.msra.gmra.mrb[2].mxu1 %v2042_v28  ;;  %3084 = vmatprep.subr.mxu0 %v5863_v0 }
 0x9a2   : > { %3080 = vmatpush3.xpose.msra.mxu1 %v2057_v31  ;;  %3081 = vmatprep.mubr.msk.f32.mxu1 %vm5864_vm0, %v5863_v0 }
 0x9a3   : > { %3077 = vmatmul.mubr.f32.vlgmr.msra.gmra.mrb[4].mxu0 %v2025_v32  ;;  %3089 = vmatprep.subr.mxu1 %v5863_v0 }
 0x9a4   : > { %3085 = vmatpush3.xpose.msra.mxu0 %v2058_v33  ;;  %3086 = vmatprep.mubr.msk.f32.mxu0 %vm5864_vm0, %v5863_v0 }
 0x9a5   : > { %3082 = vmatmul.mubr.f32.vlgmr.msra.gmra.mrb[4].mxu1 %v2039_v34 }
 0x9a6   : > { %3090 = vmatpush3.xpose.msra.mxu1 %v2059_v35  ;;  %3091 = vmatprep.mubr.msk.f32.mxu1 %vm5864_vm0, %v5863_v0 }
 0x9a7   : > { %3087 = vmatmul.mubr.f32.vlgmr.msra.gmra.mrb[6].mxu0 %v2041_v36 }
 0x9a9   : > { %3092 = vmatmul.mubr.f32.vlgmr.msra.gmra.mrb[6].mxu1 %v2043_v37 }
 0xa6e   : > { %v2126_v38 = vpop.f32.mrb[0].mxu0 }
 0xa6f   : > { %v3058_v39 = vpop.f32.mrb[1].mxu0 }
 0xa70   : > { %v2196_v40 = vpop.f32.mrb[0].mxu1 }
 0xa71   : > { %v2628_v41 = vrot.slane %v2196_v40, 7  ;;  %v3063_v42 = vpop.f32.mrb[1].mxu1 }
 0xa72   : > { %v2266_v43 = vpop.f32.mrb[2].mxu0 }
 0xa73   : > { %v2629_v44 = vsel %vm1978_vm2, %v2628_v41, %v2126_v38  ;;  %v2630_v45 = vrot.slane %v2266_v43, 6  ;;  %v3068_v46 = vpop.f32.mrb[3].mxu0 }
 0xa74   : > { %v2336_v47 = vpop.f32.mrb[2].mxu1 }
 0xa75   : > { %v2631_v48 = vsel %vm1980_vm3, %v2630_v45, %v2629_v44  ;;  %v2632_v49 = vrot.slane %v2336_v47, 5  ;;  %v3073_v50 = vpop.f32.mrb[3].mxu1 }
 0xa76   : > { %v2406_v51 = vpop.f32.mrb[4].mxu0 }
 0xa77   : > { %v2633_v0 = vsel %vm1982_vm4, %v2632_v49, %v2631_v48  ;;  %v2634_v52 = vrot.slane %v2406_v51, 4  ;;  %v3078_v53 = vpop.f32.mrb[5].mxu0 }
 0xa78   : > { %v2476_v54 = vpop.f32.mrb[4].mxu1 }
 0xa79   : > { %v2635_v55 = vsel %vm1984_vm5, %v2634_v52, %v2633_v0  ;;  %v2636_v56 = vrot.slane %v2476_v54, 3  ;;  %v3083_v57 = vpop.f32.mrb[5].mxu1 }
 0xa7a   : > { %v2546_v58 = vpop.f32.mrb[6].mxu0 }
 0xa7b   : > { %v2637_v59 = vsel %vm1986_vm6, %v2636_v56, %v2635_v55  ;;  %v2638_v60 = vrot.slane %v2546_v58, 2  ;;  %v3088_v61 = vpop.f32.mrb[7].mxu0 }
 0xa7c   : > { %v2616_v62 = vpop.f32.mrb[6].mxu1 }
 0xa7d   : > { %v2639_v63 = vsel %vm1988_vm7, %v2638_v60, %v2637_v59  ;;  %v2640_v1 = vrot.slane %v2616_v62, 1  ;;  %v3093_v2 = vpop.f32.mrb[7].mxu1 }
 0xa7f   : > { %v2641_v3 = vsel %vm1990_vm8, %v2640_v1, %v2639_v63 }
 0xa80   : > { %2644 = vst.msk [vmem:[%s7887_s7] sm:$0xff] %vm2643_vm9, %v2641_v3 }
 0xa81 PF: > { %s7888_s20 = sld [smem:[#allocation222_spill]] }
 0xa87   : > { %s30_s10 = sadd.s32 1, %s7888_s20  }
 0xa88   : > { %p27_p5 = scmp.ge.s32.totalorder %s30_s10, 3  }
 0xa8a   :  { %29 = sbr.rel (!%p27_p5) target bundleno = 37 (0x25), region = 660 }
 0xa91   :  { %2664 = vsyncmov [#allocation5] }
 0xa94   :  { %s2665_s26 = vpop.sfrf %2664 }
 0xa95   :  { %p3015_p6 = scmp.ne.s32.totalorder %s2665_s26, 0 }
 0xa97   :  { %2669 = shalt.err (%p3015_p6)  }

</bundles_post_ra>
